<compile_context>
chip_gen: v6e
topology: v6e:2x2x1
jax: 0.10.0
libtpu: 0.0.40
codegen_flags: <defaults>
</compile_context>

<pallas_src>
import math

import jax
import jax.numpy as jnp
from jax.experimental import pallas as pl
from jax.experimental.pallas import tpu as pltpu

# ---- model dimensions ------------------------------------------------------
L_POLY = 30                    # legendre_polys
SH_DIM = L_POLY * L_POLY       # 900 spherical-harmonic features
SH_PAD = 1024                  # lane-aligned (multiple of 128)
HIDDEN = 512                   # SIREN dim_hidden
FC_DIM = 512                   # num_classes / fc_dim
T_IN, T_IN_PAD = 8, 128        # TimeNet input features (padded to lane width)
T_HID, T_HID_PAD = 64, 128     # TimeNet hidden units (padded to lane width)
W0_FIRST = 30.0                # SIREN w0_initial
W0_HID = 1.0                   # SIREN w0 for hidden / last layers


# ---- spherical-harmonics positional encoding (plain JAX, outside the kernel) ----
def spherical_harmonics_encoding(lonlat_deg):
    """Real SH basis Y_l^m, l < L_POLY, of lon/lat points in degrees -> (B, L_POLY**2).

    Uses the stable fully-normalized associated-Legendre recurrence (no factorials),
    so every value stays O(1) in float32.
    """
    lon = lonlat_deg[:, 0].astype(jnp.float32)
    lat = lonlat_deg[:, 1].astype(jnp.float32)
    phi = jnp.deg2rad(lon + 180.0)
    theta = jnp.deg2rad(lat + 90.0)
    ct, st = jnp.cos(theta), jnp.sin(theta)

    p = {(0, 0): jnp.full_like(ct, 0.28209479177387814)}  # sqrt(1 / (4*pi))
    for m in range(1, L_POLY):
        p[(m, m)] = -math.sqrt((2 * m + 1) / (2 * m)) * st * p[(m - 1, m - 1)]
    for m in range(0, L_POLY - 1):
        p[(m + 1, m)] = math.sqrt(2 * m + 3) * ct * p[(m, m)]
    for m in range(0, L_POLY):
        for l in range(m + 2, L_POLY):
            a = math.sqrt((4 * l * l - 1) / (l * l - m * m))
            b = math.sqrt(((2 * l + 1) * (l - 1 - m) * (l - 1 + m))
                          / ((2 * l - 3) * (l * l - m * m)))
            p[(l, m)] = a * ct * p[(l - 1, m)] - b * p[(l - 2, m)]

    sqrt2 = math.sqrt(2.0)
    feats = []
    for l in range(L_POLY):
        for m in range(-l, l + 1):
            if m == 0:
                feats.append(p[(l, 0)])
            elif m > 0:
                feats.append(sqrt2 * jnp.cos(m * phi) * p[(l, m)])
            else:
                feats.append(sqrt2 * jnp.sin(-m * phi) * p[(l, -m)])
    return jnp.stack(feats, axis=-1)  # (B, 900)


# ---- fused Pallas kernel: SIREN location MLP + TimeNet + add ----------------
def spherical_net_kernel(sh_ref, t_ref,
                         ws0_ref, bs0_ref, ws1_ref, bs1_ref, ws2_ref, bs2_ref,
                         ws3_ref, bs3_ref, ws4_ref, bs4_ref,
                         wt1_ref, bt1_ref, wt2_ref, bt2_ref, o_ref):
    f32 = jnp.float32
    # ---- location branch: SIREN over spherical-harmonic features (f32 MXU) ----
    h = jnp.dot(sh_ref[...], ws0_ref[...], preferred_element_type=f32) + bs0_ref[...]
    h = jnp.sin(W0_FIRST * h)
    h = jnp.dot(h, ws1_ref[...], preferred_element_type=f32) + bs1_ref[...]
    h = jnp.sin(W0_HID * h)
    h = jnp.dot(h, ws2_ref[...], preferred_element_type=f32) + bs2_ref[...]
    h = jnp.sin(W0_HID * h)
    h = jnp.dot(h, ws3_ref[...], preferred_element_type=f32) + bs3_ref[...]
    h = jnp.sin(W0_HID * h)
    loc = jnp.dot(h, ws4_ref[...], preferred_element_type=f32) + bs4_ref[...]
    # ---- time branch: TimeNet (epilogue kept in f32 on the VPU) ----
    ht = jnp.dot(t_ref[...], wt1_ref[...], preferred_element_type=f32) + bt1_ref[...]
    ht = jnp.maximum(ht, 0.0)
    tenc = jnp.dot(ht, wt2_ref[...], preferred_element_type=f32) + bt2_ref[...]
    o_ref[...] = (loc + tenc).astype(o_ref.dtype)


# ---- host-side wrapper ------------------------------------------------------
def _round_up(n, m):
    return ((n + m - 1) // m) * m


def _pad2d(a, rows, cols):
    r, c = a.shape
    return jnp.pad(a, ((0, rows - r), (0, cols - c)))


def _pad_params(params):
    (ws0, bs0, ws1, bs1, ws2, bs2, ws3, bs3, ws4, bs4, wt1, bt1, wt2, bt2) = params
    return (
        _pad2d(ws0, SH_PAD, HIDDEN), bs0.reshape(1, HIDDEN),
        ws1, bs1.reshape(1, HIDDEN),
        ws2, bs2.reshape(1, HIDDEN),
        ws3, bs3.reshape(1, HIDDEN),
        ws4, bs4.reshape(1, FC_DIM),
        _pad2d(wt1, T_IN_PAD, T_HID_PAD), _pad2d(bt1.reshape(1, T_HID), 1, T_HID_PAD),
        _pad2d(wt2, T_HID_PAD, FC_DIM), bt2.reshape(1, FC_DIM),
    )


def spherical_net_forward(x, params, *, tm_max=256):
    B = x.shape[0]
    lonlat = x[:, :2]
    date_time = x[:, 2:]
    sh = spherical_harmonics_encoding(lonlat)                      # (B, 900)

    # Batch tile: one grid step for tiny batches, 256-row tiles for large batches.
    tm = min(tm_max, _round_up(B, 8))
    b_pad = _round_up(B, tm)

    sh_p = jnp.zeros((b_pad, SH_PAD), jnp.float32).at[:B, :SH_DIM].set(sh.astype(jnp.float32))
    t_p = jnp.zeros((b_pad, T_IN_PAD), jnp.float32).at[:B, :T_IN].set(date_time.astype(jnp.float32))
    padded = _pad_params(params)

    wspec = lambda r, c: pl.BlockSpec((r, c), lambda i: (0, 0))    # resident weights
    out = pl.pallas_call(
        spherical_net_kernel,
        out_shape=jax.ShapeDtypeStruct((b_pad, FC_DIM), jnp.float32),
        grid_spec=pltpu.PrefetchScalarGridSpec(
            num_scalar_prefetch=0,
            grid=(b_pad // tm,),
            in_specs=[
                pl.BlockSpec((tm, SH_PAD), lambda i: (i, 0)),      # SH feature tile
                pl.BlockSpec((tm, T_IN_PAD), lambda i: (i, 0)),    # time feature tile
                wspec(SH_PAD, HIDDEN), wspec(1, HIDDEN),           # SIREN layer 0
                wspec(HIDDEN, HIDDEN), wspec(1, HIDDEN),           # SIREN layer 1
                wspec(HIDDEN, HIDDEN), wspec(1, HIDDEN),           # SIREN layer 2
                wspec(HIDDEN, HIDDEN), wspec(1, HIDDEN),           # SIREN layer 3
                wspec(HIDDEN, FC_DIM), wspec(1, FC_DIM),           # SIREN final linear
                wspec(T_IN_PAD, T_HID_PAD), wspec(1, T_HID_PAD),   # TimeNet fc1
                wspec(T_HID_PAD, FC_DIM), wspec(1, FC_DIM),        # TimeNet fc2
            ],
            out_specs=pl.BlockSpec((tm, FC_DIM), lambda i: (i, 0)),
        ),
        compiler_params=pltpu.CompilerParams(
            dimension_semantics=("parallel",),   # shard batch tiles across TCs (v7x)
            vmem_limit_bytes=48 << 20,           # fits v7x 64 MiB, raises v5e default
        ),
    )(sh_p, t_p, *padded)
    return out[:B]


# ---- pure-JAX reference (same math, HIGHEST-precision matmuls) --------------
def reference_forward(x, params):
    (ws0, bs0, ws1, bs1, ws2, bs2, ws3, bs3, ws4, bs4, wt1, bt1, wt2, bt2) = params
    dot = lambda a, b: jnp.dot(a, b, precision=jax.lax.Precision.HIGHEST)
    lonlat = x[:, :2]
    date_time = x[:, 2:]
    sh = spherical_harmonics_encoding(lonlat)
    h = jnp.sin(W0_FIRST * (dot(sh, ws0) + bs0))
    h = jnp.sin(W0_HID * (dot(h, ws1) + bs1))
    h = jnp.sin(W0_HID * (dot(h, ws2) + bs2))
    h = jnp.sin(W0_HID * (dot(h, ws3) + bs3))
    loc = dot(h, ws4) + bs4
    ht = jnp.maximum(dot(date_time, wt1) + bt1, 0.0)
    return loc + dot(ht, wt2) + bt2


# ---- deterministic synthetic params (weights stored as (in, out) = nn.Linear.T) ----
def init_params(key):
    ks = jax.random.split(key, 14)

    def u(k, shape, lim):
        return jax.random.uniform(k, shape, jnp.float32, -lim, lim)

    lim0 = 1.0 / SH_DIM                          # SIREN first-layer init
    limh = math.sqrt(6.0 / HIDDEN) / W0_HID      # SIREN hidden / last-layer init
    ws0, bs0 = u(ks[0], (SH_DIM, HIDDEN), lim0), u(ks[1], (HIDDEN,), lim0)
    ws1, bs1 = u(ks[2], (HIDDEN, HIDDEN), limh), u(ks[3], (HIDDEN,), limh)
    ws2, bs2 = u(ks[4], (HIDDEN, HIDDEN), limh), u(ks[5], (HIDDEN,), limh)
    ws3, bs3 = u(ks[6], (HIDDEN, HIDDEN), limh), u(ks[7], (HIDDEN,), limh)
    ws4, bs4 = u(ks[8], (HIDDEN, FC_DIM), limh), u(ks[9], (FC_DIM,), limh)
    limt1, limt2 = 1.0 / math.sqrt(T_IN), 1.0 / math.sqrt(T_HID)
    wt1, bt1 = u(ks[10], (T_IN, T_HID), limt1), u(ks[11], (T_HID,), limt1)
    wt2, bt2 = u(ks[12], (T_HID, FC_DIM), limt2), u(ks[13], (FC_DIM,), limt2)
    return (ws0, bs0, ws1, bs1, ws2, bs2, ws3, bs3, ws4, bs4, wt1, bt1, wt2, bt2)


if __name__ == "__main__":
    key = jax.random.PRNGKey(0)
    kx, kp = jax.random.split(key)
    k_lon, k_lat, k_time = jax.random.split(kx, 3)

    B = 4
    lon = jax.random.uniform(k_lon, (B, 1), jnp.float32, -180.0, 180.0)
    lat = jax.random.uniform(k_lat, (B, 1), jnp.float32, -90.0, 90.0)
    date_time = jax.random.normal(k_time, (B, T_IN), jnp.float32)
    x = jnp.concatenate([lon, lat, date_time], axis=-1)   # (B, 10): [lon, lat, 8 time feats]

    params = init_params(kp)

    out = jax.jit(spherical_net_forward)(x, params)
    out = jax.block_until_ready(out)

    ref = jax.block_until_ready(jax.jit(reference_forward)(x, params))

    assert out.shape == (B, FC_DIM)
    assert jnp.allclose(out, ref, atol=3e-3, rtol=3e-3), float(jnp.max(jnp.abs(out - ref)))
    print("KERNEL_OK")
</pallas_src>

<mosaic_0001>
module attributes {stable_mosaic.version = 11 : i64} {
  func.func @spherical_net_kernel(%arg0: i32, %arg1: memref<8x1024xf32, #tpu.memory_space<vmem>>, %arg2: memref<8x128xf32, #tpu.memory_space<vmem>>, %arg3: memref<1024x512xf32, #tpu.memory_space<vmem>>, %arg4: memref<1x512xf32, #tpu.memory_space<vmem>>, %arg5: memref<512x512xf32, #tpu.memory_space<vmem>>, %arg6: memref<1x512xf32, #tpu.memory_space<vmem>>, %arg7: memref<512x512xf32, #tpu.memory_space<vmem>>, %arg8: memref<1x512xf32, #tpu.memory_space<vmem>>, %arg9: memref<512x512xf32, #tpu.memory_space<vmem>>, %arg10: memref<1x512xf32, #tpu.memory_space<vmem>>, %arg11: memref<512x512xf32, #tpu.memory_space<vmem>>, %arg12: memref<1x512xf32, #tpu.memory_space<vmem>>, %arg13: memref<128x128xf32, #tpu.memory_space<vmem>>, %arg14: memref<1x128xf32, #tpu.memory_space<vmem>>, %arg15: memref<128x512xf32, #tpu.memory_space<vmem>>, %arg16: memref<1x512xf32, #tpu.memory_space<vmem>>, %arg17: memref<8x512xf32, #tpu.memory_space<vmem>>) attributes {dimension_semantics = [#tpu.dimension_semantics<parallel>], iteration_bounds = array<i64: 1>, scalar_prefetch = 0 : i64, scratch_operands = 0 : i64, tpu.core_type = #tpu.core_type<tc>, window_params = [{transform_indices = @transform_0, window_bounds = array<i64: 8, 1024>}, {transform_indices = @transform_1, window_bounds = array<i64: 8, 128>}, {pipeline_mode = #tpu.pipeline_mode<synchronous>, transform_indices = @transform_2, window_bounds = array<i64: 1024, 512>}, {pipeline_mode = #tpu.pipeline_mode<synchronous>, transform_indices = @transform_3, window_bounds = array<i64: 1, 512>}, {pipeline_mode = #tpu.pipeline_mode<synchronous>, transform_indices = @transform_4, window_bounds = array<i64: 512, 512>}, {pipeline_mode = #tpu.pipeline_mode<synchronous>, transform_indices = @transform_5, window_bounds = array<i64: 1, 512>}, {pipeline_mode = #tpu.pipeline_mode<synchronous>, transform_indices = @transform_6, window_bounds = array<i64: 512, 512>}, {pipeline_mode = #tpu.pipeline_mode<synchronous>, transform_indices = @transform_7, window_bounds = array<i64: 1, 512>}, {pipeline_mode = #tpu.pipeline_mode<synchronous>, transform_indices = @transform_8, window_bounds = array<i64: 512, 512>}, {pipeline_mode = #tpu.pipeline_mode<synchronous>, transform_indices = @transform_9, window_bounds = array<i64: 1, 512>}, {pipeline_mode = #tpu.pipeline_mode<synchronous>, transform_indices = @transform_10, window_bounds = array<i64: 512, 512>}, {pipeline_mode = #tpu.pipeline_mode<synchronous>, transform_indices = @transform_11, window_bounds = array<i64: 1, 512>}, {pipeline_mode = #tpu.pipeline_mode<synchronous>, transform_indices = @transform_12, window_bounds = array<i64: 128, 128>}, {pipeline_mode = #tpu.pipeline_mode<synchronous>, transform_indices = @transform_13, window_bounds = array<i64: 1, 128>}, {pipeline_mode = #tpu.pipeline_mode<synchronous>, transform_indices = @transform_14, window_bounds = array<i64: 128, 512>}, {pipeline_mode = #tpu.pipeline_mode<synchronous>, transform_indices = @transform_15, window_bounds = array<i64: 1, 512>}, {transform_indices = @transform_16, window_bounds = array<i64: 8, 512>}]} {
    %c0 = arith.constant 0 : index
    %c0_0 = arith.constant 0 : index
    %0 = vector.load %arg1[%c0, %c0_0] : memref<8x1024xf32, #tpu.memory_space<vmem>>, vector<8x1024xf32>
    %c0_1 = arith.constant 0 : index
    %c0_2 = arith.constant 0 : index
    %1 = vector.load %arg3[%c0_1, %c0_2] : memref<1024x512xf32, #tpu.memory_space<vmem>>, vector<1024x512xf32>
    %cst = arith.constant dense<0.000000e+00> : vector<8x512xf32>
    %2 = tpu.matmul %0, %1, %cst {dimension_numbers = #tpu.dot_dimension_numbers<[1], [0], [0], [1], [0, 0, 1, 1], [], []>} : vector<8x1024xf32>, vector<1024x512xf32>, vector<8x512xf32> -> vector<8x512xf32>
    %c0_3 = arith.constant 0 : index
    %c0_4 = arith.constant 0 : index
    %3 = vector.load %arg4[%c0_3, %c0_4] : memref<1x512xf32, #tpu.memory_space<vmem>>, vector<1x512xf32>
    %4 = vector.broadcast %3 : vector<1x512xf32> to vector<8x512xf32>
    %5 = arith.addf %2, %4 : vector<8x512xf32>
    %cst_5 = arith.constant 3.000000e+01 : f32
    %6 = vector.broadcast %cst_5 : f32 to vector<8x512xf32>
    %7 = arith.mulf %6, %5 : vector<8x512xf32>
    %8 = math.sin %7 : vector<8x512xf32>
    %c0_6 = arith.constant 0 : index
    %c0_7 = arith.constant 0 : index
    %9 = vector.load %arg5[%c0_6, %c0_7] : memref<512x512xf32, #tpu.memory_space<vmem>>, vector<512x512xf32>
    %cst_8 = arith.constant dense<0.000000e+00> : vector<8x512xf32>
    %10 = tpu.matmul %8, %9, %cst_8 {dimension_numbers = #tpu.dot_dimension_numbers<[1], [0], [0], [1], [0, 0, 1, 1], [], []>} : vector<8x512xf32>, vector<512x512xf32>, vector<8x512xf32> -> vector<8x512xf32>
    %c0_9 = arith.constant 0 : index
    %c0_10 = arith.constant 0 : index
    %11 = vector.load %arg6[%c0_9, %c0_10] : memref<1x512xf32, #tpu.memory_space<vmem>>, vector<1x512xf32>
    %12 = vector.broadcast %11 : vector<1x512xf32> to vector<8x512xf32>
    %13 = arith.addf %10, %12 : vector<8x512xf32>
    %cst_11 = arith.constant 1.000000e+00 : f32
    %14 = vector.broadcast %cst_11 : f32 to vector<8x512xf32>
    %15 = arith.mulf %14, %13 : vector<8x512xf32>
    %16 = math.sin %15 : vector<8x512xf32>
    %c0_12 = arith.constant 0 : index
    %c0_13 = arith.constant 0 : index
    %17 = vector.load %arg7[%c0_12, %c0_13] : memref<512x512xf32, #tpu.memory_space<vmem>>, vector<512x512xf32>
    %cst_14 = arith.constant dense<0.000000e+00> : vector<8x512xf32>
    %18 = tpu.matmul %16, %17, %cst_14 {dimension_numbers = #tpu.dot_dimension_numbers<[1], [0], [0], [1], [0, 0, 1, 1], [], []>} : vector<8x512xf32>, vector<512x512xf32>, vector<8x512xf32> -> vector<8x512xf32>
    %c0_15 = arith.constant 0 : index
    %c0_16 = arith.constant 0 : index
    %19 = vector.load %arg8[%c0_15, %c0_16] : memref<1x512xf32, #tpu.memory_space<vmem>>, vector<1x512xf32>
    %20 = vector.broadcast %19 : vector<1x512xf32> to vector<8x512xf32>
    %21 = arith.addf %18, %20 : vector<8x512xf32>
    %cst_17 = arith.constant 1.000000e+00 : f32
    %22 = vector.broadcast %cst_17 : f32 to vector<8x512xf32>
    %23 = arith.mulf %22, %21 : vector<8x512xf32>
    %24 = math.sin %23 : vector<8x512xf32>
    %c0_18 = arith.constant 0 : index
    %c0_19 = arith.constant 0 : index
    %25 = vector.load %arg9[%c0_18, %c0_19] : memref<512x512xf32, #tpu.memory_space<vmem>>, vector<512x512xf32>
    %cst_20 = arith.constant dense<0.000000e+00> : vector<8x512xf32>
    %26 = tpu.matmul %24, %25, %cst_20 {dimension_numbers = #tpu.dot_dimension_numbers<[1], [0], [0], [1], [0, 0, 1, 1], [], []>} : vector<8x512xf32>, vector<512x512xf32>, vector<8x512xf32> -> vector<8x512xf32>
    %c0_21 = arith.constant 0 : index
    %c0_22 = arith.constant 0 : index
    %27 = vector.load %arg10[%c0_21, %c0_22] : memref<1x512xf32, #tpu.memory_space<vmem>>, vector<1x512xf32>
    %28 = vector.broadcast %27 : vector<1x512xf32> to vector<8x512xf32>
    %29 = arith.addf %26, %28 : vector<8x512xf32>
    %cst_23 = arith.constant 1.000000e+00 : f32
    %30 = vector.broadcast %cst_23 : f32 to vector<8x512xf32>
    %31 = arith.mulf %30, %29 : vector<8x512xf32>
    %32 = math.sin %31 : vector<8x512xf32>
    %c0_24 = arith.constant 0 : index
    %c0_25 = arith.constant 0 : index
    %33 = vector.load %arg11[%c0_24, %c0_25] : memref<512x512xf32, #tpu.memory_space<vmem>>, vector<512x512xf32>
    %cst_26 = arith.constant dense<0.000000e+00> : vector<8x512xf32>
    %34 = tpu.matmul %32, %33, %cst_26 {dimension_numbers = #tpu.dot_dimension_numbers<[1], [0], [0], [1], [0, 0, 1, 1], [], []>} : vector<8x512xf32>, vector<512x512xf32>, vector<8x512xf32> -> vector<8x512xf32>
    %c0_27 = arith.constant 0 : index
    %c0_28 = arith.constant 0 : index
    %35 = vector.load %arg12[%c0_27, %c0_28] : memref<1x512xf32, #tpu.memory_space<vmem>>, vector<1x512xf32>
    %36 = vector.broadcast %35 : vector<1x512xf32> to vector<8x512xf32>
    %37 = arith.addf %34, %36 : vector<8x512xf32>
    %c0_29 = arith.constant 0 : index
    %c0_30 = arith.constant 0 : index
    %38 = vector.load %arg2[%c0_29, %c0_30] : memref<8x128xf32, #tpu.memory_space<vmem>>, vector<8x128xf32>
    %c0_31 = arith.constant 0 : index
    %c0_32 = arith.constant 0 : index
    %39 = vector.load %arg13[%c0_31, %c0_32] : memref<128x128xf32, #tpu.memory_space<vmem>>, vector<128x128xf32>
    %cst_33 = arith.constant dense<0.000000e+00> : vector<8x128xf32>
    %40 = tpu.matmul %38, %39, %cst_33 {dimension_numbers = #tpu.dot_dimension_numbers<[1], [0], [0], [1], [0, 0, 1, 1], [], []>} : vector<8x128xf32>, vector<128x128xf32>, vector<8x128xf32> -> vector<8x128xf32>
    %c0_34 = arith.constant 0 : index
    %c0_35 = arith.constant 0 : index
    %41 = vector.load %arg14[%c0_34, %c0_35] : memref<1x128xf32, #tpu.memory_space<vmem>>, vector<1x128xf32>
    %42 = vector.broadcast %41 : vector<1x128xf32> to vector<8x128xf32>
    %43 = arith.addf %40, %42 : vector<8x128xf32>
    %cst_36 = arith.constant 0.000000e+00 : f32
    %44 = vector.broadcast %cst_36 : f32 to vector<8x128xf32>
    %45 = arith.maximumf %43, %44 : vector<8x128xf32>
    %c0_37 = arith.constant 0 : index
    %c0_38 = arith.constant 0 : index
    %46 = vector.load %arg15[%c0_37, %c0_38] : memref<128x512xf32, #tpu.memory_space<vmem>>, vector<128x512xf32>
    %cst_39 = arith.constant dense<0.000000e+00> : vector<8x512xf32>
    %47 = tpu.matmul %45, %46, %cst_39 {dimension_numbers = #tpu.dot_dimension_numbers<[1], [0], [0], [1], [0, 0, 1, 1], [], []>} : vector<8x128xf32>, vector<128x512xf32>, vector<8x512xf32> -> vector<8x512xf32>
    %c0_40 = arith.constant 0 : index
    %c0_41 = arith.constant 0 : index
    %48 = vector.load %arg16[%c0_40, %c0_41] : memref<1x512xf32, #tpu.memory_space<vmem>>, vector<1x512xf32>
    %49 = vector.broadcast %48 : vector<1x512xf32> to vector<8x512xf32>
    %50 = arith.addf %47, %49 : vector<8x512xf32>
    %51 = arith.addf %37, %50 : vector<8x512xf32>
    %c0_42 = arith.constant 0 : index
    %c0_43 = arith.constant 0 : index
    %52 = vector.load %arg17[%c0_42, %c0_43] : memref<8x512xf32, #tpu.memory_space<vmem>>, vector<8x512xf32>
    tpu.vector_store %arg17[%c0_42, %c0_43], %51 {strides = array<i32>} : memref<8x512xf32, #tpu.memory_space<vmem>>, vector<8x512xf32>,
    return
  }
  func.func @transform_0(%arg0: i32) -> (i32, i32) {
    %c0_i32 = arith.constant 0 : i32
    %c0_i32_0 = arith.constant 0 : i32
    return %arg0, %c0_i32 : i32, i32
  }
  func.func @transform_1(%arg0: i32) -> (i32, i32) {
    %c0_i32 = arith.constant 0 : i32
    %c0_i32_0 = arith.constant 0 : i32
    return %arg0, %c0_i32 : i32, i32
  }
  func.func @transform_2(%arg0: i32) -> (i32, i32) {
    %c0_i32 = arith.constant 0 : i32
    %c0_i32_0 = arith.constant 0 : i32
    %c0_i32_1 = arith.constant 0 : i32
    return %c0_i32, %c0_i32_0 : i32, i32
  }
  func.func @transform_3(%arg0: i32) -> (i32, i32) {
    %c0_i32 = arith.constant 0 : i32
    %c0_i32_0 = arith.constant 0 : i32
    %c0_i32_1 = arith.constant 0 : i32
    return %c0_i32, %c0_i32_0 : i32, i32
  }
  func.func @transform_4(%arg0: i32) -> (i32, i32) {
    %c0_i32 = arith.constant 0 : i32
    %c0_i32_0 = arith.constant 0 : i32
    %c0_i32_1 = arith.constant 0 : i32
    return %c0_i32, %c0_i32_0 : i32, i32
  }
  func.func @transform_5(%arg0: i32) -> (i32, i32) {
    %c0_i32 = arith.constant 0 : i32
    %c0_i32_0 = arith.constant 0 : i32
    %c0_i32_1 = arith.constant 0 : i32
    return %c0_i32, %c0_i32_0 : i32, i32
  }
  func.func @transform_6(%arg0: i32) -> (i32, i32) {
    %c0_i32 = arith.constant 0 : i32
    %c0_i32_0 = arith.constant 0 : i32
    %c0_i32_1 = arith.constant 0 : i32
    return %c0_i32, %c0_i32_0 : i32, i32
  }
  func.func @transform_7(%arg0: i32) -> (i32, i32) {
    %c0_i32 = arith.constant 0 : i32
    %c0_i32_0 = arith.constant 0 : i32
    %c0_i32_1 = arith.constant 0 : i32
    return %c0_i32, %c0_i32_0 : i32, i32
  }
  func.func @transform_8(%arg0: i32) -> (i32, i32) {
    %c0_i32 = arith.constant 0 : i32
    %c0_i32_0 = arith.constant 0 : i32
    %c0_i32_1 = arith.constant 0 : i32
    return %c0_i32, %c0_i32_0 : i32, i32
  }
  func.func @transform_9(%arg0: i32) -> (i32, i32) {
    %c0_i32 = arith.constant 0 : i32
    %c0_i32_0 = arith.constant 0 : i32
    %c0_i32_1 = arith.constant 0 : i32
    return %c0_i32, %c0_i32_0 : i32, i32
  }
  func.func @transform_10(%arg0: i32) -> (i32, i32) {
    %c0_i32 = arith.constant 0 : i32
    %c0_i32_0 = arith.constant 0 : i32
    %c0_i32_1 = arith.constant 0 : i32
    return %c0_i32, %c0_i32_0 : i32, i32
  }
  func.func @transform_11(%arg0: i32) -> (i32, i32) {
    %c0_i32 = arith.constant 0 : i32
    %c0_i32_0 = arith.constant 0 : i32
    %c0_i32_1 = arith.constant 0 : i32
    return %c0_i32, %c0_i32_0 : i32, i32
  }
  func.func @transform_12(%arg0: i32) -> (i32, i32) {
    %c0_i32 = arith.constant 0 : i32
    %c0_i32_0 = arith.constant 0 : i32
    %c0_i32_1 = arith.constant 0 : i32
    return %c0_i32, %c0_i32_0 : i32, i32
  }
  func.func @transform_13(%arg0: i32) -> (i32, i32) {
    %c0_i32 = arith.constant 0 : i32
    %c0_i32_0 = arith.constant 0 : i32
    %c0_i32_1 = arith.constant 0 : i32
    return %c0_i32, %c0_i32_0 : i32, i32
  }
  func.func @transform_14(%arg0: i32) -> (i32, i32) {
    %c0_i32 = arith.constant 0 : i32
    %c0_i32_0 = arith.constant 0 : i32
    %c0_i32_1 = arith.constant 0 : i32
    return %c0_i32, %c0_i32_0 : i32, i32
  }
  func.func @transform_15(%arg0: i32) -> (i32, i32) {
    %c0_i32 = arith.constant 0 : i32
    %c0_i32_0 = arith.constant 0 : i32
    %c0_i32_1 = arith.constant 0 : i32
    return %c0_i32, %c0_i32_0 : i32, i32
  }
  func.func @transform_16(%arg0: i32) -> (i32, i32) {
    %c0_i32 = arith.constant 0 : i32
    %c0_i32_0 = arith.constant 0 : i32
    return %arg0, %c0_i32 : i32, i32
  }
}

</mosaic_0001>

<bundles_post_ra>
// kernel: spherical_net_forward.1
= control target key start
LH: loop header
LB: loop body
LE: loop exit
PB: predicated region body
PF: predicated region fallthrough
CT: control target
= control target key end

     0   :  { %s12000_s2 = inlined_call_operand.vmem [shape: f32[1024,512], index: 2, kind: input, shape index: {}]   ;;  %s12001_s0 = inlined_call_operand.vmem [shape: f32[8,1024], index: 0, kind: input, shape index: {}]   ;;  %s12002_s4 = inlined_call_operand.vmem [shape: f32[512,512], index: 4, kind: input, shape index: {}]   ;;  %s12003_s3 = inlined_call_operand.vmem [shape: f32[1,512], index: 3, kind: input, shape index: {}]   ;;  %s12004_s6 = inlined_call_operand.vmem [shape: f32[512,512], index: 6, kind: input, shape index: {}]   ;;  %s12005_s5 = inlined_call_operand.vmem [shape: f32[1,512], index: 5, kind: input, shape index: {}]   ;;  %s12006_s8 = inlined_call_operand.vmem [shape: f32[512,512], index: 8, kind: input, shape index: {}]   ;;  %s12007_s7 = inlined_call_operand.vmem [shape: f32[1,512], index: 7, kind: input, shape index: {}]   ;;  %s12008_s10 = inlined_call_operand.vmem [shape: f32[512,512], index: 10, kind: input, shape index: {}]   ;;  %s12009_s9 = inlined_call_operand.vmem [shape: f32[1,512], index: 9, kind: input, shape index: {}]   ;;  %s12010_s12 = inlined_call_operand.vmem [shape: f32[128,128], index: 12, kind: input, shape index: {}]   ;;  %s12011_s1 = inlined_call_operand.vmem [shape: f32[8,128], index: 1, kind: input, shape index: {}]   ;;  %s12012_s14 = inlined_call_operand.vmem [shape: f32[128,512], index: 14, kind: input, shape index: {}]   ;;  %s12013_s13 = inlined_call_operand.vmem [shape: f32[1,128], index: 13, kind: input, shape index: {}]   ;;  %s12014_s11 = inlined_call_operand.vmem [shape: f32[1,512], index: 11, kind: input, shape index: {}]   ;;  %s12015_s15 = inlined_call_operand.vmem [shape: f32[1,512], index: 15, kind: input, shape index: {}]   ;;  %s12016_s16 = inlined_call_operand.vmem [shape: f32[8,512], index: 16, kind: output, shape index: {}]  }
   0x1   :  { %12018 = sst [smem:[#allocation2_spill]] %s12000_s2 }
   0x2   :  { %s12019_s23 = sld [smem:[#allocation2_spill]] }
   0x8   :  { %v122_v0 = vld [vmem:[%s12019_s23 + $0x1e8] sm:$0xff]  ;;  %v121_v2 = vld [vmem:[%s12019_s23 + $0x1e0] sm:$0xff] }
   0x9   :  { %v250_v1 = vld [vmem:[%s12019_s23 + $0x5e8] sm:$0xff]  ;;  %595 = vmatprep.subr.mxu0 %v122_v0  ;;  %v249_v3 = vld [vmem:[%s12019_s23 + $0x5e0] sm:$0xff] }
   0xa   :  { %666 = vmatprep.subr.mxu1 %v250_v1  ;;  %v118_v4 = vld [vmem:[%s12019_s23 + $0x1c8] sm:$0xff]  ;;  %596 = vmatpush1.msra.mxu0 %v121_v2  ;;  %v117_v6 = vld [vmem:[%s12019_s23 + $0x1c0] sm:$0xff] }
   0xb   :  { %v246_v5 = vld [vmem:[%s12019_s23 + $0x5c8] sm:$0xff]  ;;  %667 = vmatpush1.msra.mxu1 %v249_v3  ;;  %v245_v7 = vld [vmem:[%s12019_s23 + $0x5c0] sm:$0xff]  ;;  %597 = vmatprep.subr.mxu0 %v118_v4 }
   0xc   :  { %v114_v8 = vld [vmem:[%s12019_s23 + $0x1a8] sm:$0xff]  ;;  %668 = vmatprep.subr.mxu1 %v246_v5  ;;  %v113_v10 = vld [vmem:[%s12019_s23 + $0x1a0] sm:$0xff]  ;;  %598 = vmatpush1.msra.mxu0 %v117_v6 }
   0xd   :  { %v242_v9 = vld [vmem:[%s12019_s23 + $0x5a8] sm:$0xff]  ;;  %v241_v11 = vld [vmem:[%s12019_s23 + $0x5a0] sm:$0xff]  ;;  %669 = vmatpush1.msra.mxu1 %v245_v7  ;;  %599 = vmatprep.subr.mxu0 %v114_v8 }
   0xe   :  { %v110_v12 = vld [vmem:[%s12019_s23 + $0x188] sm:$0xff]  ;;  %670 = vmatprep.subr.mxu1 %v242_v9  ;;  %v109_v14 = vld [vmem:[%s12019_s23 + $0x180] sm:$0xff]  ;;  %600 = vmatpush1.msra.mxu0 %v113_v10 }
   0xf   :  { %v238_v13 = vld [vmem:[%s12019_s23 + $0x588] sm:$0xff]  ;;  %v237_v15 = vld [vmem:[%s12019_s23 + $0x580] sm:$0xff]  ;;  %671 = vmatpush1.msra.mxu1 %v241_v11  ;;  %601 = vmatprep.subr.mxu0 %v110_v12 }
  0x10   :  { %v106_v16 = vld [vmem:[%s12019_s23 + $0x168] sm:$0xff]  ;;  %672 = vmatprep.subr.mxu1 %v238_v13  ;;  %v105_v18 = vld [vmem:[%s12019_s23 + $0x160] sm:$0xff]  ;;  %602 = vmatpush1.msra.mxu0 %v109_v14 }
  0x11   :  { %v234_v17 = vld [vmem:[%s12019_s23 + $0x568] sm:$0xff]  ;;  %v233_v19 = vld [vmem:[%s12019_s23 + $0x560] sm:$0xff]  ;;  %673 = vmatpush1.msra.mxu1 %v237_v15  ;;  %603 = vmatprep.subr.mxu0 %v106_v16 }
  0x12   :  { %v102_v20 = vld [vmem:[%s12019_s23 + $0x148] sm:$0xff]  ;;  %674 = vmatprep.subr.mxu1 %v234_v17  ;;  %v101_v22 = vld [vmem:[%s12019_s23 + $0x140] sm:$0xff]  ;;  %604 = vmatpush1.msra.mxu0 %v105_v18 }
  0x13   :  { %v230_v21 = vld [vmem:[%s12019_s23 + $0x548] sm:$0xff]  ;;  %v229_v23 = vld [vmem:[%s12019_s23 + $0x540] sm:$0xff]  ;;  %675 = vmatpush1.msra.mxu1 %v233_v19  ;;  %605 = vmatprep.subr.mxu0 %v102_v20 }
  0x14   :  { %v98_v24 = vld [vmem:[%s12019_s23 + $0x128] sm:$0xff]  ;;  %676 = vmatprep.subr.mxu1 %v230_v21  ;;  %v97_v26 = vld [vmem:[%s12019_s23 + $0x120] sm:$0xff]  ;;  %606 = vmatpush1.msra.mxu0 %v101_v22 }
  0x15   :  { %v226_v25 = vld [vmem:[%s12019_s23 + $0x528] sm:$0xff]  ;;  %v225_v27 = vld [vmem:[%s12019_s23 + $0x520] sm:$0xff]  ;;  %677 = vmatpush1.msra.mxu1 %v229_v23  ;;  %607 = vmatprep.subr.mxu0 %v98_v24 }
  0x16   :  { %v94_v28 = vld [vmem:[%s12019_s23 + $0x108] sm:$0xff]  ;;  %678 = vmatprep.subr.mxu1 %v226_v25  ;;  %v93_v30 = vld [vmem:[%s12019_s23 + $0x100] sm:$0xff]  ;;  %608 = vmatpush1.msra.mxu0 %v97_v26 }
  0x17   :  { %v222_v29 = vld [vmem:[%s12019_s23 + $0x508] sm:$0xff]  ;;  %v221_v31 = vld [vmem:[%s12019_s23 + $0x500] sm:$0xff]  ;;  %679 = vmatpush1.msra.mxu1 %v225_v27  ;;  %609 = vmatprep.subr.mxu0 %v94_v28 }
  0x18   :  { %v90_v32 = vld [vmem:[%s12019_s23 + $0xe8] sm:$0xff]  ;;  %680 = vmatprep.subr.mxu1 %v222_v29  ;;  %v89_v34 = vld [vmem:[%s12019_s23 + $0xe0] sm:$0xff]  ;;  %610 = vmatpush1.msra.mxu0 %v93_v30 }
  0x19   :  { %v218_v33 = vld [vmem:[%s12019_s23 + $0x4e8] sm:$0xff]  ;;  %v217_v35 = vld [vmem:[%s12019_s23 + $0x4e0] sm:$0xff]  ;;  %681 = vmatpush1.msra.mxu1 %v221_v31  ;;  %611 = vmatprep.subr.mxu0 %v90_v32 }
  0x1a   :  { %v86_v36 = vld [vmem:[%s12019_s23 + $0xc8] sm:$0xff]  ;;  %682 = vmatprep.subr.mxu1 %v218_v33  ;;  %v85_v38 = vld [vmem:[%s12019_s23 + $0xc0] sm:$0xff]  ;;  %612 = vmatpush1.msra.mxu0 %v89_v34 }
  0x1b   :  { %v214_v37 = vld [vmem:[%s12019_s23 + $0x4c8] sm:$0xff]  ;;  %v213_v39 = vld [vmem:[%s12019_s23 + $0x4c0] sm:$0xff]  ;;  %683 = vmatpush1.msra.mxu1 %v217_v35  ;;  %613 = vmatprep.subr.mxu0 %v86_v36 }
  0x1c   :  { %v82_v40 = vld [vmem:[%s12019_s23 + $0xa8] sm:$0xff]  ;;  %684 = vmatprep.subr.mxu1 %v214_v37  ;;  %v81_v42 = vld [vmem:[%s12019_s23 + $0xa0] sm:$0xff]  ;;  %614 = vmatpush1.msra.mxu0 %v85_v38 }
  0x1d   :  { %v210_v41 = vld [vmem:[%s12019_s23 + $0x4a8] sm:$0xff]  ;;  %v209_v43 = vld [vmem:[%s12019_s23 + $0x4a0] sm:$0xff]  ;;  %685 = vmatpush1.msra.mxu1 %v213_v39  ;;  %615 = vmatprep.subr.mxu0 %v82_v40 }
  0x1e   :  { %v78_v44 = vld [vmem:[%s12019_s23 + $0x88] sm:$0xff]  ;;  %686 = vmatprep.subr.mxu1 %v210_v41  ;;  %v77_v46 = vld [vmem:[%s12019_s23 + $0x80] sm:$0xff]  ;;  %616 = vmatpush1.msra.mxu0 %v81_v42 }
  0x1f   :  { %v206_v45 = vld [vmem:[%s12019_s23 + $0x488] sm:$0xff]  ;;  %v205_v47 = vld [vmem:[%s12019_s23 + $0x480] sm:$0xff]  ;;  %687 = vmatpush1.msra.mxu1 %v209_v43  ;;  %617 = vmatprep.subr.mxu0 %v78_v44 }
  0x20   :  { %v74_v48 = vld [vmem:[%s12019_s23 + $0x68] sm:$0xff]  ;;  %688 = vmatprep.subr.mxu1 %v206_v45  ;;  %v73_v50 = vld [vmem:[%s12019_s23 + $0x60] sm:$0xff]  ;;  %618 = vmatpush1.msra.mxu0 %v77_v46 }
  0x21   :  { %v202_v49 = vld [vmem:[%s12019_s23 + $0x468] sm:$0xff]  ;;  %v201_v51 = vld [vmem:[%s12019_s23 + $0x460] sm:$0xff]  ;;  %689 = vmatpush1.msra.mxu1 %v205_v47  ;;  %619 = vmatprep.subr.mxu0 %v74_v48 }
  0x22   :  { %v70_v52 = vld [vmem:[%s12019_s23 + $0x48] sm:$0xff]  ;;  %690 = vmatprep.subr.mxu1 %v202_v49  ;;  %v69_v54 = vld [vmem:[%s12019_s23 + $0x40] sm:$0xff]  ;;  %620 = vmatpush1.msra.mxu0 %v73_v50 }
  0x23   :  { %v198_v53 = vld [vmem:[%s12019_s23 + $0x448] sm:$0xff]  ;;  %v197_v55 = vld [vmem:[%s12019_s23 + $0x440] sm:$0xff]  ;;  %691 = vmatpush1.msra.mxu1 %v201_v51  ;;  %621 = vmatprep.subr.mxu0 %v70_v52 }
  0x24   :  { %v66_v56 = vld [vmem:[%s12019_s23 + $0x28] sm:$0xff]  ;;  %692 = vmatprep.subr.mxu1 %v198_v53  ;;  %v65_v58 = vld [vmem:[%s12019_s23 + $0x20] sm:$0xff]  ;;  %622 = vmatpush1.msra.mxu0 %v69_v54 }
  0x25   :  { %v194_v57 = vld [vmem:[%s12019_s23 + $0x428] sm:$0xff]  ;;  %v193_v59 = vld [vmem:[%s12019_s23 + $0x420] sm:$0xff]  ;;  %693 = vmatpush1.msra.mxu1 %v197_v55  ;;  %623 = vmatprep.subr.mxu0 %v66_v56 }
  0x26   :  { %v62_v60 = vld [vmem:[%s12019_s23 + $0x8] sm:$0xff]  ;;  %694 = vmatprep.subr.mxu1 %v194_v57  ;;  %v61_v62 = vld [vmem:[%s12019_s23] sm:$0xff]  ;;  %624 = vmatpush1.msra.mxu0 %v65_v58 }
  0x27   :  { %v190_v61 = vld [vmem:[%s12019_s23 + $0x408] sm:$0xff]  ;;  %v189_v63 = vld [vmem:[%s12019_s23 + $0x400] sm:$0xff]  ;;  %695 = vmatpush1.msra.mxu1 %v193_v59  ;;  %625 = vmatprep.subr.mxu0 %v62_v60 }
  0x28   :  { %v186_v0 = vld [vmem:[%s12019_s23 + $0x3e8] sm:$0xff]  ;;  %696 = vmatprep.subr.mxu1 %v190_v61  ;;  %v185_v2 = vld [vmem:[%s12019_s23 + $0x3e0] sm:$0xff]  ;;  %626 = vmatpush1.msra.mxu0 %v61_v62 }
  0x29   :  { %v314_v1 = vld [vmem:[%s12019_s23 + $0x7e8] sm:$0xff]  ;;  %v313_v3 = vld [vmem:[%s12019_s23 + $0x7e0] sm:$0xff]  ;;  %697 = vmatpush1.msra.mxu1 %v189_v63  ;;  %627 = vmatprep.subr.mxu0 %v186_v0 }
  0x2a   :  { %v182_v4 = vld [vmem:[%s12019_s23 + $0x3c8] sm:$0xff]  ;;  %698 = vmatprep.subr.mxu1 %v314_v1  ;;  %v181_v6 = vld [vmem:[%s12019_s23 + $0x3c0] sm:$0xff]  ;;  %628 = vmatpush2.msra.mxu0 %v185_v2  ;;  %v56_v2 = vld [vmem:[%s12001_s0 + $0x18] sm:$0xff] }
  0x2b   :  { %v310_v5 = vld [vmem:[%s12019_s23 + $0x7c8] sm:$0xff]  ;;  %v309_v7 = vld [vmem:[%s12019_s23 + $0x7c0] sm:$0xff]  ;;  %699 = vmatpush2.msra.mxu1 %v313_v3  ;;  %629 = vmatprep.subr.mxu0 %v182_v4 }
  0x2c   :  { %v178_v8 = vld [vmem:[%s12019_s23 + $0x3a8] sm:$0xff]  ;;  %700 = vmatprep.subr.mxu1 %v310_v5  ;;  %v177_v10 = vld [vmem:[%s12019_s23 + $0x3a0] sm:$0xff]  ;;  %630 = vmatpush2.msra.mxu0 %v181_v6  ;;  %v55_v5 = vld [vmem:[%s12001_s0 + $0x10] sm:$0xff] }
  0x2d   :  { %v306_v9 = vld [vmem:[%s12019_s23 + $0x7a8] sm:$0xff]  ;;  %v305_v11 = vld [vmem:[%s12019_s23 + $0x7a0] sm:$0xff]  ;;  %701 = vmatpush2.msra.mxu1 %v309_v7  ;;  %631 = vmatprep.subr.mxu0 %v178_v8 }
  0x2e   :  { %v174_v12 = vld [vmem:[%s12019_s23 + $0x388] sm:$0xff]  ;;  %702 = vmatprep.subr.mxu1 %v306_v9  ;;  %v173_v14 = vld [vmem:[%s12019_s23 + $0x380] sm:$0xff]  ;;  %632 = vmatpush2.msra.mxu0 %v177_v10 }
  0x2f   :  { %v302_v13 = vld [vmem:[%s12019_s23 + $0x788] sm:$0xff]  ;;  %v301_v15 = vld [vmem:[%s12019_s23 + $0x780] sm:$0xff]  ;;  %703 = vmatpush2.msra.mxu1 %v305_v11  ;;  %633 = vmatprep.subr.mxu0 %v174_v12 }
  0x30   :  { %v170_v16 = vld [vmem:[%s12019_s23 + $0x368] sm:$0xff]  ;;  %704 = vmatprep.subr.mxu1 %v302_v13  ;;  %v169_v18 = vld [vmem:[%s12019_s23 + $0x360] sm:$0xff]  ;;  %634 = vmatpush2.msra.mxu0 %v173_v14 }
  0x31   :  { %v298_v17 = vld [vmem:[%s12019_s23 + $0x768] sm:$0xff]  ;;  %v297_v19 = vld [vmem:[%s12019_s23 + $0x760] sm:$0xff]  ;;  %705 = vmatpush2.msra.mxu1 %v301_v15  ;;  %635 = vmatprep.subr.mxu0 %v170_v16 }
  0x32   :  { %v166_v20 = vld [vmem:[%s12019_s23 + $0x348] sm:$0xff]  ;;  %706 = vmatprep.subr.mxu1 %v298_v17  ;;  %v165_v22 = vld [vmem:[%s12019_s23 + $0x340] sm:$0xff]  ;;  %636 = vmatpush2.msra.mxu0 %v169_v18 }
  0x33   :  { %v294_v21 = vld [vmem:[%s12019_s23 + $0x748] sm:$0xff]  ;;  %v293_v23 = vld [vmem:[%s12019_s23 + $0x740] sm:$0xff]  ;;  %707 = vmatpush2.msra.mxu1 %v297_v19  ;;  %637 = vmatprep.subr.mxu0 %v166_v20 }
  0x34   :  { %v162_v24 = vld [vmem:[%s12019_s23 + $0x328] sm:$0xff]  ;;  %708 = vmatprep.subr.mxu1 %v294_v21  ;;  %v161_v26 = vld [vmem:[%s12019_s23 + $0x320] sm:$0xff]  ;;  %638 = vmatpush2.msra.mxu0 %v165_v22 }
  0x35   :  { %v290_v25 = vld [vmem:[%s12019_s23 + $0x728] sm:$0xff]  ;;  %v289_v27 = vld [vmem:[%s12019_s23 + $0x720] sm:$0xff]  ;;  %709 = vmatpush2.msra.mxu1 %v293_v23  ;;  %639 = vmatprep.subr.mxu0 %v162_v24 }
  0x36   :  { %v158_v28 = vld [vmem:[%s12019_s23 + $0x308] sm:$0xff]  ;;  %710 = vmatprep.subr.mxu1 %v290_v25  ;;  %v157_v30 = vld [vmem:[%s12019_s23 + $0x300] sm:$0xff]  ;;  %640 = vmatpush2.msra.mxu0 %v161_v26 }
  0x37   :  { %v286_v29 = vld [vmem:[%s12019_s23 + $0x708] sm:$0xff]  ;;  %v285_v31 = vld [vmem:[%s12019_s23 + $0x700] sm:$0xff]  ;;  %711 = vmatpush2.msra.mxu1 %v289_v27  ;;  %641 = vmatprep.subr.mxu0 %v158_v28 }
  0x38   :  { %v154_v32 = vld [vmem:[%s12019_s23 + $0x2e8] sm:$0xff]  ;;  %712 = vmatprep.subr.mxu1 %v286_v29  ;;  %v153_v34 = vld [vmem:[%s12019_s23 + $0x2e0] sm:$0xff]  ;;  %642 = vmatpush2.msra.mxu0 %v157_v30 }
  0x39   :  { %v282_v33 = vld [vmem:[%s12019_s23 + $0x6e8] sm:$0xff]  ;;  %v281_v35 = vld [vmem:[%s12019_s23 + $0x6e0] sm:$0xff]  ;;  %713 = vmatpush2.msra.mxu1 %v285_v31  ;;  %643 = vmatprep.subr.mxu0 %v154_v32 }
  0x3a   :  { %v150_v36 = vld [vmem:[%s12019_s23 + $0x2c8] sm:$0xff]  ;;  %714 = vmatprep.subr.mxu1 %v282_v33  ;;  %v149_v38 = vld [vmem:[%s12019_s23 + $0x2c0] sm:$0xff]  ;;  %644 = vmatpush2.msra.mxu0 %v153_v34 }
  0x3b   :  { %v278_v37 = vld [vmem:[%s12019_s23 + $0x6c8] sm:$0xff]  ;;  %v277_v39 = vld [vmem:[%s12019_s23 + $0x6c0] sm:$0xff]  ;;  %715 = vmatpush2.msra.mxu1 %v281_v35  ;;  %645 = vmatprep.subr.mxu0 %v150_v36 }
  0x3c   :  { %v146_v40 = vld [vmem:[%s12019_s23 + $0x2a8] sm:$0xff]  ;;  %716 = vmatprep.subr.mxu1 %v278_v37  ;;  %v145_v42 = vld [vmem:[%s12019_s23 + $0x2a0] sm:$0xff]  ;;  %646 = vmatpush2.msra.mxu0 %v149_v38 }
  0x3d   :  { %v274_v41 = vld [vmem:[%s12019_s23 + $0x6a8] sm:$0xff]  ;;  %v273_v43 = vld [vmem:[%s12019_s23 + $0x6a0] sm:$0xff]  ;;  %717 = vmatpush2.msra.mxu1 %v277_v39  ;;  %647 = vmatprep.subr.mxu0 %v146_v40 }
  0x3e   :  { %v142_v44 = vld [vmem:[%s12019_s23 + $0x288] sm:$0xff]  ;;  %718 = vmatprep.subr.mxu1 %v274_v41  ;;  %v141_v46 = vld [vmem:[%s12019_s23 + $0x280] sm:$0xff]  ;;  %648 = vmatpush2.msra.mxu0 %v145_v42 }
  0x3f   :  { %v270_v45 = vld [vmem:[%s12019_s23 + $0x688] sm:$0xff]  ;;  %v269_v47 = vld [vmem:[%s12019_s23 + $0x680] sm:$0xff]  ;;  %719 = vmatpush2.msra.mxu1 %v273_v43  ;;  %649 = vmatprep.subr.mxu0 %v142_v44 }
  0x40   :  { %v138_v48 = vld [vmem:[%s12019_s23 + $0x268] sm:$0xff]  ;;  %720 = vmatprep.subr.mxu1 %v270_v45  ;;  %v137_v50 = vld [vmem:[%s12019_s23 + $0x260] sm:$0xff]  ;;  %650 = vmatpush2.msra.mxu0 %v141_v46 }
  0x41   :  { %v266_v49 = vld [vmem:[%s12019_s23 + $0x668] sm:$0xff]  ;;  %v265_v51 = vld [vmem:[%s12019_s23 + $0x660] sm:$0xff]  ;;  %721 = vmatpush2.msra.mxu1 %v269_v47  ;;  %651 = vmatprep.subr.mxu0 %v138_v48 }
  0x42   :  { %v134_v52 = vld [vmem:[%s12019_s23 + $0x248] sm:$0xff]  ;;  %722 = vmatprep.subr.mxu1 %v266_v49  ;;  %v133_v54 = vld [vmem:[%s12019_s23 + $0x240] sm:$0xff]  ;;  %652 = vmatpush2.msra.mxu0 %v137_v50 }
  0x43   :  { %v262_v53 = vld [vmem:[%s12019_s23 + $0x648] sm:$0xff]  ;;  %v261_v55 = vld [vmem:[%s12019_s23 + $0x640] sm:$0xff]  ;;  %723 = vmatpush2.msra.mxu1 %v265_v51  ;;  %653 = vmatprep.subr.mxu0 %v134_v52 }
  0x44   :  { %v130_v56 = vld [vmem:[%s12019_s23 + $0x228] sm:$0xff]  ;;  %724 = vmatprep.subr.mxu1 %v262_v53  ;;  %v129_v58 = vld [vmem:[%s12019_s23 + $0x220] sm:$0xff]  ;;  %654 = vmatpush2.msra.mxu0 %v133_v54 }
  0x45   :  { %v258_v57 = vld [vmem:[%s12019_s23 + $0x628] sm:$0xff]  ;;  %v257_v59 = vld [vmem:[%s12019_s23 + $0x620] sm:$0xff]  ;;  %725 = vmatpush2.msra.mxu1 %v261_v55  ;;  %655 = vmatprep.subr.mxu0 %v130_v56 }
  0x46   :  { %v126_v60 = vld [vmem:[%s12019_s23 + $0x208] sm:$0xff]  ;;  %726 = vmatprep.subr.mxu1 %v258_v57  ;;  %v125_v62 = vld [vmem:[%s12019_s23 + $0x200] sm:$0xff]  ;;  %656 = vmatpush2.msra.mxu0 %v129_v58 }
  0x47   :  { %v254_v61 = vld [vmem:[%s12019_s23 + $0x608] sm:$0xff]  ;;  %727 = vmatpush2.msra.mxu1 %v257_v59  ;;  %v253_v0 = vld [vmem:[%s12019_s23 + $0x600] sm:$0xff]  ;;  %657 = vmatprep.subr.mxu0 %v126_v60 }
  0x48   :  { %v54_v63 = vld [vmem:[%s12001_s0 + $0x8] sm:$0xff]  ;;  %v53_v1 = vld [vmem:[%s12001_s0] sm:$0xff]  ;;  %728 = vmatprep.subr.mxu1 %v254_v61  ;;  %658 = vmatpush2.msra.mxu0 %v125_v62 }
  0x49   :  { %v378_v3 = vld [vmem:[%s12019_s23 + $0x9e8] sm:$0xff]  ;;  %659 = vmatprep.mubr.f32.mxu0 %v54_v63  ;;  %729 = vmatpush2.msra.mxu1 %v253_v0  ;;  %v377_v6 = vld [vmem:[%s12019_s23 + $0x9e0] sm:$0xff] }
  0x4a   :  { %v506_v4 = vld [vmem:[%s12019_s23 + $0xde8] sm:$0xff]  ;;  %660 = vmatmul.mubr.f32.vlgmr.msra.gmra.mxu0 %v53_v1  ;;  %v505_v7 = vld [vmem:[%s12019_s23 + $0xde0] sm:$0xff]  ;;  %730 = vmatprep.mubr.f32.mxu1 %v56_v2 }
  0x4b   :  { %737 = vmatprep.subr.mxu0 %v378_v3  ;;  %v374_v8 = vld [vmem:[%s12019_s23 + $0x9c8] sm:$0xff]  ;;  %808 = vmatprep.subr.mxu1 %v506_v4  ;;  %v373_v10 = vld [vmem:[%s12019_s23 + $0x9c0] sm:$0xff] }
  0x4c   :  { %v502_v9 = vld [vmem:[%s12019_s23 + $0xdc8] sm:$0xff]  ;;  %731 = vmatmul.mubr.f32.vlgmr.msra.gmra.mxu1 %v55_v5  ;;  %v501_v11 = vld [vmem:[%s12019_s23 + $0xdc0] sm:$0xff]  ;;  %738 = vmatpush1.msra.mxu0 %v377_v6 }
  0x4d   :  { %809 = vmatpush1.msra.mxu1 %v505_v7  ;;  %v370_v12 = vld [vmem:[%s12019_s23 + $0x9a8] sm:$0xff]  ;;  %739 = vmatprep.subr.mxu0 %v374_v8  ;;  %v369_v14 = vld [vmem:[%s12019_s23 + $0x9a0] sm:$0xff] }
  0x4e   :  { %v498_v13 = vld [vmem:[%s12019_s23 + $0xda8] sm:$0xff]  ;;  %810 = vmatprep.subr.mxu1 %v502_v9  ;;  %v497_v15 = vld [vmem:[%s12019_s23 + $0xda0] sm:$0xff]  ;;  %740 = vmatpush1.msra.mxu0 %v373_v10 }
  0x4f   :  { %811 = vmatpush1.msra.mxu1 %v501_v11  ;;  %v366_v16 = vld [vmem:[%s12019_s23 + $0x988] sm:$0xff]  ;;  %741 = vmatprep.subr.mxu0 %v370_v12  ;;  %v365_v18 = vld [vmem:[%s12019_s23 + $0x980] sm:$0xff] }
  0x50   :  { %v494_v17 = vld [vmem:[%s12019_s23 + $0xd88] sm:$0xff]  ;;  %812 = vmatprep.subr.mxu1 %v498_v13  ;;  %v493_v19 = vld [vmem:[%s12019_s23 + $0xd80] sm:$0xff]  ;;  %742 = vmatpush1.msra.mxu0 %v369_v14 }
  0x51   :  { %813 = vmatpush1.msra.mxu1 %v497_v15  ;;  %v362_v20 = vld [vmem:[%s12019_s23 + $0x968] sm:$0xff]  ;;  %743 = vmatprep.subr.mxu0 %v366_v16  ;;  %v361_v22 = vld [vmem:[%s12019_s23 + $0x960] sm:$0xff] }
  0x52   :  { %v490_v21 = vld [vmem:[%s12019_s23 + $0xd68] sm:$0xff]  ;;  %814 = vmatprep.subr.mxu1 %v494_v17  ;;  %v489_v23 = vld [vmem:[%s12019_s23 + $0xd60] sm:$0xff]  ;;  %744 = vmatpush1.msra.mxu0 %v365_v18 }
  0x53   :  { %815 = vmatpush1.msra.mxu1 %v493_v19  ;;  %v358_v24 = vld [vmem:[%s12019_s23 + $0x948] sm:$0xff]  ;;  %745 = vmatprep.subr.mxu0 %v362_v20  ;;  %v357_v26 = vld [vmem:[%s12019_s23 + $0x940] sm:$0xff] }
  0x54   :  { %v486_v25 = vld [vmem:[%s12019_s23 + $0xd48] sm:$0xff]  ;;  %816 = vmatprep.subr.mxu1 %v490_v21  ;;  %v485_v27 = vld [vmem:[%s12019_s23 + $0xd40] sm:$0xff]  ;;  %746 = vmatpush1.msra.mxu0 %v361_v22 }
  0x55   :  { %817 = vmatpush1.msra.mxu1 %v489_v23  ;;  %v354_v28 = vld [vmem:[%s12019_s23 + $0x928] sm:$0xff]  ;;  %747 = vmatprep.subr.mxu0 %v358_v24  ;;  %v353_v30 = vld [vmem:[%s12019_s23 + $0x920] sm:$0xff] }
  0x56   :  { %v482_v29 = vld [vmem:[%s12019_s23 + $0xd28] sm:$0xff]  ;;  %818 = vmatprep.subr.mxu1 %v486_v25  ;;  %v481_v31 = vld [vmem:[%s12019_s23 + $0xd20] sm:$0xff]  ;;  %748 = vmatpush1.msra.mxu0 %v357_v26 }
  0x57   :  { %819 = vmatpush1.msra.mxu1 %v485_v27  ;;  %v350_v32 = vld [vmem:[%s12019_s23 + $0x908] sm:$0xff]  ;;  %749 = vmatprep.subr.mxu0 %v354_v28  ;;  %v349_v34 = vld [vmem:[%s12019_s23 + $0x900] sm:$0xff] }
  0x58   :  { %v478_v33 = vld [vmem:[%s12019_s23 + $0xd08] sm:$0xff]  ;;  %820 = vmatprep.subr.mxu1 %v482_v29  ;;  %v477_v35 = vld [vmem:[%s12019_s23 + $0xd00] sm:$0xff]  ;;  %750 = vmatpush1.msra.mxu0 %v353_v30 }
  0x59   :  { %821 = vmatpush1.msra.mxu1 %v481_v31  ;;  %v346_v36 = vld [vmem:[%s12019_s23 + $0x8e8] sm:$0xff]  ;;  %751 = vmatprep.subr.mxu0 %v350_v32  ;;  %v345_v38 = vld [vmem:[%s12019_s23 + $0x8e0] sm:$0xff] }
  0x5a   :  { %v474_v37 = vld [vmem:[%s12019_s23 + $0xce8] sm:$0xff]  ;;  %822 = vmatprep.subr.mxu1 %v478_v33  ;;  %v473_v39 = vld [vmem:[%s12019_s23 + $0xce0] sm:$0xff]  ;;  %752 = vmatpush1.msra.mxu0 %v349_v34 }
  0x5b   :  { %823 = vmatpush1.msra.mxu1 %v477_v35  ;;  %v342_v40 = vld [vmem:[%s12019_s23 + $0x8c8] sm:$0xff]  ;;  %753 = vmatprep.subr.mxu0 %v346_v36  ;;  %v341_v42 = vld [vmem:[%s12019_s23 + $0x8c0] sm:$0xff] }
  0x5c   :  { %v470_v41 = vld [vmem:[%s12019_s23 + $0xcc8] sm:$0xff]  ;;  %824 = vmatprep.subr.mxu1 %v474_v37  ;;  %v469_v43 = vld [vmem:[%s12019_s23 + $0xcc0] sm:$0xff]  ;;  %754 = vmatpush1.msra.mxu0 %v345_v38 }
  0x5d   :  { %825 = vmatpush1.msra.mxu1 %v473_v39  ;;  %v338_v44 = vld [vmem:[%s12019_s23 + $0x8a8] sm:$0xff]  ;;  %755 = vmatprep.subr.mxu0 %v342_v40  ;;  %v337_v46 = vld [vmem:[%s12019_s23 + $0x8a0] sm:$0xff] }
  0x5e   :  { %v466_v45 = vld [vmem:[%s12019_s23 + $0xca8] sm:$0xff]  ;;  %826 = vmatprep.subr.mxu1 %v470_v41  ;;  %v465_v47 = vld [vmem:[%s12019_s23 + $0xca0] sm:$0xff]  ;;  %756 = vmatpush1.msra.mxu0 %v341_v42 }
  0x5f   :  { %827 = vmatpush1.msra.mxu1 %v469_v43  ;;  %v334_v48 = vld [vmem:[%s12019_s23 + $0x888] sm:$0xff]  ;;  %757 = vmatprep.subr.mxu0 %v338_v44  ;;  %v333_v50 = vld [vmem:[%s12019_s23 + $0x880] sm:$0xff] }
  0x60   :  { %v462_v49 = vld [vmem:[%s12019_s23 + $0xc88] sm:$0xff]  ;;  %828 = vmatprep.subr.mxu1 %v466_v45  ;;  %v461_v51 = vld [vmem:[%s12019_s23 + $0xc80] sm:$0xff]  ;;  %758 = vmatpush1.msra.mxu0 %v337_v46 }
  0x61   :  { %829 = vmatpush1.msra.mxu1 %v465_v47  ;;  %v330_v52 = vld [vmem:[%s12019_s23 + $0x868] sm:$0xff]  ;;  %759 = vmatprep.subr.mxu0 %v334_v48  ;;  %v329_v54 = vld [vmem:[%s12019_s23 + $0x860] sm:$0xff] }
  0x62   :  { %v458_v53 = vld [vmem:[%s12019_s23 + $0xc68] sm:$0xff]  ;;  %830 = vmatprep.subr.mxu1 %v462_v49  ;;  %v457_v55 = vld [vmem:[%s12019_s23 + $0xc60] sm:$0xff]  ;;  %760 = vmatpush1.msra.mxu0 %v333_v50 }
  0x63   :  { %831 = vmatpush1.msra.mxu1 %v461_v51  ;;  %v326_v56 = vld [vmem:[%s12019_s23 + $0x848] sm:$0xff]  ;;  %761 = vmatprep.subr.mxu0 %v330_v52  ;;  %v325_v58 = vld [vmem:[%s12019_s23 + $0x840] sm:$0xff] }
  0x64   :  { %v454_v57 = vld [vmem:[%s12019_s23 + $0xc48] sm:$0xff]  ;;  %832 = vmatprep.subr.mxu1 %v458_v53  ;;  %v453_v59 = vld [vmem:[%s12019_s23 + $0xc40] sm:$0xff]  ;;  %762 = vmatpush1.msra.mxu0 %v329_v54 }
  0x65   :  { %833 = vmatpush1.msra.mxu1 %v457_v55  ;;  %v322_v60 = vld [vmem:[%s12019_s23 + $0x828] sm:$0xff]  ;;  %763 = vmatprep.subr.mxu0 %v326_v56  ;;  %v321_v62 = vld [vmem:[%s12019_s23 + $0x820] sm:$0xff] }
  0x66   :  { %v450_v61 = vld [vmem:[%s12019_s23 + $0xc28] sm:$0xff]  ;;  %834 = vmatprep.subr.mxu1 %v454_v57  ;;  %v449_v63 = vld [vmem:[%s12019_s23 + $0xc20] sm:$0xff]  ;;  %764 = vmatpush1.msra.mxu0 %v325_v58 }
  0x67   :  { %835 = vmatpush1.msra.mxu1 %v453_v59  ;;  %v318_v0 = vld [vmem:[%s12019_s23 + $0x808] sm:$0xff]  ;;  %765 = vmatprep.subr.mxu0 %v322_v60  ;;  %v317_v2 = vld [vmem:[%s12019_s23 + $0x800] sm:$0xff] }
  0x68   :  { %v446_v1 = vld [vmem:[%s12019_s23 + $0xc08] sm:$0xff]  ;;  %836 = vmatprep.subr.mxu1 %v450_v61  ;;  %v445_v3 = vld [vmem:[%s12019_s23 + $0xc00] sm:$0xff]  ;;  %766 = vmatpush1.msra.mxu0 %v321_v62 }
  0x69   :  { %837 = vmatpush1.msra.mxu1 %v449_v63  ;;  %v442_v4 = vld [vmem:[%s12019_s23 + $0xbe8] sm:$0xff]  ;;  %767 = vmatprep.subr.mxu0 %v318_v0  ;;  %v441_v6 = vld [vmem:[%s12019_s23 + $0xbe0] sm:$0xff] }
  0x6a   :  { %v570_v5 = vld [vmem:[%s12019_s23 + $0xfe8] sm:$0xff]  ;;  %838 = vmatprep.subr.mxu1 %v446_v1  ;;  %v569_v7 = vld [vmem:[%s12019_s23 + $0xfe0] sm:$0xff]  ;;  %768 = vmatpush1.msra.mxu0 %v317_v2 }
  0x6b   :  { %839 = vmatpush1.msra.mxu1 %v445_v3  ;;  %v438_v8 = vld [vmem:[%s12019_s23 + $0xbc8] sm:$0xff]  ;;  %769 = vmatprep.subr.mxu0 %v442_v4  ;;  %v437_v10 = vld [vmem:[%s12019_s23 + $0xbc0] sm:$0xff] }
  0x6c   :  { %v566_v9 = vld [vmem:[%s12019_s23 + $0xfc8] sm:$0xff]  ;;  %840 = vmatprep.subr.mxu1 %v570_v5  ;;  %v565_v11 = vld [vmem:[%s12019_s23 + $0xfc0] sm:$0xff]  ;;  %770 = vmatpush2.msra.mxu0 %v441_v6  ;;  %v60_v6 = vld [vmem:[%s12001_s0 + $0x38] sm:$0xff] }
  0x6d   :  { %841 = vmatpush2.msra.mxu1 %v569_v7  ;;  %v434_v12 = vld [vmem:[%s12019_s23 + $0xba8] sm:$0xff]  ;;  %771 = vmatprep.subr.mxu0 %v438_v8  ;;  %v433_v14 = vld [vmem:[%s12019_s23 + $0xba0] sm:$0xff]  ;;  %v124_v7 = vld [vmem:[%s12019_s23 + $0x1f8] sm:$0xff] }
  0x6e   :  { %v562_v13 = vld [vmem:[%s12019_s23 + $0xfa8] sm:$0xff]  ;;  %842 = vmatprep.subr.mxu1 %v566_v9  ;;  %v561_v15 = vld [vmem:[%s12019_s23 + $0xfa0] sm:$0xff]  ;;  %772 = vmatpush2.msra.mxu0 %v437_v10  ;;  %v252_v8 = vld [vmem:[%s12019_s23 + $0x5f8] sm:$0xff] }
  0x6f   :  { %843 = vmatpush2.msra.mxu1 %v565_v11  ;;  %v430_v16 = vld [vmem:[%s12019_s23 + $0xb88] sm:$0xff]  ;;  %773 = vmatprep.subr.mxu0 %v434_v12  ;;  %v429_v18 = vld [vmem:[%s12019_s23 + $0xb80] sm:$0xff]  ;;  %v59_v9 = vld [vmem:[%s12001_s0 + $0x30] sm:$0xff] }
  0x70   :  { %v558_v17 = vld [vmem:[%s12019_s23 + $0xf88] sm:$0xff]  ;;  %844 = vmatprep.subr.mxu1 %v562_v13  ;;  %v557_v19 = vld [vmem:[%s12019_s23 + $0xf80] sm:$0xff]  ;;  %774 = vmatpush2.msra.mxu0 %v433_v14  ;;  %v123_v10 = vld [vmem:[%s12019_s23 + $0x1f0] sm:$0xff] }
  0x71   :  { %845 = vmatpush2.msra.mxu1 %v561_v15  ;;  %v426_v20 = vld [vmem:[%s12019_s23 + $0xb68] sm:$0xff]  ;;  %775 = vmatprep.subr.mxu0 %v430_v16  ;;  %v425_v22 = vld [vmem:[%s12019_s23 + $0xb60] sm:$0xff]  ;;  %v251_v11 = vld [vmem:[%s12019_s23 + $0x5f0] sm:$0xff] }
  0x72   :  { %v554_v21 = vld [vmem:[%s12019_s23 + $0xf68] sm:$0xff]  ;;  %846 = vmatprep.subr.mxu1 %v558_v17  ;;  %v553_v23 = vld [vmem:[%s12019_s23 + $0xf60] sm:$0xff]  ;;  %776 = vmatpush2.msra.mxu0 %v429_v18  ;;  %v120_v12 = vld [vmem:[%s12019_s23 + $0x1d8] sm:$0xff] }
  0x73   :  { %847 = vmatpush2.msra.mxu1 %v557_v19  ;;  %v422_v24 = vld [vmem:[%s12019_s23 + $0xb48] sm:$0xff]  ;;  %777 = vmatprep.subr.mxu0 %v426_v20  ;;  %v421_v26 = vld [vmem:[%s12019_s23 + $0xb40] sm:$0xff]  ;;  %v248_v13 = vld [vmem:[%s12019_s23 + $0x5d8] sm:$0xff] }
  0x74   :  { %v550_v25 = vld [vmem:[%s12019_s23 + $0xf48] sm:$0xff]  ;;  %848 = vmatprep.subr.mxu1 %v554_v21  ;;  %v549_v27 = vld [vmem:[%s12019_s23 + $0xf40] sm:$0xff]  ;;  %778 = vmatpush2.msra.mxu0 %v425_v22  ;;  %v119_v14 = vld [vmem:[%s12019_s23 + $0x1d0] sm:$0xff] }
  0x75   :  { %849 = vmatpush2.msra.mxu1 %v553_v23  ;;  %v418_v28 = vld [vmem:[%s12019_s23 + $0xb28] sm:$0xff]  ;;  %779 = vmatprep.subr.mxu0 %v422_v24  ;;  %v417_v30 = vld [vmem:[%s12019_s23 + $0xb20] sm:$0xff]  ;;  %v247_v15 = vld [vmem:[%s12019_s23 + $0x5d0] sm:$0xff] }
  0x76   :  { %v546_v29 = vld [vmem:[%s12019_s23 + $0xf28] sm:$0xff]  ;;  %850 = vmatprep.subr.mxu1 %v550_v25  ;;  %v545_v31 = vld [vmem:[%s12019_s23 + $0xf20] sm:$0xff]  ;;  %780 = vmatpush2.msra.mxu0 %v421_v26  ;;  %v116_v16 = vld [vmem:[%s12019_s23 + $0x1b8] sm:$0xff] }
  0x77   :  { %851 = vmatpush2.msra.mxu1 %v549_v27  ;;  %v414_v32 = vld [vmem:[%s12019_s23 + $0xb08] sm:$0xff]  ;;  %781 = vmatprep.subr.mxu0 %v418_v28  ;;  %v413_v34 = vld [vmem:[%s12019_s23 + $0xb00] sm:$0xff]  ;;  %v244_v17 = vld [vmem:[%s12019_s23 + $0x5b8] sm:$0xff] }
  0x78   :  { %v542_v33 = vld [vmem:[%s12019_s23 + $0xf08] sm:$0xff]  ;;  %852 = vmatprep.subr.mxu1 %v546_v29  ;;  %v541_v35 = vld [vmem:[%s12019_s23 + $0xf00] sm:$0xff]  ;;  %782 = vmatpush2.msra.mxu0 %v417_v30  ;;  %v115_v18 = vld [vmem:[%s12019_s23 + $0x1b0] sm:$0xff] }
  0x79   :  { %853 = vmatpush2.msra.mxu1 %v545_v31  ;;  %v410_v36 = vld [vmem:[%s12019_s23 + $0xae8] sm:$0xff]  ;;  %783 = vmatprep.subr.mxu0 %v414_v32  ;;  %v409_v38 = vld [vmem:[%s12019_s23 + $0xae0] sm:$0xff]  ;;  %v243_v19 = vld [vmem:[%s12019_s23 + $0x5b0] sm:$0xff] }
  0x7a   :  { %v538_v37 = vld [vmem:[%s12019_s23 + $0xee8] sm:$0xff]  ;;  %854 = vmatprep.subr.mxu1 %v542_v33  ;;  %v537_v39 = vld [vmem:[%s12019_s23 + $0xee0] sm:$0xff]  ;;  %784 = vmatpush2.msra.mxu0 %v413_v34  ;;  %v112_v20 = vld [vmem:[%s12019_s23 + $0x198] sm:$0xff] }
  0x7b   :  { %855 = vmatpush2.msra.mxu1 %v541_v35  ;;  %v406_v40 = vld [vmem:[%s12019_s23 + $0xac8] sm:$0xff]  ;;  %785 = vmatprep.subr.mxu0 %v410_v36  ;;  %v405_v42 = vld [vmem:[%s12019_s23 + $0xac0] sm:$0xff]  ;;  %v240_v21 = vld [vmem:[%s12019_s23 + $0x598] sm:$0xff] }
  0x7c   :  { %v534_v41 = vld [vmem:[%s12019_s23 + $0xec8] sm:$0xff]  ;;  %856 = vmatprep.subr.mxu1 %v538_v37  ;;  %v533_v43 = vld [vmem:[%s12019_s23 + $0xec0] sm:$0xff]  ;;  %786 = vmatpush2.msra.mxu0 %v409_v38  ;;  %v111_v22 = vld [vmem:[%s12019_s23 + $0x190] sm:$0xff] }
  0x7d   :  { %857 = vmatpush2.msra.mxu1 %v537_v39  ;;  %v402_v44 = vld [vmem:[%s12019_s23 + $0xaa8] sm:$0xff]  ;;  %787 = vmatprep.subr.mxu0 %v406_v40  ;;  %v401_v46 = vld [vmem:[%s12019_s23 + $0xaa0] sm:$0xff]  ;;  %v239_v23 = vld [vmem:[%s12019_s23 + $0x590] sm:$0xff] }
  0x7e   :  { %v530_v45 = vld [vmem:[%s12019_s23 + $0xea8] sm:$0xff]  ;;  %858 = vmatprep.subr.mxu1 %v534_v41  ;;  %v529_v47 = vld [vmem:[%s12019_s23 + $0xea0] sm:$0xff]  ;;  %788 = vmatpush2.msra.mxu0 %v405_v42  ;;  %v108_v24 = vld [vmem:[%s12019_s23 + $0x178] sm:$0xff] }
  0x7f   :  { %859 = vmatpush2.msra.mxu1 %v533_v43  ;;  %v398_v48 = vld [vmem:[%s12019_s23 + $0xa88] sm:$0xff]  ;;  %789 = vmatprep.subr.mxu0 %v402_v44  ;;  %v397_v50 = vld [vmem:[%s12019_s23 + $0xa80] sm:$0xff]  ;;  %v236_v25 = vld [vmem:[%s12019_s23 + $0x578] sm:$0xff] }
  0x80   :  { %v526_v49 = vld [vmem:[%s12019_s23 + $0xe88] sm:$0xff]  ;;  %860 = vmatprep.subr.mxu1 %v530_v45  ;;  %v525_v51 = vld [vmem:[%s12019_s23 + $0xe80] sm:$0xff]  ;;  %790 = vmatpush2.msra.mxu0 %v401_v46  ;;  %v107_v26 = vld [vmem:[%s12019_s23 + $0x170] sm:$0xff] }
  0x81   :  { %861 = vmatpush2.msra.mxu1 %v529_v47  ;;  %v394_v52 = vld [vmem:[%s12019_s23 + $0xa68] sm:$0xff]  ;;  %791 = vmatprep.subr.mxu0 %v398_v48  ;;  %v393_v54 = vld [vmem:[%s12019_s23 + $0xa60] sm:$0xff]  ;;  %v235_v27 = vld [vmem:[%s12019_s23 + $0x570] sm:$0xff] }
  0x82   :  { %v522_v53 = vld [vmem:[%s12019_s23 + $0xe68] sm:$0xff]  ;;  %862 = vmatprep.subr.mxu1 %v526_v49  ;;  %v521_v55 = vld [vmem:[%s12019_s23 + $0xe60] sm:$0xff]  ;;  %792 = vmatpush2.msra.mxu0 %v397_v50  ;;  %v104_v28 = vld [vmem:[%s12019_s23 + $0x158] sm:$0xff] }
  0x83   :  { %863 = vmatpush2.msra.mxu1 %v525_v51  ;;  %v390_v56 = vld [vmem:[%s12019_s23 + $0xa48] sm:$0xff]  ;;  %793 = vmatprep.subr.mxu0 %v394_v52  ;;  %v389_v58 = vld [vmem:[%s12019_s23 + $0xa40] sm:$0xff]  ;;  %v232_v29 = vld [vmem:[%s12019_s23 + $0x558] sm:$0xff] }
  0x84   :  { %v518_v57 = vld [vmem:[%s12019_s23 + $0xe48] sm:$0xff]  ;;  %864 = vmatprep.subr.mxu1 %v522_v53  ;;  %v517_v59 = vld [vmem:[%s12019_s23 + $0xe40] sm:$0xff]  ;;  %794 = vmatpush2.msra.mxu0 %v393_v54  ;;  %v103_v30 = vld [vmem:[%s12019_s23 + $0x150] sm:$0xff] }
  0x85   :  { %865 = vmatpush2.msra.mxu1 %v521_v55  ;;  %v386_v60 = vld [vmem:[%s12019_s23 + $0xa28] sm:$0xff]  ;;  %795 = vmatprep.subr.mxu0 %v390_v56  ;;  %v385_v62 = vld [vmem:[%s12019_s23 + $0xa20] sm:$0xff]  ;;  %v231_v31 = vld [vmem:[%s12019_s23 + $0x550] sm:$0xff] }
  0x86   :  { %v514_v61 = vld [vmem:[%s12019_s23 + $0xe28] sm:$0xff]  ;;  %866 = vmatprep.subr.mxu1 %v518_v57  ;;  %v513_v63 = vld [vmem:[%s12019_s23 + $0xe20] sm:$0xff]  ;;  %796 = vmatpush2.msra.mxu0 %v389_v58  ;;  %v100_v32 = vld [vmem:[%s12019_s23 + $0x138] sm:$0xff] }
  0x87   :  { %867 = vmatpush2.msra.mxu1 %v517_v59  ;;  %v382_v0 = vld [vmem:[%s12019_s23 + $0xa08] sm:$0xff]  ;;  %797 = vmatprep.subr.mxu0 %v386_v60  ;;  %v381_v2 = vld [vmem:[%s12019_s23 + $0xa00] sm:$0xff]  ;;  %v228_v33 = vld [vmem:[%s12019_s23 + $0x538] sm:$0xff] }
  0x88   :  { %v510_v1 = vld [vmem:[%s12019_s23 + $0xe08] sm:$0xff]  ;;  %868 = vmatprep.subr.mxu1 %v514_v61  ;;  %798 = vmatpush2.msra.mxu0 %v385_v62  ;;  %v509_v4 = vld [vmem:[%s12019_s23 + $0xe00] sm:$0xff]  ;;  %v99_v34 = vld [vmem:[%s12019_s23 + $0x130] sm:$0xff] }
  0x89   :  { %v58_v3 = vld [vmem:[%s12001_s0 + $0x28] sm:$0xff]  ;;  %869 = vmatpush2.msra.mxu1 %v513_v63  ;;  %v57_v5 = vld [vmem:[%s12001_s0 + $0x20] sm:$0xff]  ;;  %799 = vmatprep.subr.mxu0 %v382_v0  ;;  %v227_v35 = vld [vmem:[%s12019_s23 + $0x530] sm:$0xff] }
  0x8a   :  { %870 = vmatprep.subr.mxu1 %v510_v1  ;;  %800 = vmatpush2.msra.mxu0 %v381_v2  ;;  %v96_v36 = vld [vmem:[%s12019_s23 + $0x118] sm:$0xff]  ;;  %v95_v38 = vld [vmem:[%s12019_s23 + $0x110] sm:$0xff] }
  0x8b   :  { %801 = vmatprep.mubr.f32.mxu0 %v58_v3  ;;  %871 = vmatpush2.msra.mxu1 %v509_v4  ;;  %v224_v37 = vld [vmem:[%s12019_s23 + $0x518] sm:$0xff]  ;;  %v223_v39 = vld [vmem:[%s12019_s23 + $0x510] sm:$0xff] }
  0x8c   :  { %802 = vmatmul.mubr.f32.vlgmr.msra.gmra.mxu0 %v57_v5  ;;  %872 = vmatprep.mubr.f32.mxu1 %v60_v6  ;;  %v92_v40 = vld [vmem:[%s12019_s23 + $0xf8] sm:$0xff]  ;;  %v91_v42 = vld [vmem:[%s12019_s23 + $0xf0] sm:$0xff] }
  0x8d   :  { %879 = vmatprep.subr.mxu0 %v124_v7  ;;  %950 = vmatprep.subr.mxu1 %v252_v8  ;;  %v220_v41 = vld [vmem:[%s12019_s23 + $0x4f8] sm:$0xff]  ;;  %v219_v43 = vld [vmem:[%s12019_s23 + $0x4f0] sm:$0xff] }
  0x8e   :  { %873 = vmatmul.mubr.f32.vlgmr.msra.gmra.mxu1 %v59_v9  ;;  %880 = vmatpush1.msra.mxu0 %v123_v10  ;;  %v88_v44 = vld [vmem:[%s12019_s23 + $0xd8] sm:$0xff]  ;;  %v87_v46 = vld [vmem:[%s12019_s23 + $0xd0] sm:$0xff] }
  0x8f   :  { %951 = vmatpush1.msra.mxu1 %v251_v11  ;;  %881 = vmatprep.subr.mxu0 %v120_v12  ;;  %v216_v45 = vld [vmem:[%s12019_s23 + $0x4d8] sm:$0xff]  ;;  %v215_v47 = vld [vmem:[%s12019_s23 + $0x4d0] sm:$0xff] }
  0x90   :  { %952 = vmatprep.subr.mxu1 %v248_v13  ;;  %882 = vmatpush1.msra.mxu0 %v119_v14  ;;  %v84_v48 = vld [vmem:[%s12019_s23 + $0xb8] sm:$0xff]  ;;  %v83_v50 = vld [vmem:[%s12019_s23 + $0xb0] sm:$0xff] }
  0x91   :  { %953 = vmatpush1.msra.mxu1 %v247_v15  ;;  %883 = vmatprep.subr.mxu0 %v116_v16  ;;  %v212_v49 = vld [vmem:[%s12019_s23 + $0x4b8] sm:$0xff]  ;;  %v211_v51 = vld [vmem:[%s12019_s23 + $0x4b0] sm:$0xff] }
  0x92   :  { %954 = vmatprep.subr.mxu1 %v244_v17  ;;  %884 = vmatpush1.msra.mxu0 %v115_v18  ;;  %v80_v52 = vld [vmem:[%s12019_s23 + $0x98] sm:$0xff]  ;;  %v79_v54 = vld [vmem:[%s12019_s23 + $0x90] sm:$0xff] }
  0x93   :  { %955 = vmatpush1.msra.mxu1 %v243_v19  ;;  %885 = vmatprep.subr.mxu0 %v112_v20  ;;  %v208_v53 = vld [vmem:[%s12019_s23 + $0x498] sm:$0xff]  ;;  %v207_v55 = vld [vmem:[%s12019_s23 + $0x490] sm:$0xff] }
  0x94   :  { %956 = vmatprep.subr.mxu1 %v240_v21  ;;  %886 = vmatpush1.msra.mxu0 %v111_v22  ;;  %v76_v56 = vld [vmem:[%s12019_s23 + $0x78] sm:$0xff]  ;;  %v75_v58 = vld [vmem:[%s12019_s23 + $0x70] sm:$0xff] }
  0x95   :  { %957 = vmatpush1.msra.mxu1 %v239_v23  ;;  %887 = vmatprep.subr.mxu0 %v108_v24  ;;  %v204_v57 = vld [vmem:[%s12019_s23 + $0x478] sm:$0xff]  ;;  %v203_v59 = vld [vmem:[%s12019_s23 + $0x470] sm:$0xff] }
  0x96   :  { %958 = vmatprep.subr.mxu1 %v236_v25  ;;  %888 = vmatpush1.msra.mxu0 %v107_v26  ;;  %v72_v60 = vld [vmem:[%s12019_s23 + $0x58] sm:$0xff]  ;;  %v71_v62 = vld [vmem:[%s12019_s23 + $0x50] sm:$0xff] }
  0x97   :  { %959 = vmatpush1.msra.mxu1 %v235_v27  ;;  %889 = vmatprep.subr.mxu0 %v104_v28  ;;  %v200_v61 = vld [vmem:[%s12019_s23 + $0x458] sm:$0xff]  ;;  %v199_v63 = vld [vmem:[%s12019_s23 + $0x450] sm:$0xff] }
  0x98   :  { %960 = vmatprep.subr.mxu1 %v232_v29  ;;  %890 = vmatpush1.msra.mxu0 %v103_v30  ;;  %v68_v0 = vld [vmem:[%s12019_s23 + $0x38] sm:$0xff]  ;;  %v67_v2 = vld [vmem:[%s12019_s23 + $0x30] sm:$0xff] }
  0x99   :  { %961 = vmatpush1.msra.mxu1 %v231_v31  ;;  %891 = vmatprep.subr.mxu0 %v100_v32  ;;  %v196_v1 = vld [vmem:[%s12019_s23 + $0x438] sm:$0xff]  ;;  %v195_v3 = vld [vmem:[%s12019_s23 + $0x430] sm:$0xff] }
  0x9a   :  { %962 = vmatprep.subr.mxu1 %v228_v33  ;;  %892 = vmatpush1.msra.mxu0 %v99_v34  ;;  %v64_v4 = vld [vmem:[%s12019_s23 + $0x18] sm:$0xff]  ;;  %v63_v6 = vld [vmem:[%s12019_s23 + $0x10] sm:$0xff] }
  0x9b   :  { %963 = vmatpush1.msra.mxu1 %v227_v35  ;;  %893 = vmatprep.subr.mxu0 %v96_v36  ;;  %v192_v5 = vld [vmem:[%s12019_s23 + $0x418] sm:$0xff]  ;;  %v191_v7 = vld [vmem:[%s12019_s23 + $0x410] sm:$0xff] }
  0x9c   :  { %964 = vmatprep.subr.mxu1 %v224_v37  ;;  %894 = vmatpush1.msra.mxu0 %v95_v38  ;;  %v188_v8 = vld [vmem:[%s12019_s23 + $0x3f8] sm:$0xff]  ;;  %v187_v10 = vld [vmem:[%s12019_s23 + $0x3f0] sm:$0xff] }
  0x9d   :  { %965 = vmatpush1.msra.mxu1 %v223_v39  ;;  %895 = vmatprep.subr.mxu0 %v92_v40  ;;  %v316_v9 = vld [vmem:[%s12019_s23 + $0x7f8] sm:$0xff]  ;;  %v315_v11 = vld [vmem:[%s12019_s23 + $0x7f0] sm:$0xff] }
  0x9e   :  { %966 = vmatprep.subr.mxu1 %v220_v41  ;;  %896 = vmatpush1.msra.mxu0 %v91_v42  ;;  %v184_v12 = vld [vmem:[%s12019_s23 + $0x3d8] sm:$0xff]  ;;  %v183_v14 = vld [vmem:[%s12019_s23 + $0x3d0] sm:$0xff] }
  0x9f   :  { %967 = vmatpush1.msra.mxu1 %v219_v43  ;;  %897 = vmatprep.subr.mxu0 %v88_v44  ;;  %v312_v13 = vld [vmem:[%s12019_s23 + $0x7d8] sm:$0xff]  ;;  %v311_v15 = vld [vmem:[%s12019_s23 + $0x7d0] sm:$0xff] }
  0xa0   :  { %968 = vmatprep.subr.mxu1 %v216_v45  ;;  %898 = vmatpush1.msra.mxu0 %v87_v46  ;;  %v180_v16 = vld [vmem:[%s12019_s23 + $0x3b8] sm:$0xff]  ;;  %v179_v18 = vld [vmem:[%s12019_s23 + $0x3b0] sm:$0xff] }
  0xa1   :  { %969 = vmatpush1.msra.mxu1 %v215_v47  ;;  %899 = vmatprep.subr.mxu0 %v84_v48  ;;  %v308_v17 = vld [vmem:[%s12019_s23 + $0x7b8] sm:$0xff]  ;;  %v307_v19 = vld [vmem:[%s12019_s23 + $0x7b0] sm:$0xff] }
  0xa2   :  { %970 = vmatprep.subr.mxu1 %v212_v49  ;;  %900 = vmatpush1.msra.mxu0 %v83_v50  ;;  %v176_v20 = vld [vmem:[%s12019_s23 + $0x398] sm:$0xff]  ;;  %v175_v22 = vld [vmem:[%s12019_s23 + $0x390] sm:$0xff] }
  0xa3   :  { %971 = vmatpush1.msra.mxu1 %v211_v51  ;;  %901 = vmatprep.subr.mxu0 %v80_v52  ;;  %v304_v21 = vld [vmem:[%s12019_s23 + $0x798] sm:$0xff]  ;;  %v303_v23 = vld [vmem:[%s12019_s23 + $0x790] sm:$0xff] }
  0xa4   :  { %972 = vmatprep.subr.mxu1 %v208_v53  ;;  %902 = vmatpush1.msra.mxu0 %v79_v54  ;;  %v172_v24 = vld [vmem:[%s12019_s23 + $0x378] sm:$0xff]  ;;  %v171_v26 = vld [vmem:[%s12019_s23 + $0x370] sm:$0xff] }
  0xa5   :  { %973 = vmatpush1.msra.mxu1 %v207_v55  ;;  %903 = vmatprep.subr.mxu0 %v76_v56  ;;  %v300_v25 = vld [vmem:[%s12019_s23 + $0x778] sm:$0xff]  ;;  %v299_v27 = vld [vmem:[%s12019_s23 + $0x770] sm:$0xff] }
  0xa6   :  { %974 = vmatprep.subr.mxu1 %v204_v57  ;;  %904 = vmatpush1.msra.mxu0 %v75_v58  ;;  %v168_v28 = vld [vmem:[%s12019_s23 + $0x358] sm:$0xff]  ;;  %v167_v30 = vld [vmem:[%s12019_s23 + $0x350] sm:$0xff] }
  0xa7   :  { %975 = vmatpush1.msra.mxu1 %v203_v59  ;;  %905 = vmatprep.subr.mxu0 %v72_v60  ;;  %v296_v29 = vld [vmem:[%s12019_s23 + $0x758] sm:$0xff]  ;;  %v295_v31 = vld [vmem:[%s12019_s23 + $0x750] sm:$0xff] }
  0xa8   :  { %976 = vmatprep.subr.mxu1 %v200_v61  ;;  %906 = vmatpush1.msra.mxu0 %v71_v62  ;;  %v164_v32 = vld [vmem:[%s12019_s23 + $0x338] sm:$0xff]  ;;  %v163_v34 = vld [vmem:[%s12019_s23 + $0x330] sm:$0xff] }
  0xa9   :  { %977 = vmatpush1.msra.mxu1 %v199_v63  ;;  %907 = vmatprep.subr.mxu0 %v68_v0  ;;  %v292_v33 = vld [vmem:[%s12019_s23 + $0x738] sm:$0xff]  ;;  %v291_v35 = vld [vmem:[%s12019_s23 + $0x730] sm:$0xff] }
  0xaa   :  { %978 = vmatprep.subr.mxu1 %v196_v1  ;;  %908 = vmatpush1.msra.mxu0 %v67_v2  ;;  %v160_v36 = vld [vmem:[%s12019_s23 + $0x318] sm:$0xff]  ;;  %v159_v38 = vld [vmem:[%s12019_s23 + $0x310] sm:$0xff] }
  0xab   :  { %979 = vmatpush1.msra.mxu1 %v195_v3  ;;  %909 = vmatprep.subr.mxu0 %v64_v4  ;;  %v288_v37 = vld [vmem:[%s12019_s23 + $0x718] sm:$0xff]  ;;  %v287_v39 = vld [vmem:[%s12019_s23 + $0x710] sm:$0xff] }
  0xac   :  { %980 = vmatprep.subr.mxu1 %v192_v5  ;;  %910 = vmatpush1.msra.mxu0 %v63_v6  ;;  %v156_v40 = vld [vmem:[%s12019_s23 + $0x2f8] sm:$0xff]  ;;  %v155_v42 = vld [vmem:[%s12019_s23 + $0x2f0] sm:$0xff] }
  0xad   :  { %981 = vmatpush1.msra.mxu1 %v191_v7  ;;  %911 = vmatprep.subr.mxu0 %v188_v8  ;;  %v284_v41 = vld [vmem:[%s12019_s23 + $0x6f8] sm:$0xff]  ;;  %v283_v43 = vld [vmem:[%s12019_s23 + $0x6f0] sm:$0xff] }
  0xae   :  { %982 = vmatprep.subr.mxu1 %v316_v9  ;;  %912 = vmatpush2.msra.mxu0 %v187_v10  ;;  %v152_v44 = vld [vmem:[%s12019_s23 + $0x2d8] sm:$0xff]  ;;  %v151_v46 = vld [vmem:[%s12019_s23 + $0x2d0] sm:$0xff]  ;;  %v5667_v9 = vld [vmem:[%s12001_s0 + $0x8] sm:$0xff] }
  0xaf   :  { %983 = vmatpush2.msra.mxu1 %v315_v11  ;;  %913 = vmatprep.subr.mxu0 %v184_v12  ;;  %v280_v45 = vld [vmem:[%s12019_s23 + $0x6d8] sm:$0xff]  ;;  %v279_v47 = vld [vmem:[%s12019_s23 + $0x6d0] sm:$0xff]  ;;  %v5668_v11 = vld [vmem:[%s12001_s0] sm:$0xff] }
  0xb0   :  { %984 = vmatprep.subr.mxu1 %v312_v13  ;;  %914 = vmatpush2.msra.mxu0 %v183_v14  ;;  %v148_v48 = vld [vmem:[%s12019_s23 + $0x2b8] sm:$0xff]  ;;  %v147_v50 = vld [vmem:[%s12019_s23 + $0x2b0] sm:$0xff] }
  0xb1   :  { %985 = vmatpush2.msra.mxu1 %v311_v15  ;;  %915 = vmatprep.subr.mxu0 %v180_v16  ;;  %v276_v49 = vld [vmem:[%s12019_s23 + $0x6b8] sm:$0xff]  ;;  %v275_v51 = vld [vmem:[%s12019_s23 + $0x6b0] sm:$0xff] }
  0xb2   :  { %986 = vmatprep.subr.mxu1 %v308_v17  ;;  %916 = vmatpush2.msra.mxu0 %v179_v18  ;;  %v144_v52 = vld [vmem:[%s12019_s23 + $0x298] sm:$0xff]  ;;  %v143_v54 = vld [vmem:[%s12019_s23 + $0x290] sm:$0xff] }
  0xb3   :  { %987 = vmatpush2.msra.mxu1 %v307_v19  ;;  %917 = vmatprep.subr.mxu0 %v176_v20  ;;  %v272_v53 = vld [vmem:[%s12019_s23 + $0x698] sm:$0xff]  ;;  %v271_v55 = vld [vmem:[%s12019_s23 + $0x690] sm:$0xff] }
  0xb4   :  { %988 = vmatprep.subr.mxu1 %v304_v21  ;;  %918 = vmatpush2.msra.mxu0 %v175_v22  ;;  %v140_v56 = vld [vmem:[%s12019_s23 + $0x278] sm:$0xff]  ;;  %v139_v58 = vld [vmem:[%s12019_s23 + $0x270] sm:$0xff] }
  0xb5   :  { %989 = vmatpush2.msra.mxu1 %v303_v23  ;;  %919 = vmatprep.subr.mxu0 %v172_v24  ;;  %v268_v57 = vld [vmem:[%s12019_s23 + $0x678] sm:$0xff]  ;;  %v267_v59 = vld [vmem:[%s12019_s23 + $0x670] sm:$0xff] }
  0xb6   :  { %990 = vmatprep.subr.mxu1 %v300_v25  ;;  %920 = vmatpush2.msra.mxu0 %v171_v26  ;;  %v136_v60 = vld [vmem:[%s12019_s23 + $0x258] sm:$0xff]  ;;  %v135_v62 = vld [vmem:[%s12019_s23 + $0x250] sm:$0xff] }
  0xb7   :  { %991 = vmatpush2.msra.mxu1 %v299_v27  ;;  %921 = vmatprep.subr.mxu0 %v168_v28  ;;  %v264_v61 = vld [vmem:[%s12019_s23 + $0x658] sm:$0xff]  ;;  %v263_v63 = vld [vmem:[%s12019_s23 + $0x650] sm:$0xff] }
  0xb8   :  { %992 = vmatprep.subr.mxu1 %v296_v29  ;;  %922 = vmatpush2.msra.mxu0 %v167_v30  ;;  %v132_v0 = vld [vmem:[%s12019_s23 + $0x238] sm:$0xff]  ;;  %v131_v2 = vld [vmem:[%s12019_s23 + $0x230] sm:$0xff] }
  0xb9   :  { %993 = vmatpush2.msra.mxu1 %v295_v31  ;;  %923 = vmatprep.subr.mxu0 %v164_v32  ;;  %v260_v1 = vld [vmem:[%s12019_s23 + $0x638] sm:$0xff]  ;;  %v259_v3 = vld [vmem:[%s12019_s23 + $0x630] sm:$0xff] }
  0xba   :  { %994 = vmatprep.subr.mxu1 %v292_v33  ;;  %924 = vmatpush2.msra.mxu0 %v163_v34  ;;  %v128_v4 = vld [vmem:[%s12019_s23 + $0x218] sm:$0xff]  ;;  %v127_v6 = vld [vmem:[%s12019_s23 + $0x210] sm:$0xff] }
  0xbb   :  { %995 = vmatpush2.msra.mxu1 %v291_v35  ;;  %925 = vmatprep.subr.mxu0 %v160_v36  ;;  %v256_v5 = vld [vmem:[%s12019_s23 + $0x618] sm:$0xff]  ;;  %v255_v7 = vld [vmem:[%s12019_s23 + $0x610] sm:$0xff] }
  0xbc   :  { %996 = vmatprep.subr.mxu1 %v288_v37  ;;  %926 = vmatpush2.msra.mxu0 %v159_v38  ;;  %v380_v8 = vld [vmem:[%s12019_s23 + $0x9f8] sm:$0xff]  ;;  %v379_v12 = vld [vmem:[%s12019_s23 + $0x9f0] sm:$0xff] }
  0xbd   :  { %997 = vmatpush2.msra.mxu1 %v287_v39  ;;  %927 = vmatprep.subr.mxu0 %v156_v40  ;;  %v508_v10 = vld [vmem:[%s12019_s23 + $0xdf8] sm:$0xff]  ;;  %v507_v13 = vld [vmem:[%s12019_s23 + $0xdf0] sm:$0xff] }
  0xbe   :  { %998 = vmatprep.subr.mxu1 %v284_v41  ;;  %928 = vmatpush2.msra.mxu0 %v155_v42  ;;  %v5669_v14 = vld [vmem:[%s12001_s0 + $0x18] sm:$0xff]  ;;  %v5670_v17 = vld [vmem:[%s12001_s0 + $0x10] sm:$0xff] }
  0xbf   :  { %999 = vmatpush2.msra.mxu1 %v283_v43  ;;  %929 = vmatprep.subr.mxu0 %v152_v44  ;;  %v376_v15 = vld [vmem:[%s12019_s23 + $0x9d8] sm:$0xff]  ;;  %v375_v18 = vld [vmem:[%s12019_s23 + $0x9d0] sm:$0xff] }
  0xc0   :  { %1000 = vmatprep.subr.mxu1 %v280_v45  ;;  %930 = vmatpush2.msra.mxu0 %v151_v46  ;;  %v504_v16 = vld [vmem:[%s12019_s23 + $0xdd8] sm:$0xff]  ;;  %v503_v19 = vld [vmem:[%s12019_s23 + $0xdd0] sm:$0xff] }
  0xc1   :  { %1001 = vmatpush2.msra.mxu1 %v279_v47  ;;  %931 = vmatprep.subr.mxu0 %v148_v48  ;;  %v372_v20 = vld [vmem:[%s12019_s23 + $0x9b8] sm:$0xff]  ;;  %v371_v22 = vld [vmem:[%s12019_s23 + $0x9b0] sm:$0xff] }
  0xc2   :  { %1002 = vmatprep.subr.mxu1 %v276_v49  ;;  %932 = vmatpush2.msra.mxu0 %v147_v50  ;;  %v500_v21 = vld [vmem:[%s12019_s23 + $0xdb8] sm:$0xff]  ;;  %v499_v23 = vld [vmem:[%s12019_s23 + $0xdb0] sm:$0xff] }
  0xc3   :  { %1003 = vmatpush2.msra.mxu1 %v275_v51  ;;  %933 = vmatprep.subr.mxu0 %v144_v52  ;;  %v368_v24 = vld [vmem:[%s12019_s23 + $0x998] sm:$0xff]  ;;  %v367_v26 = vld [vmem:[%s12019_s23 + $0x990] sm:$0xff] }
  0xc4   :  { %1004 = vmatprep.subr.mxu1 %v272_v53  ;;  %934 = vmatpush2.msra.mxu0 %v143_v54  ;;  %v496_v25 = vld [vmem:[%s12019_s23 + $0xd98] sm:$0xff]  ;;  %v495_v27 = vld [vmem:[%s12019_s23 + $0xd90] sm:$0xff] }
  0xc5   :  { %1005 = vmatpush2.msra.mxu1 %v271_v55  ;;  %935 = vmatprep.subr.mxu0 %v140_v56  ;;  %v364_v28 = vld [vmem:[%s12019_s23 + $0x978] sm:$0xff]  ;;  %v363_v30 = vld [vmem:[%s12019_s23 + $0x970] sm:$0xff] }
  0xc6   :  { %1006 = vmatprep.subr.mxu1 %v268_v57  ;;  %936 = vmatpush2.msra.mxu0 %v139_v58  ;;  %v492_v29 = vld [vmem:[%s12019_s23 + $0xd78] sm:$0xff]  ;;  %v491_v31 = vld [vmem:[%s12019_s23 + $0xd70] sm:$0xff] }
  0xc7   :  { %1007 = vmatpush2.msra.mxu1 %v267_v59  ;;  %937 = vmatprep.subr.mxu0 %v136_v60  ;;  %v360_v32 = vld [vmem:[%s12019_s23 + $0x958] sm:$0xff]  ;;  %v359_v34 = vld [vmem:[%s12019_s23 + $0x950] sm:$0xff] }
  0xc8   :  { %1008 = vmatprep.subr.mxu1 %v264_v61  ;;  %938 = vmatpush2.msra.mxu0 %v135_v62  ;;  %v488_v33 = vld [vmem:[%s12019_s23 + $0xd58] sm:$0xff]  ;;  %v487_v35 = vld [vmem:[%s12019_s23 + $0xd50] sm:$0xff] }
  0xc9   :  { %1009 = vmatpush2.msra.mxu1 %v263_v63  ;;  %939 = vmatprep.subr.mxu0 %v132_v0  ;;  %v356_v36 = vld [vmem:[%s12019_s23 + $0x938] sm:$0xff]  ;;  %v355_v38 = vld [vmem:[%s12019_s23 + $0x930] sm:$0xff] }
  0xca   :  { %1010 = vmatprep.subr.mxu1 %v260_v1  ;;  %940 = vmatpush2.msra.mxu0 %v131_v2  ;;  %v484_v37 = vld [vmem:[%s12019_s23 + $0xd38] sm:$0xff]  ;;  %v483_v39 = vld [vmem:[%s12019_s23 + $0xd30] sm:$0xff] }
  0xcb   :  { %1011 = vmatpush2.msra.mxu1 %v259_v3  ;;  %941 = vmatprep.subr.mxu0 %v128_v4  ;;  %v352_v40 = vld [vmem:[%s12019_s23 + $0x918] sm:$0xff]  ;;  %v351_v42 = vld [vmem:[%s12019_s23 + $0x910] sm:$0xff] }
  0xcc   :  { %1012 = vmatprep.subr.mxu1 %v256_v5  ;;  %942 = vmatpush2.msra.mxu0 %v127_v6  ;;  %v480_v41 = vld [vmem:[%s12019_s23 + $0xd18] sm:$0xff]  ;;  %v479_v43 = vld [vmem:[%s12019_s23 + $0xd10] sm:$0xff] }
  0xcd   :  { %943 = vmatprep.mubr.f32.mxu0 %v5667_v9  ;;  %1013 = vmatpush2.msra.mxu1 %v255_v7  ;;  %v348_v44 = vld [vmem:[%s12019_s23 + $0x8f8] sm:$0xff]  ;;  %v347_v46 = vld [vmem:[%s12019_s23 + $0x8f0] sm:$0xff] }
  0xce   :  { %944 = vmatmul.mubr.f32.vlgmr.msra.gmra.mxu0 %v5668_v11  ;;  %1014 = vmatprep.mubr.f32.mxu1 %v5669_v14  ;;  %v476_v45 = vld [vmem:[%s12019_s23 + $0xcf8] sm:$0xff]  ;;  %v475_v47 = vld [vmem:[%s12019_s23 + $0xcf0] sm:$0xff] }
  0xcf   :  { %1021 = vmatprep.subr.mxu0 %v380_v8  ;;  %1092 = vmatprep.subr.mxu1 %v508_v10  ;;  %v344_v48 = vld [vmem:[%s12019_s23 + $0x8d8] sm:$0xff]  ;;  %v343_v50 = vld [vmem:[%s12019_s23 + $0x8d0] sm:$0xff] }
  0xd0   :  { %1015 = vmatmul.mubr.f32.vlgmr.msra.gmra.mxu1 %v5670_v17  ;;  %1022 = vmatpush1.msra.mxu0 %v379_v12  ;;  %v472_v49 = vld [vmem:[%s12019_s23 + $0xcd8] sm:$0xff]  ;;  %v471_v51 = vld [vmem:[%s12019_s23 + $0xcd0] sm:$0xff] }
  0xd1   :  { %1093 = vmatpush1.msra.mxu1 %v507_v13  ;;  %1023 = vmatprep.subr.mxu0 %v376_v15  ;;  %v340_v52 = vld [vmem:[%s12019_s23 + $0x8b8] sm:$0xff]  ;;  %v339_v54 = vld [vmem:[%s12019_s23 + $0x8b0] sm:$0xff] }
  0xd2   :  { %1094 = vmatprep.subr.mxu1 %v504_v16  ;;  %1024 = vmatpush1.msra.mxu0 %v375_v18  ;;  %v468_v53 = vld [vmem:[%s12019_s23 + $0xcb8] sm:$0xff]  ;;  %v467_v55 = vld [vmem:[%s12019_s23 + $0xcb0] sm:$0xff] }
  0xd3   :  { %1095 = vmatpush1.msra.mxu1 %v503_v19  ;;  %1025 = vmatprep.subr.mxu0 %v372_v20  ;;  %v336_v56 = vld [vmem:[%s12019_s23 + $0x898] sm:$0xff]  ;;  %v335_v58 = vld [vmem:[%s12019_s23 + $0x890] sm:$0xff] }
  0xd4   :  { %1096 = vmatprep.subr.mxu1 %v500_v21  ;;  %1026 = vmatpush1.msra.mxu0 %v371_v22  ;;  %v464_v57 = vld [vmem:[%s12019_s23 + $0xc98] sm:$0xff]  ;;  %v463_v59 = vld [vmem:[%s12019_s23 + $0xc90] sm:$0xff] }
  0xd5   :  { %1097 = vmatpush1.msra.mxu1 %v499_v23  ;;  %1027 = vmatprep.subr.mxu0 %v368_v24  ;;  %v332_v60 = vld [vmem:[%s12019_s23 + $0x878] sm:$0xff]  ;;  %v331_v62 = vld [vmem:[%s12019_s23 + $0x870] sm:$0xff] }
  0xd6   :  { %1098 = vmatprep.subr.mxu1 %v496_v25  ;;  %1028 = vmatpush1.msra.mxu0 %v367_v26  ;;  %v460_v61 = vld [vmem:[%s12019_s23 + $0xc78] sm:$0xff]  ;;  %v459_v63 = vld [vmem:[%s12019_s23 + $0xc70] sm:$0xff] }
  0xd7   :  { %1099 = vmatpush1.msra.mxu1 %v495_v27  ;;  %1029 = vmatprep.subr.mxu0 %v364_v28  ;;  %v328_v0 = vld [vmem:[%s12019_s23 + $0x858] sm:$0xff]  ;;  %v327_v2 = vld [vmem:[%s12019_s23 + $0x850] sm:$0xff] }
  0xd8   :  { %1100 = vmatprep.subr.mxu1 %v492_v29  ;;  %1030 = vmatpush1.msra.mxu0 %v363_v30  ;;  %v456_v1 = vld [vmem:[%s12019_s23 + $0xc58] sm:$0xff]  ;;  %v455_v3 = vld [vmem:[%s12019_s23 + $0xc50] sm:$0xff] }
  0xd9   :  { %1101 = vmatpush1.msra.mxu1 %v491_v31  ;;  %1031 = vmatprep.subr.mxu0 %v360_v32  ;;  %v324_v4 = vld [vmem:[%s12019_s23 + $0x838] sm:$0xff]  ;;  %v323_v6 = vld [vmem:[%s12019_s23 + $0x830] sm:$0xff] }
  0xda   :  { %1102 = vmatprep.subr.mxu1 %v488_v33  ;;  %1032 = vmatpush1.msra.mxu0 %v359_v34  ;;  %v452_v5 = vld [vmem:[%s12019_s23 + $0xc38] sm:$0xff]  ;;  %v451_v7 = vld [vmem:[%s12019_s23 + $0xc30] sm:$0xff] }
  0xdb   :  { %1103 = vmatpush1.msra.mxu1 %v487_v35  ;;  %1033 = vmatprep.subr.mxu0 %v356_v36  ;;  %v320_v8 = vld [vmem:[%s12019_s23 + $0x818] sm:$0xff]  ;;  %v319_v10 = vld [vmem:[%s12019_s23 + $0x810] sm:$0xff] }
  0xdc   :  { %1104 = vmatprep.subr.mxu1 %v484_v37  ;;  %1034 = vmatpush1.msra.mxu0 %v355_v38  ;;  %v448_v9 = vld [vmem:[%s12019_s23 + $0xc18] sm:$0xff]  ;;  %v447_v11 = vld [vmem:[%s12019_s23 + $0xc10] sm:$0xff] }
  0xdd   :  { %1105 = vmatpush1.msra.mxu1 %v483_v39  ;;  %1035 = vmatprep.subr.mxu0 %v352_v40  ;;  %v444_v12 = vld [vmem:[%s12019_s23 + $0xbf8] sm:$0xff]  ;;  %v443_v14 = vld [vmem:[%s12019_s23 + $0xbf0] sm:$0xff] }
  0xde   :  { %1106 = vmatprep.subr.mxu1 %v480_v41  ;;  %1036 = vmatpush1.msra.mxu0 %v351_v42  ;;  %v572_v13 = vld [vmem:[%s12019_s23 + $0xff8] sm:$0xff]  ;;  %v571_v15 = vld [vmem:[%s12019_s23 + $0xff0] sm:$0xff] }
  0xdf   :  { %1107 = vmatpush1.msra.mxu1 %v479_v43  ;;  %1037 = vmatprep.subr.mxu0 %v348_v44  ;;  %v440_v16 = vld [vmem:[%s12019_s23 + $0xbd8] sm:$0xff]  ;;  %v439_v18 = vld [vmem:[%s12019_s23 + $0xbd0] sm:$0xff] }
  0xe0   :  { %1108 = vmatprep.subr.mxu1 %v476_v45  ;;  %1038 = vmatpush1.msra.mxu0 %v347_v46  ;;  %v568_v17 = vld [vmem:[%s12019_s23 + $0xfd8] sm:$0xff]  ;;  %v567_v19 = vld [vmem:[%s12019_s23 + $0xfd0] sm:$0xff] }
  0xe1   :  { %1109 = vmatpush1.msra.mxu1 %v475_v47  ;;  %1039 = vmatprep.subr.mxu0 %v344_v48  ;;  %v436_v20 = vld [vmem:[%s12019_s23 + $0xbb8] sm:$0xff]  ;;  %v435_v22 = vld [vmem:[%s12019_s23 + $0xbb0] sm:$0xff] }
  0xe2   :  { %1110 = vmatprep.subr.mxu1 %v472_v49  ;;  %1040 = vmatpush1.msra.mxu0 %v343_v50  ;;  %v564_v21 = vld [vmem:[%s12019_s23 + $0xfb8] sm:$0xff]  ;;  %v563_v23 = vld [vmem:[%s12019_s23 + $0xfb0] sm:$0xff] }
  0xe3   :  { %1111 = vmatpush1.msra.mxu1 %v471_v51  ;;  %1041 = vmatprep.subr.mxu0 %v340_v52  ;;  %v432_v24 = vld [vmem:[%s12019_s23 + $0xb98] sm:$0xff]  ;;  %v431_v26 = vld [vmem:[%s12019_s23 + $0xb90] sm:$0xff] }
  0xe4   :  { %1112 = vmatprep.subr.mxu1 %v468_v53  ;;  %1042 = vmatpush1.msra.mxu0 %v339_v54  ;;  %v560_v25 = vld [vmem:[%s12019_s23 + $0xf98] sm:$0xff]  ;;  %v559_v27 = vld [vmem:[%s12019_s23 + $0xf90] sm:$0xff] }
  0xe5   :  { %1113 = vmatpush1.msra.mxu1 %v467_v55  ;;  %1043 = vmatprep.subr.mxu0 %v336_v56  ;;  %v428_v28 = vld [vmem:[%s12019_s23 + $0xb78] sm:$0xff]  ;;  %v427_v30 = vld [vmem:[%s12019_s23 + $0xb70] sm:$0xff] }
  0xe6   :  { %1114 = vmatprep.subr.mxu1 %v464_v57  ;;  %1044 = vmatpush1.msra.mxu0 %v335_v58  ;;  %v556_v29 = vld [vmem:[%s12019_s23 + $0xf78] sm:$0xff]  ;;  %v555_v31 = vld [vmem:[%s12019_s23 + $0xf70] sm:$0xff] }
  0xe7   :  { %1115 = vmatpush1.msra.mxu1 %v463_v59  ;;  %1045 = vmatprep.subr.mxu0 %v332_v60  ;;  %v424_v32 = vld [vmem:[%s12019_s23 + $0xb58] sm:$0xff]  ;;  %v423_v34 = vld [vmem:[%s12019_s23 + $0xb50] sm:$0xff] }
  0xe8   :  { %1116 = vmatprep.subr.mxu1 %v460_v61  ;;  %1046 = vmatpush1.msra.mxu0 %v331_v62  ;;  %v552_v33 = vld [vmem:[%s12019_s23 + $0xf58] sm:$0xff]  ;;  %v551_v35 = vld [vmem:[%s12019_s23 + $0xf50] sm:$0xff] }
  0xe9   :  { %1117 = vmatpush1.msra.mxu1 %v459_v63  ;;  %1047 = vmatprep.subr.mxu0 %v328_v0  ;;  %v420_v36 = vld [vmem:[%s12019_s23 + $0xb38] sm:$0xff]  ;;  %v419_v38 = vld [vmem:[%s12019_s23 + $0xb30] sm:$0xff] }
  0xea   :  { %1118 = vmatprep.subr.mxu1 %v456_v1  ;;  %1048 = vmatpush1.msra.mxu0 %v327_v2  ;;  %v548_v37 = vld [vmem:[%s12019_s23 + $0xf38] sm:$0xff]  ;;  %v547_v39 = vld [vmem:[%s12019_s23 + $0xf30] sm:$0xff] }
  0xeb   :  { %1119 = vmatpush1.msra.mxu1 %v455_v3  ;;  %1049 = vmatprep.subr.mxu0 %v324_v4  ;;  %v416_v40 = vld [vmem:[%s12019_s23 + $0xb18] sm:$0xff]  ;;  %v415_v42 = vld [vmem:[%s12019_s23 + $0xb10] sm:$0xff] }
  0xec   :  { %1120 = vmatprep.subr.mxu1 %v452_v5  ;;  %1050 = vmatpush1.msra.mxu0 %v323_v6  ;;  %v544_v41 = vld [vmem:[%s12019_s23 + $0xf18] sm:$0xff]  ;;  %v543_v43 = vld [vmem:[%s12019_s23 + $0xf10] sm:$0xff] }
  0xed   :  { %1121 = vmatpush1.msra.mxu1 %v451_v7  ;;  %1051 = vmatprep.subr.mxu0 %v320_v8  ;;  %v412_v44 = vld [vmem:[%s12019_s23 + $0xaf8] sm:$0xff]  ;;  %v411_v46 = vld [vmem:[%s12019_s23 + $0xaf0] sm:$0xff] }
  0xee   :  { %1122 = vmatprep.subr.mxu1 %v448_v9  ;;  %1052 = vmatpush1.msra.mxu0 %v319_v10  ;;  %v540_v45 = vld [vmem:[%s12019_s23 + $0xef8] sm:$0xff]  ;;  %v539_v47 = vld [vmem:[%s12019_s23 + $0xef0] sm:$0xff] }
  0xef   :  { %1123 = vmatpush1.msra.mxu1 %v447_v11  ;;  %1053 = vmatprep.subr.mxu0 %v444_v12  ;;  %v408_v48 = vld [vmem:[%s12019_s23 + $0xad8] sm:$0xff]  ;;  %v407_v50 = vld [vmem:[%s12019_s23 + $0xad0] sm:$0xff]  ;;  %v5671_v12 = vld [vmem:[%s12001_s0 + $0x28] sm:$0xff] }
  0xf0   :  { %1124 = vmatprep.subr.mxu1 %v572_v13  ;;  %1054 = vmatpush2.msra.mxu0 %v443_v14  ;;  %v536_v49 = vld [vmem:[%s12019_s23 + $0xed8] sm:$0xff]  ;;  %v535_v51 = vld [vmem:[%s12019_s23 + $0xed0] sm:$0xff]  ;;  %v1644_v13 = vld [vmem:[%s12002_s4 + $0x1e8] sm:$0xff] }
  0xf1   :  { %1125 = vmatpush2.msra.mxu1 %v571_v15  ;;  %1055 = vmatprep.subr.mxu0 %v440_v16  ;;  %v404_v52 = vld [vmem:[%s12019_s23 + $0xab8] sm:$0xff]  ;;  %v403_v54 = vld [vmem:[%s12019_s23 + $0xab0] sm:$0xff]  ;;  %v1643_v15 = vld [vmem:[%s12002_s4 + $0x1e0] sm:$0xff] }
  0xf2   :  { %1126 = vmatprep.subr.mxu1 %v568_v17  ;;  %1056 = vmatpush2.msra.mxu0 %v439_v18  ;;  %v532_v53 = vld [vmem:[%s12019_s23 + $0xeb8] sm:$0xff]  ;;  %v531_v55 = vld [vmem:[%s12019_s23 + $0xeb0] sm:$0xff]  ;;  %v5673_v16 = vld [vmem:[%s12001_s0 + $0x20] sm:$0xff] }
  0xf3   :  { %1127 = vmatpush2.msra.mxu1 %v567_v19  ;;  %1057 = vmatprep.subr.mxu0 %v436_v20  ;;  %v400_v56 = vld [vmem:[%s12019_s23 + $0xa98] sm:$0xff]  ;;  %v399_v58 = vld [vmem:[%s12019_s23 + $0xa90] sm:$0xff]  ;;  %v1640_v18 = vld [vmem:[%s12002_s4 + $0x1c8] sm:$0xff] }
  0xf4   :  { %1128 = vmatprep.subr.mxu1 %v564_v21  ;;  %1058 = vmatpush2.msra.mxu0 %v435_v22  ;;  %v528_v57 = vld [vmem:[%s12019_s23 + $0xe98] sm:$0xff]  ;;  %v527_v59 = vld [vmem:[%s12019_s23 + $0xe90] sm:$0xff]  ;;  %v1639_v19 = vld [vmem:[%s12002_s4 + $0x1c0] sm:$0xff] }
  0xf5   :  { %1129 = vmatpush2.msra.mxu1 %v563_v23  ;;  %1059 = vmatprep.subr.mxu0 %v432_v24  ;;  %v396_v60 = vld [vmem:[%s12019_s23 + $0xa78] sm:$0xff]  ;;  %v395_v62 = vld [vmem:[%s12019_s23 + $0xa70] sm:$0xff]  ;;  %v1636_v20 = vld [vmem:[%s12002_s4 + $0x1a8] sm:$0xff] }
  0xf6   :  { %1130 = vmatprep.subr.mxu1 %v560_v25  ;;  %1060 = vmatpush2.msra.mxu0 %v431_v26  ;;  %v524_v61 = vld [vmem:[%s12019_s23 + $0xe78] sm:$0xff]  ;;  %v523_v63 = vld [vmem:[%s12019_s23 + $0xe70] sm:$0xff]  ;;  %v1635_v21 = vld [vmem:[%s12002_s4 + $0x1a0] sm:$0xff] }
  0xf7   :  { %1131 = vmatpush2.msra.mxu1 %v559_v27  ;;  %1061 = vmatprep.subr.mxu0 %v428_v28  ;;  %v392_v0 = vld [vmem:[%s12019_s23 + $0xa58] sm:$0xff]  ;;  %v391_v2 = vld [vmem:[%s12019_s23 + $0xa50] sm:$0xff]  ;;  %v1632_v22 = vld [vmem:[%s12002_s4 + $0x188] sm:$0xff] }
  0xf8   :  { %1132 = vmatprep.subr.mxu1 %v556_v29  ;;  %1062 = vmatpush2.msra.mxu0 %v427_v30  ;;  %v520_v1 = vld [vmem:[%s12019_s23 + $0xe58] sm:$0xff]  ;;  %v519_v3 = vld [vmem:[%s12019_s23 + $0xe50] sm:$0xff]  ;;  %v1631_v23 = vld [vmem:[%s12002_s4 + $0x180] sm:$0xff] }
  0xf9   :  { %1133 = vmatpush2.msra.mxu1 %v555_v31  ;;  %1063 = vmatprep.subr.mxu0 %v424_v32  ;;  %v388_v4 = vld [vmem:[%s12019_s23 + $0xa38] sm:$0xff]  ;;  %v387_v6 = vld [vmem:[%s12019_s23 + $0xa30] sm:$0xff]  ;;  %v1628_v24 = vld [vmem:[%s12002_s4 + $0x168] sm:$0xff] }
  0xfa   :  { %1134 = vmatprep.subr.mxu1 %v552_v33  ;;  %1064 = vmatpush2.msra.mxu0 %v423_v34  ;;  %v516_v5 = vld [vmem:[%s12019_s23 + $0xe38] sm:$0xff]  ;;  %v515_v7 = vld [vmem:[%s12019_s23 + $0xe30] sm:$0xff]  ;;  %v1627_v25 = vld [vmem:[%s12002_s4 + $0x160] sm:$0xff] }
  0xfb   :  { %1135 = vmatpush2.msra.mxu1 %v551_v35  ;;  %1065 = vmatprep.subr.mxu0 %v420_v36  ;;  %v384_v8 = vld [vmem:[%s12019_s23 + $0xa18] sm:$0xff]  ;;  %v383_v10 = vld [vmem:[%s12019_s23 + $0xa10] sm:$0xff]  ;;  %v1624_v26 = vld [vmem:[%s12002_s4 + $0x148] sm:$0xff] }
  0xfc   :  { %1136 = vmatprep.subr.mxu1 %v548_v37  ;;  %1066 = vmatpush2.msra.mxu0 %v419_v38  ;;  %v512_v9 = vld [vmem:[%s12019_s23 + $0xe18] sm:$0xff]  ;;  %v511_v11 = vld [vmem:[%s12019_s23 + $0xe10] sm:$0xff]  ;;  %v1623_v27 = vld [vmem:[%s12002_s4 + $0x140] sm:$0xff] }
  0xfd   :  { %1137 = vmatpush2.msra.mxu1 %v547_v39  ;;  %1067 = vmatprep.subr.mxu0 %v416_v40  ;;  %v5672_v14 = vld [vmem:[%s12001_s0 + $0x38] sm:$0xff]  ;;  %v5674_v17 = vld [vmem:[%s12001_s0 + $0x30] sm:$0xff]  ;;  %v1620_v28 = vld [vmem:[%s12002_s4 + $0x128] sm:$0xff] }
  0xfe   :  { %1138 = vmatprep.subr.mxu1 %v544_v41  ;;  %1068 = vmatpush2.msra.mxu0 %v415_v42  ;;  %v1619_v29 = vld [vmem:[%s12002_s4 + $0x120] sm:$0xff]  ;;  %v1616_v30 = vld [vmem:[%s12002_s4 + $0x108] sm:$0xff] }
  0xff   :  { %1139 = vmatpush2.msra.mxu1 %v543_v43  ;;  %1069 = vmatprep.subr.mxu0 %v412_v44  ;;  %v1615_v31 = vld [vmem:[%s12002_s4 + $0x100] sm:$0xff]  ;;  %v1612_v32 = vld [vmem:[%s12002_s4 + $0xe8] sm:$0xff] }
 0x100   :  { %1140 = vmatprep.subr.mxu1 %v540_v45  ;;  %1070 = vmatpush2.msra.mxu0 %v411_v46  ;;  %v1611_v33 = vld [vmem:[%s12002_s4 + $0xe0] sm:$0xff]  ;;  %v1608_v34 = vld [vmem:[%s12002_s4 + $0xc8] sm:$0xff] }
 0x101   :  { %1141 = vmatpush2.msra.mxu1 %v539_v47  ;;  %1071 = vmatprep.subr.mxu0 %v408_v48  ;;  %v1607_v35 = vld [vmem:[%s12002_s4 + $0xc0] sm:$0xff]  ;;  %v1604_v36 = vld [vmem:[%s12002_s4 + $0xa8] sm:$0xff] }
 0x102   :  { %1142 = vmatprep.subr.mxu1 %v536_v49  ;;  %1072 = vmatpush2.msra.mxu0 %v407_v50  ;;  %v1603_v37 = vld [vmem:[%s12002_s4 + $0xa0] sm:$0xff]  ;;  %v1600_v38 = vld [vmem:[%s12002_s4 + $0x88] sm:$0xff] }
 0x103   :  { %1143 = vmatpush2.msra.mxu1 %v535_v51  ;;  %1073 = vmatprep.subr.mxu0 %v404_v52  ;;  %v1599_v39 = vld [vmem:[%s12002_s4 + $0x80] sm:$0xff]  ;;  %v1596_v40 = vld [vmem:[%s12002_s4 + $0x68] sm:$0xff] }
 0x104   :  { %1144 = vmatprep.subr.mxu1 %v532_v53  ;;  %1074 = vmatpush2.msra.mxu0 %v403_v54  ;;  %v1595_v41 = vld [vmem:[%s12002_s4 + $0x60] sm:$0xff]  ;;  %v1592_v42 = vld [vmem:[%s12002_s4 + $0x48] sm:$0xff] }
 0x105   :  { %1145 = vmatpush2.msra.mxu1 %v531_v55  ;;  %1075 = vmatprep.subr.mxu0 %v400_v56  ;;  %v1591_v43 = vld [vmem:[%s12002_s4 + $0x40] sm:$0xff]  ;;  %v1588_v44 = vld [vmem:[%s12002_s4 + $0x28] sm:$0xff]  ;;  %v575_v56 = vlaneseq }
 0x106   :  { %1146 = vmatprep.subr.mxu1 %v528_v57  ;;  %1076 = vmatpush2.msra.mxu0 %v399_v58  ;;  %v1587_v45 = vld [vmem:[%s12002_s4 + $0x20] sm:$0xff]  ;;  %v1584_v46 = vld [vmem:[%s12002_s4 + $0x8] sm:$0xff] }
 0x107   :  { %1147 = vmatpush2.msra.mxu1 %v527_v59  ;;  %1077 = vmatprep.subr.mxu0 %v396_v60  ;;  %v1583_v47 = vld [vmem:[%s12002_s4] sm:$0xff]  ;;  %v1708_v48 = vld [vmem:[%s12002_s4 + $0x3e8] sm:$0xff] }
 0x108   :  { %1148 = vmatprep.subr.mxu1 %v524_v61  ;;  %1078 = vmatpush2.msra.mxu0 %v395_v62  ;;  %v1707_v49 = vld [vmem:[%s12002_s4 + $0x3e0] sm:$0xff]  ;;  %v1704_v50 = vld [vmem:[%s12002_s4 + $0x3c8] sm:$0xff]  ;;  %v7484_v61 = vshrl.u32 %v575_v56, 7 }
 0x109   :  { %1149 = vmatpush2.msra.mxu1 %v523_v63  ;;  %1079 = vmatprep.subr.mxu0 %v392_v0  ;;  %v1703_v51 = vld [vmem:[%s12002_s4 + $0x3c0] sm:$0xff]  ;;  %v1700_v52 = vld [vmem:[%s12002_s4 + $0x3a8] sm:$0xff] }
 0x10a   :  { %1150 = vmatprep.subr.mxu1 %v520_v1  ;;  %1080 = vmatpush2.msra.mxu0 %v391_v2  ;;  %v1699_v53 = vld [vmem:[%s12002_s4 + $0x3a0] sm:$0xff]  ;;  %v1696_v54 = vld [vmem:[%s12002_s4 + $0x388] sm:$0xff]  ;;  %v7499_v2 = vsub.s32 0, %v7484_v61 }
 0x10b   :  { %1151 = vmatpush2.msra.mxu1 %v519_v3  ;;  %1081 = vmatprep.subr.mxu0 %v388_v4  ;;  %v1695_v55 = vld [vmem:[%s12002_s4 + $0x380] sm:$0xff]  ;;  %v1692_v57 = vld [vmem:[%s12002_s4 + $0x368] sm:$0xff] }
 0x10c   :  { %1152 = vmatprep.subr.mxu1 %v516_v5  ;;  %1082 = vmatpush2.msra.mxu0 %v387_v6  ;;  %v1691_v58 = vld [vmem:[%s12002_s4 + $0x360] sm:$0xff]  ;;  %v1688_v59 = vld [vmem:[%s12002_s4 + $0x348] sm:$0xff]  ;;  %v7513_v6 = vsub.s32 1, %v7484_v61 }
 0x10d   :  { %1153 = vmatpush2.msra.mxu1 %v515_v7  ;;  %1083 = vmatprep.subr.mxu0 %v384_v8  ;;  %v1687_v60 = vld [vmem:[%s12002_s4 + $0x340] sm:$0xff]  ;;  %v1684_v62 = vld [vmem:[%s12002_s4 + $0x328] sm:$0xff]  ;;  %v661_v8 = vpop.f32.mrf.mxu0 }
 0x10e   :  { %1154 = vmatprep.subr.mxu1 %v512_v9  ;;  %1084 = vmatpush2.msra.mxu0 %v383_v10  ;;  %v1683_v63 = vld [vmem:[%s12002_s4 + $0x320] sm:$0xff]  ;;  %v1680_v0 = vld [vmem:[%s12002_s4 + $0x308] sm:$0xff] }
 0x10f   :  { %1085 = vmatprep.mubr.f32.mxu0 %v5671_v12  ;;  %1155 = vmatpush2.msra.mxu1 %v511_v11  ;;  %v1679_v1 = vld [vmem:[%s12002_s4 + $0x300] sm:$0xff]  ;;  %v1676_v3 = vld [vmem:[%s12002_s4 + $0x2e8] sm:$0xff] }
 0x110   :  { %1156 = vmatprep.mubr.f32.mxu1 %v5672_v14  ;;  %1086 = vmatmul.mubr.f32.vlgmr.msra.gmra.mxu0 %v5673_v16  ;;  %v7507_v4 = vld [vmem:[%s12003_s3] sm:$0xf]  ;;  %v1672_v7 = vld [vmem:[%s12002_s4 + $0x2c8] sm:$0xff]  ;;  %v663_v16 = vpop.f32.mrf.mxu0 }
 0x111   :  { %1157 = vmatmul.mubr.f32.vlgmr.msra.gmra.mxu1 %v5674_v17  ;;  %1861 = vmatprep.subr.mxu0 %v1644_v13  ;;  %v1675_v5 = vld [vmem:[%s12002_s4 + $0x2e0] sm:$0xff]  ;;  %v578_v10 = vrot.slane %v7507_v4, %v7499_v2  ;;  %v1668_v11 = vld [vmem:[%s12002_s4 + $0x2a8] sm:$0xff]  ;;  %v582_v13 = vrot.slane %v7507_v4, %v7513_v6 }
 0x112   :  { %1862 = vmatpush1.msra.mxu0 %v1643_v15  ;;  %v1671_v9 = vld [vmem:[%s12002_s4 + $0x2c0] sm:$0xff]  ;;  %v1664_v14 = vld [vmem:[%s12002_s4 + $0x288] sm:$0xff]  ;;  %v732_v15 = vpop.f32.mrf.mxu1 }
 0x113   :  { %1863 = vmatprep.subr.mxu0 %v1640_v18  ;;  %v1667_v12 = vld [vmem:[%s12002_s4 + $0x2a0] sm:$0xff]  ;;  %v662_v18 = vadd.f32 %v661_v8, %v578_v10 }
 0x114   :  { %1864 = vmatpush1.msra.mxu0 %v1639_v19  ;;  %v1663_v17 = vld [vmem:[%s12002_s4 + $0x280] sm:$0xff]  ;;  %v1660_v19 = vld [vmem:[%s12002_s4 + $0x268] sm:$0xff] }
 0x115   :  { %1865 = vmatprep.subr.mxu0 %v1636_v20  ;;  %v1659_v20 = vld [vmem:[%s12002_s4 + $0x260] sm:$0xff] }
 0x116   :  { %1866 = vmatpush1.msra.mxu0 %v1635_v21  ;;  %v664_v21 = vadd.f32 %v663_v16, %v582_v13  ;;  %v5680_v16 = vmov 1326507024  }
 0x117   :  { %1867 = vmatprep.subr.mxu0 %v1632_v22  ;;  %v1656_v22 = vld [vmem:[%s12002_s4 + $0x248] sm:$0xff] }
 0x118   :  { %1868 = vmatpush1.msra.mxu0 %v1631_v23  ;;  %v734_v23 = vpop.f32.mrf.mxu1 }
 0x119   :  { %1869 = vmatprep.subr.mxu0 %v1628_v24  ;;  %v1655_v24 = vld [vmem:[%s12002_s4 + $0x240] sm:$0xff] }
 0x11a   :  { %1870 = vmatpush1.msra.mxu0 %v1627_v25  ;;  %v733_v25 = vadd.f32 %v732_v15, %v662_v18 }
 0x11b   :  { %1871 = vmatprep.subr.mxu0 %v1624_v26  ;;  %v1652_v26 = vld [vmem:[%s12002_s4 + $0x228] sm:$0xff] }
 0x11c   :  { %1872 = vmatpush1.msra.mxu0 %v1623_v27 }
 0x11d   :  { %1873 = vmatprep.subr.mxu0 %v1620_v28  ;;  %v1651_v28 = vld [vmem:[%s12002_s4 + $0x220] sm:$0xff] }
 0x11e   :  { %1874 = vmatpush1.msra.mxu0 %v1619_v29  ;;  %v735_v29 = vadd.f32 %v734_v23, %v664_v21 }
 0x11f   :  { %1875 = vmatprep.subr.mxu0 %v1616_v30 }
 0x120   :  { %1876 = vmatpush1.msra.mxu0 %v1615_v31  ;;  %v1648_v31 = vld [vmem:[%s12002_s4 + $0x208] sm:$0xff] }
 0x121   :  { %1877 = vmatprep.subr.mxu0 %v1612_v32 }
 0x122   :  { %1878 = vmatpush1.msra.mxu0 %v1611_v33 }
 0x123   :  { %1879 = vmatprep.subr.mxu0 %v1608_v34  ;;  %v1647_v34 = vld [vmem:[%s12002_s4 + $0x200] sm:$0xff] }
 0x124   :  { %1880 = vmatpush1.msra.mxu0 %v1607_v35 }
 0x125   :  { %1881 = vmatprep.subr.mxu0 %v1604_v36 }
 0x126   :  { %1882 = vmatpush1.msra.mxu0 %v1603_v37  ;;  %v1646_v37 = vld [vmem:[%s12002_s4 + $0x1f8] sm:$0xff] }
 0x127   :  { %1883 = vmatprep.subr.mxu0 %v1600_v38 }
 0x128   :  { %1884 = vmatpush1.msra.mxu0 %v1599_v39 }
 0x129   :  { %1885 = vmatprep.subr.mxu0 %v1596_v40 }
 0x12a   :  { %1886 = vmatpush1.msra.mxu0 %v1595_v41 }
 0x12b   :  { %1887 = vmatprep.subr.mxu0 %v1592_v42 }
 0x12c   :  { %1888 = vmatpush1.msra.mxu0 %v1591_v43 }
 0x12d   :  { %1889 = vmatprep.subr.mxu0 %v1588_v44 }
 0x12e   :  { %1890 = vmatpush1.msra.mxu0 %v1587_v45 }
 0x12f   :  { %1891 = vmatprep.subr.mxu0 %v1584_v46 }
 0x130   :  { %1892 = vmatpush1.msra.mxu0 %v1583_v47 }
 0x131   :  { %1893 = vmatprep.subr.mxu0 %v1708_v48 }
 0x132   :  { %1894 = vmatpush2.msra.mxu0 %v1707_v49 }
 0x133   :  { %1895 = vmatprep.subr.mxu0 %v1704_v50 }
 0x134   :  { %1896 = vmatpush2.msra.mxu0 %v1703_v51 }
 0x135   :  { %1897 = vmatprep.subr.mxu0 %v1700_v52 }
 0x136   :  { %1898 = vmatpush2.msra.mxu0 %v1699_v53 }
 0x137   :  { %1899 = vmatprep.subr.mxu0 %v1696_v54 }
 0x138   :  { %1900 = vmatpush2.msra.mxu0 %v1695_v55 }
 0x139   :  { %1901 = vmatprep.subr.mxu0 %v1692_v57 }
 0x13a   :  { %1902 = vmatpush2.msra.mxu0 %v1691_v58 }
 0x13b   :  { %1903 = vmatprep.subr.mxu0 %v1688_v59  ;;  %v5675_v59 = vmov 683565275  }
 0x13c   :  { %1904 = vmatpush2.msra.mxu0 %v1687_v60 }
 0x13d   :  { %1905 = vmatprep.subr.mxu0 %v1684_v62 }
 0x13e   :  { %1906 = vmatpush2.msra.mxu0 %v1683_v63 }
 0x13f   :  { %1907 = vmatprep.subr.mxu0 %v1680_v0  ;;  %v5676_v0 = vmov 2475754826  }
 0x140   :  { %1908 = vmatpush2.msra.mxu0 %v1679_v1 }
 0x141   :  { %1909 = vmatprep.subr.mxu0 %v1676_v3  ;;  %v5677_v3 = vmov 2131351028  }
 0x142   :  { %1910 = vmatpush2.msra.mxu0 %v1675_v5 }
 0x143   :  { %1911 = vmatprep.subr.mxu0 %v1672_v7  ;;  %v5678_v7 = vmov 2102212464  }
 0x144   :  { %1912 = vmatpush2.msra.mxu0 %v1671_v9  ;;  %v5679_v9 = vmov 920167782  }
 0x145   :  { %1913 = vmatprep.subr.mxu0 %v1668_v11 }
 0x146   :  { %1914 = vmatpush2.msra.mxu0 %v1667_v12 }
 0x147   :  { %1915 = vmatprep.subr.mxu0 %v1664_v14 }
 0x148   :  { %1916 = vmatpush2.msra.mxu0 %v1663_v17 }
 0x149   :  { %1917 = vmatprep.subr.mxu0 %v1660_v19 }
 0x14a   :  { %1918 = vmatpush2.msra.mxu0 %v1659_v20 }
 0x14b   :  { %1919 = vmatprep.subr.mxu0 %v1656_v22 }
 0x14c   :  { %v803_v27 = vpop.f32.mrf.mxu0  ;;  %1920 = vmatpush2.msra.mxu0 %v1655_v24 }
 0x14d   :  { %v804_v30 = vadd.f32 %v803_v27, %v733_v25  ;;  %1921 = vmatprep.subr.mxu0 %v1652_v26 }
 0x14e   :  { %v874_v32 = vpop.f32.mrf.mxu1  ;;  %v805_v33 = vpop.f32.mrf.mxu0  ;;  %1922 = vmatpush2.msra.mxu0 %v1651_v28 }
 0x14f   :  { %v875_v35 = vadd.f32 %v874_v32, %v804_v30  ;;  %v806_v36 = vadd.f32 %v805_v33, %v735_v29  ;;  %1923 = vmatprep.subr.mxu0 %v1648_v31 }
 0x150   :  { %v876_v38 = vpop.f32.mrf.mxu1  ;;  %1924 = vmatpush2.msra.mxu0 %v1647_v34 }
 0x151   :  { %v7564_v39 = vmul.f32 30.0, %v875_v35  ;;  %v877_v40 = vadd.f32 %v876_v38, %v806_v36  ;;  %2003 = vmatprep.subr.mxu0 %v1646_v37 }
 0x153   :  { %v1167_v41 = vand.u32 2147483647, %v7564_v39  ;;  %v1170_v42 = vand.u32 2139095040, %v7564_v39  ;;  %v7568_v43 = vmul.f32 30.0, %v877_v40  ;;  %vm1169_vm14 = vcmp.lt.s32.totalorder %v7564_v39, 0 }
 0x155   :  { %v1171_v44 = vshrl.u32 %v1170_v42, 23  ;;  %v1274_v45 = vand.u32 2139095040, %v7568_v43  ;;  %v1174_v47 = vand.u32 8388607, %v1167_v41  ;;  %v1271_v51 = vand.u32 2147483647, %v7568_v43 }
 0x156   :  { %vm7754_vm15 = vcmp.le.f32.partialorder %v1167_v41, 0.7853982  ;;  %v1832_v41 = vld [vmem:[%s12002_s4 + $0x7c8] sm:$0xff] }
 0x157   :  { %v5414_v46 = vadd.s32 4294967169, %v1171_v44  ;;  %v1275_v48 = vshrl.u32 %v1274_v45, 23  ;;  %v1175_v52 = vor.u32 8388608, %v1174_v47  ;;  %v7576_v57 = vand.u32 8388607, %v1271_v51 }
 0x159   :  { %v1177_v49 = vadd.s32 1, %v5414_v46  ;;  %v5418_v50 = vadd.s32 4294967169, %v1275_v48  ;;  %v7579_v62 = vshll.u32 %v1175_v52, 8 }
 0x15b   :  { %vm1178_vm0 = vcmp.gt.s32.totalorder %v1177_v49, 0  ;;  %v1281_v53 = vadd.s32 1, %v5418_v50  ;;  %v1279_v50 = vor.u32 8388608, %v7576_v57 }
 0x15c   :  { %v1179_v54 = vsel %vm1178_vm0, %v1177_v49, 0  ;;  %vm1273_vm0 = vcmp.lt.s32.totalorder %v7568_v43, 0 }
 0x15d   :  { %v1180_v55 = vshrl.u32 %v1179_v54, 5  ;;  %v1181_v56 = vand.u32 31, %v1179_v54  ;;  %vm1282_vm1 = vcmp.gt.s32.totalorder %v1281_v53, 0 }
 0x15e   :  { %v1283_v63 = vsel %vm1282_vm1, %v1281_v53, 0  ;;  %vm7799_vm1 = vcmp.le.f32.partialorder %v1271_v51, 0.7853982  ;;  %v1812_v51 = vld [vmem:[%s12002_s4 + $0x728] sm:$0xff] }
 0x15f   :  { %v1182_v58 = vsub.s32 32, %v1181_v56  ;;  %v1184_v60 = vshll.u32 %v5675_v59, %v1181_v56  ;;  %v1187_v1 = vshll.u32 %v5676_v0, %v1181_v56  ;;  %v1190_v5 = vshll.u32 %v5677_v3, %v1181_v56 }
 0x160   :  { %v1193_v8 = vshll.u32 %v5678_v7, %v1181_v56  ;;  %v1196_v10 = vshll.u32 %v5679_v9, %v1181_v56  ;;  %vm1199_vm2 = vcmp.lt.s32.totalorder %v1180_v55, 1  ;;  %vm1200_vm3 = vcmp.lt.s32.totalorder %v1180_v55, 2 }
 0x161   :  { %v1185_v11 = vshrl.u32 %v5676_v0, %v1182_v58  ;;  %v1188_v12 = vshrl.u32 %v5677_v3, %v1182_v58  ;;  %v1191_v13 = vshrl.u32 %v5678_v7, %v1182_v58  ;;  %v1183_v14 = vshrl.u32 %v5675_v59, %v1182_v58 }
 0x162   :  { %v1194_v15 = vshrl.u32 %v5679_v9, %v1182_v58  ;;  %v1197_v17 = vshrl.u32 %v5680_v16, %v1182_v58  ;;  %vm1201_vm4 = vcmp.lt.s32.totalorder %v1180_v55, 3  ;;  %vm1202_vm5 = vcmp.lt.s32.totalorder %v1180_v55, 4 }
 0x163   :  { %v1186_v18 = vor.u32 %v1185_v11, %v1184_v60  ;;  %v1189_v19 = vor.u32 %v1188_v12, %v1187_v1  ;;  %v1192_v20 = vor.u32 %v1191_v13, %v1190_v5  ;;  %v1285_v23 = vand.u32 31, %v1283_v63 }
 0x164   :  { %v1195_v21 = vor.u32 %v1194_v15, %v1193_v8  ;;  %v1198_v22 = vor.u32 %v1197_v17, %v1196_v10  ;;  %v1284_v35 = vshrl.u32 %v1283_v63, 5  ;;  %v1319_v17 = vshll.u32 %v1279_v50, 8 }
 0x165   :  { %v1203_v24 = vsel %vm1199_vm2, %v1183_v14, %v1186_v18  ;;  %v1204_v25 = vsel %vm1202_vm5, %v1192_v20, 2102212464  ;;  %v1207_v26 = vsel %vm1199_vm2, %v1186_v18, %v1189_v19  ;;  %v1211_v27 = vsel %vm1199_vm2, %v1189_v19, %v1192_v20 }
 0x166   :  { %v1205_v28 = vsel %vm1201_vm4, %v1189_v19, %v1204_v25  ;;  %v1208_v29 = vsel %vm1202_vm5, %v1195_v21, 920167782  ;;  %v1212_v30 = vsel %vm1202_vm5, %v1198_v22, 1326507024  ;;  %v1286_v31 = vsub.s32 32, %v1285_v23 }
 0x167   :  { %v1206_v32 = vsel %vm1200_vm3, %v1203_v24, %v1205_v28  ;;  %v1209_v33 = vsel %vm1201_vm4, %v1192_v20, %v1208_v29  ;;  %v1213_v34 = vsel %vm1201_vm4, %v1195_v21, %v1212_v30  ;;  %v1297_v38 = vshll.u32 %v5678_v7, %v1285_v23 }
 0x168   :  { %v1210_v36 = vsel %vm1200_vm3, %v1207_v26, %v1209_v33  ;;  %v1214_v37 = vsel %vm1200_vm3, %v1211_v27, %v1213_v34  ;;  %v1298_v40 = vshrl.u32 %v5679_v9, %v1286_v31  ;;  %v1300_v47 = vshll.u32 %v5679_v9, %v1285_v23  ;;  %v1771_v33 = vld [vmem:[%s12002_s4 + $0x5e0] sm:$0xff] }
 0x169   :  { %v7600_v42 = vmul.u32.u64.low %v7579_v62, %v1214_v37  ;;  %v7601_v44 = vmul.u32.u64.high %v7579_v62, %v1214_v37, %v7600_v42  ;;  %v7604_v45 = vmul.u32.u64.low %v7579_v62, %v1210_v36  ;;  %v7605_v46 = vmul.u32.u64.high %v7579_v62, %v1210_v36, %v7604_v45  ;;  %v1768_v36 = vld [vmem:[%s12002_s4 + $0x5c8] sm:$0xff] }
 0x16a   :  { %v1301_v48 = vshrl.u32 %v5680_v16, %v1286_v31  ;;  %v1299_v49 = vor.u32 %v1298_v40, %v1297_v38  ;;  %v1288_v52 = vshll.u32 %v5675_v59, %v1285_v23  ;;  %v1289_v53 = vshrl.u32 %v5676_v0, %v1286_v31  ;;  %v1767_v38 = vld [vmem:[%s12002_s4 + $0x5c0] sm:$0xff] }
 0x16b   :  { %v1222_v54 = vmul.u32 %v7579_v62, %v1206_v32  ;;  %v1291_v56 = vshll.u32 %v5676_v0, %v1285_v23  ;;  %v1292_v58 = vshrl.u32 %v5677_v3, %v1286_v31  ;;  %vm1224_vm6 = vc.u32 %v7601_v44, %v7604_v45 }
 0x16c   :  { %v1302_v55 = vor.u32 %v1301_v48, %v1300_v47  ;;  %v1225_v60 = vadd.s32 1, %v7605_v46  ;;  %vm1306_vm7 = vcmp.lt.s32.totalorder %v1284_v35, 4  ;;  %v1290_v63 = vor.u32 %v1289_v53, %v1288_v52  ;;  %v1763_v47 = vld [vmem:[%s12002_s4 + $0x5a0] sm:$0xff] }
 0x16d   :  { %v1293_v1 = vor.u32 %v1292_v58, %v1291_v56  ;;  %v1294_v5 = vshll.u32 %v5677_v3, %v1285_v23  ;;  %v1295_v8 = vshrl.u32 %v5678_v7, %v1286_v31  ;;  %v1312_v10 = vsel %vm1306_vm7, %v1299_v49, 920167782  ;;  %v1759_v53 = vld [vmem:[%s12002_s4 + $0x580] sm:$0xff] }
 0x16e   :  { %v1316_v57 = vsel %vm1306_vm7, %v1302_v55, 1326507024  ;;  %v1226_v62 = vsel %vm1224_vm6, %v1225_v60, %v7605_v46  ;;  %vm1303_vm8 = vcmp.lt.s32.totalorder %v1284_v35, 1  ;;  %vm1305_vm9 = vcmp.lt.s32.totalorder %v1284_v35, 3  ;;  %v1755_v58 = vld [vmem:[%s12002_s4 + $0x560] sm:$0xff]  ;;  %v1752_v60 = vld [vmem:[%s12002_s4 + $0x548] sm:$0xff] }
 0x16f   :  { %v1227_v11 = vadd.s32 %v1226_v62, %v1222_v54  ;;  %v1296_v12 = vor.u32 %v1295_v8, %v1294_v5  ;;  %v1311_v13 = vsel %vm1303_vm8, %v1290_v63, %v1293_v1  ;;  %v1317_v14 = vsel %vm1305_vm9, %v1299_v49, %v1316_v57  ;;  %v1760_v49 = vld [vmem:[%s12002_s4 + $0x588] sm:$0xff]  ;;  %v1747_v62 = vld [vmem:[%s12002_s4 + $0x520] sm:$0xff] }
 0x170   :  { %v1287_v15 = vshrl.u32 %v5675_v59, %v1286_v31  ;;  %vm1304_vm10 = vcmp.lt.s32.totalorder %v1284_v35, 2  ;;  %v1772_v31 = vld [vmem:[%s12002_s4 + $0x5e8] sm:$0xff] }
 0x171   :  { %v1228_v18 = vadd.s32 536870912, %v1227_v11  ;;  %v1308_v19 = vsel %vm1306_vm7, %v1296_v12, 2102212464  ;;  %v1313_v20 = vsel %vm1305_vm9, %v1296_v12, %v1312_v10  ;;  %v1315_v21 = vsel %vm1303_vm8, %v1293_v1, %v1296_v12  ;;  %1932 = vmatprep.subr.mxu1 %v1772_v31  ;;  %v1764_v35 = vld [vmem:[%s12002_s4 + $0x5a8] sm:$0xff] }
 0x172   :  { %v1307_v22 = vsel %vm1303_vm8, %v1287_v15, %v1290_v63  ;;  %v1314_v23 = vsel %vm1304_vm10, %v1311_v13, %v1313_v20  ;;  %v1318_v24 = vsel %vm1304_vm10, %v1315_v21, %v1317_v14  ;;  %v1309_v26 = vsel %vm1305_vm9, %v1293_v1, %v1308_v19  ;;  %1933 = vmatpush1.msra.mxu1 %v1771_v33  ;;  %v1756_v54 = vld [vmem:[%s12002_s4 + $0x568] sm:$0xff]  ;;  %v1751_v1 = vld [vmem:[%s12002_s4 + $0x540] sm:$0xff] }
 0x173   :  { %v7630_v25 = vshrl.u32 %v1228_v18, 30  ;;  %v7633_v27 = vmul.u32.u64.low %v1319_v17, %v1318_v24  ;;  %v7634_v28 = vmul.u32.u64.high %v1319_v17, %v1318_v24, %v7633_v27  ;;  %v1310_v34 = vsel %vm1304_vm10, %v1307_v22, %v1309_v26  ;;  %1934 = vmatprep.subr.mxu1 %v1768_v36  ;;  %v1748_v5 = vld [vmem:[%s12002_s4 + $0x528] sm:$0xff]  ;;  %v1731_v33 = vld [vmem:[%s12002_s4 + $0x4a0] sm:$0xff] }
 0x174   :  { %v7636_v29 = vmul.u32.u64.low %v1319_v17, %v1314_v23  ;;  %v7637_v30 = vmul.u32.u64.high %v1319_v17, %v1314_v23, %v7636_v29  ;;  %1935 = vmatpush1.msra.mxu1 %v1767_v38  ;;  %v1326_v46 = vmul.u32 %v1319_v17, %v1310_v34  ;;  %v1223_v12 = vadd.s32 %v7604_v45, %v7601_v44  ;;  %v1743_v17 = vld [vmem:[%s12002_s4 + $0x500] sm:$0xff]  ;;  %v1740_v18 = vld [vmem:[%s12002_s4 + $0x4e8] sm:$0xff] }
 0x175   :  { %v1230_v32 = vshll.u32 %v7630_v25, 30  ;;  %1936 = vmatprep.subr.mxu1 %v1764_v35  ;;  %v1739_v44 = vld [vmem:[%s12002_s4 + $0x4e0] sm:$0xff]  ;;  %v1736_v45 = vld [vmem:[%s12002_s4 + $0x4c8] sm:$0xff]  ;;  %vm1363_vm8 = vweird.f32 %v7568_v43  ;;  %vm1259_vm9 = vweird.f32 %v7564_v39 }
 0x176   :  { %vm1328_vm11 = vc.u32 %v7634_v28, %v7636_v29  ;;  %v1329_v40 = vadd.s32 1, %v7637_v30  ;;  %1937 = vmatpush1.msra.mxu1 %v1763_v47  ;;  %v1735_v27 = vld [vmem:[%s12002_s4 + $0x4c0] sm:$0xff]  ;;  %v1728_v34 = vld [vmem:[%s12002_s4 + $0x488] sm:$0xff] }
 0x177   :  { %v1231_v37 = vsub.s32 %v1227_v11, %v1230_v32  ;;  %1938 = vmatprep.subr.mxu1 %v1760_v49  ;;  %v1744_v11 = vld [vmem:[%s12002_s4 + $0x508] sm:$0xff] }
 0x178   :  { %v1330_v48 = vsel %vm1328_vm11, %v1329_v40, %v7637_v30  ;;  %1939 = vmatpush1.msra.mxu1 %v1759_v53  ;;  %v1732_v30 = vld [vmem:[%s12002_s4 + $0x4a8] sm:$0xff]  ;;  %v1727_v40 = vld [vmem:[%s12002_s4 + $0x480] sm:$0xff] }
 0x179   :  { %v1233_v42 = vsub.s32 0, %v1231_v37  ;;  %v1331_v52 = vadd.s32 %v1330_v48, %v1326_v46  ;;  %1940 = vmatprep.subr.mxu1 %v1756_v54  ;;  %v1724_v35 = vld [vmem:[%s12002_s4 + $0x468] sm:$0xff]  ;;  %v1723_v46 = vld [vmem:[%s12002_s4 + $0x460] sm:$0xff] }
 0x17a   :  { %1941 = vmatpush1.msra.mxu1 %v1755_v58  ;;  %v1720_v48 = vld [vmem:[%s12002_s4 + $0x448] sm:$0xff]  ;;  %v1719_v54 = vld [vmem:[%s12002_s4 + $0x440] sm:$0xff] }
 0x17b   :  { %v5415_v50 = vmin.u32 %v1233_v42, %v1231_v37  ;;  %v1332_v56 = vadd.s32 536870912, %v1331_v52  ;;  %1942 = vmatprep.subr.mxu1 %v1752_v60 }
 0x17c   :  { %1943 = vmatpush1.msra.mxu1 %v1751_v1 }
 0x17d   :  { %v1235_v55 = vclz %v5415_v50  ;;  %v7679_v57 = vshrl.u32 %v1332_v56, 30  ;;  %1944 = vmatprep.subr.mxu1 %v1748_v5  ;;  %v1327_v50 = vadd.s32 %v7636_v29, %v7634_v28  ;;  %v1715_v28 = vld [vmem:[%s12002_s4 + $0x420] sm:$0xff] }
 0x17e   :  { %1945 = vmatpush1.msra.mxu1 %v1747_v62 }
 0x17f   :  { %v5416_v63 = vadd.s32 4294967294, %v1235_v55  ;;  %v1334_v8 = vshll.u32 %v7679_v57, 30  ;;  %1946 = vmatprep.subr.mxu1 %v1744_v11  ;;  %v1716_v55 = vld [vmem:[%s12002_s4 + $0x428] sm:$0xff] }
 0x180   :  { %1947 = vmatpush1.msra.mxu1 %v1743_v17 }
 0x181   :  { %vm5417_vm12 = vcmp.lt.s32.totalorder %v5416_v63, 0  ;;  %v1335_v15 = vsub.s32 %v1331_v52, %v1334_v8  ;;  %1948 = vmatprep.subr.mxu1 %v1740_v18  ;;  %v1711_v8 = vld [vmem:[%s12002_s4 + $0x400] sm:$0xff] }
 0x182   :  { %v1238_v10 = vsel %vm5417_vm12, 0, %v5416_v63  ;;  %1949 = vmatpush1.msra.mxu1 %v1739_v44  ;;  %v1712_v63 = vld [vmem:[%s12002_s4 + $0x408] sm:$0xff]  ;;  %v1253_v44 = vsub.s32 4, %v7630_v25 }
 0x183   :  { %v1239_v13 = vsub.s32 32, %v1238_v10  ;;  %v1243_v14 = vsub.s32 4294967266, %v1238_v10  ;;  %v1240_v19 = vshll.u32 %v1231_v37, %v1238_v10  ;;  %v1337_v22 = vsub.s32 0, %v1335_v15  ;;  %1950 = vmatprep.subr.mxu1 %v1736_v45  ;;  %v1836_v10 = vld [vmem:[%s12002_s4 + $0x7e8] sm:$0xff] }
 0x184   :  { %1951 = vmatpush1.msra.mxu1 %v1735_v27  ;;  %v1820_v45 = vld [vmem:[%s12002_s4 + $0x768] sm:$0xff] }
 0x185   :  { %v1241_v20 = vshrl.u32 %v1223_v12, %v1239_v13  ;;  %v1244_v21 = vadd.s32 127, %v1243_v14  ;;  %v5419_v26 = vmin.u32 %v1337_v22, %v1335_v15  ;;  %1952 = vmatprep.subr.mxu1 %v1732_v30  ;;  %v1835_v13 = vld [vmem:[%s12002_s4 + $0x7e0] sm:$0xff]  ;;  %v1816_v27 = vld [vmem:[%s12002_s4 + $0x748] sm:$0xff]  ;;  %v1633_v30 = vld [vmem:[%s12002_s4 + $0x190] sm:$0xff] }
 0x186   :  { %1953 = vmatpush1.msra.mxu1 %v1731_v33  ;;  %v1831_v14 = vld [vmem:[%s12002_s4 + $0x7c0] sm:$0xff] }
 0x187   :  { %v1242_v23 = vor.u32 %v1241_v20, %v1240_v19  ;;  %v1245_v24 = vshll.u32 %v1244_v21, 23  ;;  %v1339_v32 = vclz %v5419_v26  ;;  %1954 = vmatprep.subr.mxu1 %v1728_v34  ;;  %v1827_v19 = vld [vmem:[%s12002_s4 + $0x7a0] sm:$0xff]  ;;  %v1824_v20 = vld [vmem:[%s12002_s4 + $0x788] sm:$0xff]  ;;  %v1357_v26 = vsub.s32 4, %v7679_v57 }
 0x188   :  { %1955 = vmatpush1.msra.mxu1 %v1727_v40  ;;  %v1823_v22 = vld [vmem:[%s12002_s4 + $0x780] sm:$0xff]  ;;  %v1254_v34 = vsel %vm1169_vm14, %v1253_v44, %v7630_v25 }
 0x189   :  { %v1246_v31 = vor.u32 4788187, %v1245_v24  ;;  %v1249_v37 = vcvt.s32.f32 %v1242_v23  ;;  %v5420_v38 = vadd.s32 4294967294, %v1339_v32  ;;  %1956 = vmatprep.subr.mxu1 %v1724_v35  ;;  %v1819_v24 = vld [vmem:[%s12002_s4 + $0x760] sm:$0xff]  ;;  %v1256_v25 = vsel %vm7754_vm15, 0, %v1254_v34  ;;  %v1804_v35 = vld [vmem:[%s12002_s4 + $0x6e8] sm:$0xff] }
 0x18a   :  { %1957 = vmatpush1.msra.mxu1 %v1723_v46  ;;  %v1815_v32 = vld [vmem:[%s12002_s4 + $0x740] sm:$0xff]  ;;  %v1260_v46 = vadd.s32 3, %v1256_v25  ;;  %v1626_v34 = vld [vmem:[%s12002_s4 + $0x158] sm:$0xff]  ;;  %v1617_v25 = vld [vmem:[%s12002_s4 + $0x110] sm:$0xff] }
 0x18b   :  { %v1247_v36 = vand.u32 2147483647, %v1246_v31  ;;  %vm5421_vm13 = vcmp.lt.s32.totalorder %v5420_v38, 0  ;;  %1958 = vmatprep.subr.mxu1 %v1720_v48  ;;  %v1807_v40 = vld [vmem:[%s12002_s4 + $0x700] sm:$0xff] }
 0x18c   :  { %v1342_v47 = vsel %vm5421_vm13, 0, %v5420_v38  ;;  %1959 = vmatpush1.msra.mxu1 %v1719_v54  ;;  %v1808_v38 = vld [vmem:[%s12002_s4 + $0x708] sm:$0xff]  ;;  %v1795_v54 = vld [vmem:[%s12002_s4 + $0x6a0] sm:$0xff] }
 0x18d   :  { %v1250_v42 = vmul.f32 %v1249_v37, %v1247_v36  ;;  %v1343_v52 = vsub.s32 32, %v1342_v47  ;;  %v1347_v53 = vsub.s32 4294967266, %v1342_v47  ;;  %v1344_v56 = vshll.u32 %v1335_v15, %v1342_v47  ;;  %1960 = vmatprep.subr.mxu1 %v1716_v55  ;;  %v1828_v15 = vld [vmem:[%s12002_s4 + $0x7a8] sm:$0xff]  ;;  %v1811_v36 = vld [vmem:[%s12002_s4 + $0x720] sm:$0xff] }
 0x18e   :  { %1961 = vmatpush1.msra.mxu1 %v1715_v28  ;;  %v1358_v37 = vsel %vm1273_vm0, %v1357_v26, %v7679_v57  ;;  %v1800_v47 = vld [vmem:[%s12002_s4 + $0x6c8] sm:$0xff]  ;;  %v1261_v55 = vand.u32 3, %v1260_v46  ;;  %v1791_v28 = vld [vmem:[%s12002_s4 + $0x680] sm:$0xff]  ;;  %v1637_v26 = vld [vmem:[%s12002_s4 + $0x1b0] sm:$0xff] }
 0x18f   :  { %v1251_v49 = vxor.u32 2147483648, %v1250_v42  ;;  %v1345_v58 = vshrl.u32 %v1327_v50, %v1343_v52  ;;  %v1348_v60 = vadd.s32 127, %v1347_v53  ;;  %1962 = vmatprep.subr.mxu1 %v1712_v63  ;;  %v1360_v57 = vsel %vm7799_vm1, 0, %v1358_v37  ;;  %v1796_v53 = vld [vmem:[%s12002_s4 + $0x6a8] sm:$0xff]  ;;  %v1621_v37 = vld [vmem:[%s12002_s4 + $0x130] sm:$0xff] }
 0x190   :  { %1963 = vmatpush1.msra.mxu1 %v1711_v8  ;;  %v1364_v52 = vadd.s32 3, %v1360_v57  ;;  %v1788_v63 = vld [vmem:[%s12002_s4 + $0x668] sm:$0xff]  ;;  %vm1263_vm2 = vcmp.eq.s32.totalorder %v1261_v55, 0  ;;  %vm1266_vm3 = vcmp.eq.s32.totalorder %v1261_v55, 2  ;;  %vm1262_vm6 = vcmp.lt.s32.totalorder %v1261_v55, 2  ;;  %v1609_v46 = vld [vmem:[%s12002_s4 + $0xd0] sm:$0xff] }
 0x191   :  { %v1252_v29 = vsel %vm1169_vm14, %v1251_v49, %v1250_v42  ;;  %v1346_v1 = vor.u32 %v1345_v58, %v1344_v56  ;;  %v1349_v5 = vshll.u32 %v1348_v60, 23  ;;  %1964 = vmatprep.subr.mxu1 %v1836_v10  ;;  %v1803_v42 = vld [vmem:[%s12002_s4 + $0x6e0] sm:$0xff]  ;;  %v1792_v56 = vld [vmem:[%s12002_s4 + $0x688] sm:$0xff]  ;;  %v7937_v57 = vsub.s32 2, %v7484_v61  ;;  %v1598_v55 = vld [vmem:[%s12002_s4 + $0x78] sm:$0xff] }
 0x192   :  { %v1255_v12 = vsel %vm7754_vm15, %v7564_v39, %v1252_v29  ;;  %1965 = vmatpush2.msra.mxu1 %v1835_v13  ;;  %v1799_v49 = vld [vmem:[%s12002_s4 + $0x6c0] sm:$0xff]  ;;  %v1365_v29 = vand.u32 3, %v1364_v52  ;;  %v1784_v8 = vld [vmem:[%s12002_s4 + $0x648] sm:$0xff]  ;;  %v1638_v39 = vld [vmem:[%s12002_s4 + $0x1b8] sm:$0xff] }
 0x193   :  { %v1350_v11 = vor.u32 4788187, %v1349_v5  ;;  %v1353_v18 = vcvt.s32.f32 %v1346_v1  ;;  %1966 = vmatprep.subr.mxu1 %v1832_v41  ;;  %5603 = vcosq.f32 %v1255_v12  ;;  %v1787_v1 = vld [vmem:[%s12002_s4 + $0x660] sm:$0xff]  ;;  %v586_v52 = vrot.slane %v7507_v4, %v7937_v57 }
 0x194   :  { %1967 = vmatpush2.msra.mxu1 %v1831_v14  ;;  %5605 = vsinq.f32 %v1255_v12  ;;  %v1783_v13 = vld [vmem:[%s12002_s4 + $0x640] sm:$0xff]  ;;  %vm1370_vm4 = vcmp.eq.s32.totalorder %v1365_v29, 2  ;;  %v1780_v14 = vld [vmem:[%s12002_s4 + $0x628] sm:$0xff]  ;;  %vm1367_vm5 = vcmp.eq.s32.totalorder %v1365_v29, 0  ;;  %vm1366_vm7 = vcmp.lt.s32.totalorder %v1365_v29, 2  ;;  %v1594_v29 = vld [vmem:[%s12002_s4 + $0x58] sm:$0xff] }
 0x195   :  { %v1351_v17 = vand.u32 2147483647, %v1350_v11  ;;  %1968 = vmatprep.subr.mxu1 %v1828_v15 }
 0x196   :  { %1969 = vmatpush2.msra.mxu1 %v1827_v19 }
 0x197   :  { %v1354_v21 = vmul.f32 %v1353_v18, %v1351_v17  ;;  %1970 = vmatprep.subr.mxu1 %v1824_v20  ;;  %v1779_v17 = vld [vmem:[%s12002_s4 + $0x620] sm:$0xff]  ;;  %v1776_v20 = vld [vmem:[%s12002_s4 + $0x608] sm:$0xff] }
 0x198   :  { %1971 = vmatpush2.msra.mxu1 %v1823_v22  ;;  %v1775_v22 = vld [vmem:[%s12002_s4 + $0x600] sm:$0xff] }
 0x199   :  { %v1355_v23 = vxor.u32 2147483648, %v1354_v21  ;;  %1972 = vmatprep.subr.mxu1 %v1820_v45  ;;  %v1645_v45 = vld [vmem:[%s12002_s4 + $0x1f0] sm:$0xff] }
 0x19a   :  { %1973 = vmatpush2.msra.mxu1 %v1819_v24  ;;  %v1641_v24 = vld [vmem:[%s12002_s4 + $0x1d0] sm:$0xff] }
 0x19b   :  { %v1356_v31 = vsel %vm1273_vm0, %v1355_v23, %v1354_v21  ;;  %1974 = vmatprep.subr.mxu1 %v1816_v27  ;;  %v1634_v27 = vld [vmem:[%s12002_s4 + $0x198] sm:$0xff] }
 0x19c   :  { %v1359_v33 = vsel %vm7799_vm1, %v7568_v43, %v1356_v31  ;;  %1975 = vmatpush2.msra.mxu1 %v1815_v32  ;;  %v1642_v43 = vld [vmem:[%s12002_s4 + $0x1d8] sm:$0xff] }
 0x19d   :  { %5607 = vcosq.f32 %v1359_v33  ;;  %1976 = vmatprep.subr.mxu1 %v1812_v51  ;;  %v1774_v31 = vld [vmem:[%s12002_s4 + $0x5f8] sm:$0xff]  ;;  %v1625_v51 = vld [vmem:[%s12002_s4 + $0x150] sm:$0xff] }
 0x19e   :  { %5609 = vsinq.f32 %v1359_v33  ;;  %1977 = vmatpush2.msra.mxu1 %v1811_v36  ;;  %v1630_v32 = vld [vmem:[%s12002_s4 + $0x178] sm:$0xff]  ;;  %v1629_v33 = vld [vmem:[%s12002_s4 + $0x170] sm:$0xff] }
 0x19f   :  { %1978 = vmatprep.subr.mxu1 %v1808_v38  ;;  %v1622_v36 = vld [vmem:[%s12002_s4 + $0x138] sm:$0xff] }
 0x1a0   :  { %1979 = vmatpush2.msra.mxu1 %v1807_v40  ;;  %v5604_v48 = vpop.eup %5603  ;;  %v1618_v38 = vld [vmem:[%s12002_s4 + $0x118] sm:$0xff] }
 0x1a1   :  { %1980 = vmatprep.subr.mxu1 %v1804_v35  ;;  %v5606_v50 = vpop.eup %5605  ;;  %v1267_v60 = vxor.u32 2147483648, %v5604_v48  ;;  %v1614_v40 = vld [vmem:[%s12002_s4 + $0xf8] sm:$0xff]  ;;  %v1613_v35 = vld [vmem:[%s12002_s4 + $0xf0] sm:$0xff] }
 0x1a2   :  { %1981 = vmatpush2.msra.mxu1 %v1803_v42  ;;  %v1264_v58 = vxor.u32 2147483648, %v5606_v50  ;;  %v1610_v42 = vld [vmem:[%s12002_s4 + $0xd8] sm:$0xff] }
 0x1a3   :  { %1982 = vmatprep.subr.mxu1 %v1800_v47  ;;  %v1268_v12 = vsel %vm1266_vm3, %v1267_v60, %v5606_v50  ;;  %v7946_v47 = vsub.s32 3, %v7484_v61  ;;  %v1605_v50 = vld [vmem:[%s12002_s4 + $0xb0] sm:$0xff]  ;;  %v1602_v61 = vld [vmem:[%s12002_s4 + $0x98] sm:$0xff] }
 0x1a4   :  { %1983 = vmatpush2.msra.mxu1 %v1799_v49  ;;  %v1265_v11 = vsel %vm1263_vm2, %v5604_v48, %v1264_v58  ;;  %v1606_v48 = vld [vmem:[%s12002_s4 + $0xb8] sm:$0xff]  ;;  %v945_v49 = vpop.f32.mrf.mxu0  ;;  %v1597_v60 = vld [vmem:[%s12002_s4 + $0x70] sm:$0xff] }
 0x1a5   :  { %1984 = vmatprep.subr.mxu1 %v1796_v53  ;;  %v1269_v19 = vsel %vm1262_vm6, %v1265_v11, %v1268_v12  ;;  %v1601_v53 = vld [vmem:[%s12002_s4 + $0x90] sm:$0xff] }
 0x1a6   :  { %1985 = vmatpush2.msra.mxu1 %v1795_v54  ;;  %v7882_v23 = vsel %vm1259_vm9, nan, %v1269_v19  ;;  %v590_v54 = vrot.slane %v7507_v4, %v7946_v47  ;;  %v947_v58 = vpop.f32.mrf.mxu0  ;;  %v1593_v4 = vld [vmem:[%s12002_s4 + $0x50] sm:$0xff]  ;;  %v1706_v19 = vld [vmem:[%s12002_s4 + $0x3d8] sm:$0xff] }
 0x1a7   :  { %1986 = vmatprep.subr.mxu1 %v1792_v56  ;;  %v1016_v56 = vpop.f32.mrf.mxu1  ;;  %v1585_v11 = vld [vmem:[%s12002_s4 + $0x10] sm:$0xff] }
 0x1a8   :  { %1987 = vmatpush2.msra.mxu1 %v1791_v28  ;;  %v946_v28 = vadd.f32 %v945_v49, %v586_v52  ;;  %v1685_v49 = vld [vmem:[%s12002_s4 + $0x330] sm:$0xff] }
 0x1a9   :  { %1988 = vmatprep.subr.mxu1 %v1788_v63  ;;  %v948_v63 = vadd.f32 %v947_v58, %v590_v54 }
 0x1aa   :  { %v5608_v5 = vpop.eup %5607  ;;  %1989 = vmatpush2.msra.mxu1 %v1787_v1  ;;  %v1590_v1 = vld [vmem:[%s12002_s4 + $0x38] sm:$0xff] }
 0x1ab   :  { %v5610_v62 = vpop.eup %5609  ;;  %v1371_v10 = vxor.u32 2147483648, %v5608_v5  ;;  %1990 = vmatprep.subr.mxu1 %v1784_v8  ;;  %v1589_v8 = vld [vmem:[%s12002_s4 + $0x30] sm:$0xff] }
 0x1ac   :  { %v1368_v41 = vxor.u32 2147483648, %v5610_v62  ;;  %1991 = vmatpush2.msra.mxu1 %v1783_v13 }
 0x1ad   :  { %v1372_v15 = vsel %vm1370_vm4, %v1371_v10, %v5610_v62  ;;  %1992 = vmatprep.subr.mxu1 %v1780_v14  ;;  %v1017_v62 = vadd.f32 %v1016_v56, %v946_v28  ;;  %v1586_v10 = vld [vmem:[%s12002_s4 + $0x18] sm:$0xff]  ;;  %v1677_v28 = vld [vmem:[%s12002_s4 + $0x2f0] sm:$0xff] }
 0x1ae   :  { %v1369_v18 = vsel %vm1367_vm5, %v5608_v5, %v1368_v41  ;;  %1993 = vmatpush2.msra.mxu1 %v1779_v17  ;;  %v1018_v5 = vpop.f32.mrf.mxu1  ;;  %v1710_v14 = vld [vmem:[%s12002_s4 + $0x3f8] sm:$0xff]  ;;  %v1709_v17 = vld [vmem:[%s12002_s4 + $0x3f0] sm:$0xff] }
 0x1af   :  { %v1373_v21 = vsel %vm1366_vm7, %v1369_v18, %v1372_v15  ;;  %1994 = vmatprep.subr.mxu1 %v1776_v20  ;;  %v1019_v41 = vadd.f32 %v1018_v5, %v948_v63 }
 0x1b0   :  { %v1374_v44 = vsel %vm1363_vm8, nan, %v1373_v21  ;;  %1995 = vmatpush2.msra.mxu1 %v1775_v22  ;;  %v1705_v22 = vld [vmem:[%s12002_s4 + $0x3d0] sm:$0xff] }
 0x1b1   :  { %1925 = vmatprep.mubr.f32.mxu0 %v1374_v44  ;;  %2074 = vmatprep.subr.mxu1 %v1774_v31  ;;  %v1698_v31 = vld [vmem:[%s12002_s4 + $0x398] sm:$0xff] }
 0x1b2   :  { %1926 = vmatmul.mubr.f32.vlgmr.msra.gmra.mxu0 %v7882_v23 }
 0x1b3   :  { %2004 = vmatpush1.msra.mxu0 %v1645_v45  ;;  %2067 = vmatprep.mubr.f32.mxu0 %v1374_v44 }
 0x1b4   :  { %2005 = vmatprep.subr.mxu0 %v1642_v43  ;;  %v1702_v43 = vld [vmem:[%s12002_s4 + $0x3b8] sm:$0xff] }
 0x1b5   :  { %2006 = vmatpush1.msra.mxu0 %v1641_v24 }
 0x1b6   :  { %2007 = vmatprep.subr.mxu0 %v1638_v39  ;;  %v1701_v39 = vld [vmem:[%s12002_s4 + $0x3b0] sm:$0xff] }
 0x1b7   :  { %2008 = vmatpush1.msra.mxu0 %v1637_v26 }
 0x1b8   :  { %2009 = vmatprep.subr.mxu0 %v1634_v27 }
 0x1b9   :  { %2010 = vmatpush1.msra.mxu0 %v1633_v30 }
 0x1ba   :  { %2011 = vmatprep.subr.mxu0 %v1630_v32  ;;  %v1697_v32 = vld [vmem:[%s12002_s4 + $0x390] sm:$0xff] }
 0x1bb   :  { %2012 = vmatpush1.msra.mxu0 %v1629_v33 }
 0x1bc   :  { %2013 = vmatprep.subr.mxu0 %v1626_v34 }
 0x1bd   :  { %2014 = vmatpush1.msra.mxu0 %v1625_v51  ;;  %v1694_v51 = vld [vmem:[%s12002_s4 + $0x378] sm:$0xff] }
 0x1be   :  { %2015 = vmatprep.subr.mxu0 %v1622_v36  ;;  %v1693_v36 = vld [vmem:[%s12002_s4 + $0x370] sm:$0xff] }
 0x1bf   :  { %2016 = vmatpush1.msra.mxu0 %v1621_v37 }
 0x1c0   :  { %2017 = vmatprep.subr.mxu0 %v1618_v38 }
 0x1c1   :  { %2018 = vmatpush1.msra.mxu0 %v1617_v25 }
 0x1c2   :  { %2019 = vmatprep.subr.mxu0 %v1614_v40  ;;  %v1690_v40 = vld [vmem:[%s12002_s4 + $0x358] sm:$0xff] }
 0x1c3   :  { %2020 = vmatpush1.msra.mxu0 %v1613_v35  ;;  %v1689_v35 = vld [vmem:[%s12002_s4 + $0x350] sm:$0xff] }
 0x1c4   :  { %2021 = vmatprep.subr.mxu0 %v1610_v42 }
 0x1c5   :  { %2022 = vmatpush1.msra.mxu0 %v1609_v46 }
 0x1c6   :  { %2023 = vmatprep.subr.mxu0 %v1606_v48  ;;  %v1686_v48 = vld [vmem:[%s12002_s4 + $0x338] sm:$0xff] }
 0x1c7   :  { %2024 = vmatpush1.msra.mxu0 %v1605_v50 }
 0x1c8   :  { %2025 = vmatprep.subr.mxu0 %v1602_v61 }
 0x1c9   :  { %2026 = vmatpush1.msra.mxu0 %v1601_v53  ;;  %v1682_v53 = vld [vmem:[%s12002_s4 + $0x318] sm:$0xff] }
 0x1ca   :  { %2027 = vmatprep.subr.mxu0 %v1598_v55  ;;  %v1681_v55 = vld [vmem:[%s12002_s4 + $0x310] sm:$0xff] }
 0x1cb   :  { %2028 = vmatpush1.msra.mxu0 %v1597_v60  ;;  %v1678_v60 = vld [vmem:[%s12002_s4 + $0x2f8] sm:$0xff] }
 0x1cc   :  { %2029 = vmatprep.subr.mxu0 %v1594_v29 }
 0x1cd   :  { %2030 = vmatpush1.msra.mxu0 %v1593_v4 }
 0x1ce   :  { %2031 = vmatprep.subr.mxu0 %v1590_v1 }
 0x1cf   :  { %2032 = vmatpush1.msra.mxu0 %v1589_v8  ;;  %v1674_v8 = vld [vmem:[%s12002_s4 + $0x2d8] sm:$0xff] }
 0x1d0   :  { %v1087_v12 = vpop.f32.mrf.mxu0  ;;  %2033 = vmatprep.subr.mxu0 %v1586_v10 }
 0x1d1   :  { %v1158_v13 = vpop.f32.mrf.mxu1  ;;  %v1088_v15 = vadd.f32 %v1087_v12, %v1017_v62  ;;  %2034 = vmatpush1.msra.mxu0 %v1585_v11 }
 0x1d2   :  { %v1089_v18 = vpop.f32.mrf.mxu0  ;;  %2035 = vmatprep.subr.mxu0 %v1710_v14 }
 0x1d3   :  { %v1159_v20 = vadd.f32 %v1158_v13, %v1088_v15  ;;  %v1090_v21 = vadd.f32 %v1089_v18, %v1019_v41  ;;  %v1160_v44 = vpop.f32.mrf.mxu1  ;;  %2036 = vmatpush2.msra.mxu0 %v1709_v17  ;;  %v1673_v13 = vld [vmem:[%s12002_s4 + $0x2d0] sm:$0xff]  ;;  %v1670_v17 = vld [vmem:[%s12002_s4 + $0x2b8] sm:$0xff] }
 0x1d4   :  { %2037 = vmatprep.subr.mxu0 %v1706_v19 }
 0x1d5   :  { %v8000_v45 = vmul.f32 30.0, %v1159_v20  ;;  %v1161_v24 = vadd.f32 %v1160_v44, %v1090_v21  ;;  %2038 = vmatpush2.msra.mxu0 %v1705_v22  ;;  %v1669_v21 = vld [vmem:[%s12002_s4 + $0x2b0] sm:$0xff] }
 0x1d6   :  { %2039 = vmatprep.subr.mxu0 %v1702_v43 }
 0x1d7   :  { %v1375_v26 = vand.u32 2147483647, %v8000_v45  ;;  %v1378_v27 = vand.u32 2139095040, %v8000_v45  ;;  %v8010_v30 = vmul.f32 30.0, %v1161_v24  ;;  %2040 = vmatpush2.msra.mxu0 %v1701_v39  ;;  %v1666_v24 = vld [vmem:[%s12002_s4 + $0x298] sm:$0xff]  ;;  %vm1377_vm8 = vcmp.lt.s32.totalorder %v8000_v45, 0 }
 0x1d8   :  { %2041 = vmatprep.subr.mxu0 %v1698_v31 }
 0x1d9   :  { %v1379_v33 = vshrl.u32 %v1378_v27, 23  ;;  %v1482_v34 = vand.u32 2139095040, %v8010_v30  ;;  %v1382_v38 = vand.u32 8388607, %v1375_v26  ;;  %2042 = vmatpush2.msra.mxu0 %v1697_v32  ;;  %v1479_v50 = vand.u32 2147483647, %v8010_v30 }
 0x1da   :  { %2043 = vmatprep.subr.mxu0 %v1694_v51  ;;  %v1665_v32 = vld [vmem:[%s12002_s4 + $0x290] sm:$0xff]  ;;  %vm8200_vm9 = vcmp.le.f32.partialorder %v1375_v26, 0.7853982 }
 0x1db   :  { %v5422_v37 = vadd.s32 4294967169, %v1379_v33  ;;  %v1483_v25 = vshrl.u32 %v1482_v34, 23  ;;  %2044 = vmatpush2.msra.mxu0 %v1693_v36  ;;  %v1383_v52 = vor.u32 8388608, %v1382_v38  ;;  %v8056_v29 = vand.u32 8388607, %v1479_v50 }
 0x1dc   :  { %2045 = vmatprep.subr.mxu0 %v1690_v40 }
 0x1dd   :  { %v1385_v42 = vadd.s32 1, %v5422_v37  ;;  %v5426_v46 = vadd.s32 4294967169, %v1483_v25  ;;  %2046 = vmatpush2.msra.mxu0 %v1689_v35  ;;  %v8059_v1 = vshll.u32 %v1383_v52, 8  ;;  %v1662_v37 = vld [vmem:[%s12002_s4 + $0x278] sm:$0xff] }
 0x1de   :  { %2047 = vmatprep.subr.mxu0 %v1686_v48 }
 0x1df   :  { %vm1386_vm10 = vcmp.gt.s32.totalorder %v1385_v42, 0  ;;  %v1489_v61 = vadd.s32 1, %v5426_v46  ;;  %2048 = vmatpush2.msra.mxu0 %v1685_v49 }
 0x1e0   :  { %v1387_v54 = vsel %vm1386_vm10, %v1385_v42, 0  ;;  %2049 = vmatprep.subr.mxu0 %v1682_v53  ;;  %v1661_v42 = vld [vmem:[%s12002_s4 + $0x270] sm:$0xff]  ;;  %vm1481_vm10 = vcmp.lt.s32.totalorder %v8010_v30, 0 }
 0x1e1   :  { %v8046_v56 = vshrl.u32 %v1387_v54, 5  ;;  %v1389_v58 = vand.u32 31, %v1387_v54  ;;  %vm1490_vm11 = vcmp.gt.s32.totalorder %v1489_v61, 0  ;;  %2050 = vmatpush2.msra.mxu0 %v1681_v55 }
 0x1e2   :  { %v1491_v5 = vsel %vm1490_vm11, %v1489_v61, 0  ;;  %2051 = vmatprep.subr.mxu0 %v1678_v60  ;;  %v1658_v61 = vld [vmem:[%s12002_s4 + $0x258] sm:$0xff]  ;;  %v1657_v60 = vld [vmem:[%s12002_s4 + $0x250] sm:$0xff]  ;;  %vm1480_vm11 = vcmp.le.f32.partialorder %v1479_v50, 0.7853982 }
 0x1e3   :  { %v1390_v4 = vsub.s32 32, %v1389_v58  ;;  %v1392_v63 = vshll.u32 %v5675_v59, %v1389_v58  ;;  %v1395_v62 = vshll.u32 %v5676_v0, %v1389_v58  ;;  %v1398_v10 = vshll.u32 %v5677_v3, %v1389_v58  ;;  %2052 = vmatpush2.msra.mxu0 %v1677_v28 }
 0x1e4   :  { %v1401_v11 = vshll.u32 %v5678_v7, %v1389_v58  ;;  %v1404_v12 = vshll.u32 %v5679_v9, %v1389_v58  ;;  %vm1407_vm12 = vcmp.lt.s32.totalorder %v8046_v56, 1  ;;  %vm1408_vm13 = vcmp.lt.s32.totalorder %v8046_v56, 2  ;;  %2053 = vmatprep.subr.mxu0 %v1674_v8 }
 0x1e5   :  { %v1393_v41 = vshrl.u32 %v5676_v0, %v1390_v4  ;;  %v1396_v14 = vshrl.u32 %v5677_v3, %v1390_v4  ;;  %v1399_v15 = vshrl.u32 %v5678_v7, %v1390_v4  ;;  %v1391_v18 = vshrl.u32 %v5675_v59, %v1390_v4  ;;  %2054 = vmatpush2.msra.mxu0 %v1673_v13 }
 0x1e6   :  { %v1402_v19 = vshrl.u32 %v5679_v9, %v1390_v4  ;;  %v1405_v20 = vshrl.u32 %v5680_v16, %v1390_v4  ;;  %vm1409_vm14 = vcmp.lt.s32.totalorder %v8046_v56, 3  ;;  %vm1410_vm15 = vcmp.lt.s32.totalorder %v8046_v56, 4  ;;  %2055 = vmatprep.subr.mxu0 %v1670_v17  ;;  %v1654_v56 = vld [vmem:[%s12002_s4 + $0x238] sm:$0xff] }
 0x1e7   :  { %v1394_v22 = vor.u32 %v1393_v41, %v1392_v63  ;;  %v1397_v44 = vor.u32 %v1396_v14, %v1395_v62  ;;  %v1400_v43 = vor.u32 %v1399_v15, %v1398_v10  ;;  %v1493_v31 = vand.u32 31, %v1491_v5  ;;  %2056 = vmatpush2.msra.mxu0 %v1669_v21  ;;  %v1653_v10 = vld [vmem:[%s12002_s4 + $0x230] sm:$0xff] }
 0x1e8   :  { %v1403_v39 = vor.u32 %v1402_v19, %v1401_v11  ;;  %v1406_v27 = vor.u32 %v1405_v20, %v1404_v12  ;;  %2057 = vmatprep.subr.mxu0 %v1666_v24  ;;  %v8113_v52 = vshrl.u32 %v1491_v5, 5  ;;  %v1650_v12 = vld [vmem:[%s12002_s4 + $0x218] sm:$0xff]  ;;  %v1487_v13 = vor.u32 8388608, %v8056_v29 }
 0x1e9   :  { %v1411_v33 = vsel %vm1407_vm12, %v1391_v18, %v1394_v22  ;;  %v1412_v34 = vsel %vm1410_vm15, %v1400_v43, 2102212464  ;;  %v1415_v51 = vsel %vm1407_vm12, %v1394_v22, %v1397_v44  ;;  %v1419_v36 = vsel %vm1407_vm12, %v1397_v44, %v1400_v43  ;;  %2058 = vmatpush2.msra.mxu0 %v1665_v32  ;;  %v1649_v18 = vld [vmem:[%s12002_s4 + $0x210] sm:$0xff] }
 0x1ea   :  { %v1413_v38 = vsel %vm1409_vm14, %v1397_v44, %v1412_v34  ;;  %v1416_v25 = vsel %vm1410_vm15, %v1403_v39, 920167782  ;;  %v1420_v40 = vsel %vm1410_vm15, %v1406_v27, 1326507024  ;;  %v1494_v35 = vsub.s32 32, %v1493_v31  ;;  %2059 = vmatprep.subr.mxu0 %v1662_v37 }
 0x1eb   :  { %v1414_v46 = vsel %vm1408_vm13, %v1411_v33, %v1413_v38  ;;  %v1417_v48 = vsel %vm1409_vm14, %v1400_v43, %v1416_v25  ;;  %v1421_v49 = vsel %vm1409_vm14, %v1403_v39, %v1420_v40  ;;  %v1505_v55 = vshll.u32 %v5678_v7, %v1493_v31  ;;  %2060 = vmatpush2.msra.mxu0 %v1661_v42 }
 0x1ec   :  { %v1418_v53 = vsel %vm1408_vm13, %v1415_v51, %v1417_v48  ;;  %v1422_v54 = vsel %vm1408_vm13, %v1419_v36, %v1421_v49  ;;  %v1506_v58 = vshrl.u32 %v5679_v9, %v1494_v35  ;;  %v1508_v8 = vshll.u32 %v5679_v9, %v1493_v31  ;;  %2061 = vmatprep.subr.mxu0 %v1658_v61 }
 0x1ed   :  { %v8128_v28 = vmul.u32.u64.low %v8059_v1, %v1422_v54  ;;  %v8129_v4 = vmul.u32.u64.high %v8059_v1, %v1422_v54, %v8128_v28  ;;  %v8132_v63 = vmul.u32.u64.low %v8059_v1, %v1418_v53  ;;  %v8133_v5 = vmul.u32.u64.high %v8059_v1, %v1418_v53, %v8132_v63  ;;  %2062 = vmatpush2.msra.mxu0 %v1657_v60 }
 0x1ee   :  { %v1509_v62 = vshrl.u32 %v5680_v16, %v1494_v35  ;;  %v1507_v11 = vor.u32 %v1506_v58, %v1505_v55  ;;  %v1496_v41 = vshll.u32 %v5675_v59, %v1493_v31  ;;  %v1497_v14 = vshrl.u32 %v5676_v0, %v1494_v35  ;;  %2063 = vmatprep.subr.mxu0 %v1654_v56 }
 0x1ef   :  { %v1430_v15 = vmul.u32 %v8059_v1, %v1414_v46  ;;  %v1499_v19 = vshll.u32 %v5676_v0, %v1493_v31  ;;  %v1500_v20 = vshrl.u32 %v5677_v3, %v1494_v35  ;;  %vm1432_vm0 = vc.u32 %v8129_v4, %v8132_v63  ;;  %2064 = vmatpush2.msra.mxu0 %v1653_v10 }
 0x1f0   :  { %v1510_v17 = vor.u32 %v1509_v62, %v1508_v8  ;;  %v1433_v29 = vadd.s32 1, %v8133_v5  ;;  %vm1514_vm1 = vcmp.lt.s32.totalorder %v8113_v52, 4  ;;  %v1498_v21 = vor.u32 %v1497_v14, %v1496_v41  ;;  %2065 = vmatprep.subr.mxu0 %v1650_v12 }
 0x1f1   :  { %v1501_v22 = vor.u32 %v1500_v20, %v1499_v19  ;;  %v1502_v44 = vshll.u32 %v5677_v3, %v1493_v31  ;;  %v1503_v43 = vshrl.u32 %v5678_v7, %v1494_v35  ;;  %v1520_v39 = vsel %vm1514_vm1, %v1507_v11, 920167782  ;;  %2066 = vmatpush2.msra.mxu0 %v1649_v18 }
 0x1f2   :  { %v1524_v1 = vsel %vm1514_vm1, %v1510_v17, 1326507024  ;;  %v1434_v24 = vsel %vm1432_vm0, %v1433_v29, %v8133_v5  ;;  %vm1511_vm2 = vcmp.lt.s32.totalorder %v8113_v52, 1  ;;  %vm1513_vm3 = vcmp.lt.s32.totalorder %v8113_v52, 3  ;;  %2068 = vmatmul.mubr.f32.vlgmr.msra.gmra.mxu0 %v7882_v23 }
 0x1f3   :  { %v1435_v27 = vadd.s32 %v1434_v24, %v1430_v15  ;;  %v1504_v32 = vor.u32 %v1503_v43, %v1502_v44  ;;  %v1519_v33 = vsel %vm1511_vm2, %v1498_v21, %v1501_v22  ;;  %v1525_v31 = vsel %vm1513_vm3, %v1507_v11, %v1524_v1 }
 0x1f4   :  { %v1495_v34 = vshrl.u32 %v5675_v59, %v1494_v35  ;;  %vm1512_vm4 = vcmp.lt.s32.totalorder %v8113_v52, 2  ;;  %v1527_v51 = vshll.u32 %v1487_v13, 8  ;;  %v1431_v14 = vadd.s32 %v8132_v63, %v8129_v4 }
 0x1f5   :  { %v1436_v36 = vadd.s32 536870912, %v1435_v27  ;;  %v1516_v37 = vsel %vm1514_vm1, %v1504_v32, 2102212464  ;;  %v1521_v38 = vsel %vm1513_vm3, %v1504_v32, %v1520_v39  ;;  %v1523_v25 = vsel %vm1511_vm2, %v1501_v22, %v1504_v32 }
 0x1f6   :  { %v1515_v40 = vsel %vm1511_vm2, %v1495_v34, %v1498_v21  ;;  %v1522_v23 = vsel %vm1512_vm4, %v1519_v33, %v1521_v38  ;;  %v1526_v42 = vsel %vm1512_vm4, %v1523_v25, %v1525_v31  ;;  %v1517_v48 = vsel %vm1513_vm3, %v1501_v22, %v1516_v37 }
 0x1f7   :  { %v8178_v46 = vshrl.u32 %v1436_v36, 30  ;;  %v8182_v35 = vmul.u32.u64.low %v1527_v51, %v1526_v42  ;;  %v8183_v49 = vmul.u32.u64.high %v1527_v51, %v1526_v42, %v8182_v35  ;;  %v1518_v55 = vsel %vm1512_vm4, %v1515_v40, %v1517_v48  ;;  %v1734_v42 = vld [vmem:[%s12002_s4 + $0x4b8] sm:$0xff] }
 0x1f8   :  { %v8185_v61 = vmul.u32.u64.low %v1527_v51, %v1522_v23  ;;  %v8186_v53 = vmul.u32.u64.high %v1527_v51, %v1522_v23, %v8185_v61  ;;  %v1534_v5 = vmul.u32 %v1527_v51, %v1518_v55  ;;  %vm1571_vm2 = vweird.f32 %v8010_v30 }
 0x1f9   :  { %v1438_v54 = vshll.u32 %v8178_v46, 30  ;;  %vm1467_vm3 = vweird.f32 %v8000_v45 }
 0x1fa   :  { %vm1536_vm5 = vc.u32 %v8183_v49, %v8185_v61  ;;  %v1537_v60 = vadd.s32 1, %v8186_v53  ;;  %v1535_v4 = vadd.s32 %v8185_v61, %v8183_v49 }
 0x1fb   :  { %v1439_v58 = vsub.s32 %v1435_v27, %v1438_v54  ;;  %v1461_v54 = vsub.s32 4, %v8178_v46 }
 0x1fc   :  { %v1538_v56 = vsel %vm1536_vm5, %v1537_v60, %v8186_v53 }
 0x1fd   :  { %v1441_v28 = vsub.s32 0, %v1439_v58  ;;  %v1539_v8 = vadd.s32 %v1538_v56, %v1534_v5 }
 0x1ff   :  { %v5423_v52 = vmin.u32 %v1441_v28, %v1439_v58  ;;  %v1540_v10 = vadd.s32 536870912, %v1539_v8  ;;  %v1462_v28 = vsel %vm1377_vm8, %v1461_v54, %v8178_v46  ;;  %v1722_v54 = vld [vmem:[%s12002_s4 + $0x458] sm:$0xff] }
 0x200   :  { %v1464_v56 = vsel %vm8200_vm9, 0, %v1462_v28  ;;  %v1713_v28 = vld [vmem:[%s12002_s4 + $0x410] sm:$0xff] }
 0x201   :  { %v1443_v62 = vclz %v5423_v52  ;;  %v1541_v12 = vshrl.u32 %v1540_v10, 30 }
 0x203   :  { %v5424_v11 = vadd.s32 4294967294, %v1443_v62  ;;  %v1542_v13 = vshll.u32 %v1541_v12, 30 }
 0x205   :  { %vm5425_vm6 = vcmp.lt.s32.totalorder %v5424_v11, 0  ;;  %v1543_v18 = vsub.s32 %v1539_v8, %v1542_v13  ;;  %v1468_v8 = vadd.s32 3, %v1464_v56  ;;  %v1837_v56 = vld [vmem:[%s12002_s4 + $0x7f0] sm:$0xff] }
 0x206   :  { %v1446_v41 = vsel %vm5425_vm6, 0, %v5424_v11 }
 0x207   :  { %v1447_v15 = vsub.s32 32, %v1446_v41  ;;  %v1451_v17 = vsub.s32 4294967266, %v1446_v41  ;;  %v1448_v19 = vshll.u32 %v1439_v58, %v1446_v41  ;;  %v1545_v21 = vsub.s32 0, %v1543_v18 }
 0x208   :  { %v1565_v58 = vsub.s32 4, %v1541_v12  ;;  %v1469_v13 = vand.u32 3, %v1468_v8  ;;  %v1833_v8 = vld [vmem:[%s12002_s4 + $0x7d0] sm:$0xff] }
 0x209   :  { %v1449_v20 = vshrl.u32 %v1431_v14, %v1447_v15  ;;  %v1452_v29 = vadd.s32 127, %v1451_v17  ;;  %v5427_v44 = vmin.u32 %v1545_v21, %v1543_v18 }
 0x20a   :  { %v1566_v5 = vsel %vm1481_vm10, %v1565_v58, %v1541_v12  ;;  %vm1471_vm12 = vcmp.eq.s32.totalorder %v1469_v13, 0  ;;  %vm1474_vm13 = vcmp.eq.s32.totalorder %v1469_v13, 2  ;;  %vm1470_vm0 = vcmp.lt.s32.totalorder %v1469_v13, 2  ;;  %v1718_v58 = vld [vmem:[%s12002_s4 + $0x438] sm:$0xff]  ;;  %v1825_v13 = vld [vmem:[%s12002_s4 + $0x790] sm:$0xff] }
 0x20b   :  { %v1450_v1 = vor.u32 %v1449_v20, %v1448_v19  ;;  %v1453_v22 = vshll.u32 %v1452_v29, 23  ;;  %v1547_v24 = vclz %v5427_v44  ;;  %v1568_v52 = vsel %vm1480_vm11, 0, %v1566_v5  ;;  %v1773_v44 = vld [vmem:[%s12002_s4 + $0x5f0] sm:$0xff]  ;;  %v1838_v5 = vld [vmem:[%s12002_s4 + $0x7f8] sm:$0xff] }
 0x20c   :  { %v1572_v11 = vadd.s32 3, %v1568_v52  ;;  %v1834_v52 = vld [vmem:[%s12002_s4 + $0x7d8] sm:$0xff] }
 0x20d   :  { %v1454_v43 = vor.u32 4788187, %v1453_v22  ;;  %v1457_v27 = vcvt.s32.f32 %v1450_v1  ;;  %v5428_v32 = vadd.s32 4294967294, %v1547_v24  ;;  %v1770_v24 = vld [vmem:[%s12002_s4 + $0x5d8] sm:$0xff] }
 0x20e   :  { %v1573_v14 = vand.u32 3, %v1572_v11  ;;  %v1826_v11 = vld [vmem:[%s12002_s4 + $0x798] sm:$0xff] }
 0x20f   :  { %v1455_v39 = vand.u32 2147483647, %v1454_v43  ;;  %vm5429_vm7 = vcmp.lt.s32.totalorder %v5428_v32, 0 }
 0x210   :  { %v1550_v31 = vsel %vm5429_vm7, 0, %v5428_v32  ;;  %vm1578_vm14 = vcmp.eq.s32.totalorder %v1573_v14, 2  ;;  %vm1575_vm15 = vcmp.eq.s32.totalorder %v1573_v14, 0  ;;  %vm1574_vm1 = vcmp.lt.s32.totalorder %v1573_v14, 2  ;;  %v1761_v32 = vld [vmem:[%s12002_s4 + $0x590] sm:$0xff]  ;;  %v1818_v14 = vld [vmem:[%s12002_s4 + $0x758] sm:$0xff] }
 0x211   :  { %v1458_v33 = vmul.f32 %v1457_v27, %v1455_v39  ;;  %v1551_v63 = vsub.s32 32, %v1550_v31  ;;  %v1555_v51 = vsub.s32 4294967266, %v1550_v31  ;;  %v1552_v36 = vshll.u32 %v1543_v18, %v1550_v31  ;;  %v1765_v39 = vld [vmem:[%s12002_s4 + $0x5b0] sm:$0xff]  ;;  %v1762_v27 = vld [vmem:[%s12002_s4 + $0x598] sm:$0xff] }
 0x212   :  { %v1757_v31 = vld [vmem:[%s12002_s4 + $0x570] sm:$0xff] }
 0x213   :  { %v1459_v34 = vxor.u32 2147483648, %v1458_v33  ;;  %v1553_v37 = vshrl.u32 %v1535_v4, %v1551_v63  ;;  %v1556_v38 = vadd.s32 127, %v1555_v51  ;;  %v1753_v4 = vld [vmem:[%s12002_s4 + $0x550] sm:$0xff]  ;;  %v1750_v63 = vld [vmem:[%s12002_s4 + $0x538] sm:$0xff] }
 0x214   :  { %v1749_v51 = vld [vmem:[%s12002_s4 + $0x530] sm:$0xff] }
 0x215   :  { %v1460_v25 = vsel %vm1377_vm8, %v1459_v34, %v1458_v33  ;;  %v1554_v40 = vor.u32 %v1553_v37, %v1552_v36  ;;  %v1557_v23 = vshll.u32 %v1556_v38, 23  ;;  %v1758_v33 = vld [vmem:[%s12002_s4 + $0x578] sm:$0xff]  ;;  %v1745_v37 = vld [vmem:[%s12002_s4 + $0x510] sm:$0xff] }
 0x216   :  { %v1463_v35 = vsel %vm8200_vm9, %v8000_v45, %v1460_v25  ;;  %v1766_v45 = vld [vmem:[%s12002_s4 + $0x5b8] sm:$0xff]  ;;  %v1741_v25 = vld [vmem:[%s12002_s4 + $0x4f0] sm:$0xff] }
 0x217   :  { %v1558_v48 = vor.u32 4788187, %v1557_v23  ;;  %v1561_v61 = vcvt.s32.f32 %v1554_v40  ;;  %5611 = vcosq.f32 %v1463_v35  ;;  %v1754_v34 = vld [vmem:[%s12002_s4 + $0x558] sm:$0xff]  ;;  %v1737_v23 = vld [vmem:[%s12002_s4 + $0x4d0] sm:$0xff] }
 0x218   :  { %5613 = vsinq.f32 %v1463_v35  ;;  %v1746_v36 = vld [vmem:[%s12002_s4 + $0x518] sm:$0xff] }
 0x219   :  { %v1559_v49 = vand.u32 2147483647, %v1558_v48  ;;  %v1742_v38 = vld [vmem:[%s12002_s4 + $0x4f8] sm:$0xff]  ;;  %v1733_v48 = vld [vmem:[%s12002_s4 + $0x4b0] sm:$0xff] }
 0x21a   :  { %v1738_v40 = vld [vmem:[%s12002_s4 + $0x4d8] sm:$0xff] }
 0x21b   :  { %v1562_v53 = vmul.f32 %v1561_v61, %v1559_v49  ;;  %v1730_v35 = vld [vmem:[%s12002_s4 + $0x498] sm:$0xff]  ;;  %v1729_v49 = vld [vmem:[%s12002_s4 + $0x490] sm:$0xff] }
 0x21c   :  { %v1726_v61 = vld [vmem:[%s12002_s4 + $0x478] sm:$0xff] }
 0x21d   :  { %v1563_v55 = vxor.u32 2147483648, %v1562_v53 }
 0x21f   :  { %v1564_v26 = vsel %vm1481_vm10, %v1563_v55, %v1562_v53  ;;  %v1725_v53 = vld [vmem:[%s12002_s4 + $0x470] sm:$0xff] }
 0x220   :  { %v1567_v60 = vsel %vm1480_vm11, %v8010_v30, %v1564_v26  ;;  %v1769_v30 = vld [vmem:[%s12002_s4 + $0x5d0] sm:$0xff] }
 0x221   :  { %5615 = vcosq.f32 %v1567_v60  ;;  %v1721_v55 = vld [vmem:[%s12002_s4 + $0x450] sm:$0xff] }
 0x222   :  { %5617 = vsinq.f32 %v1567_v60  ;;  %v1717_v26 = vld [vmem:[%s12002_s4 + $0x430] sm:$0xff]  ;;  %v1714_v60 = vld [vmem:[%s12002_s4 + $0x418] sm:$0xff] }
 0x224   :  { %v5612_v62 = vpop.eup %5611 }
 0x225   :  { %v5614_v10 = vpop.eup %5613  ;;  %v1475_v41 = vxor.u32 2147483648, %v5612_v62 }
 0x226   :  { %v1472_v50 = vxor.u32 2147483648, %v5614_v10 }
 0x227   :  { %v1476_v12 = vsel %vm1474_vm13, %v1475_v41, %v5614_v10  ;;  %v1829_v10 = vld [vmem:[%s12002_s4 + $0x7b0] sm:$0xff] }
 0x228   :  { %v1473_v18 = vsel %vm1471_vm12, %v5612_v62, %v1472_v50  ;;  %v1830_v62 = vld [vmem:[%s12002_s4 + $0x7b8] sm:$0xff]  ;;  %v1821_v41 = vld [vmem:[%s12002_s4 + $0x770] sm:$0xff] }
 0x229   :  { %v1477_v21 = vsel %vm1470_vm0, %v1473_v18, %v1476_v12  ;;  %v1822_v50 = vld [vmem:[%s12002_s4 + $0x778] sm:$0xff]  ;;  %v1809_v12 = vld [vmem:[%s12002_s4 + $0x710] sm:$0xff] }
 0x22a   :  { %v8222_v43 = vsel %vm1467_vm3, nan, %v1477_v21  ;;  %v1810_v18 = vld [vmem:[%s12002_s4 + $0x718] sm:$0xff]  ;;  %v1801_v21 = vld [vmem:[%s12002_s4 + $0x6d0] sm:$0xff] }
 0x22e   :  { %v5616_v15 = vpop.eup %5615 }
 0x22f   :  { %v5618_v17 = vpop.eup %5617  ;;  %v1579_v46 = vxor.u32 2147483648, %v5616_v15 }
 0x230   :  { %v1576_v19 = vxor.u32 2147483648, %v5618_v17 }
 0x231   :  { %v1580_v20 = vsel %vm1578_vm14, %v1579_v46, %v5618_v17  ;;  %v1814_v17 = vld [vmem:[%s12002_s4 + $0x738] sm:$0xff]  ;;  %v1813_v46 = vld [vmem:[%s12002_s4 + $0x730] sm:$0xff] }
 0x232   :  { %v1577_v29 = vsel %vm1575_vm15, %v5616_v15, %v1576_v19  ;;  %v1817_v15 = vld [vmem:[%s12002_s4 + $0x750] sm:$0xff]  ;;  %v1806_v19 = vld [vmem:[%s12002_s4 + $0x6f8] sm:$0xff] }
 0x233   :  { %v1581_v1 = vsel %vm1574_vm1, %v1577_v29, %v1580_v20  ;;  %v1805_v20 = vld [vmem:[%s12002_s4 + $0x6f0] sm:$0xff]  ;;  %v1802_v29 = vld [vmem:[%s12002_s4 + $0x6d8] sm:$0xff] }
 0x234   :  { %v1582_v22 = vsel %vm1571_vm2, nan, %v1581_v1  ;;  %v1798_v1 = vld [vmem:[%s12002_s4 + $0x6b8] sm:$0xff] }
 0x235   :  { %1996 = vmatprep.mubr.f32.mxu1 %v1582_v22 }
 0x236   :  { %1997 = vmatmul.mubr.f32.vlgmr.msra.gmra.mxu1 %v8222_v43 }
 0x237   :  { %2075 = vmatpush1.msra.mxu1 %v1773_v44  ;;  %2138 = vmatprep.mubr.f32.mxu1 %v1582_v22  ;;  %v1797_v22 = vld [vmem:[%s12002_s4 + $0x6b0] sm:$0xff]  ;;  %v1794_v44 = vld [vmem:[%s12002_s4 + $0x698] sm:$0xff] }
 0x238   :  { %2076 = vmatprep.subr.mxu1 %v1770_v24  ;;  %v1793_v24 = vld [vmem:[%s12002_s4 + $0x690] sm:$0xff] }
 0x239   :  { %2077 = vmatpush1.msra.mxu1 %v1769_v30  ;;  %v1790_v30 = vld [vmem:[%s12002_s4 + $0x678] sm:$0xff] }
 0x23a   :  { %2078 = vmatprep.subr.mxu1 %v1766_v45  ;;  %v1789_v45 = vld [vmem:[%s12002_s4 + $0x670] sm:$0xff] }
 0x23b   :  { %2079 = vmatpush1.msra.mxu1 %v1765_v39  ;;  %v1786_v39 = vld [vmem:[%s12002_s4 + $0x658] sm:$0xff] }
 0x23c   :  { %2080 = vmatprep.subr.mxu1 %v1762_v27  ;;  %v1785_v27 = vld [vmem:[%s12002_s4 + $0x650] sm:$0xff] }
 0x23d   :  { %2081 = vmatpush1.msra.mxu1 %v1761_v32  ;;  %v1782_v32 = vld [vmem:[%s12002_s4 + $0x638] sm:$0xff] }
 0x23e   :  { %2082 = vmatprep.subr.mxu1 %v1758_v33  ;;  %v1781_v33 = vld [vmem:[%s12002_s4 + $0x630] sm:$0xff] }
 0x23f   :  { %2083 = vmatpush1.msra.mxu1 %v1757_v31  ;;  %v1778_v31 = vld [vmem:[%s12002_s4 + $0x618] sm:$0xff] }
 0x240   :  { %2084 = vmatprep.subr.mxu1 %v1754_v34  ;;  %v1777_v34 = vld [vmem:[%s12002_s4 + $0x610] sm:$0xff] }
 0x241   :  { %2085 = vmatpush1.msra.mxu1 %v1753_v4  ;;  %v2622_v4 = vld [vmem:[%s12004_s6 + $0x1e8] sm:$0xff] }
 0x242   :  { %2086 = vmatprep.subr.mxu1 %v1750_v63  ;;  %2839 = vmatprep.subr.mxu0 %v2622_v4  ;;  %v2621_v63 = vld [vmem:[%s12004_s6 + $0x1e0] sm:$0xff]  ;;  %v2642_v4 = vld [vmem:[%s12004_s6 + $0x288] sm:$0xff] }
 0x243   :  { %2087 = vmatpush1.msra.mxu1 %v1749_v51  ;;  %2840 = vmatpush1.msra.mxu0 %v2621_v63  ;;  %v2618_v51 = vld [vmem:[%s12004_s6 + $0x1c8] sm:$0xff]  ;;  %v2641_v63 = vld [vmem:[%s12004_s6 + $0x280] sm:$0xff] }
 0x244   :  { %2088 = vmatprep.subr.mxu1 %v1746_v36  ;;  %2841 = vmatprep.subr.mxu0 %v2618_v51  ;;  %v2617_v36 = vld [vmem:[%s12004_s6 + $0x1c0] sm:$0xff]  ;;  %v2638_v51 = vld [vmem:[%s12004_s6 + $0x268] sm:$0xff] }
 0x245   :  { %2089 = vmatpush1.msra.mxu1 %v1745_v37  ;;  %2842 = vmatpush1.msra.mxu0 %v2617_v36  ;;  %v2613_v37 = vld [vmem:[%s12004_s6 + $0x1a0] sm:$0xff] }
 0x246   :  { %2090 = vmatprep.subr.mxu1 %v1742_v38  ;;  %v2610_v38 = vld [vmem:[%s12004_s6 + $0x188] sm:$0xff]  ;;  %v2637_v36 = vld [vmem:[%s12004_s6 + $0x260] sm:$0xff] }
 0x247   :  { %2091 = vmatpush1.msra.mxu1 %v1741_v25  ;;  %v2609_v25 = vld [vmem:[%s12004_s6 + $0x180] sm:$0xff] }
 0x248   :  { %2092 = vmatprep.subr.mxu1 %v1738_v40  ;;  %v2606_v40 = vld [vmem:[%s12004_s6 + $0x168] sm:$0xff] }
 0x249   :  { %2093 = vmatpush1.msra.mxu1 %v1737_v23  ;;  %v2605_v23 = vld [vmem:[%s12004_s6 + $0x160] sm:$0xff] }
 0x24a   :  { %2094 = vmatprep.subr.mxu1 %v1734_v42  ;;  %v2602_v42 = vld [vmem:[%s12004_s6 + $0x148] sm:$0xff] }
 0x24b   :  { %2095 = vmatpush1.msra.mxu1 %v1733_v48  ;;  %v2601_v48 = vld [vmem:[%s12004_s6 + $0x140] sm:$0xff] }
 0x24c   :  { %2096 = vmatprep.subr.mxu1 %v1730_v35  ;;  %v2598_v35 = vld [vmem:[%s12004_s6 + $0x128] sm:$0xff] }
 0x24d   :  { %2097 = vmatpush1.msra.mxu1 %v1729_v49  ;;  %v2597_v49 = vld [vmem:[%s12004_s6 + $0x120] sm:$0xff] }
 0x24e   :  { %2098 = vmatprep.subr.mxu1 %v1726_v61  ;;  %v2594_v61 = vld [vmem:[%s12004_s6 + $0x108] sm:$0xff] }
 0x24f   :  { %2099 = vmatpush1.msra.mxu1 %v1725_v53  ;;  %v2593_v53 = vld [vmem:[%s12004_s6 + $0x100] sm:$0xff] }
 0x250   :  { %2100 = vmatprep.subr.mxu1 %v1722_v54  ;;  %v2590_v54 = vld [vmem:[%s12004_s6 + $0xe8] sm:$0xff] }
 0x251   :  { %2101 = vmatpush1.msra.mxu1 %v1721_v55  ;;  %v2589_v55 = vld [vmem:[%s12004_s6 + $0xe0] sm:$0xff] }
 0x252   :  { %2102 = vmatprep.subr.mxu1 %v1718_v58  ;;  %v2586_v58 = vld [vmem:[%s12004_s6 + $0xc8] sm:$0xff] }
 0x253   :  { %2103 = vmatpush1.msra.mxu1 %v1717_v26  ;;  %v2585_v26 = vld [vmem:[%s12004_s6 + $0xc0] sm:$0xff] }
 0x254   :  { %2104 = vmatprep.subr.mxu1 %v1714_v60  ;;  %v2582_v60 = vld [vmem:[%s12004_s6 + $0xa8] sm:$0xff] }
 0x255   :  { %2105 = vmatpush1.msra.mxu1 %v1713_v28  ;;  %v2581_v28 = vld [vmem:[%s12004_s6 + $0xa0] sm:$0xff] }
 0x256   :  { %2106 = vmatprep.subr.mxu1 %v1838_v5  ;;  %v2578_v5 = vld [vmem:[%s12004_s6 + $0x88] sm:$0xff] }
 0x257   :  { %2107 = vmatpush2.msra.mxu1 %v1837_v56  ;;  %v2577_v56 = vld [vmem:[%s12004_s6 + $0x80] sm:$0xff] }
 0x258   :  { %2108 = vmatprep.subr.mxu1 %v1834_v52  ;;  %v2574_v52 = vld [vmem:[%s12004_s6 + $0x68] sm:$0xff] }
 0x259   :  { %2109 = vmatpush2.msra.mxu1 %v1833_v8  ;;  %v2573_v8 = vld [vmem:[%s12004_s6 + $0x60] sm:$0xff] }
 0x25a   :  { %2110 = vmatprep.subr.mxu1 %v1830_v62  ;;  %v2570_v62 = vld [vmem:[%s12004_s6 + $0x48] sm:$0xff] }
 0x25b   :  { %2111 = vmatpush2.msra.mxu1 %v1829_v10  ;;  %v2569_v10 = vld [vmem:[%s12004_s6 + $0x40] sm:$0xff] }
 0x25c   :  { %2112 = vmatprep.subr.mxu1 %v1826_v11  ;;  %v2566_v11 = vld [vmem:[%s12004_s6 + $0x28] sm:$0xff] }
 0x25d   :  { %2113 = vmatpush2.msra.mxu1 %v1825_v13  ;;  %v2565_v13 = vld [vmem:[%s12004_s6 + $0x20] sm:$0xff] }
 0x25e   :  { %2114 = vmatprep.subr.mxu1 %v1822_v50  ;;  %v2562_v50 = vld [vmem:[%s12004_s6 + $0x8] sm:$0xff] }
 0x25f   :  { %2115 = vmatpush2.msra.mxu1 %v1821_v41  ;;  %v2561_v41 = vld [vmem:[%s12004_s6] sm:$0xff] }
 0x260   :  { %2116 = vmatprep.subr.mxu1 %v1818_v14  ;;  %v2686_v14 = vld [vmem:[%s12004_s6 + $0x3e8] sm:$0xff] }
 0x261   :  { %2117 = vmatpush2.msra.mxu1 %v1817_v15  ;;  %v2685_v15 = vld [vmem:[%s12004_s6 + $0x3e0] sm:$0xff] }
 0x262   :  { %2118 = vmatprep.subr.mxu1 %v1814_v17  ;;  %v2682_v17 = vld [vmem:[%s12004_s6 + $0x3c8] sm:$0xff] }
 0x263   :  { %2119 = vmatpush2.msra.mxu1 %v1813_v46  ;;  %v2681_v46 = vld [vmem:[%s12004_s6 + $0x3c0] sm:$0xff] }
 0x264   :  { %2120 = vmatprep.subr.mxu1 %v1810_v18  ;;  %v2678_v18 = vld [vmem:[%s12004_s6 + $0x3a8] sm:$0xff] }
 0x265   :  { %2121 = vmatpush2.msra.mxu1 %v1809_v12  ;;  %v2677_v12 = vld [vmem:[%s12004_s6 + $0x3a0] sm:$0xff] }
 0x266   :  { %2122 = vmatprep.subr.mxu1 %v1806_v19  ;;  %v2674_v19 = vld [vmem:[%s12004_s6 + $0x388] sm:$0xff] }
 0x267   :  { %2123 = vmatpush2.msra.mxu1 %v1805_v20  ;;  %v2673_v20 = vld [vmem:[%s12004_s6 + $0x380] sm:$0xff] }
 0x268   :  { %2124 = vmatprep.subr.mxu1 %v1802_v29  ;;  %v2670_v29 = vld [vmem:[%s12004_s6 + $0x368] sm:$0xff] }
 0x269   :  { %2125 = vmatpush2.msra.mxu1 %v1801_v21  ;;  %v2669_v21 = vld [vmem:[%s12004_s6 + $0x360] sm:$0xff] }
 0x26a   :  { %2126 = vmatprep.subr.mxu1 %v1798_v1  ;;  %v2666_v1 = vld [vmem:[%s12004_s6 + $0x348] sm:$0xff] }
 0x26b   :  { %2127 = vmatpush2.msra.mxu1 %v1797_v22  ;;  %v2665_v22 = vld [vmem:[%s12004_s6 + $0x340] sm:$0xff] }
 0x26c   :  { %2128 = vmatprep.subr.mxu1 %v1794_v44  ;;  %v2662_v44 = vld [vmem:[%s12004_s6 + $0x328] sm:$0xff] }
 0x26d   :  { %2129 = vmatpush2.msra.mxu1 %v1793_v24  ;;  %v2661_v24 = vld [vmem:[%s12004_s6 + $0x320] sm:$0xff] }
 0x26e   :  { %2130 = vmatprep.subr.mxu1 %v1790_v30  ;;  %v2658_v30 = vld [vmem:[%s12004_s6 + $0x308] sm:$0xff] }
 0x26f   :  { %2131 = vmatpush2.msra.mxu1 %v1789_v45  ;;  %v2657_v45 = vld [vmem:[%s12004_s6 + $0x300] sm:$0xff] }
 0x270   :  { %2132 = vmatprep.subr.mxu1 %v1786_v39  ;;  %v2654_v39 = vld [vmem:[%s12004_s6 + $0x2e8] sm:$0xff] }
 0x271   :  { %2133 = vmatpush2.msra.mxu1 %v1785_v27  ;;  %v2653_v27 = vld [vmem:[%s12004_s6 + $0x2e0] sm:$0xff] }
 0x272   :  { %2134 = vmatprep.subr.mxu1 %v1782_v32  ;;  %v2650_v32 = vld [vmem:[%s12004_s6 + $0x2c8] sm:$0xff] }
 0x273   :  { %2135 = vmatpush2.msra.mxu1 %v1781_v33  ;;  %v2649_v33 = vld [vmem:[%s12004_s6 + $0x2c0] sm:$0xff] }
 0x274   :  { %2136 = vmatprep.subr.mxu1 %v1778_v31  ;;  %v2646_v31 = vld [vmem:[%s12004_s6 + $0x2a8] sm:$0xff] }
 0x275   :  { %2137 = vmatpush2.msra.mxu1 %v1777_v34  ;;  %v2645_v34 = vld [vmem:[%s12004_s6 + $0x2a0] sm:$0xff] }
 0x276   :  { %2139 = vmatmul.mubr.f32.vlgmr.msra.gmra.mxu1 %v8222_v43  ;;  %v2614_v43 = vld [vmem:[%s12004_s6 + $0x1a8] sm:$0xff] }
 0x277   :  { %2843 = vmatprep.subr.mxu0 %v2614_v43  ;;  %v2634_v43 = vld [vmem:[%s12004_s6 + $0x248] sm:$0xff] }
 0x278   :  { %2844 = vmatpush1.msra.mxu0 %v2613_v37  ;;  %v2633_v37 = vld [vmem:[%s12004_s6 + $0x240] sm:$0xff] }
 0x279   :  { %2845 = vmatprep.subr.mxu0 %v2610_v38  ;;  %v2630_v38 = vld [vmem:[%s12004_s6 + $0x228] sm:$0xff] }
 0x27a   :  { %2846 = vmatpush1.msra.mxu0 %v2609_v25  ;;  %v2629_v25 = vld [vmem:[%s12004_s6 + $0x220] sm:$0xff] }
 0x27b   :  { %2847 = vmatprep.subr.mxu0 %v2606_v40  ;;  %v2626_v40 = vld [vmem:[%s12004_s6 + $0x208] sm:$0xff] }
 0x27c   :  { %2848 = vmatpush1.msra.mxu0 %v2605_v23  ;;  %v2625_v23 = vld [vmem:[%s12004_s6 + $0x200] sm:$0xff] }
 0x27d   :  { %2849 = vmatprep.subr.mxu0 %v2602_v42  ;;  %v2750_v42 = vld [vmem:[%s12004_s6 + $0x5e8] sm:$0xff] }
 0x27e   :  { %2850 = vmatpush1.msra.mxu0 %v2601_v48  ;;  %2910 = vmatprep.subr.mxu1 %v2750_v42  ;;  %v2749_v48 = vld [vmem:[%s12004_s6 + $0x5e0] sm:$0xff]  ;;  %v2698_v42 = vld [vmem:[%s12004_s6 + $0x448] sm:$0xff] }
 0x27f   :  { %2851 = vmatprep.subr.mxu0 %v2598_v35  ;;  %v2624_v35 = vld [vmem:[%s12004_s6 + $0x1f8] sm:$0xff]  ;;  %2911 = vmatpush1.msra.mxu1 %v2749_v48 }
 0x280   :  { %2852 = vmatpush1.msra.mxu0 %v2597_v49  ;;  %v2746_v49 = vld [vmem:[%s12004_s6 + $0x5c8] sm:$0xff] }
 0x281   :  { %2853 = vmatprep.subr.mxu0 %v2594_v61  ;;  %2912 = vmatprep.subr.mxu1 %v2746_v49  ;;  %v2745_v61 = vld [vmem:[%s12004_s6 + $0x5c0] sm:$0xff] }
 0x282   :  { %2854 = vmatpush1.msra.mxu0 %v2593_v53  ;;  %2913 = vmatpush1.msra.mxu1 %v2745_v61  ;;  %v2742_v53 = vld [vmem:[%s12004_s6 + $0x5a8] sm:$0xff] }
 0x283   :  { %2855 = vmatprep.subr.mxu0 %v2590_v54  ;;  %v8625_v54 = vld [vmem:[%s12005_s5] sm:$0xf]  ;;  %2914 = vmatprep.subr.mxu1 %v2742_v53 }
 0x284   :  { %2856 = vmatpush1.msra.mxu0 %v2589_v55  ;;  %v2741_v55 = vld [vmem:[%s12004_s6 + $0x5a0] sm:$0xff] }
 0x285   :  { %2857 = vmatprep.subr.mxu0 %v2586_v58  ;;  %2915 = vmatpush1.msra.mxu1 %v2741_v55  ;;  %v2738_v58 = vld [vmem:[%s12004_s6 + $0x588] sm:$0xff] }
 0x286   :  { %2858 = vmatpush1.msra.mxu0 %v2585_v26  ;;  %v1927_v26 = vpop.f32.mrf.mxu0  ;;  %2916 = vmatprep.subr.mxu1 %v2738_v58  ;;  %v2694_v55 = vld [vmem:[%s12004_s6 + $0x428] sm:$0xff] }
 0x287   :  { %2859 = vmatprep.subr.mxu0 %v2582_v60  ;;  %v2737_v60 = vld [vmem:[%s12004_s6 + $0x580] sm:$0xff] }
 0x288   :  { %2860 = vmatpush1.msra.mxu0 %v2581_v28  ;;  %v1844_v28 = vrot.slane %v8625_v54, %v7499_v2  ;;  %2917 = vmatpush1.msra.mxu1 %v2737_v60 }
 0x289   :  { %2861 = vmatprep.subr.mxu0 %v2578_v5  ;;  %v2734_v5 = vld [vmem:[%s12004_s6 + $0x568] sm:$0xff] }
 0x28a   :  { %2862 = vmatpush1.msra.mxu0 %v2577_v56  ;;  %2918 = vmatprep.subr.mxu1 %v2734_v5  ;;  %v2733_v56 = vld [vmem:[%s12004_s6 + $0x560] sm:$0xff] }
 0x28b   :  { %2863 = vmatprep.subr.mxu0 %v2574_v52  ;;  %v1848_v52 = vrot.slane %v8625_v54, %v7513_v6  ;;  %2919 = vmatpush1.msra.mxu1 %v2733_v56  ;;  %v2693_v5 = vld [vmem:[%s12004_s6 + $0x420] sm:$0xff] }
 0x28c   :  { %2864 = vmatpush1.msra.mxu0 %v2573_v8  ;;  %v2730_v8 = vld [vmem:[%s12004_s6 + $0x548] sm:$0xff] }
 0x28d   :  { %2865 = vmatprep.subr.mxu0 %v2570_v62  ;;  %v1929_v62 = vpop.f32.mrf.mxu0  ;;  %2920 = vmatprep.subr.mxu1 %v2730_v8 }
 0x28e   :  { %2866 = vmatpush1.msra.mxu0 %v2569_v10  ;;  %v2729_v10 = vld [vmem:[%s12004_s6 + $0x540] sm:$0xff] }
 0x28f   :  { %2867 = vmatprep.subr.mxu0 %v2566_v11  ;;  %v1928_v11 = vadd.f32 %v1927_v26, %v1844_v28  ;;  %2921 = vmatpush1.msra.mxu1 %v2729_v10 }
 0x290   :  { %2868 = vmatpush1.msra.mxu0 %v2565_v13  ;;  %v2726_v13 = vld [vmem:[%s12004_s6 + $0x528] sm:$0xff] }
 0x291   :  { %2869 = vmatprep.subr.mxu0 %v2562_v50  ;;  %2922 = vmatprep.subr.mxu1 %v2726_v13 }
 0x292   :  { %2870 = vmatpush1.msra.mxu0 %v2561_v41  ;;  %v2725_v41 = vld [vmem:[%s12004_s6 + $0x520] sm:$0xff] }
 0x293   :  { %2871 = vmatprep.subr.mxu0 %v2686_v14  ;;  %v1930_v14 = vadd.f32 %v1929_v62, %v1848_v52  ;;  %2923 = vmatpush1.msra.mxu1 %v2725_v41  ;;  %v2690_v62 = vld [vmem:[%s12004_s6 + $0x408] sm:$0xff] }
 0x294   :  { %2872 = vmatpush2.msra.mxu0 %v2685_v15 }
 0x295   :  { %2873 = vmatprep.subr.mxu0 %v2682_v17  ;;  %v2722_v17 = vld [vmem:[%s12004_s6 + $0x508] sm:$0xff] }
 0x296   :  { %2874 = vmatpush2.msra.mxu0 %v2681_v46  ;;  %2924 = vmatprep.subr.mxu1 %v2722_v17 }
 0x297   :  { %2875 = vmatprep.subr.mxu0 %v2678_v18  ;;  %v2721_v18 = vld [vmem:[%s12004_s6 + $0x500] sm:$0xff] }
 0x298   :  { %2876 = vmatpush2.msra.mxu0 %v2677_v12  ;;  %2925 = vmatpush1.msra.mxu1 %v2721_v18  ;;  %v2814_v18 = vld [vmem:[%s12004_s6 + $0x7e8] sm:$0xff] }
 0x299   :  { %2877 = vmatprep.subr.mxu0 %v2674_v19 }
 0x29a   :  { %2878 = vmatpush2.msra.mxu0 %v2673_v20 }
 0x29b   :  { %2879 = vmatprep.subr.mxu0 %v2670_v29  ;;  %v2718_v29 = vld [vmem:[%s12004_s6 + $0x4e8] sm:$0xff] }
 0x29c   :  { %2880 = vmatpush2.msra.mxu0 %v2669_v21  ;;  %2926 = vmatprep.subr.mxu1 %v2718_v29  ;;  %v2717_v21 = vld [vmem:[%s12004_s6 + $0x4e0] sm:$0xff] }
 0x29d   :  { %2881 = vmatprep.subr.mxu0 %v2666_v1  ;;  %2927 = vmatpush1.msra.mxu1 %v2717_v21 }
 0x29e   :  { %2882 = vmatpush2.msra.mxu0 %v2665_v22 }
 0x29f   :  { %2883 = vmatprep.subr.mxu0 %v2662_v44 }
 0x2a0   :  { %2884 = vmatpush2.msra.mxu0 %v2661_v24  ;;  %v2714_v24 = vld [vmem:[%s12004_s6 + $0x4c8] sm:$0xff] }
 0x2a1   :  { %2885 = vmatprep.subr.mxu0 %v2658_v30  ;;  %v2713_v30 = vld [vmem:[%s12004_s6 + $0x4c0] sm:$0xff]  ;;  %2928 = vmatprep.subr.mxu1 %v2714_v24 }
 0x2a2   :  { %2886 = vmatpush2.msra.mxu0 %v2657_v45  ;;  %2929 = vmatpush1.msra.mxu1 %v2713_v30 }
 0x2a3   :  { %2887 = vmatprep.subr.mxu0 %v2654_v39 }
 0x2a4   :  { %2888 = vmatpush2.msra.mxu0 %v2653_v27  ;;  %v2710_v27 = vld [vmem:[%s12004_s6 + $0x4a8] sm:$0xff] }
 0x2a5   :  { %2889 = vmatprep.subr.mxu0 %v2650_v32  ;;  %2930 = vmatprep.subr.mxu1 %v2710_v27 }
 0x2a6   :  { %2890 = vmatpush2.msra.mxu0 %v2649_v33  ;;  %v2709_v33 = vld [vmem:[%s12004_s6 + $0x4a0] sm:$0xff] }
 0x2a7   :  { %2891 = vmatprep.subr.mxu0 %v2646_v31  ;;  %2931 = vmatpush1.msra.mxu1 %v2709_v33 }
 0x2a8   :  { %2892 = vmatpush2.msra.mxu0 %v2645_v34  ;;  %v2706_v34 = vld [vmem:[%s12004_s6 + $0x488] sm:$0xff] }
 0x2a9   :  { %2893 = vmatprep.subr.mxu0 %v2642_v4  ;;  %2932 = vmatprep.subr.mxu1 %v2706_v34  ;;  %v2809_v34 = vld [vmem:[%s12004_s6 + $0x7c0] sm:$0xff] }
 0x2aa   :  { %2894 = vmatpush2.msra.mxu0 %v2641_v63 }
 0x2ab   :  { %2895 = vmatprep.subr.mxu0 %v2638_v51  ;;  %v2705_v51 = vld [vmem:[%s12004_s6 + $0x480] sm:$0xff] }
 0x2ac   :  { %2896 = vmatpush2.msra.mxu0 %v2637_v36  ;;  %2933 = vmatpush1.msra.mxu1 %v2705_v51 }
 0x2ad   :  { %2897 = vmatprep.subr.mxu0 %v2634_v43  ;;  %v2702_v43 = vld [vmem:[%s12004_s6 + $0x468] sm:$0xff] }
 0x2ae   :  { %2898 = vmatpush2.msra.mxu0 %v2633_v37  ;;  %2934 = vmatprep.subr.mxu1 %v2702_v43 }
 0x2af   :  { %2899 = vmatprep.subr.mxu0 %v2630_v38 }
 0x2b0   :  { %2900 = vmatpush2.msra.mxu0 %v2629_v25  ;;  %v2701_v25 = vld [vmem:[%s12004_s6 + $0x460] sm:$0xff] }
 0x2b1   :  { %2901 = vmatprep.subr.mxu0 %v2626_v40  ;;  %2935 = vmatpush1.msra.mxu1 %v2701_v25 }
 0x2b2   :  { %2902 = vmatpush2.msra.mxu0 %v2625_v23  ;;  %2936 = vmatprep.subr.mxu1 %v2698_v42 }
 0x2b3   :  { %2981 = vmatprep.subr.mxu0 %v2624_v35  ;;  %v2697_v35 = vld [vmem:[%s12004_s6 + $0x440] sm:$0xff] }
 0x2b4   :  { %2937 = vmatpush1.msra.mxu1 %v2697_v35 }
 0x2b5   :  { %2938 = vmatprep.subr.mxu1 %v2694_v55 }
 0x2b6   :  { %2939 = vmatpush1.msra.mxu1 %v2693_v5 }
 0x2b7   :  { %2940 = vmatprep.subr.mxu1 %v2690_v62 }
 0x2f6   :  { %v1998_v50 = vpop.f32.mrf.mxu1 }
 0x2f7   :  { %v8658_v15 = vadd.f32 %v1998_v50, %v1928_v11  ;;  %v2689_v50 = vld [vmem:[%s12004_s6 + $0x400] sm:$0xff] }
 0x2f8   :  { %v2000_v46 = vpop.f32.mrf.mxu1  ;;  %2941 = vmatpush1.msra.mxu1 %v2689_v50  ;;  %v2797_v50 = vld [vmem:[%s12004_s6 + $0x760] sm:$0xff] }
 0x2f9   :  { %v2145_v12 = vand.u32 2147483647, %v8658_v15  ;;  %v2148_v19 = vand.u32 2139095040, %v8658_v15  ;;  %v8668_v20 = vadd.f32 %v2000_v46, %v1930_v14  ;;  %2942 = vmatprep.subr.mxu1 %v2814_v18  ;;  %vm2147_vm2 = vcmp.lt.s32.totalorder %v8658_v15, 0 }
 0x2fb   :  { %v2149_v1 = vshrl.u32 %v2148_v19, 23  ;;  %v2152_v22 = vand.u32 8388607, %v2145_v12  ;;  %v2252_v44 = vand.u32 2139095040, %v8668_v20  ;;  %v2249_v39 = vand.u32 2147483647, %v8668_v20 }
 0x2fc   :  { %vm8954_vm3 = vcmp.le.f32.partialorder %v2145_v12, 0.7853982 }
 0x2fd   :  { %v5430_v45 = vadd.s32 4294967169, %v2149_v1  ;;  %v2253_v32 = vshrl.u32 %v2252_v44, 23  ;;  %v2153_v4 = vor.u32 8388608, %v2152_v22  ;;  %v8700_v36 = vand.u32 8388607, %v2249_v39  ;;  %v2813_v1 = vld [vmem:[%s12004_s6 + $0x7e0] sm:$0xff] }
 0x2fe   :  { %2943 = vmatpush2.msra.mxu1 %v2813_v1 }
 0x2ff   :  { %v2155_v31 = vadd.s32 1, %v5430_v45  ;;  %v5434_v63 = vadd.s32 4294967169, %v2253_v32  ;;  %v8713_v48 = vshll.u32 %v2153_v4, 8  ;;  %v2257_v53 = vor.u32 8388608, %v8700_v36  ;;  %v2810_v45 = vld [vmem:[%s12004_s6 + $0x7c8] sm:$0xff] }
 0x300   :  { %2944 = vmatprep.subr.mxu1 %v2810_v45  ;;  %v2806_v36 = vld [vmem:[%s12004_s6 + $0x7a8] sm:$0xff] }
 0x301   :  { %vm2156_vm4 = vcmp.gt.s32.totalorder %v2155_v31, 0  ;;  %v2259_v38 = vadd.s32 1, %v5434_v63  ;;  %v8771_v51 = vshll.u32 %v2257_v53, 8  ;;  %2945 = vmatpush2.msra.mxu1 %v2809_v34  ;;  %v2786_v34 = vld [vmem:[%s12004_s6 + $0x708] sm:$0xff] }
 0x302   :  { %v2157_v37 = vsel %vm2156_vm4, %v2155_v31, 0  ;;  %2946 = vmatprep.subr.mxu1 %v2806_v36  ;;  %vm2251_vm4 = vcmp.lt.s32.totalorder %v8668_v20, 0 }
 0x303   :  { %v8708_v40 = vshrl.u32 %v2157_v37, 5  ;;  %v2159_v23 = vand.u32 31, %v2157_v37  ;;  %vm2260_vm5 = vcmp.gt.s32.totalorder %v2259_v38, 0 }
 0x304   :  { %v2261_v46 = vsel %vm2260_vm5, %v2259_v38, 0 }
 0x305   :  { %v2160_v49 = vsub.s32 32, %v2159_v23  ;;  %v2162_v61 = vshll.u32 %v5675_v59, %v2159_v23  ;;  %v2165_v58 = vshll.u32 %v5676_v0, %v2159_v23  ;;  %v2168_v26 = vshll.u32 %v5677_v3, %v2159_v23 }
 0x306   :  { %v2171_v60 = vshll.u32 %v5678_v7, %v2159_v23  ;;  %v2174_v28 = vshll.u32 %v5679_v9, %v2159_v23  ;;  %vm2177_vm6 = vcmp.lt.s32.totalorder %v8708_v40, 1  ;;  %vm2179_vm7 = vcmp.lt.s32.totalorder %v8708_v40, 3  ;;  %v2805_v23 = vld [vmem:[%s12004_s6 + $0x7a0] sm:$0xff] }
 0x307   :  { %v2163_v56 = vshrl.u32 %v5676_v0, %v2160_v49  ;;  %v2166_v52 = vshrl.u32 %v5677_v3, %v2160_v49  ;;  %v2169_v8 = vshrl.u32 %v5678_v7, %v2160_v49  ;;  %v2161_v10 = vshrl.u32 %v5675_v59, %v2160_v49  ;;  %2947 = vmatpush2.msra.mxu1 %v2805_v23 }
 0x308   :  { %v2172_v11 = vshrl.u32 %v5679_v9, %v2160_v49  ;;  %v2175_v13 = vshrl.u32 %v5680_v16, %v2160_v49  ;;  %vm2180_vm8 = vcmp.lt.s32.totalorder %v8708_v40, 4  ;;  %v2263_v21 = vand.u32 31, %v2261_v46 }
 0x309   :  { %v2164_v41 = vor.u32 %v2163_v56, %v2162_v61  ;;  %v2167_v14 = vor.u32 %v2166_v52, %v2165_v58  ;;  %v2170_v17 = vor.u32 %v2169_v8, %v2168_v26  ;;  %vm2178_vm9 = vcmp.lt.s32.totalorder %v8708_v40, 2  ;;  %v2802_v61 = vld [vmem:[%s12004_s6 + $0x788] sm:$0xff] }
 0x30a   :  { %v2173_v19 = vor.u32 %v2172_v11, %v2171_v60  ;;  %v2176_v29 = vor.u32 %v2175_v13, %v2174_v28  ;;  %v2264_v31 = vsub.s32 32, %v2263_v21  ;;  %v8776_v25 = vshrl.u32 %v2261_v46, 5  ;;  %v2801_v60 = vld [vmem:[%s12004_s6 + $0x780] sm:$0xff]  ;;  %2948 = vmatprep.subr.mxu1 %v2802_v61  ;;  %v2798_v8 = vld [vmem:[%s12004_s6 + $0x768] sm:$0xff] }
 0x30b   :  { %v2181_v22 = vsel %vm2177_vm6, %v2161_v10, %v2164_v41  ;;  %v2182_v44 = vsel %vm2180_vm8, %v2170_v17, 2102212464  ;;  %v2185_v24 = vsel %vm2177_vm6, %v2164_v41, %v2167_v14  ;;  %v2189_v30 = vsel %vm2177_vm6, %v2167_v14, %v2170_v17  ;;  %2949 = vmatpush2.msra.mxu1 %v2801_v60  ;;  %v2794_v46 = vld [vmem:[%s12004_s6 + $0x748] sm:$0xff] }
 0x30c   :  { %v2183_v27 = vsel %vm2179_vm7, %v2167_v14, %v2182_v44  ;;  %v2186_v32 = vsel %vm2180_vm8, %v2173_v19, 920167782  ;;  %v2190_v33 = vsel %vm2180_vm8, %v2176_v29, 1326507024  ;;  %v2266_v53 = vshll.u32 %v5675_v59, %v2263_v21  ;;  %2950 = vmatprep.subr.mxu1 %v2798_v8  ;;  %v2778_v60 = vld [vmem:[%s12004_s6 + $0x6c8] sm:$0xff] }
 0x30d   :  { %v2187_v4 = vsel %vm2179_vm7, %v2170_v17, %v2186_v32  ;;  %v2191_v63 = vsel %vm2179_vm7, %v2173_v19, %v2190_v33  ;;  %v2184_v43 = vsel %vm2178_vm9, %v2181_v22, %v2183_v27  ;;  %v2267_v55 = vshrl.u32 %v5676_v0, %v2264_v31  ;;  %2951 = vmatpush2.msra.mxu1 %v2797_v50  ;;  %v2790_v22 = vld [vmem:[%s12004_s6 + $0x728] sm:$0xff]  ;;  %v2789_v27 = vld [vmem:[%s12004_s6 + $0x720] sm:$0xff] }
 0x30e   :  { %v2188_v37 = vsel %vm2178_vm9, %v2185_v24, %v2187_v4  ;;  %v2192_v38 = vsel %vm2178_vm9, %v2189_v30, %v2191_v63  ;;  %v2269_v58 = vshll.u32 %v5676_v0, %v2263_v21  ;;  %v2270_v26 = vshrl.u32 %v5677_v3, %v2264_v31  ;;  %2952 = vmatprep.subr.mxu1 %v2794_v46  ;;  %v2765_v46 = vld [vmem:[%s12004_s6 + $0x660] sm:$0xff] }
 0x30f   :  { %v8782_v40 = vmul.u32.u64.low %v8713_v48, %v2192_v38  ;;  %v8783_v42 = vmul.u32.u64.high %v8713_v48, %v2192_v38, %v8782_v40  ;;  %v8786_v35 = vmul.u32.u64.low %v8713_v48, %v2188_v37  ;;  %v8787_v49 = vmul.u32.u64.high %v8713_v48, %v2188_v37, %v8786_v35  ;;  %v2785_v37 = vld [vmem:[%s12004_s6 + $0x700] sm:$0xff] }
 0x310   :  { %v2272_v28 = vshll.u32 %v5677_v3, %v2263_v21  ;;  %v2273_v5 = vshrl.u32 %v5678_v7, %v2264_v31  ;;  %v2275_v56 = vshll.u32 %v5678_v7, %v2263_v21  ;;  %v2276_v52 = vshrl.u32 %v5679_v9, %v2264_v31 }
 0x311   :  { %v2268_v62 = vor.u32 %v2267_v55, %v2266_v53  ;;  %v2271_v10 = vor.u32 %v2270_v26, %v2269_v58  ;;  %v2278_v11 = vshll.u32 %v5679_v9, %v2263_v21  ;;  %v2279_v13 = vshrl.u32 %v5680_v16, %v2264_v31  ;;  %v2781_v58 = vld [vmem:[%s12004_s6 + $0x6e0] sm:$0xff] }
 0x312   :  { %v2200_v41 = vmul.u32 %v8713_v48, %v2184_v43  ;;  %vm2202_vm10 = vc.u32 %v8783_v42, %v8786_v35  ;;  %v2203_v14 = vadd.s32 1, %v8787_v49  ;;  %v2274_v17 = vor.u32 %v2273_v5, %v2272_v28  ;;  %v2793_v48 = vld [vmem:[%s12004_s6 + $0x740] sm:$0xff] }
 0x313   :  { %v2265_v18 = vshrl.u32 %v5675_v59, %v2264_v31  ;;  %v2277_v19 = vor.u32 %v2276_v52, %v2275_v56  ;;  %v2280_v29 = vor.u32 %v2279_v13, %v2278_v11  ;;  %vm2281_vm11 = vcmp.lt.s32.totalorder %v8776_v25, 1  ;;  %2953 = vmatpush2.msra.mxu1 %v2793_v48  ;;  %v2777_v5 = vld [vmem:[%s12004_s6 + $0x6c0] sm:$0xff]  ;;  %v2770_v11 = vld [vmem:[%s12004_s6 + $0x688] sm:$0xff] }
 0x314   :  { %v2204_v21 = vsel %vm2202_vm10, %v2203_v14, %v8787_v49  ;;  %vm2283_vm12 = vcmp.lt.s32.totalorder %v8776_v25, 3  ;;  %vm2284_vm13 = vcmp.lt.s32.totalorder %v8776_v25, 4  ;;  %v2289_v1 = vsel %vm2281_vm11, %v2268_v62, %v2271_v10  ;;  %2954 = vmatprep.subr.mxu1 %v2790_v22  ;;  %v2782_v49 = vld [vmem:[%s12004_s6 + $0x6e8] sm:$0xff]  ;;  %v2761_v48 = vld [vmem:[%s12004_s6 + $0x640] sm:$0xff] }
 0x315   :  { %v2205_v44 = vadd.s32 %v2204_v21, %v2200_v41  ;;  %v2286_v24 = vsel %vm2284_vm13, %v2274_v17, 2102212464  ;;  %v2290_v30 = vsel %vm2284_vm13, %v2277_v19, 920167782  ;;  %v2293_v45 = vsel %vm2281_vm11, %v2271_v10, %v2274_v17  ;;  %2955 = vmatpush2.msra.mxu1 %v2789_v27  ;;  %v2766_v41 = vld [vmem:[%s12004_s6 + $0x668] sm:$0xff] }
 0x316   :  { %vm2282_vm14 = vcmp.lt.s32.totalorder %v8776_v25, 2  ;;  %v2285_v32 = vsel %vm2281_vm11, %v2265_v18, %v2268_v62  ;;  %v2291_v33 = vsel %vm2283_vm12, %v2274_v17, %v2290_v30  ;;  %v2294_v31 = vsel %vm2284_vm13, %v2280_v29, 1326507024  ;;  %2956 = vmatprep.subr.mxu1 %v2786_v34  ;;  %v2774_v25 = vld [vmem:[%s12004_s6 + $0x6a8] sm:$0xff]  ;;  %v2773_v62 = vld [vmem:[%s12004_s6 + $0x6a0] sm:$0xff] }
 0x317   :  { %v2206_v4 = vadd.s32 536870912, %v2205_v44  ;;  %v2287_v63 = vsel %vm2283_vm12, %v2271_v10, %v2286_v24  ;;  %v2292_v36 = vsel %vm2282_vm14, %v2289_v1, %v2291_v33  ;;  %v2295_v43 = vsel %vm2283_vm12, %v2277_v19, %v2294_v31  ;;  %2957 = vmatpush2.msra.mxu1 %v2785_v37  ;;  %v2762_v18 = vld [vmem:[%s12004_s6 + $0x648] sm:$0xff] }
 0x318   :  { %v2296_v38 = vsel %vm2282_vm14, %v2293_v45, %v2295_v43  ;;  %v8857_v23 = vmul.u32.u64.low %v8771_v51, %v2292_v36  ;;  %v8858_v40 = vmul.u32.u64.high %v8771_v51, %v2292_v36, %v8857_v23  ;;  %v2288_v26 = vsel %vm2282_vm14, %v2285_v32, %v2287_v63  ;;  %2958 = vmatprep.subr.mxu1 %v2782_v49  ;;  %v2758_v21 = vld [vmem:[%s12004_s6 + $0x628] sm:$0xff]  ;;  %v2753_v45 = vld [vmem:[%s12004_s6 + $0x600] sm:$0xff]  ;;  %v2752_v32 = vld [vmem:[%s12004_s6 + $0x5f8] sm:$0xff] }
 0x319   :  { %v8864_v61 = vshrl.u32 %v2206_v4, 30  ;;  %v8867_v53 = vmul.u32.u64.low %v8771_v51, %v2296_v38  ;;  %v8868_v55 = vmul.u32.u64.high %v8771_v51, %v2296_v38, %v8867_v53  ;;  %2959 = vmatpush2.msra.mxu1 %v2781_v58  ;;  %v2304_v8 = vmul.u32 %v8771_v51, %v2288_v26  ;;  %v2769_v51 = vld [vmem:[%s12004_s6 + $0x680] sm:$0xff]  ;;  %v2754_v24 = vld [vmem:[%s12004_s6 + $0x608] sm:$0xff] }
 0x31a   :  { %v2307_v56 = vadd.s32 1, %v8858_v40  ;;  %2960 = vmatprep.subr.mxu1 %v2778_v60  ;;  %v2201_v33 = vadd.s32 %v8786_v35, %v8783_v42  ;;  %v1852_v26 = vrot.slane %v8625_v54, %v7937_v57  ;;  %v2069_v60 = vpop.f32.mrf.mxu0  ;;  %v1856_v35 = vrot.slane %v8625_v54, %v7946_v47 }
 0x31b   :  { %v2208_v28 = vshll.u32 %v8864_v61, 30  ;;  %vm2306_vm15 = vc.u32 %v8868_v55, %v8857_v23  ;;  %2961 = vmatpush2.msra.mxu1 %v2777_v5  ;;  %vm8974_vm6 = vcmp.le.f32.partialorder %v2249_v39, 0.7853982 }
 0x31c   :  { %v2308_v10 = vsel %vm2306_vm15, %v2307_v56, %v8858_v40  ;;  %2962 = vmatprep.subr.mxu1 %v2774_v25  ;;  %v2305_v25 = vadd.s32 %v8857_v23, %v8868_v55 }
 0x31d   :  { %v2209_v52 = vsub.s32 %v2205_v44, %v2208_v28  ;;  %v2309_v50 = vadd.s32 %v2308_v10, %v2304_v8  ;;  %2963 = vmatpush2.msra.mxu1 %v2773_v62  ;;  %v2757_v44 = vld [vmem:[%s12004_s6 + $0x620] sm:$0xff]  ;;  %v2070_v62 = vadd.f32 %v2069_v60, %v1852_v26  ;;  %v2071_v10 = vpop.f32.mrf.mxu0 }
 0x31e   :  { %2964 = vmatprep.subr.mxu1 %v2770_v11 }
 0x31f   :  { %v2211_v13 = vsub.s32 0, %v2209_v52  ;;  %v2310_v17 = vadd.s32 536870912, %v2309_v50  ;;  %2965 = vmatpush2.msra.mxu1 %v2769_v51 }
 0x320   :  { %2966 = vmatprep.subr.mxu1 %v2766_v41 }
 0x321   :  { %v5431_v14 = vmin.u32 %v2211_v13, %v2209_v52  ;;  %v8908_v29 = vshrl.u32 %v2310_v17, 30  ;;  %2967 = vmatpush2.msra.mxu1 %v2765_v46  ;;  %v2072_v17 = vadd.f32 %v2071_v10, %v1856_v35 }
 0x322   :  { %2968 = vmatprep.subr.mxu1 %v2762_v18 }
 0x323   :  { %v2213_v19 = vclz %v5431_v14  ;;  %v2312_v22 = vshll.u32 %v8908_v29, 30  ;;  %2969 = vmatpush2.msra.mxu1 %v2761_v48 }
 0x324   :  { %2970 = vmatprep.subr.mxu1 %v2758_v21  ;;  %v2231_v21 = vsub.s32 4, %v8864_v61 }
 0x325   :  { %v5432_v1 = vadd.s32 4294967294, %v2213_v19  ;;  %v2313_v30 = vsub.s32 %v2309_v50, %v2312_v22  ;;  %2971 = vmatpush2.msra.mxu1 %v2757_v44 }
 0x326   :  { %2972 = vmatprep.subr.mxu1 %v2754_v24  ;;  %v2335_v24 = vsub.s32 4, %v8908_v29  ;;  %v8970_v12 = vsel %vm2147_vm2, %v2231_v21, %v8864_v61 }
 0x327   :  { %vm5433_vm0 = vcmp.lt.s32.totalorder %v5432_v1, 0  ;;  %v2315_v4 = vsub.s32 0, %v2313_v30  ;;  %2973 = vmatpush2.msra.mxu1 %v2753_v45 }
 0x328   :  { %v2216_v27 = vsel %vm5433_vm0, 0, %v5432_v1  ;;  %3052 = vmatprep.subr.mxu1 %v2752_v32 }
 0x329   :  { %v2217_v31 = vsub.s32 32, %v2216_v27  ;;  %v2221_v34 = vsub.s32 4294967266, %v2216_v27  ;;  %v2218_v63 = vshll.u32 %v2209_v52, %v2216_v27  ;;  %v5435_v37 = vmin.u32 %v2315_v4, %v2313_v30 }
 0x32b   :  { %v2219_v36 = vshrl.u32 %v2201_v33, %v2217_v31  ;;  %v2222_v43 = vadd.s32 127, %v2221_v34  ;;  %v2317_v49 = vclz %v5435_v37  ;;  %v8965_v37 = vsel %vm2251_vm4, %v2335_v24, %v8908_v29 }
 0x32c   :  { %v2338_v35 = vsel %vm8974_vm6, 0, %v8965_v37 }
 0x32d   :  { %v2220_v38 = vor.u32 %v2219_v36, %v2218_v63  ;;  %v2223_v40 = vshll.u32 %v2222_v43, 23  ;;  %v5436_v58 = vadd.s32 4294967294, %v2317_v49 }
 0x32f   :  { %v2224_v53 = vor.u32 4788187, %v2223_v40  ;;  %v2227_v42 = vcvt.s32.f32 %v2220_v38  ;;  %vm5437_vm1 = vcmp.lt.s32.totalorder %v5436_v58, 0 }
 0x330   :  { %v2320_v5 = vsel %vm5437_vm1, 0, %v5436_v58 }
 0x331   :  { %v2225_v28 = vand.u32 2147483647, %v2224_v53  ;;  %v2321_v52 = vsub.s32 32, %v2320_v5  ;;  %v2325_v8 = vsub.s32 4294967266, %v2320_v5  ;;  %v2322_v11 = vshll.u32 %v2313_v30, %v2320_v5 }
 0x333   :  { %v2228_v56 = vmul.f32 %v2227_v42, %v2225_v28  ;;  %v2323_v13 = vshrl.u32 %v2305_v25, %v2321_v52  ;;  %v2326_v50 = vadd.s32 127, %v2325_v8  ;;  %v2234_v28 = vsel %vm8954_vm3, 0, %v8970_v12 }
 0x335   :  { %v2229_v41 = vxor.u32 2147483648, %v2228_v56  ;;  %v2324_v46 = vor.u32 %v2323_v13, %v2322_v11  ;;  %v2327_v18 = vshll.u32 %v2326_v50, 23 }
 0x336   :  { %v2140_v51 = vpop.f32.mrf.mxu1 }
 0x337   :  { %v8937_v14 = vadd.f32 %v2140_v51, %v2070_v62  ;;  %v2328_v23 = vor.u32 4788187, %v2327_v18  ;;  %v2230_v1 = vsel %vm2147_vm2, %v2229_v41, %v2228_v56  ;;  %v2331_v45 = vcvt.s32.f32 %v2324_v46 }
 0x338   :  { %v2142_v54 = vpop.f32.mrf.mxu1  ;;  %v2233_v36 = vsel %vm8954_vm3, %v8658_v15, %v2230_v1 }
 0x339   :  { %v2353_v19 = vand.u32 2147483647, %v8937_v14  ;;  %v2356_v48 = vand.u32 2139095040, %v8937_v14  ;;  %v8942_v55 = vadd.f32 %v2142_v54, %v2072_v17  ;;  %v2329_v30 = vand.u32 2147483647, %v2328_v23 }
 0x33a   :  { %5619 = vcosq.f32 %v2233_v36 }
 0x33b   :  { %v2357_v22 = vshrl.u32 %v2356_v48, 23  ;;  %v2360_v44 = vand.u32 8388607, %v2353_v19  ;;  %v2457_v27 = vand.u32 2147483647, %v8942_v55  ;;  %v2460_v32 = vand.u32 2139095040, %v8942_v55 }
 0x33c   :  { %v2332_v34 = vmul.f32 %v2331_v45, %v2329_v30  ;;  %5621 = vsinq.f32 %v2233_v36 }
 0x33d   :  { %v5438_v31 = vadd.s32 4294967169, %v2357_v22  ;;  %v2461_v4 = vshrl.u32 %v2460_v32, 23  ;;  %v2464_v63 = vand.u32 8388607, %v2457_v27  ;;  %v2361_v40 = vor.u32 8388608, %v2360_v44 }
 0x33e   :  { %v2333_v38 = vxor.u32 2147483648, %v2332_v34 }
 0x33f   :  { %v2363_v43 = vadd.s32 1, %v5438_v31  ;;  %v5442_v49 = vadd.s32 4294967169, %v2461_v4  ;;  %v2465_v53 = vor.u32 8388608, %v2464_v63  ;;  %v8984_v5 = vshll.u32 %v2361_v40, 8 }
 0x340   :  { %v2334_v26 = vsel %vm2251_vm4, %v2333_v38, %v2332_v34 }
 0x341   :  { %vm2364_vm5 = vcmp.gt.s32.totalorder %v2363_v43, 0  ;;  %v2467_v29 = vadd.s32 1, %v5442_v49  ;;  %v8986_v39 = vshll.u32 %v2465_v53, 8  ;;  %v8991_v56 = vsel %vm8974_vm6, %v8668_v20, %v2334_v26 }
 0x342   :  { %v2365_v60 = vsel %vm2364_vm5, %v2363_v43, 0  ;;  %5623 = vcosq.f32 %v8991_v56 }
 0x343   :  { %v2366_v61 = vshrl.u32 %v2365_v60, 5  ;;  %v2367_v42 = vand.u32 31, %v2365_v60  ;;  %vm2468_vm7 = vcmp.gt.s32.totalorder %v2467_v29, 0  ;;  %5625 = vsinq.f32 %v8991_v56 }
 0x344   :  { %v2469_v23 = vsel %vm2468_vm7, %v2467_v29, 0 }
 0x345   :  { %v2368_v25 = vsub.s32 32, %v2367_v42  ;;  %v2370_v52 = vshll.u32 %v5675_v59, %v2367_v42  ;;  %v2373_v8 = vshll.u32 %v5676_v0, %v2367_v42  ;;  %v2376_v62 = vshll.u32 %v5677_v3, %v2367_v42 }
 0x346   :  { %v2379_v10 = vshll.u32 %v5678_v7, %v2367_v42  ;;  %v2382_v11 = vshll.u32 %v5679_v9, %v2367_v42  ;;  %vm2385_vm8 = vcmp.lt.s32.totalorder %v2366_v61, 1  ;;  %vm2386_vm9 = vcmp.lt.s32.totalorder %v2366_v61, 2 }
 0x347   :  { %v2371_v13 = vshrl.u32 %v5676_v0, %v2368_v25  ;;  %v2374_v50 = vshrl.u32 %v5677_v3, %v2368_v25  ;;  %v2377_v51 = vshrl.u32 %v5678_v7, %v2368_v25  ;;  %v2369_v41 = vshrl.u32 %v5675_v59, %v2368_v25 }
 0x348   :  { %v2380_v17 = vshrl.u32 %v5679_v9, %v2368_v25  ;;  %v2383_v46 = vshrl.u32 %v5680_v16, %v2368_v25  ;;  %vm2387_vm10 = vcmp.lt.s32.totalorder %v2366_v61, 3  ;;  %vm2388_vm11 = vcmp.lt.s32.totalorder %v2366_v61, 4  ;;  %v9025_v25 = vpop.eup %5619 }
 0x349   :  { %v2372_v18 = vor.u32 %v2371_v13, %v2370_v52  ;;  %v2375_v54 = vor.u32 %v2374_v50, %v2373_v8  ;;  %v2378_v48 = vor.u32 %v2377_v51, %v2376_v62  ;;  %v2471_v22 = vand.u32 31, %v2469_v23 }
 0x34a   :  { %v2381_v21 = vor.u32 %v2380_v17, %v2379_v10  ;;  %v2384_v1 = vor.u32 %v2383_v46, %v2382_v11  ;;  %v2470_v49 = vshrl.u32 %v2469_v23, 5  ;;  %v9031_v10 = vpop.eup %5621  ;;  %v2245_v12 = vxor.u32 2147483648, %v9025_v25 }
 0x34b   :  { %v2389_v44 = vsel %vm2385_vm8, %v2369_v41, %v2372_v18  ;;  %v2390_v24 = vsel %vm2388_vm11, %v2378_v48, 2102212464  ;;  %v2393_v30 = vsel %vm2385_vm8, %v2372_v18, %v2375_v54  ;;  %v2397_v45 = vsel %vm2385_vm8, %v2375_v54, %v2378_v48 }
 0x34c   :  { %v2391_v32 = vsel %vm2387_vm10, %v2375_v54, %v2390_v24  ;;  %v2394_v31 = vsel %vm2388_vm11, %v2381_v21, 920167782  ;;  %v2398_v34 = vsel %vm2388_vm11, %v2384_v1, 1326507024  ;;  %v2472_v4 = vsub.s32 32, %v2471_v22 }
 0x34d   :  { %v2392_v63 = vsel %vm2386_vm9, %v2389_v44, %v2391_v32  ;;  %v2395_v36 = vsel %vm2387_vm10, %v2378_v48, %v2394_v31  ;;  %v2399_v43 = vsel %vm2387_vm10, %v2381_v21, %v2398_v34  ;;  %v2474_v53 = vshll.u32 %v5675_v59, %v2471_v22 }
 0x34e   :  { %v2396_v38 = vsel %vm2386_vm9, %v2393_v30, %v2395_v36  ;;  %v2400_v40 = vsel %vm2386_vm9, %v2397_v45, %v2399_v43  ;;  %v2408_v52 = vmul.u32 %v8984_v5, %v2392_v63  ;;  %v2475_v8 = vshrl.u32 %v5676_v0, %v2472_v4 }
 0x34f   :  { %v9017_v26 = vmul.u32.u64.low %v8984_v5, %v2400_v40  ;;  %v9018_v60 = vmul.u32.u64.high %v8984_v5, %v2400_v40, %v9017_v26  ;;  %v9021_v29 = vmul.u32.u64.low %v8984_v5, %v2396_v38  ;;  %v9022_v42 = vmul.u32.u64.high %v8984_v5, %v2396_v38, %v9021_v29 }
 0x350   :  { %v2477_v61 = vshll.u32 %v5676_v0, %v2471_v22  ;;  %v2478_v62 = vshrl.u32 %v5677_v3, %v2472_v4  ;;  %v2480_v11 = vshll.u32 %v5677_v3, %v2471_v22  ;;  %v2481_v13 = vshrl.u32 %v5678_v7, %v2472_v4  ;;  %v5624_v26 = vpop.eup %5623 }
 0x351   :  { %v2483_v50 = vshll.u32 %v5678_v7, %v2471_v22  ;;  %v2484_v51 = vshrl.u32 %v5679_v9, %v2472_v4  ;;  %v2476_v41 = vor.u32 %v2475_v8, %v2474_v53  ;;  %v2486_v5 = vshll.u32 %v5679_v9, %v2471_v22 }
 0x352   :  { %v2479_v17 = vor.u32 %v2478_v62, %v2477_v61  ;;  %v2487_v46 = vshrl.u32 %v5680_v16, %v2472_v4  ;;  %vm2410_vm12 = vc.u32 %v9018_v60, %v9021_v29  ;;  %v2411_v18 = vadd.s32 1, %v9022_v42 }
 0x353   :  { %v2473_v54 = vshrl.u32 %v5675_v59, %v2472_v4  ;;  %v2482_v48 = vor.u32 %v2481_v13, %v2480_v11  ;;  %v2485_v23 = vor.u32 %v2484_v51, %v2483_v50  ;;  %vm2489_vm13 = vcmp.lt.s32.totalorder %v2470_v49, 1 }
 0x354   :  { %v2488_v21 = vor.u32 %v2487_v46, %v2486_v5  ;;  %vm2490_vm14 = vcmp.lt.s32.totalorder %v2470_v49, 2  ;;  %v2412_v1 = vsel %vm2410_vm12, %v2411_v18, %v9022_v42  ;;  %vm2491_vm15 = vcmp.lt.s32.totalorder %v2470_v49, 3 }
 0x355   :  { %vm2492_vm0 = vcmp.lt.s32.totalorder %v2470_v49, 4  ;;  %v2497_v44 = vsel %vm2489_vm13, %v2476_v41, %v2479_v17  ;;  %v2413_v22 = vadd.s32 %v2412_v1, %v2408_v52  ;;  %v2501_v45 = vsel %vm2489_vm13, %v2479_v17, %v2482_v48 }
 0x356   :  { %v2494_v24 = vsel %vm2492_vm0, %v2482_v48, 2102212464  ;;  %v2498_v30 = vsel %vm2492_vm0, %v2485_v23, 920167782  ;;  %v2493_v32 = vsel %vm2489_vm13, %v2473_v54, %v2476_v41  ;;  %v2502_v34 = vsel %vm2492_vm0, %v2488_v21, 1326507024 }
 0x357   :  { %v2499_v31 = vsel %vm2491_vm15, %v2482_v48, %v2498_v30  ;;  %v2414_v4 = vadd.s32 536870912, %v2413_v22  ;;  %v2495_v63 = vsel %vm2491_vm15, %v2479_v17, %v2494_v24  ;;  %v2503_v43 = vsel %vm2491_vm15, %v2485_v23, %v2502_v34 }
 0x358   :  { %v2500_v36 = vsel %vm2490_vm14, %v2497_v44, %v2499_v31  ;;  %v2504_v38 = vsel %vm2490_vm14, %v2501_v45, %v2503_v43  ;;  %v2496_v56 = vsel %vm2490_vm14, %v2493_v32, %v2495_v63  ;;  %v2342_v61 = vadd.s32 3, %v2338_v35  ;;  %v2623_v31 = vld [vmem:[%s12004_s6 + $0x1f0] sm:$0xff] }
 0x359   :  { %v9048_v40 = vmul.u32.u64.low %v8986_v39, %v2500_v36  ;;  %v9049_v53 = vmul.u32.u64.high %v8986_v39, %v2500_v36, %v9048_v40  ;;  %v9052_v42 = vshrl.u32 %v2414_v4, 30  ;;  %v2238_v62 = vadd.s32 3, %v2234_v28 }
 0x35a   :  { %v9055_v52 = vmul.u32.u64.low %v8986_v39, %v2504_v38  ;;  %v9056_v8 = vmul.u32.u64.high %v8986_v39, %v2504_v38, %v9055_v52  ;;  %v2512_v51 = vmul.u32 %v8986_v39, %v2496_v56  ;;  %v2343_v49 = vand.u32 3, %v2342_v61  ;;  %v5626_v39 = vpop.eup %5625 }
 0x35b   :  { %v2416_v11 = vshll.u32 %v9052_v42, 30  ;;  %v2515_v13 = vadd.s32 1, %v9049_v53  ;;  %v2239_v37 = vand.u32 3, %v2238_v62  ;;  %v2242_v33 = vxor.u32 2147483648, %v9031_v10  ;;  %v2612_v62 = vld [vmem:[%s12004_s6 + $0x198] sm:$0xff] }
 0x35c   :  { %vm2514_vm1 = vc.u32 %v9056_v8, %v9048_v40  ;;  %v2349_v28 = vxor.u32 2147483648, %v5624_v26  ;;  %vm2348_vm2 = vcmp.eq.s32.totalorder %v2343_v49, 2  ;;  %v2346_v23 = vxor.u32 2147483648, %v5626_v39 }
 0x35d   :  { %v2417_v50 = vsub.s32 %v2413_v22, %v2416_v11  ;;  %v2516_v58 = vsel %vm2514_vm1, %v2515_v13, %v9049_v53  ;;  %vm2241_vm3 = vcmp.eq.s32.totalorder %v2239_v37, 0  ;;  %vm2244_vm4 = vcmp.eq.s32.totalorder %v2239_v37, 2  ;;  %v2616_v53 = vld [vmem:[%s12004_s6 + $0x1b8] sm:$0xff]  ;;  %v2611_v11 = vld [vmem:[%s12004_s6 + $0x190] sm:$0xff] }
 0x35e   :  { %v2517_v41 = vadd.s32 %v2516_v58, %v2512_v51  ;;  %v2243_v54 = vsel %vm2241_vm3, %v9025_v25, %v2242_v33  ;;  %v2246_v48 = vsel %vm2244_vm4, %v2245_v12, %v9031_v10  ;;  %v2350_v21 = vsel %vm2348_vm2, %v2349_v28, %v5626_v39  ;;  %v2608_v51 = vld [vmem:[%s12004_s6 + $0x178] sm:$0xff]  ;;  %v2607_v58 = vld [vmem:[%s12004_s6 + $0x170] sm:$0xff] }
 0x35f   :  { %v2419_v35 = vsub.s32 0, %v2417_v50  ;;  %vm2345_vm5 = vcmp.eq.s32.totalorder %v2343_v49, 0  ;;  %vm2240_vm6 = vcmp.lt.s32.totalorder %v2239_v37, 2  ;;  %vm2344_vm7 = vcmp.lt.s32.totalorder %v2343_v49, 2  ;;  %v2603_v33 = vld [vmem:[%s12004_s6 + $0x150] sm:$0xff]  ;;  %v2600_v39 = vld [vmem:[%s12004_s6 + $0x138] sm:$0xff] }
 0x360   :  { %v2518_v5 = vadd.s32 536870912, %v2517_v41  ;;  %v2347_v22 = vsel %vm2345_vm5, %v5624_v26, %v2346_v23  ;;  %v2247_v24 = vsel %vm2240_vm6, %v2243_v54, %v2246_v48  ;;  %vm2341_vm9 = vweird.f32 %v8668_v20  ;;  %v2620_v20 = vld [vmem:[%s12004_s6 + $0x1d8] sm:$0xff]  ;;  %v2615_v26 = vld [vmem:[%s12004_s6 + $0x1b0] sm:$0xff] }
 0x361   :  { %v5439_v17 = vmin.u32 %v2419_v35, %v2417_v50  ;;  %v2351_v45 = vsel %vm2344_vm7, %v2347_v22, %v2350_v21  ;;  %v2409_v25 = vadd.s32 %v9021_v29, %v9018_v60  ;;  %vm2237_vm10 = vweird.f32 %v8658_v15  ;;  %v2619_v15 = vld [vmem:[%s12004_s6 + $0x1d0] sm:$0xff]  ;;  %v2604_v35 = vld [vmem:[%s12004_s6 + $0x158] sm:$0xff] }
 0x362   :  { %v9075_v18 = vshrl.u32 %v2518_v5, 30  ;;  %v2352_v32 = vsel %vm2341_vm9, nan, %v2351_v45  ;;  %v9090_v36 = vsel %vm2237_vm10, nan, %v2247_v24  ;;  %v2513_v28 = vadd.s32 %v9048_v40, %v9056_v8  ;;  %v2596_v40 = vld [vmem:[%s12004_s6 + $0x118] sm:$0xff]  ;;  %v2595_v8 = vld [vmem:[%s12004_s6 + $0x110] sm:$0xff] }
 0x363   :  { %v2421_v46 = vclz %v5439_v17  ;;  %2903 = vmatprep.mubr.f32.mxu0 %v2352_v32  ;;  %vm2355_vm12 = vcmp.lt.s32.totalorder %v8937_v14, 0  ;;  %v2592_v24 = vld [vmem:[%s12004_s6 + $0xf8] sm:$0xff]  ;;  %vm9147_vm13 = vcmp.le.f32.partialorder %v2353_v19, 0.7853982  ;;  %v2591_v45 = vld [vmem:[%s12004_s6 + $0xf0] sm:$0xff]  ;;  %vm2459_vm14 = vcmp.lt.s32.totalorder %v8942_v55, 0 }
 0x364   :  { %v2520_v44 = vshll.u32 %v9075_v18, 30  ;;  %2904 = vmatmul.mubr.f32.vlgmr.msra.gmra.mxu0 %v9090_v36  ;;  %v2587_v19 = vld [vmem:[%s12004_s6 + $0xd0] sm:$0xff]  ;;  %vm9191_vm15 = vcmp.le.f32.partialorder %v2457_v27, 0.7853982  ;;  %v2568_v27 = vld [vmem:[%s12004_s6 + $0x38] sm:$0xff]  ;;  %vm2549_vm6 = vweird.f32 %v8942_v55  ;;  %vm2445_vm7 = vweird.f32 %v8937_v14 }
 0x365   :  { %v5440_v1 = vadd.s32 4294967294, %v2421_v46  ;;  %2982 = vmatpush1.msra.mxu0 %v2623_v31  ;;  %3045 = vmatprep.mubr.f32.mxu0 %v2352_v32  ;;  %v2599_v46 = vld [vmem:[%s12004_s6 + $0x130] sm:$0xff]  ;;  %v2588_v32 = vld [vmem:[%s12004_s6 + $0xd8] sm:$0xff] }
 0x366   :  { %v9080_v30 = vsub.s32 %v2517_v41, %v2520_v44  ;;  %2983 = vmatprep.subr.mxu0 %v2620_v20 }
 0x367   :  { %vm5441_vm8 = vcmp.lt.s32.totalorder %v5440_v1, 0  ;;  %2984 = vmatpush1.msra.mxu0 %v2619_v15  ;;  %v2580_v15 = vld [vmem:[%s12004_s6 + $0x98] sm:$0xff] }
 0x368   :  { %v2424_v10 = vsel %vm5441_vm8, 0, %v5440_v1  ;;  %v2523_v63 = vsub.s32 0, %v9080_v30  ;;  %2985 = vmatprep.subr.mxu0 %v2616_v53  ;;  %v2575_v53 = vld [vmem:[%s12004_s6 + $0x70] sm:$0xff] }
 0x369   :  { %v2425_v34 = vsub.s32 32, %v2424_v10  ;;  %v2429_v4 = vsub.s32 4294967266, %v2424_v10  ;;  %v2426_v60 = vshll.u32 %v2417_v50, %v2424_v10  ;;  %2986 = vmatpush1.msra.mxu0 %v2615_v26  ;;  %v2543_v26 = vsub.s32 4, %v9075_v18 }
 0x36a   :  { %v5443_v38 = vmin.u32 %v2523_v63, %v9080_v30  ;;  %2987 = vmatprep.subr.mxu0 %v2612_v62  ;;  %v2583_v63 = vld [vmem:[%s12004_s6 + $0xb0] sm:$0xff] }
 0x36b   :  { %v2427_v29 = vshrl.u32 %v2409_v25, %v2425_v34  ;;  %v2430_v43 = vadd.s32 127, %v2429_v4  ;;  %2988 = vmatpush1.msra.mxu0 %v2611_v11  ;;  %v2584_v4 = vld [vmem:[%s12004_s6 + $0xb8] sm:$0xff]  ;;  %v2571_v62 = vld [vmem:[%s12004_s6 + $0x50] sm:$0xff] }
 0x36c   :  { %v2525_v61 = vclz %v5443_v38  ;;  %2989 = vmatprep.subr.mxu0 %v2608_v51  ;;  %v2576_v38 = vld [vmem:[%s12004_s6 + $0x78] sm:$0xff]  ;;  %v2544_v51 = vsel %vm2459_vm14, %v2543_v26, %v9075_v18 }
 0x36d   :  { %v2428_v52 = vor.u32 %v2427_v29, %v2426_v60  ;;  %v2431_v56 = vshll.u32 %v2430_v43, 23  ;;  %2990 = vmatpush1.msra.mxu0 %v2607_v58  ;;  %v2579_v60 = vld [vmem:[%s12004_s6 + $0x90] sm:$0xff]  ;;  %v2439_v29 = vsub.s32 4, %v9052_v42  ;;  %v2546_v18 = vsel %vm9191_vm15, 0, %v2544_v51  ;;  %v2748_v26 = vld [vmem:[%s12004_s6 + $0x5d8] sm:$0xff] }
 0x36e   :  { %v5444_v50 = vadd.s32 4294967294, %v2525_v61  ;;  %2991 = vmatprep.subr.mxu0 %v2604_v35  ;;  %v2687_v35 = vld [vmem:[%s12004_s6 + $0x3f0] sm:$0xff]  ;;  %v2644_v51 = vld [vmem:[%s12004_s6 + $0x298] sm:$0xff] }
 0x36f   :  { %v2432_v13 = vor.u32 4788187, %v2431_v56  ;;  %v2435_v37 = vcvt.s32.f32 %v2428_v52  ;;  %2992 = vmatpush1.msra.mxu0 %v2603_v33  ;;  %v2572_v56 = vld [vmem:[%s12004_s6 + $0x58] sm:$0xff]  ;;  %v2651_v61 = vld [vmem:[%s12004_s6 + $0x2d0] sm:$0xff] }
 0x370   :  { %vm5445_vm11 = vcmp.lt.s32.totalorder %v5444_v50, 0  ;;  %2993 = vmatprep.subr.mxu0 %v2600_v39  ;;  %v2680_v39 = vld [vmem:[%s12004_s6 + $0x3b8] sm:$0xff] }
 0x371   :  { %v2433_v49 = vand.u32 2147483647, %v2432_v13  ;;  %v2528_v41 = vsel %vm5445_vm11, 0, %v5444_v50  ;;  %2994 = vmatpush1.msra.mxu0 %v2599_v46  ;;  %v2440_v13 = vsel %vm2355_vm12, %v2439_v29, %v9052_v42  ;;  %v2567_v50 = vld [vmem:[%s12004_s6 + $0x30] sm:$0xff]  ;;  %v2564_v42 = vld [vmem:[%s12004_s6 + $0x18] sm:$0xff] }
 0x372   :  { %v2529_v17 = vsub.s32 32, %v2528_v41  ;;  %v2533_v5 = vsub.s32 4294967266, %v2528_v41  ;;  %v2530_v48 = vshll.u32 %v9080_v30, %v2528_v41  ;;  %2995 = vmatprep.subr.mxu0 %v2596_v40  ;;  %v2442_v58 = vsel %vm9147_vm13, 0, %v2440_v13  ;;  %v2679_v46 = vld [vmem:[%s12004_s6 + $0x3b0] sm:$0xff]  ;;  %v2668_v30 = vld [vmem:[%s12004_s6 + $0x358] sm:$0xff] }
 0x373   :  { %v2436_v12 = vmul.f32 %v2435_v37, %v2433_v49  ;;  %2996 = vmatpush1.msra.mxu0 %v2595_v8  ;;  %v2563_v49 = vld [vmem:[%s12004_s6 + $0x10] sm:$0xff]  ;;  %v2688_v37 = vld [vmem:[%s12004_s6 + $0x3f8] sm:$0xff]  ;;  %v2446_v41 = vadd.s32 3, %v2442_v58 }
 0x374   :  { %v2531_v23 = vshrl.u32 %v2513_v28, %v2529_v17  ;;  %v2534_v21 = vadd.s32 127, %v2533_v5  ;;  %2997 = vmatprep.subr.mxu0 %v2592_v24  ;;  %v2683_v17 = vld [vmem:[%s12004_s6 + $0x3d0] sm:$0xff]  ;;  %v2550_v5 = vadd.s32 3, %v2546_v18 }
 0x375   :  { %v2437_v54 = vxor.u32 2147483648, %v2436_v12  ;;  %2998 = vmatpush1.msra.mxu0 %v2591_v45  ;;  %v2675_v40 = vld [vmem:[%s12004_s6 + $0x390] sm:$0xff] }
 0x376   :  { %v2532_v44 = vor.u32 %v2531_v23, %v2530_v48  ;;  %v2535_v22 = vshll.u32 %v2534_v21, 23  ;;  %2999 = vmatprep.subr.mxu0 %v2588_v32  ;;  %v2676_v48 = vld [vmem:[%s12004_s6 + $0x398] sm:$0xff]  ;;  %v2551_v8 = vand.u32 3, %v2550_v5  ;;  %v2667_v32 = vld [vmem:[%s12004_s6 + $0x350] sm:$0xff] }
 0x377   :  { %v2438_v1 = vsel %vm2355_vm12, %v2437_v54, %v2436_v12  ;;  %3000 = vmatpush1.msra.mxu0 %v2587_v19  ;;  %v2684_v12 = vld [vmem:[%s12004_s6 + $0x3d8] sm:$0xff]  ;;  %v2447_v54 = vand.u32 3, %v2446_v41  ;;  %v2659_v29 = vld [vmem:[%s12004_s6 + $0x310] sm:$0xff] }
 0x378   :  { %v2441_v25 = vsel %vm9147_vm13, %v8937_v14, %v2438_v1  ;;  %v2536_v10 = vor.u32 4788187, %v2535_v22  ;;  %v2539_v34 = vcvt.s32.f32 %v2532_v44  ;;  %3001 = vmatprep.subr.mxu0 %v2584_v4  ;;  %v2672_v1 = vld [vmem:[%s12004_s6 + $0x378] sm:$0xff]  ;;  %v2671_v22 = vld [vmem:[%s12004_s6 + $0x370] sm:$0xff]  ;;  %vm2556_vm2 = vcmp.eq.s32.totalorder %v2551_v8, 2 }
 0x379   :  { %5627 = vcosq.f32 %v2441_v25  ;;  %3002 = vmatpush1.msra.mxu0 %v2583_v63  ;;  %vm2449_vm0 = vcmp.eq.s32.totalorder %v2447_v54, 0  ;;  %vm2452_vm1 = vcmp.eq.s32.totalorder %v2447_v54, 2  ;;  %vm2553_vm3 = vcmp.eq.s32.totalorder %v2551_v8, 0  ;;  %v2663_v4 = vld [vmem:[%s12004_s6 + $0x330] sm:$0xff]  ;;  %v2732_v41 = vld [vmem:[%s12004_s6 + $0x558] sm:$0xff] }
 0x37a   :  { %v2537_v31 = vand.u32 2147483647, %v2536_v10  ;;  %5629 = vsinq.f32 %v2441_v25  ;;  %3003 = vmatprep.subr.mxu0 %v2580_v15  ;;  %vm2448_vm4 = vcmp.lt.s32.totalorder %v2447_v54, 2  ;;  %vm2552_vm5 = vcmp.lt.s32.totalorder %v2551_v8, 2  ;;  %v2660_v15 = vld [vmem:[%s12004_s6 + $0x318] sm:$0xff]  ;;  %v2655_v14 = vld [vmem:[%s12004_s6 + $0x2f0] sm:$0xff] }
 0x37b   :  { %3004 = vmatpush1.msra.mxu0 %v2579_v60  ;;  %v2743_v13 = vld [vmem:[%s12004_s6 + $0x5b0] sm:$0xff]  ;;  %v2632_v5 = vld [vmem:[%s12004_s6 + $0x238] sm:$0xff] }
 0x37c   :  { %v2540_v20 = vmul.f32 %v2539_v34, %v2537_v31  ;;  %3005 = vmatprep.subr.mxu0 %v2576_v38  ;;  %v2664_v31 = vld [vmem:[%s12004_s6 + $0x338] sm:$0xff]  ;;  %v2751_v38 = vld [vmem:[%s12004_s6 + $0x5f0] sm:$0xff] }
 0x37d   :  { %3006 = vmatpush1.msra.mxu0 %v2575_v53  ;;  %v2656_v53 = vld [vmem:[%s12004_s6 + $0x2f8] sm:$0xff]  ;;  %v2643_v58 = vld [vmem:[%s12004_s6 + $0x290] sm:$0xff] }
 0x37e   :  { %v2541_v43 = vxor.u32 2147483648, %v2540_v20  ;;  %3007 = vmatprep.subr.mxu0 %v2572_v56  ;;  %v2747_v56 = vld [vmem:[%s12004_s6 + $0x5d0] sm:$0xff]  ;;  %v2724_v54 = vld [vmem:[%s12004_s6 + $0x518] sm:$0xff] }
 0x37f   :  { %3008 = vmatpush1.msra.mxu0 %v2571_v62  ;;  %v2744_v62 = vld [vmem:[%s12004_s6 + $0x5b8] sm:$0xff]  ;;  %v2735_v18 = vld [vmem:[%s12004_s6 + $0x570] sm:$0xff] }
 0x380   :  { %v2542_v52 = vsel %vm2459_vm14, %v2541_v43, %v2540_v20  ;;  %3009 = vmatprep.subr.mxu0 %v2568_v27  ;;  %v2647_v27 = vld [vmem:[%s12004_s6 + $0x2b0] sm:$0xff] }
 0x381   :  { %v2545_v11 = vsel %vm9191_vm15, %v8942_v55, %v2542_v52  ;;  %3010 = vmatpush1.msra.mxu0 %v2567_v50  ;;  %v2652_v52 = vld [vmem:[%s12004_s6 + $0x2d8] sm:$0xff]  ;;  %v2719_v8 = vld [vmem:[%s12004_s6 + $0x4f0] sm:$0xff] }
 0x382   :  { %5631 = vcosq.f32 %v2545_v11  ;;  %3011 = vmatprep.subr.mxu0 %v2564_v42  ;;  %v2740_v50 = vld [vmem:[%s12004_s6 + $0x598] sm:$0xff]  ;;  %v2739_v42 = vld [vmem:[%s12004_s6 + $0x590] sm:$0xff] }
 0x383   :  { %5633 = vsinq.f32 %v2545_v11  ;;  %3012 = vmatpush1.msra.mxu0 %v2563_v49  ;;  %v2648_v11 = vld [vmem:[%s12004_s6 + $0x2b8] sm:$0xff] }
 0x384   :  { %3013 = vmatprep.subr.mxu0 %v2688_v37  ;;  %v2736_v49 = vld [vmem:[%s12004_s6 + $0x578] sm:$0xff] }
 0x385   :  { %3014 = vmatpush2.msra.mxu0 %v2687_v35  ;;  %v2640_v37 = vld [vmem:[%s12004_s6 + $0x278] sm:$0xff]  ;;  %v2639_v35 = vld [vmem:[%s12004_s6 + $0x270] sm:$0xff] }
 0x386   :  { %v5628_v33 = vpop.eup %5627  ;;  %3015 = vmatprep.subr.mxu0 %v2684_v12  ;;  %v2731_v12 = vld [vmem:[%s12004_s6 + $0x550] sm:$0xff] }
 0x387   :  { %v5630_v28 = vpop.eup %5629  ;;  %3016 = vmatpush2.msra.mxu0 %v2683_v17  ;;  %v2453_v21 = vxor.u32 2147483648, %v5628_v33  ;;  %v2728_v17 = vld [vmem:[%s12004_s6 + $0x538] sm:$0xff] }
 0x388   :  { %v2450_v23 = vxor.u32 2147483648, %v5630_v28  ;;  %3017 = vmatprep.subr.mxu0 %v2680_v39  ;;  %v2727_v39 = vld [vmem:[%s12004_s6 + $0x530] sm:$0xff] }
 0x389   :  { %3018 = vmatpush2.msra.mxu0 %v2679_v46  ;;  %v2454_v10 = vsel %vm2452_vm1, %v2453_v21, %v5630_v28  ;;  %v2635_v28 = vld [vmem:[%s12004_s6 + $0x250] sm:$0xff] }
 0x38a   :  { %3019 = vmatprep.subr.mxu0 %v2676_v48  ;;  %v2451_v25 = vsel %vm2449_vm0, %v5628_v33, %v2450_v23  ;;  %v2636_v33 = vld [vmem:[%s12004_s6 + $0x258] sm:$0xff]  ;;  %v2631_v46 = vld [vmem:[%s12004_s6 + $0x230] sm:$0xff] }
 0x38b   :  { %3020 = vmatpush2.msra.mxu0 %v2675_v40  ;;  %v2455_v20 = vsel %vm2448_vm4, %v2451_v25, %v2454_v10  ;;  %v2628_v48 = vld [vmem:[%s12004_s6 + $0x218] sm:$0xff]  ;;  %v2723_v23 = vld [vmem:[%s12004_s6 + $0x510] sm:$0xff] }
 0x38c   :  { %3021 = vmatprep.subr.mxu0 %v2672_v1  ;;  %v9279_v55 = vsel %vm2445_vm7, nan, %v2455_v20  ;;  %v2627_v21 = vld [vmem:[%s12004_s6 + $0x210] sm:$0xff]  ;;  %v2720_v40 = vld [vmem:[%s12004_s6 + $0x4f8] sm:$0xff] }
 0x38d   :  { %3022 = vmatpush2.msra.mxu0 %v2671_v22  ;;  %v2716_v1 = vld [vmem:[%s12004_s6 + $0x4d8] sm:$0xff]  ;;  %v2703_v25 = vld [vmem:[%s12004_s6 + $0x470] sm:$0xff] }
 0x38e   :  { %3023 = vmatprep.subr.mxu0 %v2668_v30  ;;  %v2712_v22 = vld [vmem:[%s12004_s6 + $0x4b8] sm:$0xff]  ;;  %v2815_v20 = vld [vmem:[%s12004_s6 + $0x7f0] sm:$0xff] }
 0x38f   :  { %v5632_v44 = vpop.eup %5631  ;;  %3024 = vmatpush2.msra.mxu0 %v2667_v32  ;;  %v2708_v30 = vld [vmem:[%s12004_s6 + $0x498] sm:$0xff]  ;;  %v2699_v32 = vld [vmem:[%s12004_s6 + $0x450] sm:$0xff] }
 0x390   :  { %v5634_v24 = vpop.eup %5633  ;;  %v2557_v45 = vxor.u32 2147483648, %v5632_v44  ;;  %3025 = vmatprep.subr.mxu0 %v2664_v31  ;;  %v2700_v10 = vld [vmem:[%s12004_s6 + $0x458] sm:$0xff]  ;;  %v2695_v31 = vld [vmem:[%s12004_s6 + $0x430] sm:$0xff] }
 0x391   :  { %v2554_v19 = vxor.u32 2147483648, %v5634_v24  ;;  %3026 = vmatpush2.msra.mxu0 %v2663_v4  ;;  %v2691_v4 = vld [vmem:[%s12004_s6 + $0x410] sm:$0xff] }
 0x392   :  { %v2558_v34 = vsel %vm2556_vm2, %v2557_v45, %v5634_v24  ;;  %3027 = vmatprep.subr.mxu0 %v2660_v15  ;;  %v2711_v24 = vld [vmem:[%s12004_s6 + $0x4b0] sm:$0xff]  ;;  %v2704_v45 = vld [vmem:[%s12004_s6 + $0x478] sm:$0xff] }
 0x393   :  { %v2555_v63 = vsel %vm2553_vm3, %v5632_v44, %v2554_v19  ;;  %3028 = vmatpush2.msra.mxu0 %v2659_v29  ;;  %v2715_v44 = vld [vmem:[%s12004_s6 + $0x4d0] sm:$0xff]  ;;  %v2696_v19 = vld [vmem:[%s12004_s6 + $0x438] sm:$0xff] }
 0x394   :  { %v2559_v60 = vsel %vm2552_vm5, %v2555_v63, %v2558_v34  ;;  %3029 = vmatprep.subr.mxu0 %v2656_v53  ;;  %v2692_v34 = vld [vmem:[%s12004_s6 + $0x418] sm:$0xff]  ;;  %v2803_v53 = vld [vmem:[%s12004_s6 + $0x790] sm:$0xff] }
 0x395   :  { %v2560_v43 = vsel %vm2549_vm6, nan, %v2559_v60  ;;  %3030 = vmatpush2.msra.mxu0 %v2655_v14  ;;  %v2816_v63 = vld [vmem:[%s12004_s6 + $0x7f8] sm:$0xff]  ;;  %v2811_v60 = vld [vmem:[%s12004_s6 + $0x7d0] sm:$0xff] }
 0x396   :  { %2974 = vmatprep.mubr.f32.mxu1 %v2560_v43  ;;  %3031 = vmatprep.subr.mxu0 %v2652_v52  ;;  %v2812_v15 = vld [vmem:[%s12004_s6 + $0x7d8] sm:$0xff]  ;;  %v2799_v14 = vld [vmem:[%s12004_s6 + $0x770] sm:$0xff] }
 0x397   :  { %2975 = vmatmul.mubr.f32.vlgmr.msra.gmra.mxu1 %v9279_v55  ;;  %3032 = vmatpush2.msra.mxu0 %v2651_v61  ;;  %v2808_v29 = vld [vmem:[%s12004_s6 + $0x7b8] sm:$0xff] }
 0x398   :  { %3053 = vmatpush1.msra.mxu1 %v2751_v38  ;;  %3116 = vmatprep.mubr.f32.mxu1 %v2560_v43  ;;  %v2807_v43 = vld [vmem:[%s12004_s6 + $0x7b0] sm:$0xff]  ;;  %v2804_v38 = vld [vmem:[%s12004_s6 + $0x798] sm:$0xff] }
 0x399   :  { %3054 = vmatprep.subr.mxu1 %v2748_v26  ;;  %3033 = vmatprep.subr.mxu0 %v2648_v11  ;;  %v2800_v26 = vld [vmem:[%s12004_s6 + $0x778] sm:$0xff] }
 0x39a   :  { %3055 = vmatpush1.msra.mxu1 %v2747_v56  ;;  %3034 = vmatpush2.msra.mxu0 %v2647_v27  ;;  %v2796_v52 = vld [vmem:[%s12004_s6 + $0x758] sm:$0xff]  ;;  %v2795_v56 = vld [vmem:[%s12004_s6 + $0x750] sm:$0xff] }
 0x39b   :  { %3056 = vmatprep.subr.mxu1 %v2744_v62  ;;  %3035 = vmatprep.subr.mxu0 %v2644_v51  ;;  %v2792_v61 = vld [vmem:[%s12004_s6 + $0x738] sm:$0xff]  ;;  %v2791_v62 = vld [vmem:[%s12004_s6 + $0x730] sm:$0xff] }
 0x39c   :  { %3057 = vmatpush1.msra.mxu1 %v2743_v13  ;;  %3036 = vmatpush2.msra.mxu0 %v2643_v58  ;;  %v2788_v11 = vld [vmem:[%s12004_s6 + $0x718] sm:$0xff]  ;;  %v2787_v13 = vld [vmem:[%s12004_s6 + $0x710] sm:$0xff] }
 0x39d   :  { %3058 = vmatprep.subr.mxu1 %v2740_v50  ;;  %3037 = vmatprep.subr.mxu0 %v2640_v37  ;;  %v2784_v27 = vld [vmem:[%s12004_s6 + $0x6f8] sm:$0xff]  ;;  %v2783_v50 = vld [vmem:[%s12004_s6 + $0x6f0] sm:$0xff] }
 0x39e   :  { %3059 = vmatpush1.msra.mxu1 %v2739_v42  ;;  %3038 = vmatpush2.msra.mxu0 %v2639_v35  ;;  %v2780_v51 = vld [vmem:[%s12004_s6 + $0x6d8] sm:$0xff]  ;;  %v2779_v42 = vld [vmem:[%s12004_s6 + $0x6d0] sm:$0xff] }
 0x39f   :  { %3060 = vmatprep.subr.mxu1 %v2736_v49  ;;  %3039 = vmatprep.subr.mxu0 %v2636_v33  ;;  %v2776_v58 = vld [vmem:[%s12004_s6 + $0x6b8] sm:$0xff]  ;;  %v2775_v49 = vld [vmem:[%s12004_s6 + $0x6b0] sm:$0xff] }
 0x3a0   :  { %3061 = vmatpush1.msra.mxu1 %v2735_v18  ;;  %3040 = vmatpush2.msra.mxu0 %v2635_v28  ;;  %v2772_v37 = vld [vmem:[%s12004_s6 + $0x698] sm:$0xff]  ;;  %v2771_v18 = vld [vmem:[%s12004_s6 + $0x690] sm:$0xff] }
 0x3a1   :  { %3062 = vmatprep.subr.mxu1 %v2732_v41  ;;  %3041 = vmatprep.subr.mxu0 %v2632_v5  ;;  %v2768_v35 = vld [vmem:[%s12004_s6 + $0x678] sm:$0xff]  ;;  %v2767_v41 = vld [vmem:[%s12004_s6 + $0x670] sm:$0xff] }
 0x3a2   :  { %3063 = vmatpush1.msra.mxu1 %v2731_v12  ;;  %3042 = vmatpush2.msra.mxu0 %v2631_v46  ;;  %v2764_v33 = vld [vmem:[%s12004_s6 + $0x658] sm:$0xff]  ;;  %v2763_v12 = vld [vmem:[%s12004_s6 + $0x650] sm:$0xff]  ;;  %v3600_v46 = vld [vmem:[%s12006_s8 + $0x1e8] sm:$0xff] }
 0x3a3   :  { %3064 = vmatprep.subr.mxu1 %v2728_v17  ;;  %3043 = vmatprep.subr.mxu0 %v2628_v48  ;;  %v2760_v28 = vld [vmem:[%s12004_s6 + $0x638] sm:$0xff]  ;;  %v2759_v17 = vld [vmem:[%s12004_s6 + $0x630] sm:$0xff]  ;;  %v3596_v48 = vld [vmem:[%s12006_s8 + $0x1c8] sm:$0xff] }
 0x3a4   :  { %3065 = vmatpush1.msra.mxu1 %v2727_v39  ;;  %3044 = vmatpush2.msra.mxu0 %v2627_v21  ;;  %v2756_v5 = vld [vmem:[%s12004_s6 + $0x618] sm:$0xff]  ;;  %v2755_v39 = vld [vmem:[%s12004_s6 + $0x610] sm:$0xff]  ;;  %v3591_v21 = vld [vmem:[%s12006_s8 + $0x1a0] sm:$0xff] }
 0x3a5   :  { %3066 = vmatprep.subr.mxu1 %v2724_v54  ;;  %3046 = vmatmul.mubr.f32.vlgmr.msra.gmra.mxu0 %v9090_v36  ;;  %v2707_v36 = vld [vmem:[%s12004_s6 + $0x490] sm:$0xff]  ;;  %v3599_v54 = vld [vmem:[%s12006_s8 + $0x1e0] sm:$0xff] }
 0x3a6   :  { %3067 = vmatpush1.msra.mxu1 %v2723_v23  ;;  %3817 = vmatprep.subr.mxu0 %v3600_v46  ;;  %v3595_v23 = vld [vmem:[%s12006_s8 + $0x1c0] sm:$0xff]  ;;  %v3620_v46 = vld [vmem:[%s12006_s8 + $0x288] sm:$0xff] }
 0x3a7   :  { %3068 = vmatprep.subr.mxu1 %v2720_v40  ;;  %3818 = vmatpush1.msra.mxu0 %v3599_v54  ;;  %v3588_v40 = vld [vmem:[%s12006_s8 + $0x188] sm:$0xff]  ;;  %v3619_v54 = vld [vmem:[%s12006_s8 + $0x280] sm:$0xff] }
 0x3a8   :  { %3069 = vmatpush1.msra.mxu1 %v2719_v8  ;;  %3819 = vmatprep.subr.mxu0 %v3596_v48  ;;  %v3587_v8 = vld [vmem:[%s12006_s8 + $0x180] sm:$0xff]  ;;  %v3616_v48 = vld [vmem:[%s12006_s8 + $0x268] sm:$0xff] }
 0x3a9   :  { %3070 = vmatprep.subr.mxu1 %v2716_v1  ;;  %3820 = vmatpush1.msra.mxu0 %v3595_v23  ;;  %v3584_v1 = vld [vmem:[%s12006_s8 + $0x168] sm:$0xff]  ;;  %v3615_v23 = vld [vmem:[%s12006_s8 + $0x260] sm:$0xff] }
 0x3aa   :  { %3071 = vmatpush1.msra.mxu1 %v2715_v44  ;;  %v3583_v44 = vld [vmem:[%s12006_s8 + $0x160] sm:$0xff] }
 0x3ab   :  { %3072 = vmatprep.subr.mxu1 %v2712_v22  ;;  %v3580_v22 = vld [vmem:[%s12006_s8 + $0x148] sm:$0xff] }
 0x3ac   :  { %3073 = vmatpush1.msra.mxu1 %v2711_v24  ;;  %v3579_v24 = vld [vmem:[%s12006_s8 + $0x140] sm:$0xff] }
 0x3ad   :  { %3074 = vmatprep.subr.mxu1 %v2708_v30  ;;  %v3576_v30 = vld [vmem:[%s12006_s8 + $0x128] sm:$0xff] }
 0x3ae   :  { %3075 = vmatpush1.msra.mxu1 %v2707_v36  ;;  %v3575_v36 = vld [vmem:[%s12006_s8 + $0x120] sm:$0xff] }
 0x3af   :  { %3076 = vmatprep.subr.mxu1 %v2704_v45  ;;  %v3572_v45 = vld [vmem:[%s12006_s8 + $0x108] sm:$0xff] }
 0x3b0   :  { %3077 = vmatpush1.msra.mxu1 %v2703_v25  ;;  %v3571_v25 = vld [vmem:[%s12006_s8 + $0x100] sm:$0xff] }
 0x3b1   :  { %3078 = vmatprep.subr.mxu1 %v2700_v10  ;;  %v3568_v10 = vld [vmem:[%s12006_s8 + $0xe8] sm:$0xff] }
 0x3b2   :  { %3079 = vmatpush1.msra.mxu1 %v2699_v32  ;;  %v3567_v32 = vld [vmem:[%s12006_s8 + $0xe0] sm:$0xff] }
 0x3b3   :  { %3080 = vmatprep.subr.mxu1 %v2696_v19  ;;  %v3564_v19 = vld [vmem:[%s12006_s8 + $0xc8] sm:$0xff] }
 0x3b4   :  { %3081 = vmatpush1.msra.mxu1 %v2695_v31  ;;  %v3563_v31 = vld [vmem:[%s12006_s8 + $0xc0] sm:$0xff] }
 0x3b5   :  { %3082 = vmatprep.subr.mxu1 %v2692_v34  ;;  %v3560_v34 = vld [vmem:[%s12006_s8 + $0xa8] sm:$0xff] }
 0x3b6   :  { %3083 = vmatpush1.msra.mxu1 %v2691_v4  ;;  %v3559_v4 = vld [vmem:[%s12006_s8 + $0xa0] sm:$0xff] }
 0x3b7   :  { %3084 = vmatprep.subr.mxu1 %v2816_v63  ;;  %v3556_v63 = vld [vmem:[%s12006_s8 + $0x88] sm:$0xff] }
 0x3b8   :  { %3085 = vmatpush2.msra.mxu1 %v2815_v20  ;;  %v3555_v20 = vld [vmem:[%s12006_s8 + $0x80] sm:$0xff] }
 0x3b9   :  { %3086 = vmatprep.subr.mxu1 %v2812_v15  ;;  %v3552_v15 = vld [vmem:[%s12006_s8 + $0x68] sm:$0xff] }
 0x3ba   :  { %3087 = vmatpush2.msra.mxu1 %v2811_v60  ;;  %v3551_v60 = vld [vmem:[%s12006_s8 + $0x60] sm:$0xff] }
 0x3bb   :  { %3088 = vmatprep.subr.mxu1 %v2808_v29  ;;  %v3548_v29 = vld [vmem:[%s12006_s8 + $0x48] sm:$0xff] }
 0x3bc   :  { %3089 = vmatpush2.msra.mxu1 %v2807_v43  ;;  %v3547_v43 = vld [vmem:[%s12006_s8 + $0x40] sm:$0xff] }
 0x3bd   :  { %3090 = vmatprep.subr.mxu1 %v2804_v38  ;;  %v3544_v38 = vld [vmem:[%s12006_s8 + $0x28] sm:$0xff] }
 0x3be   :  { %3091 = vmatpush2.msra.mxu1 %v2803_v53  ;;  %v3543_v53 = vld [vmem:[%s12006_s8 + $0x20] sm:$0xff] }
 0x3bf   :  { %3092 = vmatprep.subr.mxu1 %v2800_v26  ;;  %v3540_v26 = vld [vmem:[%s12006_s8 + $0x8] sm:$0xff] }
 0x3c0   :  { %3093 = vmatpush2.msra.mxu1 %v2799_v14  ;;  %v3539_v14 = vld [vmem:[%s12006_s8] sm:$0xff] }
 0x3c1   :  { %3094 = vmatprep.subr.mxu1 %v2796_v52  ;;  %v3664_v52 = vld [vmem:[%s12006_s8 + $0x3e8] sm:$0xff] }
 0x3c2   :  { %3095 = vmatpush2.msra.mxu1 %v2795_v56  ;;  %v3663_v56 = vld [vmem:[%s12006_s8 + $0x3e0] sm:$0xff] }
 0x3c3   :  { %3096 = vmatprep.subr.mxu1 %v2792_v61  ;;  %v3660_v61 = vld [vmem:[%s12006_s8 + $0x3c8] sm:$0xff] }
 0x3c4   :  { %3097 = vmatpush2.msra.mxu1 %v2791_v62  ;;  %v3659_v62 = vld [vmem:[%s12006_s8 + $0x3c0] sm:$0xff] }
 0x3c5   :  { %3098 = vmatprep.subr.mxu1 %v2788_v11  ;;  %v3656_v11 = vld [vmem:[%s12006_s8 + $0x3a8] sm:$0xff] }
 0x3c6   :  { %3099 = vmatpush2.msra.mxu1 %v2787_v13  ;;  %v3655_v13 = vld [vmem:[%s12006_s8 + $0x3a0] sm:$0xff] }
 0x3c7   :  { %3100 = vmatprep.subr.mxu1 %v2784_v27  ;;  %v3652_v27 = vld [vmem:[%s12006_s8 + $0x388] sm:$0xff] }
 0x3c8   :  { %3101 = vmatpush2.msra.mxu1 %v2783_v50  ;;  %v3651_v50 = vld [vmem:[%s12006_s8 + $0x380] sm:$0xff] }
 0x3c9   :  { %3102 = vmatprep.subr.mxu1 %v2780_v51  ;;  %v3648_v51 = vld [vmem:[%s12006_s8 + $0x368] sm:$0xff] }
 0x3ca   :  { %3103 = vmatpush2.msra.mxu1 %v2779_v42  ;;  %v3647_v42 = vld [vmem:[%s12006_s8 + $0x360] sm:$0xff] }
 0x3cb   :  { %3104 = vmatprep.subr.mxu1 %v2776_v58  ;;  %v3644_v58 = vld [vmem:[%s12006_s8 + $0x348] sm:$0xff] }
 0x3cc   :  { %3105 = vmatpush2.msra.mxu1 %v2775_v49  ;;  %v3643_v49 = vld [vmem:[%s12006_s8 + $0x340] sm:$0xff] }
 0x3cd   :  { %3106 = vmatprep.subr.mxu1 %v2772_v37  ;;  %v3640_v37 = vld [vmem:[%s12006_s8 + $0x328] sm:$0xff] }
 0x3ce   :  { %3107 = vmatpush2.msra.mxu1 %v2771_v18  ;;  %v3639_v18 = vld [vmem:[%s12006_s8 + $0x320] sm:$0xff] }
 0x3cf   :  { %3108 = vmatprep.subr.mxu1 %v2768_v35  ;;  %v3636_v35 = vld [vmem:[%s12006_s8 + $0x308] sm:$0xff] }
 0x3d0   :  { %3109 = vmatpush2.msra.mxu1 %v2767_v41  ;;  %v3635_v41 = vld [vmem:[%s12006_s8 + $0x300] sm:$0xff] }
 0x3d1   :  { %3110 = vmatprep.subr.mxu1 %v2764_v33  ;;  %v3632_v33 = vld [vmem:[%s12006_s8 + $0x2e8] sm:$0xff] }
 0x3d2   :  { %3111 = vmatpush2.msra.mxu1 %v2763_v12  ;;  %v3631_v12 = vld [vmem:[%s12006_s8 + $0x2e0] sm:$0xff] }
 0x3d3   :  { %3112 = vmatprep.subr.mxu1 %v2760_v28  ;;  %v3628_v28 = vld [vmem:[%s12006_s8 + $0x2c8] sm:$0xff] }
 0x3d4   :  { %3113 = vmatpush2.msra.mxu1 %v2759_v17  ;;  %v3627_v17 = vld [vmem:[%s12006_s8 + $0x2c0] sm:$0xff] }
 0x3d5   :  { %3114 = vmatprep.subr.mxu1 %v2756_v5  ;;  %v3624_v5 = vld [vmem:[%s12006_s8 + $0x2a8] sm:$0xff] }
 0x3d6   :  { %3115 = vmatpush2.msra.mxu1 %v2755_v39  ;;  %v3623_v39 = vld [vmem:[%s12006_s8 + $0x2a0] sm:$0xff] }
 0x3d7   :  { %3117 = vmatmul.mubr.f32.vlgmr.msra.gmra.mxu1 %v9279_v55  ;;  %v3592_v55 = vld [vmem:[%s12006_s8 + $0x1a8] sm:$0xff] }
 0x3d8   :  { %3821 = vmatprep.subr.mxu0 %v3592_v55  ;;  %v3612_v55 = vld [vmem:[%s12006_s8 + $0x248] sm:$0xff] }
 0x3d9   :  { %3822 = vmatpush1.msra.mxu0 %v3591_v21  ;;  %v3611_v21 = vld [vmem:[%s12006_s8 + $0x240] sm:$0xff] }
 0x3da   :  { %3823 = vmatprep.subr.mxu0 %v3588_v40  ;;  %v3608_v40 = vld [vmem:[%s12006_s8 + $0x228] sm:$0xff] }
 0x3db   :  { %3824 = vmatpush1.msra.mxu0 %v3587_v8  ;;  %v3607_v8 = vld [vmem:[%s12006_s8 + $0x220] sm:$0xff] }
 0x3dc   :  { %3825 = vmatprep.subr.mxu0 %v3584_v1  ;;  %v3604_v1 = vld [vmem:[%s12006_s8 + $0x208] sm:$0xff] }
 0x3dd   :  { %3826 = vmatpush1.msra.mxu0 %v3583_v44  ;;  %v3603_v44 = vld [vmem:[%s12006_s8 + $0x200] sm:$0xff] }
 0x3de   :  { %3827 = vmatprep.subr.mxu0 %v3580_v22  ;;  %v3728_v22 = vld [vmem:[%s12006_s8 + $0x5e8] sm:$0xff] }
 0x3df   :  { %3828 = vmatpush1.msra.mxu0 %v3579_v24  ;;  %3888 = vmatprep.subr.mxu1 %v3728_v22  ;;  %v3727_v24 = vld [vmem:[%s12006_s8 + $0x5e0] sm:$0xff] }
 0x3e0   :  { %3829 = vmatprep.subr.mxu0 %v3576_v30  ;;  %v3602_v30 = vld [vmem:[%s12006_s8 + $0x1f8] sm:$0xff]  ;;  %3889 = vmatpush1.msra.mxu1 %v3727_v24 }
 0x3e1   :  { %3830 = vmatpush1.msra.mxu0 %v3575_v36  ;;  %v3724_v36 = vld [vmem:[%s12006_s8 + $0x5c8] sm:$0xff] }
 0x3e2   :  { %3831 = vmatprep.subr.mxu0 %v3572_v45  ;;  %3890 = vmatprep.subr.mxu1 %v3724_v36  ;;  %v3723_v45 = vld [vmem:[%s12006_s8 + $0x5c0] sm:$0xff] }
 0x3e3   :  { %3832 = vmatpush1.msra.mxu0 %v3571_v25  ;;  %v9725_v25 = vld [vmem:[%s12007_s7] sm:$0xf]  ;;  %3891 = vmatpush1.msra.mxu1 %v3723_v45 }
 0x3e4   :  { %3833 = vmatprep.subr.mxu0 %v3568_v10  ;;  %v3720_v10 = vld [vmem:[%s12006_s8 + $0x5a8] sm:$0xff]  ;;  %v3675_v36 = vld [vmem:[%s12006_s8 + $0x440] sm:$0xff] }
 0x3e5   :  { %3834 = vmatpush1.msra.mxu0 %v3567_v32  ;;  %3892 = vmatprep.subr.mxu1 %v3720_v10  ;;  %v3719_v32 = vld [vmem:[%s12006_s8 + $0x5a0] sm:$0xff] }
 0x3e6   :  { %3835 = vmatprep.subr.mxu0 %v3564_v19  ;;  %3893 = vmatpush1.msra.mxu1 %v3719_v32 }
 0x3e7   :  { %3836 = vmatpush1.msra.mxu0 %v3563_v31  ;;  %v3716_v31 = vld [vmem:[%s12006_s8 + $0x588] sm:$0xff] }
 0x3e8   :  { %3837 = vmatprep.subr.mxu0 %v3560_v34  ;;  %v2822_v34 = vrot.slane %v9725_v25, %v7499_v2  ;;  %3894 = vmatprep.subr.mxu1 %v3716_v31  ;;  %v3672_v31 = vld [vmem:[%s12006_s8 + $0x428] sm:$0xff] }
 0x3e9   :  { %3838 = vmatpush1.msra.mxu0 %v3559_v4  ;;  %v3715_v4 = vld [vmem:[%s12006_s8 + $0x580] sm:$0xff] }
 0x3ea   :  { %3839 = vmatprep.subr.mxu0 %v3556_v63  ;;  %3895 = vmatpush1.msra.mxu1 %v3715_v4  ;;  %v3712_v63 = vld [vmem:[%s12006_s8 + $0x568] sm:$0xff] }
 0x3eb   :  { %3840 = vmatpush1.msra.mxu0 %v3555_v20  ;;  %v2826_v20 = vrot.slane %v9725_v25, %v7513_v6  ;;  %3896 = vmatprep.subr.mxu1 %v3712_v63 }
 0x3ec   :  { %3841 = vmatprep.subr.mxu0 %v3552_v15  ;;  %v3711_v15 = vld [vmem:[%s12006_s8 + $0x560] sm:$0xff] }
 0x3ed   :  { %3842 = vmatpush1.msra.mxu0 %v3551_v60  ;;  %3897 = vmatpush1.msra.mxu1 %v3711_v15  ;;  %v3671_v15 = vld [vmem:[%s12006_s8 + $0x420] sm:$0xff] }
 0x3ee   :  { %3843 = vmatprep.subr.mxu0 %v3548_v29  ;;  %v3708_v29 = vld [vmem:[%s12006_s8 + $0x548] sm:$0xff] }
 0x3ef   :  { %3844 = vmatpush1.msra.mxu0 %v3547_v43  ;;  %3898 = vmatprep.subr.mxu1 %v3708_v29 }
 0x3f0   :  { %3845 = vmatprep.subr.mxu0 %v3544_v38  ;;  %v3707_v38 = vld [vmem:[%s12006_s8 + $0x540] sm:$0xff] }
 0x3f1   :  { %3846 = vmatpush1.msra.mxu0 %v3543_v53  ;;  %3899 = vmatpush1.msra.mxu1 %v3707_v38  ;;  %v3668_v38 = vld [vmem:[%s12006_s8 + $0x408] sm:$0xff] }
 0x3f2   :  { %3847 = vmatprep.subr.mxu0 %v3540_v26  ;;  %v3704_v26 = vld [vmem:[%s12006_s8 + $0x528] sm:$0xff] }
 0x3f3   :  { %3848 = vmatpush1.msra.mxu0 %v3539_v14  ;;  %3900 = vmatprep.subr.mxu1 %v3704_v26 }
 0x3f4   :  { %3849 = vmatprep.subr.mxu0 %v3664_v52 }
 0x3f5   :  { %3850 = vmatpush2.msra.mxu0 %v3663_v56  ;;  %v3703_v56 = vld [vmem:[%s12006_s8 + $0x520] sm:$0xff] }
 0x3f6   :  { %3851 = vmatprep.subr.mxu0 %v3660_v61  ;;  %3901 = vmatpush1.msra.mxu1 %v3703_v56  ;;  %v3667_v56 = vld [vmem:[%s12006_s8 + $0x400] sm:$0xff] }
 0x3f7   :  { %3852 = vmatpush2.msra.mxu0 %v3659_v62  ;;  %v3700_v62 = vld [vmem:[%s12006_s8 + $0x508] sm:$0xff] }
 0x3f8   :  { %3853 = vmatprep.subr.mxu0 %v3656_v11  ;;  %3902 = vmatprep.subr.mxu1 %v3700_v62 }
 0x3f9   :  { %3854 = vmatpush2.msra.mxu0 %v3655_v13 }
 0x3fa   :  { %3855 = vmatprep.subr.mxu0 %v3652_v27 }
 0x3fb   :  { %3856 = vmatpush2.msra.mxu0 %v3651_v50  ;;  %v3699_v50 = vld [vmem:[%s12006_s8 + $0x500] sm:$0xff] }
 0x3fc   :  { %3857 = vmatprep.subr.mxu0 %v3648_v51  ;;  %3903 = vmatpush1.msra.mxu1 %v3699_v50  ;;  %v3696_v51 = vld [vmem:[%s12006_s8 + $0x4e8] sm:$0xff] }
 0x3fd   :  { %3858 = vmatpush2.msra.mxu0 %v3647_v42  ;;  %3904 = vmatprep.subr.mxu1 %v3696_v51  ;;  %v3792_v50 = vld [vmem:[%s12006_s8 + $0x7e8] sm:$0xff] }
 0x3fe   :  { %3859 = vmatprep.subr.mxu0 %v3644_v58 }
 0x3ff   :  { %3860 = vmatpush2.msra.mxu0 %v3643_v49  ;;  %v3695_v49 = vld [vmem:[%s12006_s8 + $0x4e0] sm:$0xff] }
 0x400   :  { %3861 = vmatprep.subr.mxu0 %v3640_v37  ;;  %v3692_v37 = vld [vmem:[%s12006_s8 + $0x4c8] sm:$0xff]  ;;  %3905 = vmatpush1.msra.mxu1 %v3695_v49 }
 0x401   :  { %3862 = vmatpush2.msra.mxu0 %v3639_v18  ;;  %3906 = vmatprep.subr.mxu1 %v3692_v37  ;;  %v3791_v37 = vld [vmem:[%s12006_s8 + $0x7e0] sm:$0xff] }
 0x402   :  { %3863 = vmatprep.subr.mxu0 %v3636_v35 }
 0x403   :  { %3864 = vmatpush2.msra.mxu0 %v3635_v41  ;;  %v3691_v41 = vld [vmem:[%s12006_s8 + $0x4c0] sm:$0xff] }
 0x404   :  { %3865 = vmatprep.subr.mxu0 %v3632_v33  ;;  %3907 = vmatpush1.msra.mxu1 %v3691_v41 }
 0x405   :  { %3866 = vmatpush2.msra.mxu0 %v3631_v12  ;;  %v3688_v12 = vld [vmem:[%s12006_s8 + $0x4a8] sm:$0xff] }
 0x406   :  { %3867 = vmatprep.subr.mxu0 %v3628_v28  ;;  %3908 = vmatprep.subr.mxu1 %v3688_v12  ;;  %v3788_v12 = vld [vmem:[%s12006_s8 + $0x7c8] sm:$0xff] }
 0x407   :  { %3868 = vmatpush2.msra.mxu0 %v3627_v17  ;;  %v3687_v17 = vld [vmem:[%s12006_s8 + $0x4a0] sm:$0xff] }
 0x408   :  { %3869 = vmatprep.subr.mxu0 %v3624_v5  ;;  %3909 = vmatpush1.msra.mxu1 %v3687_v17 }
 0x409   :  { %3870 = vmatpush2.msra.mxu0 %v3623_v39  ;;  %v3684_v39 = vld [vmem:[%s12006_s8 + $0x488] sm:$0xff] }
 0x40a   :  { %3871 = vmatprep.subr.mxu0 %v3620_v46  ;;  %3910 = vmatprep.subr.mxu1 %v3684_v39  ;;  %v3787_v39 = vld [vmem:[%s12006_s8 + $0x7c0] sm:$0xff] }
 0x40b   :  { %3872 = vmatpush2.msra.mxu0 %v3619_v54 }
 0x40c   :  { %3873 = vmatprep.subr.mxu0 %v3616_v48  ;;  %v3683_v48 = vld [vmem:[%s12006_s8 + $0x480] sm:$0xff] }
 0x40d   :  { %3874 = vmatpush2.msra.mxu0 %v3615_v23  ;;  %3911 = vmatpush1.msra.mxu1 %v3683_v48 }
 0x40e   :  { %3875 = vmatprep.subr.mxu0 %v3612_v55 }
 0x40f   :  { %3876 = vmatpush2.msra.mxu0 %v3611_v21  ;;  %v3680_v21 = vld [vmem:[%s12006_s8 + $0x468] sm:$0xff] }
 0x410   :  { %3877 = vmatprep.subr.mxu0 %v3608_v40  ;;  %3912 = vmatprep.subr.mxu1 %v3680_v21 }
 0x411   :  { %3878 = vmatpush2.msra.mxu0 %v3607_v8  ;;  %v3679_v8 = vld [vmem:[%s12006_s8 + $0x460] sm:$0xff] }
 0x412   :  { %3879 = vmatprep.subr.mxu0 %v3604_v1  ;;  %3913 = vmatpush1.msra.mxu1 %v3679_v8 }
 0x413   :  { %3880 = vmatpush2.msra.mxu0 %v3603_v44  ;;  %v3676_v44 = vld [vmem:[%s12006_s8 + $0x448] sm:$0xff] }
 0x414   :  { %3959 = vmatprep.subr.mxu0 %v3602_v30  ;;  %3914 = vmatprep.subr.mxu1 %v3676_v44  ;;  %v3783_v44 = vld [vmem:[%s12006_s8 + $0x7a0] sm:$0xff] }
 0x415   :  { %3915 = vmatpush1.msra.mxu1 %v3675_v36 }
 0x416   :  { %3916 = vmatprep.subr.mxu1 %v3672_v31 }
 0x417   :  { %3917 = vmatpush1.msra.mxu1 %v3671_v15 }
 0x418   :  { %3918 = vmatprep.subr.mxu1 %v3668_v38  ;;  %v3775_v38 = vld [vmem:[%s12006_s8 + $0x760] sm:$0xff] }
 0x419   :  { %3919 = vmatpush1.msra.mxu1 %v3667_v56 }
 0x41a   :  { %3920 = vmatprep.subr.mxu1 %v3792_v50  ;;  %v3771_v50 = vld [vmem:[%s12006_s8 + $0x740] sm:$0xff] }
 0x41b   :  { %3921 = vmatpush2.msra.mxu1 %v3791_v37 }
 0x41c   :  { %3922 = vmatprep.subr.mxu1 %v3788_v12 }
 0x41d   :  { %3923 = vmatpush2.msra.mxu1 %v3787_v39 }
 0x424   :  { %v2905_v19 = vpop.f32.mrf.mxu0 }
 0x425   :  { %v2906_v43 = vadd.f32 %v2905_v19, %v2822_v34 }
 0x426   :  { %v2907_v60 = vpop.f32.mrf.mxu0 }
 0x427   :  { %v2908_v14 = vadd.f32 %v2907_v60, %v2826_v20 }
 0x457   :  { %v2976_v53 = vpop.f32.mrf.mxu1 }
 0x458   :  { %v9758_v52 = vadd.f32 %v2976_v53, %v2906_v43 }
 0x459   :  { %v2978_v61 = vpop.f32.mrf.mxu1 }
 0x45a   :  { %v3123_v11 = vand.u32 2147483647, %v9758_v52  ;;  %v3126_v13 = vand.u32 2139095040, %v9758_v52  ;;  %v9768_v27 = vadd.f32 %v2978_v61, %v2908_v14  ;;  %vm3125_vm6 = vcmp.lt.s32.totalorder %v9758_v52, 0 }
 0x45c   :  { %v3127_v42 = vshrl.u32 %v3126_v13, 23  ;;  %v3230_v58 = vand.u32 2139095040, %v9768_v27  ;;  %v3130_v35 = vand.u32 8388607, %v3123_v11  ;;  %v3227_v54 = vand.u32 2147483647, %v9768_v27 }
 0x45d   :  { %vm10051_vm7 = vcmp.le.f32.partialorder %v3123_v11, 0.7853982 }
 0x45e   :  { %v5446_v18 = vadd.s32 4294967169, %v3127_v42  ;;  %v3231_v33 = vshrl.u32 %v3230_v58, 23  ;;  %v3131_v46 = vor.u32 8388608, %v3130_v35  ;;  %v9814_v30 = vand.u32 8388607, %v3227_v54 }
 0x460   :  { %v3133_v28 = vadd.s32 1, %v5446_v18  ;;  %v5450_v5 = vadd.s32 4294967169, %v3231_v33  ;;  %v9810_v24 = vshll.u32 %v3131_v46, 8  ;;  %v3235_v33 = vor.u32 8388608, %v9814_v30 }
 0x462   :  { %vm3134_vm8 = vcmp.gt.s32.totalorder %v3133_v28, 0  ;;  %v3237_v55 = vadd.s32 1, %v5450_v5  ;;  %v9879_v36 = vshll.u32 %v3235_v33, 8  ;;  %v3767_v33 = vld [vmem:[%s12006_s8 + $0x720] sm:$0xff] }
 0x463   :  { %v3135_v23 = vsel %vm3134_vm8, %v3133_v28, 0  ;;  %vm3229_vm8 = vcmp.lt.s32.totalorder %v9768_v27, 0 }
 0x464   :  { %v3137_v40 = vand.u32 31, %v3135_v23  ;;  %v3136_v1 = vshrl.u32 %v3135_v23, 5  ;;  %vm3238_vm9 = vcmp.gt.s32.totalorder %v3237_v55, 0 }
 0x465   :  { %v3239_v13 = vsel %vm3238_vm9, %v3237_v55, 0  ;;  %v3784_v55 = vld [vmem:[%s12006_s8 + $0x7a8] sm:$0xff] }
 0x466   :  { %v3138_v22 = vsub.s32 32, %v3137_v40  ;;  %v3140_v45 = vshll.u32 %v5675_v59, %v3137_v40  ;;  %v3143_v10 = vshll.u32 %v5676_v0, %v3137_v40  ;;  %v3146_v32 = vshll.u32 %v5677_v3, %v3137_v40  ;;  %3924 = vmatprep.subr.mxu1 %v3784_v55  ;;  %v3763_v55 = vld [vmem:[%s12006_s8 + $0x700] sm:$0xff] }
 0x467   :  { %v3149_v19 = vshll.u32 %v5678_v7, %v3137_v40  ;;  %v3152_v20 = vshll.u32 %v5679_v9, %v3137_v40  ;;  %vm3155_vm10 = vcmp.lt.s32.totalorder %v3136_v1, 1  ;;  %vm3157_vm11 = vcmp.lt.s32.totalorder %v3136_v1, 3  ;;  %3925 = vmatpush2.msra.mxu1 %v3783_v44 }
 0x468   :  { %v3141_v34 = vshrl.u32 %v5676_v0, %v3138_v22  ;;  %v3144_v4 = vshrl.u32 %v5677_v3, %v3138_v22  ;;  %v3147_v63 = vshrl.u32 %v5678_v7, %v3138_v22  ;;  %v3139_v60 = vshrl.u32 %v5675_v59, %v3138_v22 }
 0x469   :  { %v3150_v29 = vshrl.u32 %v5679_v9, %v3138_v22  ;;  %v3153_v43 = vshrl.u32 %v5680_v16, %v3138_v22  ;;  %vm3158_vm12 = vcmp.lt.s32.totalorder %v3136_v1, 4  ;;  %vm3156_vm13 = vcmp.lt.s32.totalorder %v3136_v1, 2 }
 0x46a   :  { %v3142_v53 = vor.u32 %v3141_v34, %v3140_v45  ;;  %v3145_v26 = vor.u32 %v3144_v4, %v3143_v10  ;;  %v3148_v14 = vor.u32 %v3147_v63, %v3146_v32  ;;  %v3241_v5 = vand.u32 31, %v3239_v13  ;;  %v3780_v45 = vld [vmem:[%s12006_s8 + $0x788] sm:$0xff]  ;;  %v3779_v34 = vld [vmem:[%s12006_s8 + $0x780] sm:$0xff] }
 0x46b   :  { %v3151_v61 = vor.u32 %v3150_v29, %v3149_v19  ;;  %v3154_v62 = vor.u32 %v3153_v43, %v3152_v20  ;;  %v9877_v22 = vshrl.u32 %v3239_v13, 5  ;;  %3926 = vmatprep.subr.mxu1 %v3780_v45  ;;  %v3760_v45 = vld [vmem:[%s12006_s8 + $0x6e8] sm:$0xff] }
 0x46c   :  { %v3159_v51 = vsel %vm3155_vm10, %v3139_v60, %v3142_v53  ;;  %v3160_v42 = vsel %vm3158_vm12, %v3148_v14, 2102212464  ;;  %v3163_v58 = vsel %vm3155_vm10, %v3142_v53, %v3145_v26  ;;  %v3167_v49 = vsel %vm3155_vm10, %v3145_v26, %v3148_v14  ;;  %3927 = vmatpush2.msra.mxu1 %v3779_v34 }
 0x46d   :  { %v3161_v18 = vsel %vm3157_vm11, %v3145_v26, %v3160_v42  ;;  %v3164_v35 = vsel %vm3158_vm12, %v3151_v61, 920167782  ;;  %v3168_v41 = vsel %vm3158_vm12, %v3154_v62, 1326507024  ;;  %v3242_v30 = vsub.s32 32, %v3241_v5 }
 0x46e   :  { %v3165_v28 = vsel %vm3157_vm11, %v3148_v14, %v3164_v35  ;;  %v3169_v17 = vsel %vm3157_vm11, %v3151_v61, %v3168_v41  ;;  %v3162_v46 = vsel %vm3156_vm13, %v3159_v51, %v3161_v18  ;;  %v3244_v32 = vshll.u32 %v5675_v59, %v3241_v5  ;;  %v3772_v61 = vld [vmem:[%s12006_s8 + $0x748] sm:$0xff] }
 0x46f   :  { %v3166_v48 = vsel %vm3156_vm13, %v3163_v58, %v3165_v28  ;;  %v3170_v23 = vsel %vm3156_vm13, %v3167_v49, %v3169_v17  ;;  %v3178_v10 = vmul.u32 %v9810_v24, %v3162_v46  ;;  %v3247_v19 = vshll.u32 %v5676_v0, %v3241_v5  ;;  %v3768_v49 = vld [vmem:[%s12006_s8 + $0x728] sm:$0xff] }
 0x470   :  { %v9866_v21 = vmul.u32.u64.low %v9810_v24, %v3170_v23  ;;  %v9867_v40 = vmul.u32.u64.high %v9810_v24, %v3170_v23, %v9866_v21  ;;  %v9870_v8 = vmul.u32.u64.low %v9810_v24, %v3166_v48  ;;  %v9871_v1 = vmul.u32.u64.high %v9810_v24, %v3166_v48, %v9870_v8  ;;  %v3776_v24 = vld [vmem:[%s12006_s8 + $0x768] sm:$0xff] }
 0x471   :  { %v3250_v31 = vshll.u32 %v5677_v3, %v3241_v5  ;;  %v3245_v4 = vshrl.u32 %v5676_v0, %v3242_v30  ;;  %v3248_v63 = vshrl.u32 %v5677_v3, %v3242_v30  ;;  %v3251_v20 = vshrl.u32 %v5678_v7, %v3242_v30  ;;  %3928 = vmatprep.subr.mxu1 %v3776_v24  ;;  %v3752_v24 = vld [vmem:[%s12006_s8 + $0x6a8] sm:$0xff] }
 0x472   :  { %v3253_v15 = vshll.u32 %v5678_v7, %v3241_v5  ;;  %vm3180_vm14 = vc.u32 %v9867_v40, %v9870_v8  ;;  %v3181_v60 = vadd.s32 1, %v9871_v1  ;;  %v3254_v29 = vshrl.u32 %v5679_v9, %v3242_v30  ;;  %3929 = vmatpush2.msra.mxu1 %v3775_v38  ;;  %v3748_v38 = vld [vmem:[%s12006_s8 + $0x688] sm:$0xff] }
 0x473   :  { %v3256_v43 = vshll.u32 %v5679_v9, %v3241_v5  ;;  %v3246_v53 = vor.u32 %v3245_v4, %v3244_v32  ;;  %v3249_v26 = vor.u32 %v3248_v63, %v3247_v19  ;;  %v3252_v14 = vor.u32 %v3251_v20, %v3250_v31  ;;  %3930 = vmatprep.subr.mxu1 %v3772_v61  ;;  %v3764_v5 = vld [vmem:[%s12006_s8 + $0x708] sm:$0xff]  ;;  %v3759_v19 = vld [vmem:[%s12006_s8 + $0x6e0] sm:$0xff] }
 0x474   :  { %v3257_v56 = vshrl.u32 %v5680_v16, %v3242_v30  ;;  %v3182_v62 = vsel %vm3180_vm14, %v3181_v60, %v9871_v1  ;;  %v3255_v13 = vor.u32 %v3254_v29, %v3253_v15  ;;  %vm3259_vm15 = vcmp.lt.s32.totalorder %v9877_v22, 1  ;;  %3931 = vmatpush2.msra.mxu1 %v3771_v50  ;;  %v3756_v4 = vld [vmem:[%s12006_s8 + $0x6c8] sm:$0xff]  ;;  %v3755_v63 = vld [vmem:[%s12006_s8 + $0x6c0] sm:$0xff] }
 0x475   :  { %vm3262_vm0 = vcmp.lt.s32.totalorder %v9877_v22, 4  ;;  %v3183_v51 = vadd.s32 %v3182_v62, %v3178_v10  ;;  %vm3261_vm1 = vcmp.lt.s32.totalorder %v9877_v22, 3  ;;  %v3243_v37 = vshrl.u32 %v5675_v59, %v3242_v30  ;;  %3932 = vmatprep.subr.mxu1 %v3768_v49  ;;  %v3751_v60 = vld [vmem:[%s12006_s8 + $0x6a0] sm:$0xff] }
 0x476   :  { %v3258_v42 = vor.u32 %v3257_v56, %v3256_v43  ;;  %v3264_v58 = vsel %vm3262_vm0, %v3252_v14, 2102212464  ;;  %v3267_v18 = vsel %vm3259_vm15, %v3246_v53, %v3249_v26  ;;  %v3268_v35 = vsel %vm3262_vm0, %v3255_v13, 920167782  ;;  %3933 = vmatpush2.msra.mxu1 %v3767_v33  ;;  %v3743_v61 = vld [vmem:[%s12006_s8 + $0x660] sm:$0xff] }
 0x477   :  { %v3271_v41 = vsel %vm3259_vm15, %v3249_v26, %v3252_v14  ;;  %v3184_v12 = vadd.s32 536870912, %v3183_v51  ;;  %vm3260_vm2 = vcmp.lt.s32.totalorder %v9877_v22, 2  ;;  %v3269_v28 = vsel %vm3261_vm1, %v3252_v14, %v3268_v35  ;;  %3934 = vmatprep.subr.mxu1 %v3764_v5  ;;  %v3744_v14 = vld [vmem:[%s12006_s8 + $0x668] sm:$0xff]  ;;  %v3731_v33 = vld [vmem:[%s12006_s8 + $0x600] sm:$0xff]  ;;  %v3730_v5 = vld [vmem:[%s12006_s8 + $0x5f8] sm:$0xff] }
 0x478   :  { %v3272_v17 = vsel %vm3262_vm0, %v3258_v42, 1326507024  ;;  %v3263_v39 = vsel %vm3259_vm15, %v3243_v37, %v3246_v53  ;;  %v3265_v46 = vsel %vm3261_vm1, %v3249_v26, %v3264_v58  ;;  %v3270_v48 = vsel %vm3260_vm2, %v3267_v18, %v3269_v28  ;;  %3935 = vmatpush2.msra.mxu1 %v3763_v55  ;;  %v3736_v58 = vld [vmem:[%s12006_s8 + $0x628] sm:$0xff]  ;;  %v3735_v37 = vld [vmem:[%s12006_s8 + $0x620] sm:$0xff] }
 0x479   :  { %v3273_v23 = vsel %vm3261_vm1, %v3255_v13, %v3272_v17  ;;  %v9951_v21 = vshrl.u32 %v3184_v12, 30  ;;  %v9956_v44 = vmul.u32.u64.low %v9879_v36, %v3270_v48  ;;  %v9957_v30 = vmul.u32.u64.high %v9879_v36, %v3270_v48, %v9956_v44  ;;  %3936 = vmatprep.subr.mxu1 %v3760_v45  ;;  %v3740_v13 = vld [vmem:[%s12006_s8 + $0x648] sm:$0xff] }
 0x47a   :  { %v3274_v1 = vsel %vm3260_vm2, %v3271_v41, %v3273_v23  ;;  %v3266_v34 = vsel %vm3260_vm2, %v3263_v39, %v3265_v46  ;;  %3937 = vmatpush2.msra.mxu1 %v3759_v19  ;;  %v3732_v18 = vld [vmem:[%s12006_s8 + $0x608] sm:$0xff]  ;;  %v3179_v12 = vadd.s32 %v9870_v8, %v9867_v40  ;;  %vm10071_vm10 = vcmp.le.f32.partialorder %v3227_v54, 0.7853982 }
 0x47b   :  { %v9964_v10 = vmul.u32.u64.low %v9879_v36, %v3274_v1  ;;  %v9965_v32 = vmul.u32.u64.high %v9879_v36, %v3274_v1, %v9964_v10  ;;  %v3186_v31 = vshll.u32 %v9951_v21, 30  ;;  %v3285_v15 = vadd.s32 1, %v9957_v30  ;;  %3938 = vmatprep.subr.mxu1 %v3756_v4 }
 0x47c   :  { %v3282_v22 = vmul.u32 %v9879_v36, %v3266_v34  ;;  %3939 = vmatpush2.msra.mxu1 %v3755_v63  ;;  %v3747_v36 = vld [vmem:[%s12006_s8 + $0x680] sm:$0xff]  ;;  %v3047_v34 = vpop.f32.mrf.mxu0 }
 0x47d   :  { %v3187_v20 = vsub.s32 %v3183_v51, %v3186_v31  ;;  %vm3284_vm3 = vc.u32 %v9965_v32, %v9956_v44  ;;  %3940 = vmatprep.subr.mxu1 %v3752_v24  ;;  %v3739_v51 = vld [vmem:[%s12006_s8 + $0x640] sm:$0xff]  ;;  %v2830_v31 = vrot.slane %v9725_v25, %v7937_v57 }
 0x47e   :  { %v3286_v43 = vsel %vm3284_vm3, %v3285_v15, %v9957_v30  ;;  %3941 = vmatpush2.msra.mxu1 %v3751_v60 }
 0x47f   :  { %v3189_v29 = vsub.s32 0, %v3187_v20  ;;  %v3287_v53 = vadd.s32 %v3286_v43, %v3282_v22  ;;  %3942 = vmatprep.subr.mxu1 %v3748_v38  ;;  %v2834_v22 = vrot.slane %v9725_v25, %v7946_v47  ;;  %v3048_v60 = vadd.f32 %v3047_v34, %v2830_v31 }
 0x480   :  { %3943 = vmatpush2.msra.mxu1 %v3747_v36 }
 0x481   :  { %v5447_v26 = vmin.u32 %v3189_v29, %v3187_v20  ;;  %v3288_v56 = vadd.s32 536870912, %v3287_v53  ;;  %3944 = vmatprep.subr.mxu1 %v3744_v14  ;;  %v3049_v29 = vpop.f32.mrf.mxu0 }
 0x482   :  { %3945 = vmatpush2.msra.mxu1 %v3743_v61 }
 0x483   :  { %v3191_v62 = vclz %v5447_v26  ;;  %v10005_v50 = vshrl.u32 %v3288_v56, 30  ;;  %3946 = vmatprep.subr.mxu1 %v3740_v13 }
 0x484   :  { %3947 = vmatpush2.msra.mxu1 %v3739_v51 }
 0x485   :  { %v5448_v42 = vadd.s32 4294967294, %v3191_v62  ;;  %v3290_v49 = vshll.u32 %v10005_v50, 30  ;;  %3948 = vmatprep.subr.mxu1 %v3736_v58  ;;  %v3050_v62 = vadd.f32 %v3049_v29, %v2834_v22 }
 0x486   :  { %3949 = vmatpush2.msra.mxu1 %v3735_v37 }
 0x487   :  { %vm5449_vm4 = vcmp.lt.s32.totalorder %v5448_v42, 0  ;;  %v3291_v41 = vsub.s32 %v3287_v53, %v3290_v49  ;;  %3950 = vmatprep.subr.mxu1 %v3732_v18  ;;  %v3313_v18 = vsub.s32 4, %v10005_v50 }
 0x488   :  { %v3194_v35 = vsel %vm5449_vm4, 0, %v5448_v42  ;;  %3951 = vmatpush2.msra.mxu1 %v3731_v33  ;;  %v3209_v42 = vsub.s32 4, %v9951_v21 }
 0x489   :  { %v3195_v28 = vsub.s32 32, %v3194_v35  ;;  %v3199_v17 = vsub.s32 4294967266, %v3194_v35  ;;  %v3293_v39 = vsub.s32 0, %v3291_v41  ;;  %v3196_v46 = vshll.u32 %v3187_v20, %v3194_v35  ;;  %4030 = vmatprep.subr.mxu1 %v3730_v5 }
 0x48a   :  { %v3283_v20 = vadd.s32 %v9956_v44, %v9965_v32  ;;  %v10067_v11 = vsel %vm3125_vm6, %v3209_v42, %v9951_v21 }
 0x48b   :  { %v3197_v48 = vshrl.u32 %v3179_v12, %v3195_v28  ;;  %v3200_v23 = vadd.s32 127, %v3199_v17  ;;  %v5451_v55 = vmin.u32 %v3293_v39, %v3291_v41  ;;  %v3212_v31 = vsel %vm10051_vm7, 0, %v10067_v11 }
 0x48d   :  { %v3198_v1 = vor.u32 %v3197_v48, %v3196_v46  ;;  %v3201_v30 = vshll.u32 %v3200_v23, 23  ;;  %v3295_v45 = vclz %v5451_v55  ;;  %v10062_v55 = vsel %vm3229_vm8, %v3313_v18, %v10005_v50 }
 0x48f   :  { %v3202_v10 = vor.u32 4788187, %v3201_v30  ;;  %v5452_v19 = vadd.s32 4294967294, %v3295_v45  ;;  %v3205_v8 = vcvt.s32.f32 %v3198_v1 }
 0x491   :  { %v3203_v40 = vand.u32 2147483647, %v3202_v10  ;;  %vm5453_vm5 = vcmp.lt.s32.totalorder %v5452_v19, 0 }
 0x492   :  { %v3298_v63 = vsel %vm5453_vm5, 0, %v5452_v19 }
 0x493   :  { %v3206_v4 = vmul.f32 %v3205_v8, %v3203_v40  ;;  %v3299_v15 = vsub.s32 32, %v3298_v63  ;;  %v3303_v24 = vsub.s32 4294967266, %v3298_v63  ;;  %v3300_v43 = vshll.u32 %v3291_v41, %v3298_v63 }
 0x495   :  { %v3301_v38 = vshrl.u32 %v3283_v20, %v3299_v15  ;;  %v3304_v53 = vadd.s32 127, %v3303_v24  ;;  %v3207_v26 = vxor.u32 2147483648, %v3206_v4 }
 0x497   :  { %v3118_v36 = vpop.f32.mrf.mxu1  ;;  %v3302_v56 = vor.u32 %v3301_v38, %v3300_v43  ;;  %v3305_v61 = vshll.u32 %v3304_v53, 23  ;;  %v3208_v58 = vsel %vm3125_vm6, %v3207_v26, %v3206_v4  ;;  %v3316_v4 = vsel %vm10071_vm10, 0, %v10062_v55 }
 0x498   :  { %v10034_v14 = vadd.f32 %v3118_v36, %v3048_v60  ;;  %v3211_v48 = vsel %vm10051_vm7, %v9758_v52, %v3208_v58 }
 0x499   :  { %v3120_v13 = vpop.f32.mrf.mxu1  ;;  %v3306_v25 = vor.u32 4788187, %v3305_v61  ;;  %v3309_v41 = vcvt.s32.f32 %v3302_v56  ;;  %5635 = vcosq.f32 %v3211_v48 }
 0x49a   :  { %v3331_v44 = vand.u32 2147483647, %v10034_v14  ;;  %v3334_v32 = vand.u32 2139095040, %v10034_v14  ;;  %v10039_v51 = vadd.f32 %v3120_v13, %v3050_v62  ;;  %5637 = vsinq.f32 %v3211_v48 }
 0x49b   :  { %v3307_v35 = vand.u32 2147483647, %v3306_v25 }
 0x49c   :  { %v3335_v49 = vshrl.u32 %v3334_v32, 23  ;;  %v3338_v37 = vand.u32 8388607, %v3331_v44  ;;  %v3435_v33 = vand.u32 2147483647, %v10039_v51  ;;  %v3438_v12 = vand.u32 2139095040, %v10039_v51 }
 0x49d   :  { %v3310_v5 = vmul.f32 %v3309_v41, %v3307_v35 }
 0x49e   :  { %v5454_v17 = vadd.s32 4294967169, %v3335_v49  ;;  %v3439_v39 = vshrl.u32 %v3438_v12, 23  ;;  %v3442_v46 = vand.u32 8388607, %v3435_v33  ;;  %v3339_v30 = vor.u32 8388608, %v3338_v37 }
 0x49f   :  { %v3311_v1 = vxor.u32 2147483648, %v3310_v5 }
 0x4a0   :  { %v3341_v23 = vadd.s32 1, %v5454_v17  ;;  %v5458_v45 = vadd.s32 4294967169, %v3439_v39  ;;  %v3443_v10 = vor.u32 8388608, %v3442_v46  ;;  %v10081_v63 = vshll.u32 %v3339_v30, 8 }
 0x4a1   :  { %v3312_v40 = vsel %vm3229_vm8, %v3311_v1, %v3310_v5 }
 0x4a2   :  { %vm3342_vm9 = vcmp.gt.s32.totalorder %v3341_v23, 0  ;;  %v3445_v50 = vadd.s32 1, %v5458_v45  ;;  %v10083_v54 = vshll.u32 %v3443_v10, 8  ;;  %v10088_v20 = vsel %vm10071_vm10, %v9768_v27, %v3312_v40 }
 0x4a3   :  { %v3343_v8 = vsel %vm3342_vm9, %v3341_v23, 0  ;;  %5639 = vcosq.f32 %v10088_v20 }
 0x4a4   :  { %v3344_v21 = vshrl.u32 %v3343_v8, 5  ;;  %v3345_v34 = vand.u32 31, %v3343_v8  ;;  %vm3446_vm11 = vcmp.gt.s32.totalorder %v3445_v50, 0  ;;  %5641 = vsinq.f32 %v10088_v20 }
 0x4a5   :  { %v3447_v25 = vsel %vm3446_vm11, %v3445_v50, 0 }
 0x4a6   :  { %v3346_v15 = vsub.s32 32, %v3345_v34  ;;  %v3348_v24 = vshll.u32 %v5675_v59, %v3345_v34  ;;  %v3351_v22 = vshll.u32 %v5676_v0, %v3345_v34  ;;  %v3354_v60 = vshll.u32 %v5677_v3, %v3345_v34 }
 0x4a7   :  { %v3357_v29 = vshll.u32 %v5678_v7, %v3345_v34  ;;  %v3360_v43 = vshll.u32 %v5679_v9, %v3345_v34  ;;  %vm3363_vm12 = vcmp.lt.s32.totalorder %v3344_v21, 1  ;;  %vm3364_vm13 = vcmp.lt.s32.totalorder %v3344_v21, 2 }
 0x4a8   :  { %v3349_v38 = vshrl.u32 %v5676_v0, %v3346_v15  ;;  %v3352_v53 = vshrl.u32 %v5677_v3, %v3346_v15  ;;  %v3355_v36 = vshrl.u32 %v5678_v7, %v3346_v15  ;;  %v3347_v26 = vshrl.u32 %v5675_v59, %v3346_v15 }
 0x4a9   :  { %v3358_v56 = vshrl.u32 %v5679_v9, %v3346_v15  ;;  %v3361_v61 = vshrl.u32 %v5680_v16, %v3346_v15  ;;  %vm3365_vm14 = vcmp.lt.s32.totalorder %v3344_v21, 3  ;;  %vm3366_vm15 = vcmp.lt.s32.totalorder %v3344_v21, 4  ;;  %v10122_v15 = vpop.eup %5635 }
 0x4aa   :  { %v3350_v62 = vor.u32 %v3349_v38, %v3348_v24  ;;  %v3353_v13 = vor.u32 %v3352_v53, %v3351_v22  ;;  %v3356_v32 = vor.u32 %v3355_v36, %v3354_v60  ;;  %v3449_v49 = vand.u32 31, %v3447_v25 }
 0x4ab   :  { %v3359_v42 = vor.u32 %v3358_v56, %v3357_v29  ;;  %v3362_v58 = vor.u32 %v3361_v61, %v3360_v43  ;;  %v3448_v45 = vshrl.u32 %v3447_v25, 5  ;;  %v10128_v29 = vpop.eup %5637  ;;  %v3223_v11 = vxor.u32 2147483648, %v10122_v15 }
 0x4ac   :  { %v3367_v37 = vsel %vm3363_vm12, %v3347_v26, %v3350_v62  ;;  %v3368_v18 = vsel %vm3366_vm15, %v3356_v32, 2102212464  ;;  %v3371_v35 = vsel %vm3363_vm12, %v3350_v62, %v3353_v13  ;;  %v3375_v41 = vsel %vm3363_vm12, %v3353_v13, %v3356_v32 }
 0x4ad   :  { %v3369_v12 = vsel %vm3365_vm14, %v3353_v13, %v3368_v18  ;;  %v3372_v17 = vsel %vm3366_vm15, %v3359_v42, 920167782  ;;  %v3376_v5 = vsel %vm3366_vm15, %v3362_v58, 1326507024  ;;  %v3450_v39 = vsub.s32 32, %v3449_v49 }
 0x4ae   :  { %v3370_v46 = vsel %vm3364_vm13, %v3367_v37, %v3369_v12  ;;  %v3373_v48 = vsel %vm3365_vm14, %v3356_v32, %v3372_v17  ;;  %v3377_v23 = vsel %vm3365_vm14, %v3359_v42, %v3376_v5  ;;  %v3452_v10 = vshll.u32 %v5675_v59, %v3449_v49 }
 0x4af   :  { %v3374_v1 = vsel %vm3364_vm13, %v3371_v35, %v3373_v48  ;;  %v3378_v30 = vsel %vm3364_vm13, %v3375_v41, %v3377_v23  ;;  %v3386_v24 = vmul.u32 %v10081_v63, %v3370_v46  ;;  %v3453_v22 = vshrl.u32 %v5676_v0, %v3450_v39 }
 0x4b0   :  { %v10114_v40 = vmul.u32.u64.low %v10081_v63, %v3378_v30  ;;  %v10115_v8 = vmul.u32.u64.high %v10081_v63, %v3378_v30, %v10114_v40  ;;  %v10118_v50 = vmul.u32.u64.low %v10081_v63, %v3374_v1  ;;  %v10119_v34 = vmul.u32.u64.high %v10081_v63, %v3374_v1, %v10118_v50 }
 0x4b1   :  { %v3455_v21 = vshll.u32 %v5676_v0, %v3449_v49  ;;  %v3456_v60 = vshrl.u32 %v5677_v3, %v3450_v39  ;;  %v3458_v43 = vshll.u32 %v5677_v3, %v3449_v49  ;;  %v3459_v38 = vshrl.u32 %v5678_v7, %v3450_v39  ;;  %v5640_v40 = vpop.eup %5639 }
 0x4b2   :  { %v3461_v53 = vshll.u32 %v5678_v7, %v3449_v49  ;;  %v3462_v36 = vshrl.u32 %v5679_v9, %v3450_v39  ;;  %v3454_v26 = vor.u32 %v3453_v22, %v3452_v10  ;;  %v3464_v63 = vshll.u32 %v5679_v9, %v3449_v49 }
 0x4b3   :  { %v3457_v56 = vor.u32 %v3456_v60, %v3455_v21  ;;  %v3465_v61 = vshrl.u32 %v5680_v16, %v3450_v39  ;;  %vm3388_vm0 = vc.u32 %v10115_v8, %v10118_v50  ;;  %v3389_v62 = vadd.s32 1, %v10119_v34 }
 0x4b4   :  { %v3451_v13 = vshrl.u32 %v5675_v59, %v3450_v39  ;;  %v3460_v32 = vor.u32 %v3459_v38, %v3458_v43  ;;  %v3463_v25 = vor.u32 %v3462_v36, %v3461_v53  ;;  %vm3467_vm1 = vcmp.lt.s32.totalorder %v3448_v45, 1 }
 0x4b5   :  { %v3466_v42 = vor.u32 %v3465_v61, %v3464_v63  ;;  %vm3468_vm2 = vcmp.lt.s32.totalorder %v3448_v45, 2  ;;  %v3390_v58 = vsel %vm3388_vm0, %v3389_v62, %v10119_v34  ;;  %vm3469_vm3 = vcmp.lt.s32.totalorder %v3448_v45, 3 }
 0x4b6   :  { %vm3470_vm4 = vcmp.lt.s32.totalorder %v3448_v45, 4  ;;  %v3475_v37 = vsel %vm3467_vm1, %v3454_v26, %v3457_v56  ;;  %v3391_v49 = vadd.s32 %v3390_v58, %v3386_v24  ;;  %v3479_v41 = vsel %vm3467_vm1, %v3457_v56, %v3460_v32 }
 0x4b7   :  { %v3472_v18 = vsel %vm3470_vm4, %v3460_v32, 2102212464  ;;  %v3476_v35 = vsel %vm3470_vm4, %v3463_v25, 920167782  ;;  %v3471_v12 = vsel %vm3467_vm1, %v3451_v13, %v3454_v26  ;;  %v3480_v5 = vsel %vm3470_vm4, %v3466_v42, 1326507024 }
 0x4b8   :  { %v3477_v17 = vsel %vm3469_vm3, %v3460_v32, %v3476_v35  ;;  %v3392_v39 = vadd.s32 536870912, %v3391_v49  ;;  %v3473_v46 = vsel %vm3469_vm3, %v3457_v56, %v3472_v18  ;;  %v3481_v23 = vsel %vm3469_vm3, %v3463_v25, %v3480_v5 }
 0x4b9   :  { %v3478_v48 = vsel %vm3468_vm2, %v3475_v37, %v3477_v17  ;;  %v3482_v1 = vsel %vm3468_vm2, %v3479_v41, %v3481_v23  ;;  %v3474_v20 = vsel %vm3468_vm2, %v3471_v12, %v3473_v46  ;;  %v3320_v21 = vadd.s32 3, %v3316_v4  ;;  %v3601_v17 = vld [vmem:[%s12006_s8 + $0x1f0] sm:$0xff] }
 0x4ba   :  { %v10145_v30 = vmul.u32.u64.low %v10083_v54, %v3478_v48  ;;  %v10146_v10 = vmul.u32.u64.high %v10083_v54, %v3478_v48, %v10145_v30  ;;  %v10149_v34 = vshrl.u32 %v3392_v39, 30  ;;  %v3216_v60 = vadd.s32 3, %v3212_v31 }
 0x4bb   :  { %v10152_v24 = vmul.u32.u64.low %v10083_v54, %v3482_v1  ;;  %v10153_v22 = vmul.u32.u64.high %v10083_v54, %v3482_v1, %v10152_v24  ;;  %v3490_v36 = vmul.u32 %v10083_v54, %v3474_v20  ;;  %v3321_v45 = vand.u32 3, %v3320_v21  ;;  %v5642_v54 = vpop.eup %5641 }
 0x4bc   :  { %v3394_v43 = vshll.u32 %v10149_v34, 30  ;;  %v3493_v38 = vadd.s32 1, %v10146_v10  ;;  %v3217_v55 = vand.u32 3, %v3216_v60  ;;  %v3220_v28 = vxor.u32 2147483648, %v10128_v29  ;;  %v3590_v60 = vld [vmem:[%s12006_s8 + $0x198] sm:$0xff] }
 0x4bd   :  { %vm3492_vm5 = vc.u32 %v10153_v22, %v10145_v30  ;;  %v3327_v31 = vxor.u32 2147483648, %v5640_v40  ;;  %vm3326_vm6 = vcmp.eq.s32.totalorder %v3321_v45, 2  ;;  %v3324_v25 = vxor.u32 2147483648, %v5642_v54 }
 0x4be   :  { %v3395_v53 = vsub.s32 %v3391_v49, %v3394_v43  ;;  %v3494_v19 = vsel %vm3492_vm5, %v3493_v38, %v10146_v10  ;;  %vm3219_vm7 = vcmp.eq.s32.totalorder %v3217_v55, 0  ;;  %vm3222_vm8 = vcmp.eq.s32.totalorder %v3217_v55, 2  ;;  %v3594_v10 = vld [vmem:[%s12006_s8 + $0x1b8] sm:$0xff]  ;;  %v3589_v43 = vld [vmem:[%s12006_s8 + $0x190] sm:$0xff] }
 0x4bf   :  { %v3495_v26 = vadd.s32 %v3494_v19, %v3490_v36  ;;  %v3221_v13 = vsel %vm3219_vm7, %v10122_v15, %v3220_v28  ;;  %v3224_v32 = vsel %vm3222_vm8, %v3223_v11, %v10128_v29  ;;  %v3328_v42 = vsel %vm3326_vm6, %v3327_v31, %v5642_v54  ;;  %v3586_v36 = vld [vmem:[%s12006_s8 + $0x178] sm:$0xff]  ;;  %v3585_v19 = vld [vmem:[%s12006_s8 + $0x170] sm:$0xff] }
 0x4c0   :  { %v3397_v4 = vsub.s32 0, %v3395_v53  ;;  %vm3323_vm9 = vcmp.eq.s32.totalorder %v3321_v45, 0  ;;  %vm3218_vm10 = vcmp.lt.s32.totalorder %v3217_v55, 2  ;;  %vm3322_vm11 = vcmp.lt.s32.totalorder %v3321_v45, 2  ;;  %v3581_v28 = vld [vmem:[%s12006_s8 + $0x150] sm:$0xff]  ;;  %v3578_v54 = vld [vmem:[%s12006_s8 + $0x138] sm:$0xff] }
 0x4c1   :  { %v3496_v63 = vadd.s32 536870912, %v3495_v26  ;;  %v3325_v49 = vsel %vm3323_vm9, %v5640_v40, %v3324_v25  ;;  %v3225_v18 = vsel %vm3218_vm10, %v3221_v13, %v3224_v32  ;;  %vm3319_vm13 = vweird.f32 %v9768_v27  ;;  %v3598_v27 = vld [vmem:[%s12006_s8 + $0x1d8] sm:$0xff]  ;;  %v3593_v40 = vld [vmem:[%s12006_s8 + $0x1b0] sm:$0xff] }
 0x4c2   :  { %v5455_v56 = vmin.u32 %v3397_v4, %v3395_v53  ;;  %v3329_v41 = vsel %vm3322_vm11, %v3325_v49, %v3328_v42  ;;  %v3387_v15 = vadd.s32 %v10118_v50, %v10115_v8  ;;  %vm3215_vm14 = vweird.f32 %v9758_v52  ;;  %v3597_v52 = vld [vmem:[%s12006_s8 + $0x1d0] sm:$0xff]  ;;  %v3582_v4 = vld [vmem:[%s12006_s8 + $0x158] sm:$0xff] }
 0x4c3   :  { %v10172_v62 = vshrl.u32 %v3496_v63, 30  ;;  %v3330_v12 = vsel %vm3319_vm13, nan, %v3329_v41  ;;  %v10187_v48 = vsel %vm3215_vm14, nan, %v3225_v18  ;;  %v3491_v31 = vadd.s32 %v10145_v30, %v10153_v22  ;;  %v3574_v30 = vld [vmem:[%s12006_s8 + $0x118] sm:$0xff]  ;;  %v3573_v22 = vld [vmem:[%s12006_s8 + $0x110] sm:$0xff] }
 0x4c4   :  { %v3399_v61 = vclz %v5455_v56  ;;  %3881 = vmatprep.mubr.f32.mxu0 %v3330_v12  ;;  %vm3333_vm0 = vcmp.lt.s32.totalorder %v10034_v14, 0  ;;  %v3570_v18 = vld [vmem:[%s12006_s8 + $0xf8] sm:$0xff]  ;;  %vm10244_vm1 = vcmp.le.f32.partialorder %v3331_v44, 0.7853982  ;;  %v3569_v41 = vld [vmem:[%s12006_s8 + $0xf0] sm:$0xff]  ;;  %vm3437_vm2 = vcmp.lt.s32.totalorder %v10039_v51, 0 }
 0x4c5   :  { %v3498_v37 = vshll.u32 %v10172_v62, 30  ;;  %3882 = vmatmul.mubr.f32.vlgmr.msra.gmra.mxu0 %v10187_v48  ;;  %v3565_v44 = vld [vmem:[%s12006_s8 + $0xd0] sm:$0xff]  ;;  %vm10288_vm3 = vcmp.le.f32.partialorder %v3435_v33, 0.7853982  ;;  %v3546_v33 = vld [vmem:[%s12006_s8 + $0x38] sm:$0xff]  ;;  %vm3527_vm10 = vweird.f32 %v10039_v51  ;;  %vm3423_vm11 = vweird.f32 %v10034_v14 }
 0x4c6   :  { %v5456_v58 = vadd.s32 4294967294, %v3399_v61  ;;  %3960 = vmatpush1.msra.mxu0 %v3601_v17  ;;  %4023 = vmatprep.mubr.f32.mxu0 %v3330_v12  ;;  %v3577_v61 = vld [vmem:[%s12006_s8 + $0x130] sm:$0xff]  ;;  %v3566_v12 = vld [vmem:[%s12006_s8 + $0xd8] sm:$0xff] }
 0x4c7   :  { %v10177_v35 = vsub.s32 %v3495_v26, %v3498_v37  ;;  %3961 = vmatprep.subr.mxu0 %v3598_v27 }
 0x4c8   :  { %vm5457_vm12 = vcmp.lt.s32.totalorder %v5456_v58, 0  ;;  %3962 = vmatpush1.msra.mxu0 %v3597_v52  ;;  %v3558_v52 = vld [vmem:[%s12006_s8 + $0x98] sm:$0xff] }
 0x4c9   :  { %v3402_v29 = vsel %vm5457_vm12, 0, %v5456_v58  ;;  %v3501_v46 = vsub.s32 0, %v10177_v35  ;;  %3963 = vmatprep.subr.mxu0 %v3594_v10  ;;  %v3553_v10 = vld [vmem:[%s12006_s8 + $0x70] sm:$0xff] }
 0x4ca   :  { %v3403_v5 = vsub.s32 32, %v3402_v29  ;;  %v3407_v39 = vsub.s32 4294967266, %v3402_v29  ;;  %v3404_v8 = vshll.u32 %v3395_v53, %v3402_v29  ;;  %3964 = vmatpush1.msra.mxu0 %v3593_v40  ;;  %v3521_v40 = vsub.s32 4, %v10172_v62 }
 0x4cb   :  { %v5459_v1 = vmin.u32 %v3501_v46, %v10177_v35  ;;  %3965 = vmatprep.subr.mxu0 %v3590_v60  ;;  %v3561_v46 = vld [vmem:[%s12006_s8 + $0xb0] sm:$0xff] }
 0x4cc   :  { %v3405_v50 = vshrl.u32 %v3387_v15, %v3403_v5  ;;  %v3408_v23 = vadd.s32 127, %v3407_v39  ;;  %3966 = vmatpush1.msra.mxu0 %v3589_v43  ;;  %v3562_v39 = vld [vmem:[%s12006_s8 + $0xb8] sm:$0xff]  ;;  %v3549_v60 = vld [vmem:[%s12006_s8 + $0x50] sm:$0xff] }
 0x4cd   :  { %v3503_v21 = vclz %v5459_v1  ;;  %3967 = vmatprep.subr.mxu0 %v3586_v36  ;;  %v3554_v1 = vld [vmem:[%s12006_s8 + $0x78] sm:$0xff]  ;;  %v3522_v36 = vsel %vm3437_vm2, %v3521_v40, %v10172_v62 }
 0x4ce   :  { %v3406_v24 = vor.u32 %v3405_v50, %v3404_v8  ;;  %v3409_v20 = vshll.u32 %v3408_v23, 23  ;;  %3968 = vmatpush1.msra.mxu0 %v3585_v19  ;;  %v3557_v8 = vld [vmem:[%s12006_s8 + $0x90] sm:$0xff]  ;;  %v3417_v50 = vsub.s32 4, %v10149_v34  ;;  %v3524_v62 = vsel %vm10288_vm3, 0, %v3522_v36  ;;  %v3726_v40 = vld [vmem:[%s12006_s8 + $0x5d8] sm:$0xff] }
 0x4cf   :  { %v5460_v53 = vadd.s32 4294967294, %v3503_v21  ;;  %3969 = vmatprep.subr.mxu0 %v3582_v4  ;;  %v3665_v4 = vld [vmem:[%s12006_s8 + $0x3f0] sm:$0xff]  ;;  %v3622_v36 = vld [vmem:[%s12006_s8 + $0x298] sm:$0xff] }
 0x4d0   :  { %v3410_v38 = vor.u32 4788187, %v3409_v20  ;;  %v3413_v55 = vcvt.s32.f32 %v3406_v24  ;;  %3970 = vmatpush1.msra.mxu0 %v3581_v28  ;;  %v3550_v20 = vld [vmem:[%s12006_s8 + $0x58] sm:$0xff]  ;;  %v3629_v21 = vld [vmem:[%s12006_s8 + $0x2d0] sm:$0xff] }
 0x4d1   :  { %vm5461_vm15 = vcmp.lt.s32.totalorder %v5460_v53, 0  ;;  %3971 = vmatprep.subr.mxu0 %v3578_v54  ;;  %v3658_v54 = vld [vmem:[%s12006_s8 + $0x3b8] sm:$0xff] }
 0x4d2   :  { %v3411_v45 = vand.u32 2147483647, %v3410_v38  ;;  %v3506_v26 = vsel %vm5461_vm15, 0, %v5460_v53  ;;  %3972 = vmatpush1.msra.mxu0 %v3577_v61  ;;  %v3418_v38 = vsel %vm3333_vm0, %v3417_v50, %v10149_v34  ;;  %v3545_v53 = vld [vmem:[%s12006_s8 + $0x30] sm:$0xff]  ;;  %v3542_v34 = vld [vmem:[%s12006_s8 + $0x18] sm:$0xff] }
 0x4d3   :  { %v3507_v56 = vsub.s32 32, %v3506_v26  ;;  %v3511_v63 = vsub.s32 4294967266, %v3506_v26  ;;  %v3508_v32 = vshll.u32 %v10177_v35, %v3506_v26  ;;  %3973 = vmatprep.subr.mxu0 %v3574_v30  ;;  %v3420_v19 = vsel %vm10244_vm1, 0, %v3418_v38  ;;  %v3657_v61 = vld [vmem:[%s12006_s8 + $0x3b0] sm:$0xff]  ;;  %v3646_v35 = vld [vmem:[%s12006_s8 + $0x358] sm:$0xff] }
 0x4d4   :  { %v3414_v11 = vmul.f32 %v3413_v55, %v3411_v45  ;;  %3974 = vmatpush1.msra.mxu0 %v3573_v22  ;;  %v3541_v45 = vld [vmem:[%s12006_s8 + $0x10] sm:$0xff]  ;;  %v3666_v55 = vld [vmem:[%s12006_s8 + $0x3f8] sm:$0xff]  ;;  %v3424_v26 = vadd.s32 3, %v3420_v19 }
 0x4d5   :  { %v3509_v25 = vshrl.u32 %v3491_v31, %v3507_v56  ;;  %v3512_v42 = vadd.s32 127, %v3511_v63  ;;  %3975 = vmatprep.subr.mxu0 %v3570_v18  ;;  %v3661_v56 = vld [vmem:[%s12006_s8 + $0x3d0] sm:$0xff]  ;;  %v3528_v63 = vadd.s32 3, %v3524_v62 }
 0x4d6   :  { %v3415_v13 = vxor.u32 2147483648, %v3414_v11  ;;  %3976 = vmatpush1.msra.mxu0 %v3569_v41  ;;  %v3653_v30 = vld [vmem:[%s12006_s8 + $0x390] sm:$0xff] }
 0x4d7   :  { %v3510_v37 = vor.u32 %v3509_v25, %v3508_v32  ;;  %v3513_v49 = vshll.u32 %v3512_v42, 23  ;;  %3977 = vmatprep.subr.mxu0 %v3566_v12  ;;  %v3654_v32 = vld [vmem:[%s12006_s8 + $0x398] sm:$0xff]  ;;  %v3529_v22 = vand.u32 3, %v3528_v63  ;;  %v3645_v12 = vld [vmem:[%s12006_s8 + $0x350] sm:$0xff] }
 0x4d8   :  { %v3416_v58 = vsel %vm3333_vm0, %v3415_v13, %v3414_v11  ;;  %3978 = vmatpush1.msra.mxu0 %v3565_v44  ;;  %v3662_v11 = vld [vmem:[%s12006_s8 + $0x3d8] sm:$0xff]  ;;  %v3425_v13 = vand.u32 3, %v3424_v26  ;;  %v3637_v50 = vld [vmem:[%s12006_s8 + $0x310] sm:$0xff] }
 0x4d9   :  { %v3419_v15 = vsel %vm10244_vm1, %v10034_v14, %v3416_v58  ;;  %v3514_v29 = vor.u32 4788187, %v3513_v49  ;;  %v3517_v5 = vcvt.s32.f32 %v3510_v37  ;;  %3979 = vmatprep.subr.mxu0 %v3562_v39  ;;  %v3650_v58 = vld [vmem:[%s12006_s8 + $0x378] sm:$0xff]  ;;  %v3649_v49 = vld [vmem:[%s12006_s8 + $0x370] sm:$0xff]  ;;  %vm3534_vm6 = vcmp.eq.s32.totalorder %v3529_v22, 2 }
 0x4da   :  { %5643 = vcosq.f32 %v3419_v15  ;;  %3980 = vmatpush1.msra.mxu0 %v3561_v46  ;;  %vm3427_vm4 = vcmp.eq.s32.totalorder %v3425_v13, 0  ;;  %vm3430_vm5 = vcmp.eq.s32.totalorder %v3425_v13, 2  ;;  %vm3531_vm7 = vcmp.eq.s32.totalorder %v3529_v22, 0  ;;  %v3641_v39 = vld [vmem:[%s12006_s8 + $0x330] sm:$0xff]  ;;  %v3710_v26 = vld [vmem:[%s12006_s8 + $0x558] sm:$0xff] }
 0x4db   :  { %v3515_v17 = vand.u32 2147483647, %v3514_v29  ;;  %5645 = vsinq.f32 %v3419_v15  ;;  %3981 = vmatprep.subr.mxu0 %v3558_v52  ;;  %vm3426_vm8 = vcmp.lt.s32.totalorder %v3425_v13, 2  ;;  %vm3530_vm9 = vcmp.lt.s32.totalorder %v3529_v22, 2  ;;  %v3638_v52 = vld [vmem:[%s12006_s8 + $0x318] sm:$0xff]  ;;  %v3633_v14 = vld [vmem:[%s12006_s8 + $0x2f0] sm:$0xff] }
 0x4dc   :  { %3982 = vmatpush1.msra.mxu0 %v3557_v8  ;;  %v3721_v38 = vld [vmem:[%s12006_s8 + $0x5b0] sm:$0xff]  ;;  %v3610_v63 = vld [vmem:[%s12006_s8 + $0x238] sm:$0xff] }
 0x4dd   :  { %v3518_v27 = vmul.f32 %v3517_v5, %v3515_v17  ;;  %3983 = vmatprep.subr.mxu0 %v3554_v1  ;;  %v3642_v17 = vld [vmem:[%s12006_s8 + $0x338] sm:$0xff]  ;;  %v3729_v1 = vld [vmem:[%s12006_s8 + $0x5f0] sm:$0xff] }
 0x4de   :  { %3984 = vmatpush1.msra.mxu0 %v3553_v10  ;;  %v3634_v10 = vld [vmem:[%s12006_s8 + $0x2f8] sm:$0xff]  ;;  %v3621_v19 = vld [vmem:[%s12006_s8 + $0x290] sm:$0xff] }
 0x4df   :  { %v3519_v23 = vxor.u32 2147483648, %v3518_v27  ;;  %3985 = vmatprep.subr.mxu0 %v3550_v20  ;;  %v3725_v20 = vld [vmem:[%s12006_s8 + $0x5d0] sm:$0xff]  ;;  %v3702_v13 = vld [vmem:[%s12006_s8 + $0x518] sm:$0xff] }
 0x4e0   :  { %3986 = vmatpush1.msra.mxu0 %v3549_v60  ;;  %v3722_v60 = vld [vmem:[%s12006_s8 + $0x5b8] sm:$0xff]  ;;  %v3713_v62 = vld [vmem:[%s12006_s8 + $0x570] sm:$0xff] }
 0x4e1   :  { %v3520_v24 = vsel %vm3437_vm2, %v3519_v23, %v3518_v27  ;;  %3987 = vmatprep.subr.mxu0 %v3546_v33  ;;  %v3625_v33 = vld [vmem:[%s12006_s8 + $0x2b0] sm:$0xff] }
 0x4e2   :  { %v3523_v43 = vsel %vm10288_vm3, %v10039_v51, %v3520_v24  ;;  %3988 = vmatpush1.msra.mxu0 %v3545_v53  ;;  %v3630_v24 = vld [vmem:[%s12006_s8 + $0x2d8] sm:$0xff]  ;;  %v3697_v22 = vld [vmem:[%s12006_s8 + $0x4f0] sm:$0xff] }
 0x4e3   :  { %5647 = vcosq.f32 %v3523_v43  ;;  %3989 = vmatprep.subr.mxu0 %v3542_v34  ;;  %v3718_v53 = vld [vmem:[%s12006_s8 + $0x598] sm:$0xff]  ;;  %v3717_v34 = vld [vmem:[%s12006_s8 + $0x590] sm:$0xff] }
 0x4e4   :  { %5649 = vsinq.f32 %v3523_v43  ;;  %3990 = vmatpush1.msra.mxu0 %v3541_v45  ;;  %v3626_v43 = vld [vmem:[%s12006_s8 + $0x2b8] sm:$0xff] }
 0x4e5   :  { %3991 = vmatprep.subr.mxu0 %v3666_v55  ;;  %v3714_v45 = vld [vmem:[%s12006_s8 + $0x578] sm:$0xff] }
 0x4e6   :  { %3992 = vmatpush2.msra.mxu0 %v3665_v4  ;;  %v3618_v55 = vld [vmem:[%s12006_s8 + $0x278] sm:$0xff]  ;;  %v3617_v4 = vld [vmem:[%s12006_s8 + $0x270] sm:$0xff] }
 0x4e7   :  { %v5644_v28 = vpop.eup %5643  ;;  %3993 = vmatprep.subr.mxu0 %v3662_v11  ;;  %v3709_v11 = vld [vmem:[%s12006_s8 + $0x550] sm:$0xff] }
 0x4e8   :  { %v5646_v31 = vpop.eup %5645  ;;  %3994 = vmatpush2.msra.mxu0 %v3661_v56  ;;  %v3431_v42 = vxor.u32 2147483648, %v5644_v28  ;;  %v3706_v56 = vld [vmem:[%s12006_s8 + $0x538] sm:$0xff] }
 0x4e9   :  { %v3428_v25 = vxor.u32 2147483648, %v5646_v31  ;;  %3995 = vmatprep.subr.mxu0 %v3658_v54  ;;  %v3705_v54 = vld [vmem:[%s12006_s8 + $0x530] sm:$0xff] }
 0x4ea   :  { %3996 = vmatpush2.msra.mxu0 %v3657_v61  ;;  %v3432_v29 = vsel %vm3430_vm5, %v3431_v42, %v5646_v31  ;;  %v3613_v31 = vld [vmem:[%s12006_s8 + $0x250] sm:$0xff] }
 0x4eb   :  { %3997 = vmatprep.subr.mxu0 %v3654_v32  ;;  %v3429_v15 = vsel %vm3427_vm4, %v5644_v28, %v3428_v25  ;;  %v3614_v28 = vld [vmem:[%s12006_s8 + $0x258] sm:$0xff]  ;;  %v3609_v61 = vld [vmem:[%s12006_s8 + $0x230] sm:$0xff] }
 0x4ec   :  { %3998 = vmatpush2.msra.mxu0 %v3653_v30  ;;  %v3433_v27 = vsel %vm3426_vm8, %v3429_v15, %v3432_v29  ;;  %v3606_v32 = vld [vmem:[%s12006_s8 + $0x218] sm:$0xff]  ;;  %v3701_v25 = vld [vmem:[%s12006_s8 + $0x510] sm:$0xff] }
 0x4ed   :  { %3999 = vmatprep.subr.mxu0 %v3650_v58  ;;  %v10376_v51 = vsel %vm3423_vm11, nan, %v3433_v27  ;;  %v3605_v42 = vld [vmem:[%s12006_s8 + $0x210] sm:$0xff]  ;;  %v3698_v30 = vld [vmem:[%s12006_s8 + $0x4f8] sm:$0xff] }
 0x4ee   :  { %4000 = vmatpush2.msra.mxu0 %v3649_v49  ;;  %v3694_v58 = vld [vmem:[%s12006_s8 + $0x4d8] sm:$0xff]  ;;  %v3681_v15 = vld [vmem:[%s12006_s8 + $0x470] sm:$0xff] }
 0x4ef   :  { %4001 = vmatprep.subr.mxu0 %v3646_v35  ;;  %v3690_v49 = vld [vmem:[%s12006_s8 + $0x4b8] sm:$0xff]  ;;  %v3793_v27 = vld [vmem:[%s12006_s8 + $0x7f0] sm:$0xff] }
 0x4f0   :  { %v5648_v37 = vpop.eup %5647  ;;  %4002 = vmatpush2.msra.mxu0 %v3645_v12  ;;  %v3686_v35 = vld [vmem:[%s12006_s8 + $0x498] sm:$0xff]  ;;  %v3677_v12 = vld [vmem:[%s12006_s8 + $0x450] sm:$0xff] }
 0x4f1   :  { %v5650_v18 = vpop.eup %5649  ;;  %v3535_v41 = vxor.u32 2147483648, %v5648_v37  ;;  %4003 = vmatprep.subr.mxu0 %v3642_v17  ;;  %v3678_v29 = vld [vmem:[%s12006_s8 + $0x458] sm:$0xff]  ;;  %v3673_v17 = vld [vmem:[%s12006_s8 + $0x430] sm:$0xff] }
 0x4f2   :  { %v3532_v44 = vxor.u32 2147483648, %v5650_v18  ;;  %4004 = vmatpush2.msra.mxu0 %v3641_v39  ;;  %v3669_v39 = vld [vmem:[%s12006_s8 + $0x410] sm:$0xff] }
 0x4f3   :  { %v3536_v5 = vsel %vm3534_vm6, %v3535_v41, %v5650_v18  ;;  %4005 = vmatprep.subr.mxu0 %v3638_v52  ;;  %v3689_v18 = vld [vmem:[%s12006_s8 + $0x4b0] sm:$0xff]  ;;  %v3682_v41 = vld [vmem:[%s12006_s8 + $0x478] sm:$0xff] }
 0x4f4   :  { %v3533_v46 = vsel %vm3531_vm7, %v5648_v37, %v3532_v44  ;;  %4006 = vmatpush2.msra.mxu0 %v3637_v50  ;;  %v3693_v37 = vld [vmem:[%s12006_s8 + $0x4d0] sm:$0xff]  ;;  %v3674_v44 = vld [vmem:[%s12006_s8 + $0x438] sm:$0xff] }
 0x4f5   :  { %v3537_v8 = vsel %vm3530_vm9, %v3533_v46, %v3536_v5  ;;  %4007 = vmatprep.subr.mxu0 %v3634_v10  ;;  %v3670_v5 = vld [vmem:[%s12006_s8 + $0x418] sm:$0xff]  ;;  %v3781_v10 = vld [vmem:[%s12006_s8 + $0x790] sm:$0xff] }
 0x4f6   :  { %v3538_v23 = vsel %vm3527_vm10, nan, %v3537_v8  ;;  %4008 = vmatpush2.msra.mxu0 %v3633_v14  ;;  %v3794_v46 = vld [vmem:[%s12006_s8 + $0x7f8] sm:$0xff]  ;;  %v3789_v8 = vld [vmem:[%s12006_s8 + $0x7d0] sm:$0xff] }
 0x4f7   :  { %3952 = vmatprep.mubr.f32.mxu1 %v3538_v23  ;;  %4009 = vmatprep.subr.mxu0 %v3630_v24  ;;  %v3790_v52 = vld [vmem:[%s12006_s8 + $0x7d8] sm:$0xff]  ;;  %v3777_v14 = vld [vmem:[%s12006_s8 + $0x770] sm:$0xff] }
 0x4f8   :  { %3953 = vmatmul.mubr.f32.vlgmr.msra.gmra.mxu1 %v10376_v51  ;;  %4010 = vmatpush2.msra.mxu0 %v3629_v21  ;;  %v3786_v50 = vld [vmem:[%s12006_s8 + $0x7b8] sm:$0xff] }
 0x4f9   :  { %4031 = vmatpush1.msra.mxu1 %v3729_v1  ;;  %4094 = vmatprep.mubr.f32.mxu1 %v3538_v23  ;;  %v3785_v23 = vld [vmem:[%s12006_s8 + $0x7b0] sm:$0xff]  ;;  %v3782_v1 = vld [vmem:[%s12006_s8 + $0x798] sm:$0xff] }
 0x4fa   :  { %4032 = vmatprep.subr.mxu1 %v3726_v40  ;;  %4011 = vmatprep.subr.mxu0 %v3626_v43  ;;  %v3778_v40 = vld [vmem:[%s12006_s8 + $0x778] sm:$0xff] }
 0x4fb   :  { %4033 = vmatpush1.msra.mxu1 %v3725_v20  ;;  %4012 = vmatpush2.msra.mxu0 %v3625_v33  ;;  %v3774_v24 = vld [vmem:[%s12006_s8 + $0x758] sm:$0xff]  ;;  %v3773_v20 = vld [vmem:[%s12006_s8 + $0x750] sm:$0xff] }
 0x4fc   :  { %4034 = vmatprep.subr.mxu1 %v3722_v60  ;;  %4013 = vmatprep.subr.mxu0 %v3622_v36  ;;  %v3770_v21 = vld [vmem:[%s12006_s8 + $0x738] sm:$0xff]  ;;  %v3769_v60 = vld [vmem:[%s12006_s8 + $0x730] sm:$0xff] }
 0x4fd   :  { %4035 = vmatpush1.msra.mxu1 %v3721_v38  ;;  %4014 = vmatpush2.msra.mxu0 %v3621_v19  ;;  %v3766_v43 = vld [vmem:[%s12006_s8 + $0x718] sm:$0xff]  ;;  %v3765_v38 = vld [vmem:[%s12006_s8 + $0x710] sm:$0xff] }
 0x4fe   :  { %4036 = vmatprep.subr.mxu1 %v3718_v53  ;;  %4015 = vmatprep.subr.mxu0 %v3618_v55  ;;  %v3762_v33 = vld [vmem:[%s12006_s8 + $0x6f8] sm:$0xff]  ;;  %v3761_v53 = vld [vmem:[%s12006_s8 + $0x6f0] sm:$0xff] }
 0x4ff   :  { %4037 = vmatpush1.msra.mxu1 %v3717_v34  ;;  %4016 = vmatpush2.msra.mxu0 %v3617_v4  ;;  %v3758_v36 = vld [vmem:[%s12006_s8 + $0x6d8] sm:$0xff]  ;;  %v3757_v34 = vld [vmem:[%s12006_s8 + $0x6d0] sm:$0xff] }
 0x500   :  { %4038 = vmatprep.subr.mxu1 %v3714_v45  ;;  %4017 = vmatprep.subr.mxu0 %v3614_v28  ;;  %v3754_v19 = vld [vmem:[%s12006_s8 + $0x6b8] sm:$0xff]  ;;  %v3753_v45 = vld [vmem:[%s12006_s8 + $0x6b0] sm:$0xff] }
 0x501   :  { %4039 = vmatpush1.msra.mxu1 %v3713_v62  ;;  %4018 = vmatpush2.msra.mxu0 %v3613_v31  ;;  %v3750_v55 = vld [vmem:[%s12006_s8 + $0x698] sm:$0xff]  ;;  %v3749_v62 = vld [vmem:[%s12006_s8 + $0x690] sm:$0xff] }
 0x502   :  { %4040 = vmatprep.subr.mxu1 %v3710_v26  ;;  %4019 = vmatprep.subr.mxu0 %v3610_v63  ;;  %v3746_v4 = vld [vmem:[%s12006_s8 + $0x678] sm:$0xff]  ;;  %v3745_v26 = vld [vmem:[%s12006_s8 + $0x670] sm:$0xff] }
 0x503   :  { %4041 = vmatpush1.msra.mxu1 %v3709_v11  ;;  %4020 = vmatpush2.msra.mxu0 %v3609_v61  ;;  %v3742_v28 = vld [vmem:[%s12006_s8 + $0x658] sm:$0xff]  ;;  %v3741_v11 = vld [vmem:[%s12006_s8 + $0x650] sm:$0xff]  ;;  %v4578_v61 = vld [vmem:[%s12008_s10 + $0x1e8] sm:$0xff] }
 0x504   :  { %4042 = vmatprep.subr.mxu1 %v3706_v56  ;;  %4021 = vmatprep.subr.mxu0 %v3606_v32  ;;  %v3738_v31 = vld [vmem:[%s12006_s8 + $0x638] sm:$0xff]  ;;  %v3737_v56 = vld [vmem:[%s12006_s8 + $0x630] sm:$0xff]  ;;  %v4574_v32 = vld [vmem:[%s12008_s10 + $0x1c8] sm:$0xff] }
 0x505   :  { %4043 = vmatpush1.msra.mxu1 %v3705_v54  ;;  %4022 = vmatpush2.msra.mxu0 %v3605_v42  ;;  %v3734_v63 = vld [vmem:[%s12006_s8 + $0x618] sm:$0xff]  ;;  %v3733_v54 = vld [vmem:[%s12006_s8 + $0x610] sm:$0xff]  ;;  %v4569_v42 = vld [vmem:[%s12008_s10 + $0x1a0] sm:$0xff] }
 0x506   :  { %4044 = vmatprep.subr.mxu1 %v3702_v13  ;;  %4024 = vmatmul.mubr.f32.vlgmr.msra.gmra.mxu0 %v10187_v48  ;;  %v3685_v48 = vld [vmem:[%s12006_s8 + $0x490] sm:$0xff]  ;;  %v4577_v13 = vld [vmem:[%s12008_s10 + $0x1e0] sm:$0xff] }
 0x507   :  { %4045 = vmatpush1.msra.mxu1 %v3701_v25  ;;  %4795 = vmatprep.subr.mxu0 %v4578_v61  ;;  %v4573_v25 = vld [vmem:[%s12008_s10 + $0x1c0] sm:$0xff]  ;;  %v4598_v61 = vld [vmem:[%s12008_s10 + $0x288] sm:$0xff] }
 0x508   :  { %4046 = vmatprep.subr.mxu1 %v3698_v30  ;;  %4796 = vmatpush1.msra.mxu0 %v4577_v13  ;;  %v4566_v30 = vld [vmem:[%s12008_s10 + $0x188] sm:$0xff]  ;;  %v4597_v13 = vld [vmem:[%s12008_s10 + $0x280] sm:$0xff] }
 0x509   :  { %4047 = vmatpush1.msra.mxu1 %v3697_v22  ;;  %4797 = vmatprep.subr.mxu0 %v4574_v32  ;;  %v4565_v22 = vld [vmem:[%s12008_s10 + $0x180] sm:$0xff]  ;;  %v4594_v32 = vld [vmem:[%s12008_s10 + $0x268] sm:$0xff] }
 0x50a   :  { %4048 = vmatprep.subr.mxu1 %v3694_v58  ;;  %4798 = vmatpush1.msra.mxu0 %v4573_v25  ;;  %v4562_v58 = vld [vmem:[%s12008_s10 + $0x168] sm:$0xff]  ;;  %v4593_v25 = vld [vmem:[%s12008_s10 + $0x260] sm:$0xff] }
 0x50b   :  { %4049 = vmatpush1.msra.mxu1 %v3693_v37  ;;  %v4561_v37 = vld [vmem:[%s12008_s10 + $0x160] sm:$0xff] }
 0x50c   :  { %4050 = vmatprep.subr.mxu1 %v3690_v49  ;;  %v4558_v49 = vld [vmem:[%s12008_s10 + $0x148] sm:$0xff] }
 0x50d   :  { %4051 = vmatpush1.msra.mxu1 %v3689_v18  ;;  %v4557_v18 = vld [vmem:[%s12008_s10 + $0x140] sm:$0xff] }
 0x50e   :  { %4052 = vmatprep.subr.mxu1 %v3686_v35  ;;  %v4554_v35 = vld [vmem:[%s12008_s10 + $0x128] sm:$0xff] }
 0x50f   :  { %4053 = vmatpush1.msra.mxu1 %v3685_v48  ;;  %v4553_v48 = vld [vmem:[%s12008_s10 + $0x120] sm:$0xff] }
 0x510   :  { %4054 = vmatprep.subr.mxu1 %v3682_v41  ;;  %v4550_v41 = vld [vmem:[%s12008_s10 + $0x108] sm:$0xff] }
 0x511   :  { %4055 = vmatpush1.msra.mxu1 %v3681_v15  ;;  %v4549_v15 = vld [vmem:[%s12008_s10 + $0x100] sm:$0xff] }
 0x512   :  { %4056 = vmatprep.subr.mxu1 %v3678_v29  ;;  %v4546_v29 = vld [vmem:[%s12008_s10 + $0xe8] sm:$0xff] }
 0x513   :  { %4057 = vmatpush1.msra.mxu1 %v3677_v12  ;;  %v4545_v12 = vld [vmem:[%s12008_s10 + $0xe0] sm:$0xff] }
 0x514   :  { %4058 = vmatprep.subr.mxu1 %v3674_v44  ;;  %v4542_v44 = vld [vmem:[%s12008_s10 + $0xc8] sm:$0xff] }
 0x515   :  { %4059 = vmatpush1.msra.mxu1 %v3673_v17  ;;  %v4541_v17 = vld [vmem:[%s12008_s10 + $0xc0] sm:$0xff] }
 0x516   :  { %4060 = vmatprep.subr.mxu1 %v3670_v5  ;;  %v4538_v5 = vld [vmem:[%s12008_s10 + $0xa8] sm:$0xff] }
 0x517   :  { %4061 = vmatpush1.msra.mxu1 %v3669_v39  ;;  %v4537_v39 = vld [vmem:[%s12008_s10 + $0xa0] sm:$0xff] }
 0x518   :  { %4062 = vmatprep.subr.mxu1 %v3794_v46  ;;  %v4534_v46 = vld [vmem:[%s12008_s10 + $0x88] sm:$0xff] }
 0x519   :  { %4063 = vmatpush2.msra.mxu1 %v3793_v27  ;;  %v4533_v27 = vld [vmem:[%s12008_s10 + $0x80] sm:$0xff] }
 0x51a   :  { %4064 = vmatprep.subr.mxu1 %v3790_v52  ;;  %v4530_v52 = vld [vmem:[%s12008_s10 + $0x68] sm:$0xff] }
 0x51b   :  { %4065 = vmatpush2.msra.mxu1 %v3789_v8  ;;  %v4529_v8 = vld [vmem:[%s12008_s10 + $0x60] sm:$0xff] }
 0x51c   :  { %4066 = vmatprep.subr.mxu1 %v3786_v50  ;;  %v4526_v50 = vld [vmem:[%s12008_s10 + $0x48] sm:$0xff] }
 0x51d   :  { %4067 = vmatpush2.msra.mxu1 %v3785_v23  ;;  %v4525_v23 = vld [vmem:[%s12008_s10 + $0x40] sm:$0xff] }
 0x51e   :  { %4068 = vmatprep.subr.mxu1 %v3782_v1  ;;  %v4522_v1 = vld [vmem:[%s12008_s10 + $0x28] sm:$0xff] }
 0x51f   :  { %4069 = vmatpush2.msra.mxu1 %v3781_v10  ;;  %v4521_v10 = vld [vmem:[%s12008_s10 + $0x20] sm:$0xff] }
 0x520   :  { %4070 = vmatprep.subr.mxu1 %v3778_v40  ;;  %v4518_v40 = vld [vmem:[%s12008_s10 + $0x8] sm:$0xff] }
 0x521   :  { %4071 = vmatpush2.msra.mxu1 %v3777_v14  ;;  %v4517_v14 = vld [vmem:[%s12008_s10] sm:$0xff] }
 0x522   :  { %4072 = vmatprep.subr.mxu1 %v3774_v24  ;;  %v4642_v24 = vld [vmem:[%s12008_s10 + $0x3e8] sm:$0xff] }
 0x523   :  { %4073 = vmatpush2.msra.mxu1 %v3773_v20  ;;  %v4641_v20 = vld [vmem:[%s12008_s10 + $0x3e0] sm:$0xff] }
 0x524   :  { %4074 = vmatprep.subr.mxu1 %v3770_v21  ;;  %v4638_v21 = vld [vmem:[%s12008_s10 + $0x3c8] sm:$0xff] }
 0x525   :  { %4075 = vmatpush2.msra.mxu1 %v3769_v60  ;;  %v4637_v60 = vld [vmem:[%s12008_s10 + $0x3c0] sm:$0xff] }
 0x526   :  { %4076 = vmatprep.subr.mxu1 %v3766_v43  ;;  %v4634_v43 = vld [vmem:[%s12008_s10 + $0x3a8] sm:$0xff] }
 0x527   :  { %4077 = vmatpush2.msra.mxu1 %v3765_v38  ;;  %v4633_v38 = vld [vmem:[%s12008_s10 + $0x3a0] sm:$0xff] }
 0x528   :  { %4078 = vmatprep.subr.mxu1 %v3762_v33  ;;  %v4630_v33 = vld [vmem:[%s12008_s10 + $0x388] sm:$0xff] }
 0x529   :  { %4079 = vmatpush2.msra.mxu1 %v3761_v53  ;;  %v4629_v53 = vld [vmem:[%s12008_s10 + $0x380] sm:$0xff] }
 0x52a   :  { %4080 = vmatprep.subr.mxu1 %v3758_v36  ;;  %v4626_v36 = vld [vmem:[%s12008_s10 + $0x368] sm:$0xff] }
 0x52b   :  { %4081 = vmatpush2.msra.mxu1 %v3757_v34  ;;  %v4625_v34 = vld [vmem:[%s12008_s10 + $0x360] sm:$0xff] }
 0x52c   :  { %4082 = vmatprep.subr.mxu1 %v3754_v19  ;;  %v4622_v19 = vld [vmem:[%s12008_s10 + $0x348] sm:$0xff] }
 0x52d   :  { %4083 = vmatpush2.msra.mxu1 %v3753_v45  ;;  %v4621_v45 = vld [vmem:[%s12008_s10 + $0x340] sm:$0xff] }
 0x52e   :  { %4084 = vmatprep.subr.mxu1 %v3750_v55  ;;  %v4618_v55 = vld [vmem:[%s12008_s10 + $0x328] sm:$0xff] }
 0x52f   :  { %4085 = vmatpush2.msra.mxu1 %v3749_v62  ;;  %v4617_v62 = vld [vmem:[%s12008_s10 + $0x320] sm:$0xff] }
 0x530   :  { %4086 = vmatprep.subr.mxu1 %v3746_v4  ;;  %v4614_v4 = vld [vmem:[%s12008_s10 + $0x308] sm:$0xff] }
 0x531   :  { %4087 = vmatpush2.msra.mxu1 %v3745_v26  ;;  %v4613_v26 = vld [vmem:[%s12008_s10 + $0x300] sm:$0xff] }
 0x532   :  { %4088 = vmatprep.subr.mxu1 %v3742_v28  ;;  %v4610_v28 = vld [vmem:[%s12008_s10 + $0x2e8] sm:$0xff] }
 0x533   :  { %4089 = vmatpush2.msra.mxu1 %v3741_v11  ;;  %v4609_v11 = vld [vmem:[%s12008_s10 + $0x2e0] sm:$0xff] }
 0x534   :  { %4090 = vmatprep.subr.mxu1 %v3738_v31  ;;  %v4606_v31 = vld [vmem:[%s12008_s10 + $0x2c8] sm:$0xff] }
 0x535   :  { %4091 = vmatpush2.msra.mxu1 %v3737_v56  ;;  %v4605_v56 = vld [vmem:[%s12008_s10 + $0x2c0] sm:$0xff] }
 0x536   :  { %4092 = vmatprep.subr.mxu1 %v3734_v63  ;;  %v4602_v63 = vld [vmem:[%s12008_s10 + $0x2a8] sm:$0xff] }
 0x537   :  { %4093 = vmatpush2.msra.mxu1 %v3733_v54  ;;  %v4601_v54 = vld [vmem:[%s12008_s10 + $0x2a0] sm:$0xff] }
 0x538   :  { %4095 = vmatmul.mubr.f32.vlgmr.msra.gmra.mxu1 %v10376_v51  ;;  %v4570_v51 = vld [vmem:[%s12008_s10 + $0x1a8] sm:$0xff] }
 0x539   :  { %4799 = vmatprep.subr.mxu0 %v4570_v51  ;;  %v4590_v51 = vld [vmem:[%s12008_s10 + $0x248] sm:$0xff] }
 0x53a   :  { %4800 = vmatpush1.msra.mxu0 %v4569_v42  ;;  %v4589_v42 = vld [vmem:[%s12008_s10 + $0x240] sm:$0xff] }
 0x53b   :  { %4801 = vmatprep.subr.mxu0 %v4566_v30  ;;  %v4586_v30 = vld [vmem:[%s12008_s10 + $0x228] sm:$0xff] }
 0x53c   :  { %4802 = vmatpush1.msra.mxu0 %v4565_v22  ;;  %v4585_v22 = vld [vmem:[%s12008_s10 + $0x220] sm:$0xff] }
 0x53d   :  { %4803 = vmatprep.subr.mxu0 %v4562_v58  ;;  %v4582_v58 = vld [vmem:[%s12008_s10 + $0x208] sm:$0xff] }
 0x53e   :  { %4804 = vmatpush1.msra.mxu0 %v4561_v37  ;;  %v4581_v37 = vld [vmem:[%s12008_s10 + $0x200] sm:$0xff] }
 0x53f   :  { %4805 = vmatprep.subr.mxu0 %v4558_v49  ;;  %v4706_v49 = vld [vmem:[%s12008_s10 + $0x5e8] sm:$0xff] }
 0x540   :  { %4806 = vmatpush1.msra.mxu0 %v4557_v18  ;;  %4866 = vmatprep.subr.mxu1 %v4706_v49  ;;  %v4705_v18 = vld [vmem:[%s12008_s10 + $0x5e0] sm:$0xff] }
 0x541   :  { %4807 = vmatprep.subr.mxu0 %v4554_v35  ;;  %v4580_v35 = vld [vmem:[%s12008_s10 + $0x1f8] sm:$0xff]  ;;  %4867 = vmatpush1.msra.mxu1 %v4705_v18 }
 0x542   :  { %4808 = vmatpush1.msra.mxu0 %v4553_v48  ;;  %v4702_v48 = vld [vmem:[%s12008_s10 + $0x5c8] sm:$0xff] }
 0x543   :  { %4809 = vmatprep.subr.mxu0 %v4550_v41  ;;  %4868 = vmatprep.subr.mxu1 %v4702_v48  ;;  %v4701_v41 = vld [vmem:[%s12008_s10 + $0x5c0] sm:$0xff] }
 0x544   :  { %4810 = vmatpush1.msra.mxu0 %v4549_v15  ;;  %v10822_v15 = vld [vmem:[%s12009_s9] sm:$0xf]  ;;  %4869 = vmatpush1.msra.mxu1 %v4701_v41 }
 0x545   :  { %4811 = vmatprep.subr.mxu0 %v4546_v29  ;;  %v4698_v29 = vld [vmem:[%s12008_s10 + $0x5a8] sm:$0xff]  ;;  %v4653_v48 = vld [vmem:[%s12008_s10 + $0x440] sm:$0xff] }
 0x546   :  { %4812 = vmatpush1.msra.mxu0 %v4545_v12  ;;  %4870 = vmatprep.subr.mxu1 %v4698_v29  ;;  %v4697_v12 = vld [vmem:[%s12008_s10 + $0x5a0] sm:$0xff] }
 0x547   :  { %4813 = vmatprep.subr.mxu0 %v4542_v44  ;;  %4871 = vmatpush1.msra.mxu1 %v4697_v12 }
 0x548   :  { %4814 = vmatpush1.msra.mxu0 %v4541_v17  ;;  %v4694_v17 = vld [vmem:[%s12008_s10 + $0x588] sm:$0xff] }
 0x549   :  { %4815 = vmatprep.subr.mxu0 %v4538_v5  ;;  %v3800_v5 = vrot.slane %v10822_v15, %v7499_v2  ;;  %4872 = vmatprep.subr.mxu1 %v4694_v17  ;;  %v4650_v17 = vld [vmem:[%s12008_s10 + $0x428] sm:$0xff] }
 0x54a   :  { %4816 = vmatpush1.msra.mxu0 %v4537_v39  ;;  %v4693_v39 = vld [vmem:[%s12008_s10 + $0x580] sm:$0xff] }
 0x54b   :  { %4817 = vmatprep.subr.mxu0 %v4534_v46  ;;  %4873 = vmatpush1.msra.mxu1 %v4693_v39  ;;  %v4690_v46 = vld [vmem:[%s12008_s10 + $0x568] sm:$0xff] }
 0x54c   :  { %4818 = vmatpush1.msra.mxu0 %v4533_v27  ;;  %v3804_v27 = vrot.slane %v10822_v15, %v7513_v6  ;;  %4874 = vmatprep.subr.mxu1 %v4690_v46 }
 0x54d   :  { %4819 = vmatprep.subr.mxu0 %v4530_v52  ;;  %v4689_v52 = vld [vmem:[%s12008_s10 + $0x560] sm:$0xff] }
 0x54e   :  { %4820 = vmatpush1.msra.mxu0 %v4529_v8  ;;  %4875 = vmatpush1.msra.mxu1 %v4689_v52  ;;  %v4649_v52 = vld [vmem:[%s12008_s10 + $0x420] sm:$0xff] }
 0x54f   :  { %4821 = vmatprep.subr.mxu0 %v4526_v50  ;;  %v4686_v50 = vld [vmem:[%s12008_s10 + $0x548] sm:$0xff] }
 0x550   :  { %4822 = vmatpush1.msra.mxu0 %v4525_v23  ;;  %4876 = vmatprep.subr.mxu1 %v4686_v50 }
 0x551   :  { %4823 = vmatprep.subr.mxu0 %v4522_v1  ;;  %v4685_v1 = vld [vmem:[%s12008_s10 + $0x540] sm:$0xff] }
 0x552   :  { %4824 = vmatpush1.msra.mxu0 %v4521_v10  ;;  %4877 = vmatpush1.msra.mxu1 %v4685_v1  ;;  %v4646_v1 = vld [vmem:[%s12008_s10 + $0x408] sm:$0xff] }
 0x553   :  { %4825 = vmatprep.subr.mxu0 %v4518_v40  ;;  %v4682_v40 = vld [vmem:[%s12008_s10 + $0x528] sm:$0xff] }
 0x554   :  { %4826 = vmatpush1.msra.mxu0 %v4517_v14  ;;  %4878 = vmatprep.subr.mxu1 %v4682_v40 }
 0x555   :  { %4827 = vmatprep.subr.mxu0 %v4642_v24 }
 0x556   :  { %4828 = vmatpush2.msra.mxu0 %v4641_v20  ;;  %v4681_v20 = vld [vmem:[%s12008_s10 + $0x520] sm:$0xff] }
 0x557   :  { %4829 = vmatprep.subr.mxu0 %v4638_v21  ;;  %4879 = vmatpush1.msra.mxu1 %v4681_v20  ;;  %v4645_v20 = vld [vmem:[%s12008_s10 + $0x400] sm:$0xff] }
 0x558   :  { %4830 = vmatpush2.msra.mxu0 %v4637_v60  ;;  %v4678_v60 = vld [vmem:[%s12008_s10 + $0x508] sm:$0xff] }
 0x559   :  { %4831 = vmatprep.subr.mxu0 %v4634_v43  ;;  %4880 = vmatprep.subr.mxu1 %v4678_v60 }
 0x55a   :  { %4832 = vmatpush2.msra.mxu0 %v4633_v38 }
 0x55b   :  { %4833 = vmatprep.subr.mxu0 %v4630_v33 }
 0x55c   :  { %4834 = vmatpush2.msra.mxu0 %v4629_v53  ;;  %v4677_v53 = vld [vmem:[%s12008_s10 + $0x500] sm:$0xff] }
 0x55d   :  { %4835 = vmatprep.subr.mxu0 %v4626_v36  ;;  %4881 = vmatpush1.msra.mxu1 %v4677_v53  ;;  %v4674_v36 = vld [vmem:[%s12008_s10 + $0x4e8] sm:$0xff] }
 0x55e   :  { %4836 = vmatpush2.msra.mxu0 %v4625_v34  ;;  %4882 = vmatprep.subr.mxu1 %v4674_v36  ;;  %v4770_v53 = vld [vmem:[%s12008_s10 + $0x7e8] sm:$0xff] }
 0x55f   :  { %4837 = vmatprep.subr.mxu0 %v4622_v19 }
 0x560   :  { %4838 = vmatpush2.msra.mxu0 %v4621_v45  ;;  %v4673_v45 = vld [vmem:[%s12008_s10 + $0x4e0] sm:$0xff] }
 0x561   :  { %4839 = vmatprep.subr.mxu0 %v4618_v55  ;;  %v4670_v55 = vld [vmem:[%s12008_s10 + $0x4c8] sm:$0xff]  ;;  %4883 = vmatpush1.msra.mxu1 %v4673_v45 }
 0x562   :  { %4840 = vmatpush2.msra.mxu0 %v4617_v62  ;;  %4884 = vmatprep.subr.mxu1 %v4670_v55  ;;  %v4769_v55 = vld [vmem:[%s12008_s10 + $0x7e0] sm:$0xff] }
 0x563   :  { %4841 = vmatprep.subr.mxu0 %v4614_v4 }
 0x564   :  { %4842 = vmatpush2.msra.mxu0 %v4613_v26  ;;  %v4669_v26 = vld [vmem:[%s12008_s10 + $0x4c0] sm:$0xff] }
 0x565   :  { %4843 = vmatprep.subr.mxu0 %v4610_v28  ;;  %4885 = vmatpush1.msra.mxu1 %v4669_v26 }
 0x566   :  { %4844 = vmatpush2.msra.mxu0 %v4609_v11  ;;  %v4666_v11 = vld [vmem:[%s12008_s10 + $0x4a8] sm:$0xff] }
 0x567   :  { %4845 = vmatprep.subr.mxu0 %v4606_v31  ;;  %4886 = vmatprep.subr.mxu1 %v4666_v11  ;;  %v4766_v11 = vld [vmem:[%s12008_s10 + $0x7c8] sm:$0xff] }
 0x568   :  { %4846 = vmatpush2.msra.mxu0 %v4605_v56  ;;  %v4665_v56 = vld [vmem:[%s12008_s10 + $0x4a0] sm:$0xff] }
 0x569   :  { %4847 = vmatprep.subr.mxu0 %v4602_v63  ;;  %4887 = vmatpush1.msra.mxu1 %v4665_v56 }
 0x56a   :  { %4848 = vmatpush2.msra.mxu0 %v4601_v54  ;;  %v4662_v54 = vld [vmem:[%s12008_s10 + $0x488] sm:$0xff] }
 0x56b   :  { %4849 = vmatprep.subr.mxu0 %v4598_v61  ;;  %4888 = vmatprep.subr.mxu1 %v4662_v54  ;;  %v4765_v54 = vld [vmem:[%s12008_s10 + $0x7c0] sm:$0xff] }
 0x56c   :  { %4850 = vmatpush2.msra.mxu0 %v4597_v13 }
 0x56d   :  { %4851 = vmatprep.subr.mxu0 %v4594_v32  ;;  %v4661_v32 = vld [vmem:[%s12008_s10 + $0x480] sm:$0xff] }
 0x56e   :  { %4852 = vmatpush2.msra.mxu0 %v4593_v25  ;;  %4889 = vmatpush1.msra.mxu1 %v4661_v32 }
 0x56f   :  { %4853 = vmatprep.subr.mxu0 %v4590_v51 }
 0x570   :  { %4854 = vmatpush2.msra.mxu0 %v4589_v42  ;;  %v4658_v42 = vld [vmem:[%s12008_s10 + $0x468] sm:$0xff] }
 0x571   :  { %4855 = vmatprep.subr.mxu0 %v4586_v30  ;;  %4890 = vmatprep.subr.mxu1 %v4658_v42 }
 0x572   :  { %4856 = vmatpush2.msra.mxu0 %v4585_v22  ;;  %v4657_v22 = vld [vmem:[%s12008_s10 + $0x460] sm:$0xff] }
 0x573   :  { %4857 = vmatprep.subr.mxu0 %v4582_v58  ;;  %4891 = vmatpush1.msra.mxu1 %v4657_v22 }
 0x574   :  { %4858 = vmatpush2.msra.mxu0 %v4581_v37  ;;  %v4654_v37 = vld [vmem:[%s12008_s10 + $0x448] sm:$0xff] }
 0x575   :  { %4937 = vmatprep.subr.mxu0 %v4580_v35  ;;  %4892 = vmatprep.subr.mxu1 %v4654_v37  ;;  %v4761_v37 = vld [vmem:[%s12008_s10 + $0x7a0] sm:$0xff] }
 0x576   :  { %4893 = vmatpush1.msra.mxu1 %v4653_v48 }
 0x577   :  { %4894 = vmatprep.subr.mxu1 %v4650_v17 }
 0x578   :  { %4895 = vmatpush1.msra.mxu1 %v4649_v52 }
 0x579   :  { %4896 = vmatprep.subr.mxu1 %v4646_v1  ;;  %v4753_v1 = vld [vmem:[%s12008_s10 + $0x760] sm:$0xff] }
 0x57a   :  { %4897 = vmatpush1.msra.mxu1 %v4645_v20 }
 0x57b   :  { %4898 = vmatprep.subr.mxu1 %v4770_v53  ;;  %v4749_v53 = vld [vmem:[%s12008_s10 + $0x740] sm:$0xff] }
 0x57c   :  { %4899 = vmatpush2.msra.mxu1 %v4769_v55 }
 0x57d   :  { %4900 = vmatprep.subr.mxu1 %v4766_v11 }
 0x57e   :  { %4901 = vmatpush2.msra.mxu1 %v4765_v54 }
 0x585   :  { %v3883_v44 = vpop.f32.mrf.mxu0 }
 0x586   :  { %v3884_v23 = vadd.f32 %v3883_v44, %v3800_v5 }
 0x587   :  { %v3885_v8 = vpop.f32.mrf.mxu0 }
 0x588   :  { %v3886_v14 = vadd.f32 %v3885_v8, %v3804_v27 }
 0x5b8   :  { %v3954_v10 = vpop.f32.mrf.mxu1 }
 0x5b9   :  { %v10855_v24 = vadd.f32 %v3954_v10, %v3884_v23 }
 0x5ba   :  { %v3956_v21 = vpop.f32.mrf.mxu1 }
 0x5bb   :  { %v4101_v43 = vand.u32 2147483647, %v10855_v24  ;;  %v4104_v38 = vand.u32 2139095040, %v10855_v24  ;;  %v10865_v33 = vadd.f32 %v3956_v21, %v3886_v14  ;;  %vm4103_vm10 = vcmp.lt.s32.totalorder %v10855_v24, 0 }
 0x5bd   :  { %v4105_v34 = vshrl.u32 %v4104_v38, 23  ;;  %v4208_v19 = vand.u32 2139095040, %v10865_v33  ;;  %v4108_v4 = vand.u32 8388607, %v4101_v43  ;;  %v4205_v13 = vand.u32 2147483647, %v10865_v33 }
 0x5be   :  { %vm11148_vm11 = vcmp.le.f32.partialorder %v4101_v43, 0.7853982 }
 0x5bf   :  { %v5462_v62 = vadd.s32 4294967169, %v4105_v34  ;;  %v4209_v28 = vshrl.u32 %v4208_v19, 23  ;;  %v4109_v61 = vor.u32 8388608, %v4108_v4  ;;  %v10911_v35 = vand.u32 8388607, %v4205_v13 }
 0x5c1   :  { %v4111_v31 = vadd.s32 1, %v5462_v62  ;;  %v5466_v63 = vadd.s32 4294967169, %v4209_v28  ;;  %v10907_v18 = vshll.u32 %v4109_v61, 8  ;;  %v4213_v28 = vor.u32 8388608, %v10911_v35 }
 0x5c3   :  { %vm4112_vm12 = vcmp.gt.s32.totalorder %v4111_v31, 0  ;;  %v4215_v51 = vadd.s32 1, %v5466_v63  ;;  %v10976_v48 = vshll.u32 %v4213_v28, 8  ;;  %v4745_v28 = vld [vmem:[%s12008_s10 + $0x720] sm:$0xff] }
 0x5c4   :  { %v4113_v25 = vsel %vm4112_vm12, %v4111_v31, 0  ;;  %vm4207_vm12 = vcmp.lt.s32.totalorder %v10865_v33, 0 }
 0x5c5   :  { %v4115_v30 = vand.u32 31, %v4113_v25  ;;  %v4114_v58 = vshrl.u32 %v4113_v25, 5  ;;  %vm4216_vm13 = vcmp.gt.s32.totalorder %v4215_v51, 0 }
 0x5c6   :  { %v4217_v38 = vsel %vm4216_vm13, %v4215_v51, 0  ;;  %v4762_v51 = vld [vmem:[%s12008_s10 + $0x7a8] sm:$0xff] }
 0x5c7   :  { %v4116_v49 = vsub.s32 32, %v4115_v30  ;;  %v4118_v41 = vshll.u32 %v5675_v59, %v4115_v30  ;;  %v4121_v29 = vshll.u32 %v5676_v0, %v4115_v30  ;;  %v4124_v12 = vshll.u32 %v5677_v3, %v4115_v30  ;;  %4902 = vmatprep.subr.mxu1 %v4762_v51  ;;  %v4741_v51 = vld [vmem:[%s12008_s10 + $0x700] sm:$0xff] }
 0x5c8   :  { %v4127_v44 = vshll.u32 %v5678_v7, %v4115_v30  ;;  %v4130_v27 = vshll.u32 %v5679_v9, %v4115_v30  ;;  %vm4133_vm14 = vcmp.lt.s32.totalorder %v4114_v58, 1  ;;  %vm4135_vm15 = vcmp.lt.s32.totalorder %v4114_v58, 3  ;;  %4903 = vmatpush2.msra.mxu1 %v4761_v37 }
 0x5c9   :  { %v4119_v5 = vshrl.u32 %v5676_v0, %v4116_v49  ;;  %v4122_v39 = vshrl.u32 %v5677_v3, %v4116_v49  ;;  %v4125_v46 = vshrl.u32 %v5678_v7, %v4116_v49  ;;  %v4117_v8 = vshrl.u32 %v5675_v59, %v4116_v49 }
 0x5ca   :  { %v4128_v50 = vshrl.u32 %v5679_v9, %v4116_v49  ;;  %v4131_v23 = vshrl.u32 %v5680_v16, %v4116_v49  ;;  %vm4136_vm0 = vcmp.lt.s32.totalorder %v4114_v58, 4  ;;  %vm4134_vm1 = vcmp.lt.s32.totalorder %v4114_v58, 2 }
 0x5cb   :  { %v4120_v10 = vor.u32 %v4119_v5, %v4118_v41  ;;  %v4123_v40 = vor.u32 %v4122_v39, %v4121_v29  ;;  %v4126_v14 = vor.u32 %v4125_v46, %v4124_v12  ;;  %v4219_v63 = vand.u32 31, %v4217_v38  ;;  %v4758_v41 = vld [vmem:[%s12008_s10 + $0x788] sm:$0xff]  ;;  %v4757_v5 = vld [vmem:[%s12008_s10 + $0x780] sm:$0xff] }
 0x5cc   :  { %v4129_v21 = vor.u32 %v4128_v50, %v4127_v44  ;;  %v4132_v60 = vor.u32 %v4131_v23, %v4130_v27  ;;  %v10974_v49 = vshrl.u32 %v4217_v38, 5  ;;  %4904 = vmatprep.subr.mxu1 %v4758_v41  ;;  %v4738_v41 = vld [vmem:[%s12008_s10 + $0x6e8] sm:$0xff] }
 0x5cd   :  { %v4137_v36 = vsel %vm4133_vm14, %v4117_v8, %v4120_v10  ;;  %v4138_v34 = vsel %vm4136_vm0, %v4126_v14, 2102212464  ;;  %v4141_v19 = vsel %vm4133_vm14, %v4120_v10, %v4123_v40  ;;  %v4145_v45 = vsel %vm4133_vm14, %v4123_v40, %v4126_v14  ;;  %4905 = vmatpush2.msra.mxu1 %v4757_v5 }
 0x5ce   :  { %v4139_v62 = vsel %vm4135_vm15, %v4123_v40, %v4138_v34  ;;  %v4142_v4 = vsel %vm4136_vm0, %v4129_v21, 920167782  ;;  %v4146_v26 = vsel %vm4136_vm0, %v4132_v60, 1326507024  ;;  %v4220_v35 = vsub.s32 32, %v4219_v63 }
 0x5cf   :  { %v4143_v31 = vsel %vm4135_vm15, %v4126_v14, %v4142_v4  ;;  %v4147_v56 = vsel %vm4135_vm15, %v4129_v21, %v4146_v26  ;;  %v4140_v61 = vsel %vm4134_vm1, %v4137_v36, %v4139_v62  ;;  %v4222_v12 = vshll.u32 %v5675_v59, %v4219_v63  ;;  %v4750_v21 = vld [vmem:[%s12008_s10 + $0x748] sm:$0xff] }
 0x5d0   :  { %v4144_v32 = vsel %vm4134_vm1, %v4141_v19, %v4143_v31  ;;  %v4148_v25 = vsel %vm4134_vm1, %v4145_v45, %v4147_v56  ;;  %v4156_v29 = vmul.u32 %v10907_v18, %v4140_v61  ;;  %v4225_v44 = vshll.u32 %v5676_v0, %v4219_v63  ;;  %v4746_v45 = vld [vmem:[%s12008_s10 + $0x728] sm:$0xff] }
 0x5d1   :  { %v10963_v42 = vmul.u32.u64.low %v10907_v18, %v4148_v25  ;;  %v10964_v30 = vmul.u32.u64.high %v10907_v18, %v4148_v25, %v10963_v42  ;;  %v10967_v22 = vmul.u32.u64.low %v10907_v18, %v4144_v32  ;;  %v10968_v58 = vmul.u32.u64.high %v10907_v18, %v4144_v32, %v10967_v22  ;;  %v4754_v18 = vld [vmem:[%s12008_s10 + $0x768] sm:$0xff] }
 0x5d2   :  { %v4228_v17 = vshll.u32 %v5677_v3, %v4219_v63  ;;  %v4223_v39 = vshrl.u32 %v5676_v0, %v4220_v35  ;;  %v4226_v46 = vshrl.u32 %v5677_v3, %v4220_v35  ;;  %v4229_v27 = vshrl.u32 %v5678_v7, %v4220_v35  ;;  %4906 = vmatprep.subr.mxu1 %v4754_v18  ;;  %v4730_v18 = vld [vmem:[%s12008_s10 + $0x6a8] sm:$0xff] }
 0x5d3   :  { %v4231_v52 = vshll.u32 %v5678_v7, %v4219_v63  ;;  %vm4158_vm2 = vc.u32 %v10964_v30, %v10967_v22  ;;  %v4159_v8 = vadd.s32 1, %v10968_v58  ;;  %v4232_v50 = vshrl.u32 %v5679_v9, %v4220_v35  ;;  %4907 = vmatpush2.msra.mxu1 %v4753_v1  ;;  %v4726_v1 = vld [vmem:[%s12008_s10 + $0x688] sm:$0xff] }
 0x5d4   :  { %v4234_v23 = vshll.u32 %v5679_v9, %v4219_v63  ;;  %v4224_v10 = vor.u32 %v4223_v39, %v4222_v12  ;;  %v4227_v40 = vor.u32 %v4226_v46, %v4225_v44  ;;  %v4230_v14 = vor.u32 %v4229_v27, %v4228_v17  ;;  %4908 = vmatprep.subr.mxu1 %v4750_v21  ;;  %v4742_v63 = vld [vmem:[%s12008_s10 + $0x708] sm:$0xff]  ;;  %v4737_v44 = vld [vmem:[%s12008_s10 + $0x6e0] sm:$0xff] }
 0x5d5   :  { %v4235_v20 = vshrl.u32 %v5680_v16, %v4220_v35  ;;  %v4160_v60 = vsel %vm4158_vm2, %v4159_v8, %v10968_v58  ;;  %v4233_v38 = vor.u32 %v4232_v50, %v4231_v52  ;;  %vm4237_vm3 = vcmp.lt.s32.totalorder %v10974_v49, 1  ;;  %4909 = vmatpush2.msra.mxu1 %v4749_v53  ;;  %v4734_v39 = vld [vmem:[%s12008_s10 + $0x6c8] sm:$0xff]  ;;  %v4733_v46 = vld [vmem:[%s12008_s10 + $0x6c0] sm:$0xff] }
 0x5d6   :  { %vm4240_vm4 = vcmp.lt.s32.totalorder %v10974_v49, 4  ;;  %v4161_v36 = vadd.s32 %v4160_v60, %v4156_v29  ;;  %vm4239_vm5 = vcmp.lt.s32.totalorder %v10974_v49, 3  ;;  %v4221_v55 = vshrl.u32 %v5675_v59, %v4220_v35  ;;  %4910 = vmatprep.subr.mxu1 %v4746_v45  ;;  %v4729_v8 = vld [vmem:[%s12008_s10 + $0x6a0] sm:$0xff] }
 0x5d7   :  { %v4236_v34 = vor.u32 %v4235_v20, %v4234_v23  ;;  %v4242_v19 = vsel %vm4240_vm4, %v4230_v14, 2102212464  ;;  %v4245_v62 = vsel %vm4237_vm3, %v4224_v10, %v4227_v40  ;;  %v4246_v4 = vsel %vm4240_vm4, %v4233_v38, 920167782  ;;  %4911 = vmatpush2.msra.mxu1 %v4745_v28  ;;  %v4721_v21 = vld [vmem:[%s12008_s10 + $0x660] sm:$0xff] }
 0x5d8   :  { %v4249_v26 = vsel %vm4237_vm3, %v4227_v40, %v4230_v14  ;;  %v4162_v11 = vadd.s32 536870912, %v4161_v36  ;;  %vm4238_vm6 = vcmp.lt.s32.totalorder %v10974_v49, 2  ;;  %v4247_v31 = vsel %vm4239_vm5, %v4230_v14, %v4246_v4  ;;  %4912 = vmatprep.subr.mxu1 %v4742_v63  ;;  %v4722_v14 = vld [vmem:[%s12008_s10 + $0x668] sm:$0xff]  ;;  %v4709_v28 = vld [vmem:[%s12008_s10 + $0x600] sm:$0xff]  ;;  %v4708_v63 = vld [vmem:[%s12008_s10 + $0x5f8] sm:$0xff] }
 0x5d9   :  { %v4250_v56 = vsel %vm4240_vm4, %v4236_v34, 1326507024  ;;  %v4241_v54 = vsel %vm4237_vm3, %v4221_v55, %v4224_v10  ;;  %v4243_v61 = vsel %vm4239_vm5, %v4227_v40, %v4242_v19  ;;  %v4248_v32 = vsel %vm4238_vm6, %v4245_v62, %v4247_v31  ;;  %4913 = vmatpush2.msra.mxu1 %v4741_v51  ;;  %v4714_v19 = vld [vmem:[%s12008_s10 + $0x628] sm:$0xff]  ;;  %v4713_v55 = vld [vmem:[%s12008_s10 + $0x620] sm:$0xff] }
 0x5da   :  { %v4251_v25 = vsel %vm4239_vm5, %v4233_v38, %v4250_v56  ;;  %v11048_v42 = vshrl.u32 %v4162_v11, 30  ;;  %v11053_v37 = vmul.u32.u64.low %v10976_v48, %v4248_v32  ;;  %v11054_v35 = vmul.u32.u64.high %v10976_v48, %v4248_v32, %v11053_v37  ;;  %4914 = vmatprep.subr.mxu1 %v4738_v41  ;;  %v4718_v38 = vld [vmem:[%s12008_s10 + $0x648] sm:$0xff] }
 0x5db   :  { %v4252_v58 = vsel %vm4238_vm6, %v4249_v26, %v4251_v25  ;;  %v4244_v5 = vsel %vm4238_vm6, %v4241_v54, %v4243_v61  ;;  %4915 = vmatpush2.msra.mxu1 %v4737_v44  ;;  %v4710_v62 = vld [vmem:[%s12008_s10 + $0x608] sm:$0xff]  ;;  %v4157_v11 = vadd.s32 %v10967_v22, %v10964_v30  ;;  %vm11168_vm14 = vcmp.le.f32.partialorder %v4205_v13, 0.7853982 }
 0x5dc   :  { %v11061_v29 = vmul.u32.u64.low %v10976_v48, %v4252_v58  ;;  %v11062_v12 = vmul.u32.u64.high %v10976_v48, %v4252_v58, %v11061_v29  ;;  %v4164_v17 = vshll.u32 %v11048_v42, 30  ;;  %v4263_v52 = vadd.s32 1, %v11054_v35  ;;  %4916 = vmatprep.subr.mxu1 %v4734_v39 }
 0x5dd   :  { %v4260_v49 = vmul.u32 %v10976_v48, %v4244_v5  ;;  %4917 = vmatpush2.msra.mxu1 %v4733_v46  ;;  %v4725_v48 = vld [vmem:[%s12008_s10 + $0x680] sm:$0xff]  ;;  %v4025_v5 = vpop.f32.mrf.mxu0 }
 0x5de   :  { %v4165_v27 = vsub.s32 %v4161_v36, %v4164_v17  ;;  %vm4262_vm7 = vc.u32 %v11062_v12, %v11053_v37  ;;  %4918 = vmatprep.subr.mxu1 %v4730_v18  ;;  %v4717_v36 = vld [vmem:[%s12008_s10 + $0x640] sm:$0xff]  ;;  %v3808_v17 = vrot.slane %v10822_v15, %v7937_v57 }
 0x5df   :  { %v4264_v23 = vsel %vm4262_vm7, %v4263_v52, %v11054_v35  ;;  %4919 = vmatpush2.msra.mxu1 %v4729_v8 }
 0x5e0   :  { %v4167_v50 = vsub.s32 0, %v4165_v27  ;;  %v4265_v10 = vadd.s32 %v4264_v23, %v4260_v49  ;;  %4920 = vmatprep.subr.mxu1 %v4726_v1  ;;  %v3812_v49 = vrot.slane %v10822_v15, %v7946_v47  ;;  %v4026_v8 = vadd.f32 %v4025_v5, %v3808_v17 }
 0x5e1   :  { %4921 = vmatpush2.msra.mxu1 %v4725_v48 }
 0x5e2   :  { %v5463_v40 = vmin.u32 %v4167_v50, %v4165_v27  ;;  %v4266_v20 = vadd.s32 536870912, %v4265_v10  ;;  %4922 = vmatprep.subr.mxu1 %v4722_v14  ;;  %v4027_v50 = vpop.f32.mrf.mxu0 }
 0x5e3   :  { %4923 = vmatpush2.msra.mxu1 %v4721_v21 }
 0x5e4   :  { %v4169_v60 = vclz %v5463_v40  ;;  %v11102_v53 = vshrl.u32 %v4266_v20, 30  ;;  %4924 = vmatprep.subr.mxu1 %v4718_v38 }
 0x5e5   :  { %4925 = vmatpush2.msra.mxu1 %v4717_v36 }
 0x5e6   :  { %v5464_v34 = vadd.s32 4294967294, %v4169_v60  ;;  %v4268_v45 = vshll.u32 %v11102_v53, 30  ;;  %4926 = vmatprep.subr.mxu1 %v4714_v19  ;;  %v4028_v60 = vadd.f32 %v4027_v50, %v3812_v49 }
 0x5e7   :  { %4927 = vmatpush2.msra.mxu1 %v4713_v55 }
 0x5e8   :  { %vm5465_vm8 = vcmp.lt.s32.totalorder %v5464_v34, 0  ;;  %v4269_v26 = vsub.s32 %v4265_v10, %v4268_v45  ;;  %4928 = vmatprep.subr.mxu1 %v4710_v62  ;;  %v4291_v62 = vsub.s32 4, %v11102_v53 }
 0x5e9   :  { %v4172_v4 = vsel %vm5465_vm8, 0, %v5464_v34  ;;  %4929 = vmatpush2.msra.mxu1 %v4709_v28  ;;  %v4187_v34 = vsub.s32 4, %v11048_v42 }
 0x5ea   :  { %v4173_v31 = vsub.s32 32, %v4172_v4  ;;  %v4177_v56 = vsub.s32 4294967266, %v4172_v4  ;;  %v4271_v54 = vsub.s32 0, %v4269_v26  ;;  %v4174_v61 = vshll.u32 %v4165_v27, %v4172_v4  ;;  %5008 = vmatprep.subr.mxu1 %v4708_v63 }
 0x5eb   :  { %v4261_v27 = vadd.s32 %v11053_v37, %v11062_v12  ;;  %v11164_v43 = vsel %vm4103_vm10, %v4187_v34, %v11048_v42 }
 0x5ec   :  { %v4175_v32 = vshrl.u32 %v4157_v11, %v4173_v31  ;;  %v4178_v25 = vadd.s32 127, %v4177_v56  ;;  %v5467_v51 = vmin.u32 %v4271_v54, %v4269_v26  ;;  %v4190_v17 = vsel %vm11148_vm11, 0, %v11164_v43 }
 0x5ee   :  { %v4176_v58 = vor.u32 %v4175_v32, %v4174_v61  ;;  %v4179_v35 = vshll.u32 %v4178_v25, 23  ;;  %v4273_v41 = vclz %v5467_v51  ;;  %v11159_v51 = vsel %vm4207_vm12, %v4291_v62, %v11102_v53 }
 0x5f0   :  { %v4180_v29 = vor.u32 4788187, %v4179_v35  ;;  %v5468_v44 = vadd.s32 4294967294, %v4273_v41  ;;  %v4183_v22 = vcvt.s32.f32 %v4176_v58 }
 0x5f2   :  { %v4181_v30 = vand.u32 2147483647, %v4180_v29  ;;  %vm5469_vm9 = vcmp.lt.s32.totalorder %v5468_v44, 0 }
 0x5f3   :  { %v4276_v46 = vsel %vm5469_vm9, 0, %v5468_v44 }
 0x5f4   :  { %v4184_v39 = vmul.f32 %v4183_v22, %v4181_v30  ;;  %v4277_v52 = vsub.s32 32, %v4276_v46  ;;  %v4281_v18 = vsub.s32 4294967266, %v4276_v46  ;;  %v4278_v23 = vshll.u32 %v4269_v26, %v4276_v46 }
 0x5f6   :  { %v4279_v1 = vshrl.u32 %v4261_v27, %v4277_v52  ;;  %v4282_v10 = vadd.s32 127, %v4281_v18  ;;  %v4185_v40 = vxor.u32 2147483648, %v4184_v39 }
 0x5f8   :  { %v4096_v48 = vpop.f32.mrf.mxu1  ;;  %v4280_v20 = vor.u32 %v4279_v1, %v4278_v23  ;;  %v4283_v21 = vshll.u32 %v4282_v10, 23  ;;  %v4186_v19 = vsel %vm4103_vm10, %v4185_v40, %v4184_v39  ;;  %v4294_v39 = vsel %vm11168_vm14, 0, %v11159_v51 }
 0x5f9   :  { %v11131_v14 = vadd.f32 %v4096_v48, %v4026_v8  ;;  %v4189_v32 = vsel %vm11148_vm11, %v10855_v24, %v4186_v19 }
 0x5fa   :  { %v4098_v38 = vpop.f32.mrf.mxu1  ;;  %v4284_v15 = vor.u32 4788187, %v4283_v21  ;;  %v4287_v26 = vcvt.s32.f32 %v4280_v20  ;;  %5651 = vcosq.f32 %v4189_v32 }
 0x5fb   :  { %v4309_v37 = vand.u32 2147483647, %v11131_v14  ;;  %v4312_v12 = vand.u32 2139095040, %v11131_v14  ;;  %v11136_v36 = vadd.f32 %v4098_v38, %v4028_v60  ;;  %5653 = vsinq.f32 %v4189_v32 }
 0x5fc   :  { %v4285_v4 = vand.u32 2147483647, %v4284_v15 }
 0x5fd   :  { %v4313_v45 = vshrl.u32 %v4312_v12, 23  ;;  %v4316_v55 = vand.u32 8388607, %v4309_v37  ;;  %v4413_v28 = vand.u32 2147483647, %v11136_v36  ;;  %v4416_v11 = vand.u32 2139095040, %v11136_v36 }
 0x5fe   :  { %v4288_v63 = vmul.f32 %v4287_v26, %v4285_v4 }
 0x5ff   :  { %v5470_v56 = vadd.s32 4294967169, %v4313_v45  ;;  %v4417_v54 = vshrl.u32 %v4416_v11, 23  ;;  %v4420_v61 = vand.u32 8388607, %v4413_v28  ;;  %v4317_v35 = vor.u32 8388608, %v4316_v55 }
 0x600   :  { %v4289_v58 = vxor.u32 2147483648, %v4288_v63 }
 0x601   :  { %v4319_v25 = vadd.s32 1, %v5470_v56  ;;  %v5474_v41 = vadd.s32 4294967169, %v4417_v54  ;;  %v4421_v29 = vor.u32 8388608, %v4420_v61  ;;  %v11178_v46 = vshll.u32 %v4317_v35, 8 }
 0x602   :  { %v4290_v30 = vsel %vm4207_vm12, %v4289_v58, %v4288_v63 }
 0x603   :  { %vm4320_vm13 = vcmp.gt.s32.totalorder %v4319_v25, 0  ;;  %v4423_v53 = vadd.s32 1, %v5474_v41  ;;  %v11180_v13 = vshll.u32 %v4421_v29, 8  ;;  %v11185_v27 = vsel %vm11168_vm14, %v10865_v33, %v4290_v30 }
 0x604   :  { %v4321_v22 = vsel %vm4320_vm13, %v4319_v25, 0  ;;  %5655 = vcosq.f32 %v11185_v27 }
 0x605   :  { %v4322_v42 = vshrl.u32 %v4321_v22, 5  ;;  %v4323_v5 = vand.u32 31, %v4321_v22  ;;  %vm4424_vm15 = vcmp.gt.s32.totalorder %v4423_v53, 0  ;;  %5657 = vsinq.f32 %v11185_v27 }
 0x606   :  { %v4425_v15 = vsel %vm4424_vm15, %v4423_v53, 0 }
 0x607   :  { %v4324_v52 = vsub.s32 32, %v4323_v5  ;;  %v4326_v18 = vshll.u32 %v5675_v59, %v4323_v5  ;;  %v4329_v49 = vshll.u32 %v5676_v0, %v4323_v5  ;;  %v4332_v8 = vshll.u32 %v5677_v3, %v4323_v5 }
 0x608   :  { %v4335_v50 = vshll.u32 %v5678_v7, %v4323_v5  ;;  %v4338_v23 = vshll.u32 %v5679_v9, %v4323_v5  ;;  %vm4341_vm0 = vcmp.lt.s32.totalorder %v4322_v42, 1  ;;  %vm4342_vm1 = vcmp.lt.s32.totalorder %v4322_v42, 2 }
 0x609   :  { %v4327_v1 = vshrl.u32 %v5676_v0, %v4324_v52  ;;  %v4330_v10 = vshrl.u32 %v5677_v3, %v4324_v52  ;;  %v4333_v48 = vshrl.u32 %v5678_v7, %v4324_v52  ;;  %v4325_v40 = vshrl.u32 %v5675_v59, %v4324_v52 }
 0x60a   :  { %v4336_v20 = vshrl.u32 %v5679_v9, %v4324_v52  ;;  %v4339_v21 = vshrl.u32 %v5680_v16, %v4324_v52  ;;  %vm4343_vm2 = vcmp.lt.s32.totalorder %v4322_v42, 3  ;;  %vm4344_vm3 = vcmp.lt.s32.totalorder %v4322_v42, 4  ;;  %v11219_v52 = vpop.eup %5651 }
 0x60b   :  { %v4328_v60 = vor.u32 %v4327_v1, %v4326_v18  ;;  %v4331_v38 = vor.u32 %v4330_v10, %v4329_v49  ;;  %v4334_v12 = vor.u32 %v4333_v48, %v4332_v8  ;;  %v4427_v45 = vand.u32 31, %v4425_v15 }
 0x60c   :  { %v4337_v34 = vor.u32 %v4336_v20, %v4335_v50  ;;  %v4340_v19 = vor.u32 %v4339_v21, %v4338_v23  ;;  %v4426_v41 = vshrl.u32 %v4425_v15, 5  ;;  %v11225_v50 = vpop.eup %5653  ;;  %v4201_v43 = vxor.u32 2147483648, %v11219_v52 }
 0x60d   :  { %v4345_v55 = vsel %vm4341_vm0, %v4325_v40, %v4328_v60  ;;  %v4346_v62 = vsel %vm4344_vm3, %v4334_v12, 2102212464  ;;  %v4349_v4 = vsel %vm4341_vm0, %v4328_v60, %v4331_v38  ;;  %v4353_v26 = vsel %vm4341_vm0, %v4331_v38, %v4334_v12 }
 0x60e   :  { %v4347_v11 = vsel %vm4343_vm2, %v4331_v38, %v4346_v62  ;;  %v4350_v56 = vsel %vm4344_vm3, %v4337_v34, 920167782  ;;  %v4354_v63 = vsel %vm4344_vm3, %v4340_v19, 1326507024  ;;  %v4428_v54 = vsub.s32 32, %v4427_v45 }
 0x60f   :  { %v4348_v61 = vsel %vm4342_vm1, %v4345_v55, %v4347_v11  ;;  %v4351_v32 = vsel %vm4343_vm2, %v4334_v12, %v4350_v56  ;;  %v4355_v25 = vsel %vm4343_vm2, %v4337_v34, %v4354_v63  ;;  %v4430_v29 = vshll.u32 %v5675_v59, %v4427_v45 }
 0x610   :  { %v4352_v58 = vsel %vm4342_vm1, %v4349_v4, %v4351_v32  ;;  %v4356_v35 = vsel %vm4342_vm1, %v4353_v26, %v4355_v25  ;;  %v4364_v18 = vmul.u32 %v11178_v46, %v4348_v61  ;;  %v4431_v49 = vshrl.u32 %v5676_v0, %v4428_v54 }
 0x611   :  { %v11211_v30 = vmul.u32.u64.low %v11178_v46, %v4356_v35  ;;  %v11212_v22 = vmul.u32.u64.high %v11178_v46, %v4356_v35, %v11211_v30  ;;  %v11215_v53 = vmul.u32.u64.low %v11178_v46, %v4352_v58  ;;  %v11216_v5 = vmul.u32.u64.high %v11178_v46, %v4352_v58, %v11215_v53  ;;  %v5656_v61 = vpop.eup %5655 }
 0x612   :  { %v4433_v42 = vshll.u32 %v5676_v0, %v4427_v45  ;;  %v4434_v8 = vshrl.u32 %v5677_v3, %v4428_v54  ;;  %v4436_v23 = vshll.u32 %v5677_v3, %v4427_v45  ;;  %v4437_v1 = vshrl.u32 %v5678_v7, %v4428_v54 }
 0x613   :  { %v4439_v10 = vshll.u32 %v5678_v7, %v4427_v45  ;;  %v4440_v48 = vshrl.u32 %v5679_v9, %v4428_v54  ;;  %v4432_v40 = vor.u32 %v4431_v49, %v4430_v29  ;;  %v4442_v46 = vshll.u32 %v5679_v9, %v4427_v45 }
 0x614   :  { %v4435_v20 = vor.u32 %v4434_v8, %v4433_v42  ;;  %v4443_v21 = vshrl.u32 %v5680_v16, %v4428_v54  ;;  %vm4366_vm4 = vc.u32 %v11212_v22, %v11215_v53  ;;  %v4367_v0 = vadd.s32 1, %v11216_v5 }
 0x615   :  { %v4429_v60 = vshrl.u32 %v5675_v59, %v4428_v54  ;;  %v4438_v3 = vor.u32 %v4437_v1, %v4436_v23  ;;  %v4441_v38 = vor.u32 %v4440_v48, %v4439_v10  ;;  %vm4445_vm5 = vcmp.lt.s32.totalorder %v4426_v41, 1 }
 0x616   :  { %v4444_v12 = vor.u32 %v4443_v21, %v4442_v46  ;;  %vm4446_vm6 = vcmp.lt.s32.totalorder %v4426_v41, 2  ;;  %v4368_v7 = vsel %vm4366_vm4, %v4367_v0, %v11216_v5  ;;  %vm4447_vm7 = vcmp.lt.s32.totalorder %v4426_v41, 3 }
 0x617   :  { %vm4448_vm8 = vcmp.lt.s32.totalorder %v4426_v41, 4  ;;  %v4453_v15 = vsel %vm4445_vm5, %v4432_v40, %v4435_v20  ;;  %v4369_v9 = vadd.s32 %v4368_v7, %v4364_v18  ;;  %v4457_v19 = vsel %vm4445_vm5, %v4435_v20, %v4438_v3 }
 0x618   :  { %v4450_v34 = vsel %vm4448_vm8, %v4438_v3, 2102212464  ;;  %v4454_v16 = vsel %vm4448_vm8, %v4441_v38, 920167782  ;;  %v4449_v45 = vsel %vm4445_vm5, %v4429_v60, %v4432_v40  ;;  %v4458_v62 = vsel %vm4448_vm8, %v4444_v12, 1326507024 }
 0x619   :  { %v4455_v55 = vsel %vm4447_vm7, %v4438_v3, %v4454_v16  ;;  %v4370_v59 = vadd.s32 536870912, %v4369_v9  ;;  %v4451_v4 = vsel %vm4447_vm7, %v4435_v20, %v4450_v34  ;;  %v4459_v11 = vsel %vm4447_vm7, %v4441_v38, %v4458_v62  ;;  %v4572_v62 = vld [vmem:[%s12008_s10 + $0x1b8] sm:$0xff] }
 0x61a   :  { %v4456_v26 = vsel %vm4446_vm6, %v4453_v15, %v4455_v55  ;;  %v4460_v56 = vsel %vm4446_vm6, %v4457_v19, %v4459_v11  ;;  %v4452_v27 = vsel %vm4446_vm6, %v4449_v45, %v4451_v4  ;;  %v4298_v35 = vadd.s32 3, %v4294_v39  ;;  %v4579_v15 = vld [vmem:[%s12008_s10 + $0x1f0] sm:$0xff] }
 0x61b   :  { %v11242_v63 = vmul.u32.u64.low %v11180_v13, %v4456_v26  ;;  %v11243_v54 = vmul.u32.u64.high %v11180_v13, %v4456_v26, %v11242_v63  ;;  %v11246_v32 = vshrl.u32 %v4370_v59, 30  ;;  %v4194_v29 = vadd.s32 3, %v4190_v17  ;;  %v4571_v59 = vld [vmem:[%s12008_s10 + $0x1b0] sm:$0xff] }
 0x61c   :  { %v11249_v25 = vmul.u32.u64.low %v11180_v13, %v4460_v56  ;;  %v11250_v58 = vmul.u32.u64.high %v11180_v13, %v4460_v56, %v11249_v25  ;;  %v4468_v49 = vmul.u32 %v11180_v13, %v4452_v27  ;;  %v4299_v41 = vand.u32 3, %v4298_v35  ;;  %v5658_v13 = vpop.eup %5657  ;;  %v4568_v56 = vld [vmem:[%s12008_s10 + $0x198] sm:$0xff]  ;;  %v4563_v35 = vld [vmem:[%s12008_s10 + $0x170] sm:$0xff] }
 0x61d   :  { %v4372_v30 = vshll.u32 %v11246_v32, 30  ;;  %v4471_v5 = vadd.s32 1, %v11243_v54  ;;  %v4195_v51 = vand.u32 3, %v4194_v29  ;;  %v4198_v31 = vxor.u32 2147483648, %v11225_v50  ;;  %v4564_v27 = vld [vmem:[%s12008_s10 + $0x178] sm:$0xff] }
 0x61e   :  { %vm4470_vm9 = vc.u32 %v11250_v58, %v11242_v63  ;;  %v4305_v17 = vxor.u32 2147483648, %v5656_v61  ;;  %vm4304_vm10 = vcmp.eq.s32.totalorder %v4299_v41, 2  ;;  %v4302_v20 = vxor.u32 2147483648, %v5658_v13 }
 0x61f   :  { %v4373_v18 = vsub.s32 %v4369_v9, %v4372_v30  ;;  %v4472_v44 = vsel %vm4470_vm9, %v4471_v5, %v11243_v54  ;;  %vm4197_vm11 = vcmp.eq.s32.totalorder %v4195_v51, 0  ;;  %vm4200_vm12 = vcmp.eq.s32.totalorder %v4195_v51, 2  ;;  %v4567_v54 = vld [vmem:[%s12008_s10 + $0x190] sm:$0xff]  ;;  %v4560_v5 = vld [vmem:[%s12008_s10 + $0x158] sm:$0xff] }
 0x620   :  { %v4473_v42 = vadd.s32 %v4472_v44, %v4468_v49  ;;  %v4199_v48 = vsel %vm4197_vm11, %v11219_v52, %v4198_v31  ;;  %v4202_v40 = vsel %vm4200_vm12, %v4201_v43, %v11225_v50  ;;  %v4306_v46 = vsel %vm4304_vm10, %v4305_v17, %v5658_v13  ;;  %v4559_v49 = vld [vmem:[%s12008_s10 + $0x150] sm:$0xff] }
 0x621   :  { %v4375_v39 = vsub.s32 0, %v4373_v18  ;;  %vm4301_vm13 = vcmp.eq.s32.totalorder %v4299_v41, 0  ;;  %vm4196_vm14 = vcmp.lt.s32.totalorder %v4195_v51, 2  ;;  %vm4300_vm15 = vcmp.lt.s32.totalorder %v4299_v41, 2  ;;  %v4555_v31 = vld [vmem:[%s12008_s10 + $0x130] sm:$0xff] }
 0x622   :  { %v4474_v23 = vadd.s32 536870912, %v4473_v42  ;;  %v4303_v60 = vsel %vm4301_vm13, %v5656_v61, %v4302_v20  ;;  %v4203_v3 = vsel %vm4196_vm14, %v4199_v48, %v4202_v40  ;;  %vm4297_vm1 = vweird.f32 %v10865_v33  ;;  %v4576_v33 = vld [vmem:[%s12008_s10 + $0x1d8] sm:$0xff] }
 0x623   :  { %v5471_v8 = vmin.u32 %v4375_v39, %v4373_v18  ;;  %v4307_v12 = vsel %vm4300_vm15, %v4303_v60, %v4306_v46  ;;  %v4365_v52 = vadd.s32 %v11215_v53, %v11212_v22  ;;  %vm4193_vm2 = vweird.f32 %v10855_v24  ;;  %v4575_v24 = vld [vmem:[%s12008_s10 + $0x1d0] sm:$0xff]  ;;  %v4548_v40 = vld [vmem:[%s12008_s10 + $0xf8] sm:$0xff] }
 0x624   :  { %v11269_v10 = vshrl.u32 %v4474_v23, 30  ;;  %v4308_v7 = vsel %vm4297_vm1, nan, %v4307_v12  ;;  %v11284_v19 = vsel %vm4193_vm2, nan, %v4203_v3  ;;  %v4469_v41 = vadd.s32 %v11242_v63, %v11250_v58  ;;  %v4552_v63 = vld [vmem:[%s12008_s10 + $0x118] sm:$0xff]  ;;  %v4551_v58 = vld [vmem:[%s12008_s10 + $0x110] sm:$0xff] }
 0x625   :  { %v4377_v1 = vclz %v5471_v8  ;;  %4859 = vmatprep.mubr.f32.mxu0 %v4308_v7  ;;  %vm4311_vm4 = vcmp.lt.s32.totalorder %v11131_v14, 0  ;;  %vm11341_vm5 = vcmp.le.f32.partialorder %v4309_v37, 0.7853982  ;;  %v4547_v46 = vld [vmem:[%s12008_s10 + $0xf0] sm:$0xff]  ;;  %v4544_v60 = vld [vmem:[%s12008_s10 + $0xd8] sm:$0xff]  ;;  %vm4415_vm6 = vcmp.lt.s32.totalorder %v11136_v36, 0 }
 0x626   :  { %v4476_v0 = vshll.u32 %v11269_v10, 30  ;;  %4860 = vmatmul.mubr.f32.vlgmr.msra.gmra.mxu0 %v11284_v19  ;;  %v4543_v37 = vld [vmem:[%s12008_s10 + $0xd0] sm:$0xff]  ;;  %v4540_v12 = vld [vmem:[%s12008_s10 + $0xb8] sm:$0xff]  ;;  %vm11385_vm7 = vcmp.le.f32.partialorder %v4413_v28, 0.7853982  ;;  %vm4505_vm14 = vweird.f32 %v11136_v36  ;;  %vm4401_vm15 = vweird.f32 %v11131_v14 }
 0x627   :  { %v5472_v21 = vadd.s32 4294967294, %v4377_v1  ;;  %4938 = vmatpush1.msra.mxu0 %v4579_v15  ;;  %5001 = vmatprep.mubr.f32.mxu0 %v4308_v7  ;;  %v4536_v7 = vld [vmem:[%s12008_s10 + $0x98] sm:$0xff]  ;;  %v4535_v15 = vld [vmem:[%s12008_s10 + $0x90] sm:$0xff] }
 0x628   :  { %v11274_v38 = vsub.s32 %v4473_v42, %v4476_v0  ;;  %4939 = vmatprep.subr.mxu0 %v4576_v33  ;;  %v4556_v42 = vld [vmem:[%s12008_s10 + $0x138] sm:$0xff]  ;;  %v4531_v33 = vld [vmem:[%s12008_s10 + $0x70] sm:$0xff] }
 0x629   :  { %vm5473_vm0 = vcmp.lt.s32.totalorder %v5472_v21, 0  ;;  %4940 = vmatpush1.msra.mxu0 %v4575_v24  ;;  %v4499_v24 = vsub.s32 4, %v11269_v10  ;;  %v4524_v28 = vld [vmem:[%s12008_s10 + $0x38] sm:$0xff] }
 0x62a   :  { %v4380_v50 = vsel %vm5473_vm0, 0, %v5472_v21  ;;  %v4479_v16 = vsub.s32 0, %v11274_v38  ;;  %4941 = vmatprep.subr.mxu0 %v4572_v62  ;;  %v4620_v20 = vld [vmem:[%s12008_s10 + $0x338] sm:$0xff]  ;;  %vm5682_vm0 = vmmov 0  }
 0x62b   :  { %v4381_v9 = vsub.s32 32, %v4380_v50  ;;  %v4385_v34 = vsub.s32 4294967266, %v4380_v50  ;;  %v4382_v22 = vshll.u32 %v4373_v18, %v4380_v50  ;;  %4942 = vmatpush1.msra.mxu0 %v4571_v59 }
 0x62c   :  { %v5475_v55 = vmin.u32 %v4479_v16, %v11274_v38  ;;  %4943 = vmatprep.subr.mxu0 %v4568_v56  ;;  %v4532_v16 = vld [vmem:[%s12008_s10 + $0x78] sm:$0xff]  ;;  %v4519_v56 = vld [vmem:[%s12008_s10 + $0x10] sm:$0xff] }
 0x62d   :  { %v4383_v53 = vshrl.u32 %v4365_v52, %v4381_v9  ;;  %v4386_v45 = vadd.s32 127, %v4385_v34  ;;  %4944 = vmatpush1.msra.mxu0 %v4567_v54  ;;  %v4539_v52 = vld [vmem:[%s12008_s10 + $0xb0] sm:$0xff]  ;;  %v4395_v9 = vsub.s32 4, %v11246_v32  ;;  %v4644_v54 = vld [vmem:[%s12008_s10 + $0x3f8] sm:$0xff] }
 0x62e   :  { %v4481_v11 = vclz %v5475_v55  ;;  %4945 = vmatprep.subr.mxu0 %v4564_v27  ;;  %v4527_v55 = vld [vmem:[%s12008_s10 + $0x50] sm:$0xff] }
 0x62f   :  { %v4384_v4 = vor.u32 %v4383_v53, %v4382_v22  ;;  %v4387_v26 = vshll.u32 %v4386_v45, 23  ;;  %4946 = vmatpush1.msra.mxu0 %v4563_v35  ;;  %v4528_v53 = vld [vmem:[%s12008_s10 + $0x58] sm:$0xff]  ;;  %v4396_v59 = vsel %vm4311_vm4, %v4395_v9, %v11246_v32  ;;  %v4703_v9 = vld [vmem:[%s12008_s10 + $0x5d0] sm:$0xff] }
 0x630   :  { %v5476_v25 = vadd.s32 4294967294, %v4481_v11  ;;  %4947 = vmatprep.subr.mxu0 %v4560_v5  ;;  %v4520_v32 = vld [vmem:[%s12008_s10 + $0x18] sm:$0xff]  ;;  %v4398_v11 = vsel %vm11341_vm5, 0, %v4396_v59 }
 0x631   :  { %v4388_v61 = vor.u32 4788187, %v4387_v26  ;;  %v4391_v30 = vcvt.s32.f32 %v4384_v4  ;;  %4948 = vmatpush1.msra.mxu0 %v4559_v49  ;;  %v4523_v4 = vld [vmem:[%s12008_s10 + $0x30] sm:$0xff]  ;;  %v4500_v26 = vsel %vm4415_vm6, %v4499_v24, %v11269_v10  ;;  %v4640_v35 = vld [vmem:[%s12008_s10 + $0x3d8] sm:$0xff] }
 0x632   :  { %vm5477_vm3 = vcmp.lt.s32.totalorder %v5476_v25, 0  ;;  %4949 = vmatprep.subr.mxu0 %v4556_v42  ;;  %v4502_v10 = vsel %vm11385_vm7, 0, %v4500_v26  ;;  %v4635_v49 = vld [vmem:[%s12008_s10 + $0x3b0] sm:$0xff]  ;;  %v4600_v45 = vld [vmem:[%s12008_s10 + $0x298] sm:$0xff] }
 0x633   :  { %v4389_v29 = vand.u32 2147483647, %v4388_v61  ;;  %v4484_v18 = vsel %vm5477_vm3, 0, %v5476_v25  ;;  %4950 = vmatpush1.msra.mxu0 %v4555_v31  ;;  %v4643_v61 = vld [vmem:[%s12008_s10 + $0x3f0] sm:$0xff]  ;;  %v4402_v25 = vadd.s32 3, %v4398_v11  ;;  %v4506_v5 = vadd.s32 3, %v4502_v10 }
 0x634   :  { %v4485_v51 = vsub.s32 32, %v4484_v18  ;;  %v4489_v39 = vsub.s32 4294967266, %v4484_v18  ;;  %v4486_v17 = vshll.u32 %v11274_v38, %v4484_v18  ;;  %4951 = vmatprep.subr.mxu0 %v4552_v63  ;;  %v4636_v18 = vld [vmem:[%s12008_s10 + $0x3b8] sm:$0xff]  ;;  %v4631_v42 = vld [vmem:[%s12008_s10 + $0x390] sm:$0xff] }
 0x635   :  { %v4392_v44 = vmul.f32 %v4391_v30, %v4389_v29  ;;  %4952 = vmatpush1.msra.mxu0 %v4551_v58  ;;  %v4639_v30 = vld [vmem:[%s12008_s10 + $0x3d0] sm:$0xff]  ;;  %v4507_v31 = vand.u32 3, %v4506_v5  ;;  %v4624_v63 = vld [vmem:[%s12008_s10 + $0x358] sm:$0xff] }
 0x636   :  { %v4487_v8 = vshrl.u32 %v4469_v41, %v4485_v51  ;;  %v4490_v23 = vadd.s32 127, %v4489_v39  ;;  %4953 = vmatprep.subr.mxu0 %v4548_v40  ;;  %v4632_v41 = vld [vmem:[%s12008_s10 + $0x398] sm:$0xff]  ;;  %v4699_v24 = vld [vmem:[%s12008_s10 + $0x5b0] sm:$0xff] }
 0x637   :  { %v4393_v43 = vxor.u32 2147483648, %v4392_v44  ;;  %4954 = vmatpush1.msra.mxu0 %v4547_v46  ;;  %vm4512_vm10 = vcmp.eq.s32.totalorder %v4507_v31, 2  ;;  %vm4509_vm11 = vcmp.eq.s32.totalorder %v4507_v31, 0  ;;  %vm4508_vm13 = vcmp.lt.s32.totalorder %v4507_v31, 2  ;;  %v4692_v59 = vld [vmem:[%s12008_s10 + $0x578] sm:$0xff]  ;;  %v4595_v26 = vld [vmem:[%s12008_s10 + $0x270] sm:$0xff] }
 0x638   :  { %v4488_v1 = vor.u32 %v4487_v8, %v4486_v17  ;;  %v4491_v48 = vshll.u32 %v4490_v23, 23  ;;  %4955 = vmatprep.subr.mxu0 %v4544_v60  ;;  %v4627_v8 = vld [vmem:[%s12008_s10 + $0x370] sm:$0xff]  ;;  %v4592_v11 = vld [vmem:[%s12008_s10 + $0x258] sm:$0xff] }
 0x639   :  { %v4394_v13 = vsel %vm4311_vm4, %v4393_v43, %v4392_v44  ;;  %4956 = vmatpush1.msra.mxu0 %v4543_v37  ;;  %v4403_v44 = vand.u32 3, %v4402_v25  ;;  %v4628_v43 = vld [vmem:[%s12008_s10 + $0x378] sm:$0xff]  ;;  %v4683_v25 = vld [vmem:[%s12008_s10 + $0x530] sm:$0xff] }
 0x63a   :  { %v4397_v21 = vsel %vm11341_vm5, %v11131_v14, %v4394_v13  ;;  %v4492_v0 = vor.u32 4788187, %v4491_v48  ;;  %v4495_v38 = vcvt.s32.f32 %v4488_v1  ;;  %4957 = vmatprep.subr.mxu0 %v4540_v12  ;;  %v4623_v48 = vld [vmem:[%s12008_s10 + $0x350] sm:$0xff]  ;;  %v4616_v37 = vld [vmem:[%s12008_s10 + $0x318] sm:$0xff] }
 0x63b   :  { %5659 = vcosq.f32 %v4397_v21  ;;  %4958 = vmatpush1.msra.mxu0 %v4539_v52  ;;  %vm4405_vm8 = vcmp.eq.s32.totalorder %v4403_v44, 0  ;;  %vm4408_vm9 = vcmp.eq.s32.totalorder %v4403_v44, 2  ;;  %vm4404_vm12 = vcmp.lt.s32.totalorder %v4403_v44, 2  ;;  %v4707_v52 = vld [vmem:[%s12008_s10 + $0x5f0] sm:$0xff]  ;;  %v4684_v10 = vld [vmem:[%s12008_s10 + $0x538] sm:$0xff] }
 0x63c   :  { %v4493_v3 = vand.u32 2147483647, %v4492_v0  ;;  %5661 = vsinq.f32 %v4397_v21  ;;  %4959 = vmatprep.subr.mxu0 %v4536_v7  ;;  %v4619_v21 = vld [vmem:[%s12008_s10 + $0x330] sm:$0xff]  ;;  %v4704_v7 = vld [vmem:[%s12008_s10 + $0x5d8] sm:$0xff] }
 0x63d   :  { %4960 = vmatpush1.msra.mxu0 %v4535_v15  ;;  %v4611_v14 = vld [vmem:[%s12008_s10 + $0x2f0] sm:$0xff]  ;;  %v4608_v15 = vld [vmem:[%s12008_s10 + $0x2d8] sm:$0xff] }
 0x63e   :  { %v4496_v50 = vmul.f32 %v4495_v38, %v4493_v3  ;;  %4961 = vmatprep.subr.mxu0 %v4532_v16  ;;  %v4615_v38 = vld [vmem:[%s12008_s10 + $0x310] sm:$0xff]  ;;  %v4700_v16 = vld [vmem:[%s12008_s10 + $0x5b8] sm:$0xff] }
 0x63f   :  { %4962 = vmatpush1.msra.mxu0 %v4531_v33  ;;  %v4604_v33 = vld [vmem:[%s12008_s10 + $0x2b8] sm:$0xff]  ;;  %v4583_v5 = vld [vmem:[%s12008_s10 + $0x210] sm:$0xff] }
 0x640   :  { %v4497_v34 = vxor.u32 2147483648, %v4496_v50  ;;  %4963 = vmatprep.subr.mxu0 %v4528_v53  ;;  %v4696_v53 = vld [vmem:[%s12008_s10 + $0x598] sm:$0xff]  ;;  %v4675_v44 = vld [vmem:[%s12008_s10 + $0x4f0] sm:$0xff] }
 0x641   :  { %4964 = vmatpush1.msra.mxu0 %v4527_v55  ;;  %v4695_v55 = vld [vmem:[%s12008_s10 + $0x590] sm:$0xff]  ;;  %v4668_v31 = vld [vmem:[%s12008_s10 + $0x4b8] sm:$0xff] }
 0x642   :  { %v4498_v22 = vsel %vm4415_vm6, %v4497_v34, %v4496_v50  ;;  %4965 = vmatprep.subr.mxu0 %v4524_v28  ;;  %v4612_v50 = vld [vmem:[%s12008_s10 + $0x2f8] sm:$0xff]  ;;  %v4607_v34 = vld [vmem:[%s12008_s10 + $0x2d0] sm:$0xff] }
 0x643   :  { %v4501_v62 = vsel %vm11385_vm7, %v11136_v36, %v4498_v22  ;;  %4966 = vmatpush1.msra.mxu0 %v4523_v4  ;;  %v4603_v22 = vld [vmem:[%s12008_s10 + $0x2b0] sm:$0xff]  ;;  %v4596_v28 = vld [vmem:[%s12008_s10 + $0x278] sm:$0xff] }
 0x644   :  { %5663 = vcosq.f32 %v4501_v62  ;;  %4967 = vmatprep.subr.mxu0 %v4520_v32  ;;  %v4691_v4 = vld [vmem:[%s12008_s10 + $0x570] sm:$0xff]  ;;  %v4688_v32 = vld [vmem:[%s12008_s10 + $0x558] sm:$0xff] }
 0x645   :  { %5665 = vsinq.f32 %v4501_v62  ;;  %4968 = vmatpush1.msra.mxu0 %v4519_v56  ;;  %v4599_v62 = vld [vmem:[%s12008_s10 + $0x290] sm:$0xff] }
 0x646   :  { %4969 = vmatprep.subr.mxu0 %v4644_v54  ;;  %v4687_v56 = vld [vmem:[%s12008_s10 + $0x550] sm:$0xff] }
 0x647   :  { %4970 = vmatpush2.msra.mxu0 %v4643_v61  ;;  %v4591_v54 = vld [vmem:[%s12008_s10 + $0x250] sm:$0xff]  ;;  %v4588_v61 = vld [vmem:[%s12008_s10 + $0x238] sm:$0xff] }
 0x648   :  { %v5660_v27 = vpop.eup %5659  ;;  %4971 = vmatprep.subr.mxu0 %v4640_v35  ;;  %v4680_v35 = vld [vmem:[%s12008_s10 + $0x518] sm:$0xff] }
 0x649   :  { %v5662_v29 = vpop.eup %5661  ;;  %4972 = vmatpush2.msra.mxu0 %v4639_v30  ;;  %v4409_v39 = vxor.u32 2147483648, %v5660_v27  ;;  %v4679_v30 = vld [vmem:[%s12008_s10 + $0x510] sm:$0xff] }
 0x64a   :  { %v4406_v51 = vxor.u32 2147483648, %v5662_v29  ;;  %4973 = vmatprep.subr.mxu0 %v4636_v18  ;;  %v4676_v18 = vld [vmem:[%s12008_s10 + $0x4f8] sm:$0xff] }
 0x64b   :  { %4974 = vmatpush2.msra.mxu0 %v4635_v49  ;;  %v4410_v1 = vsel %vm4408_vm9, %v4409_v39, %v5662_v29  ;;  %v4584_v29 = vld [vmem:[%s12008_s10 + $0x218] sm:$0xff]  ;;  %v5094_v39 = vld [vmem:[%s12010_s12 + $0x70] sm:$0xff] }
 0x64c   :  { %4975 = vmatprep.subr.mxu0 %v4632_v41  ;;  %v4407_v13 = vsel %vm4405_vm8, %v5660_v27, %v4406_v51  ;;  %v4587_v27 = vld [vmem:[%s12008_s10 + $0x230] sm:$0xff]  ;;  %v5095_v49 = vld [vmem:[%s12010_s12 + $0x78] sm:$0xff]  ;;  %v5681_v51 = vmov 0.0  }
 0x64d   :  { %4976 = vmatpush2.msra.mxu0 %v4631_v42  ;;  %v4411_v60 = vsel %vm4404_vm12, %v4407_v13, %v4410_v1  ;;  %v4672_v41 = vld [vmem:[%s12008_s10 + $0x4d8] sm:$0xff]  ;;  %v4671_v42 = vld [vmem:[%s12008_s10 + $0x4d0] sm:$0xff] }
 0x64e   :  { %4977 = vmatprep.subr.mxu0 %v4628_v43  ;;  %v11473_v36 = vsel %vm4401_vm15, nan, %v4411_v60  ;;  %v4667_v43 = vld [vmem:[%s12008_s10 + $0x4b0] sm:$0xff]  ;;  %v4656_v1 = vld [vmem:[%s12008_s10 + $0x458] sm:$0xff]  ;;  %v5088_v60 = vld [vmem:[%s12010_s12 + $0x40] sm:$0xff] }
 0x64f   :  { %4978 = vmatpush2.msra.mxu0 %v4627_v8  ;;  %v5092_v8 = vld [vmem:[%s12010_s12 + $0x60] sm:$0xff]  ;;  %v4659_v13 = vld [vmem:[%s12008_s10 + $0x470] sm:$0xff] }
 0x650   :  { %4979 = vmatprep.subr.mxu0 %v4624_v63  ;;  %v4660_v63 = vld [vmem:[%s12008_s10 + $0x478] sm:$0xff] }
 0x651   :  { %v5664_v17 = vpop.eup %5663  ;;  %4980 = vmatpush2.msra.mxu0 %v4623_v48  ;;  %v5090_v48 = vld [vmem:[%s12010_s12 + $0x50] sm:$0xff] }
 0x652   :  { %v5666_v23 = vpop.eup %5665  ;;  %v4513_v58 = vxor.u32 2147483648, %v5664_v17  ;;  %4981 = vmatprep.subr.mxu0 %v4620_v20  ;;  %v4652_v20 = vld [vmem:[%s12008_s10 + $0x438] sm:$0xff] }
 0x653   :  { %v4510_v40 = vxor.u32 2147483648, %v5666_v23  ;;  %4982 = vmatpush2.msra.mxu0 %v4619_v21  ;;  %v4651_v21 = vld [vmem:[%s12008_s10 + $0x430] sm:$0xff] }
 0x654   :  { %v4514_v46 = vsel %vm4512_vm10, %v4513_v58, %v5666_v23  ;;  %4983 = vmatprep.subr.mxu0 %v4616_v37  ;;  %v4663_v23 = vld [vmem:[%s12008_s10 + $0x490] sm:$0xff]  ;;  %v5091_v58 = vld [vmem:[%s12010_s12 + $0x58] sm:$0xff] }
 0x655   :  { %v4511_v0 = vsel %vm4509_vm11, %v5664_v17, %v4510_v40  ;;  %4984 = vmatpush2.msra.mxu0 %v4615_v38  ;;  %v4664_v17 = vld [vmem:[%s12008_s10 + $0x498] sm:$0xff]  ;;  %v4655_v40 = vld [vmem:[%s12008_s10 + $0x450] sm:$0xff] }
 0x656   :  { %v4515_v3 = vsel %vm4508_vm13, %v4511_v0, %v4514_v46  ;;  %4985 = vmatprep.subr.mxu0 %v4612_v50  ;;  %v5089_v46 = vld [vmem:[%s12010_s12 + $0x48] sm:$0xff]  ;;  %v4648_v0 = vld [vmem:[%s12008_s10 + $0x418] sm:$0xff]  ;;  %v4647_v37 = vld [vmem:[%s12008_s10 + $0x410] sm:$0xff] }
 0x657   :  { %v4516_v12 = vsel %vm4505_vm14, nan, %v4515_v3  ;;  %4986 = vmatpush2.msra.mxu0 %v4611_v14  ;;  %v4772_v3 = vld [vmem:[%s12008_s10 + $0x7f8] sm:$0xff]  ;;  %v5085_v14 = vld [vmem:[%s12010_s12 + $0x28] sm:$0xff] }
 0x658   :  { %4930 = vmatprep.mubr.f32.mxu1 %v4516_v12  ;;  %4987 = vmatprep.subr.mxu0 %v4608_v15  ;;  %v5087_v38 = vld [vmem:[%s12010_s12 + $0x38] sm:$0xff] }
 0x659   :  { %4931 = vmatmul.mubr.f32.vlgmr.msra.gmra.mxu1 %v11473_v36  ;;  %4988 = vmatpush2.msra.mxu0 %v4607_v34  ;;  %v4768_v50 = vld [vmem:[%s12008_s10 + $0x7d8] sm:$0xff]  ;;  %v5084_v34 = vld [vmem:[%s12010_s12 + $0x20] sm:$0xff] }
 0x65a   :  { %5009 = vmatpush1.msra.mxu1 %v4707_v52  ;;  %5072 = vmatprep.mubr.f32.mxu1 %v4516_v12  ;;  %v4771_v12 = vld [vmem:[%s12008_s10 + $0x7f0] sm:$0xff]  ;;  %v4764_v15 = vld [vmem:[%s12008_s10 + $0x7b8] sm:$0xff] }
 0x65b   :  { %5010 = vmatprep.subr.mxu1 %v4704_v7  ;;  %4989 = vmatprep.subr.mxu0 %v4604_v33  ;;  %v5086_v52 = vld [vmem:[%s12010_s12 + $0x30] sm:$0xff] }
 0x65c   :  { %5011 = vmatpush1.msra.mxu1 %v4703_v9  ;;  %4990 = vmatpush2.msra.mxu0 %v4603_v22  ;;  %v4767_v7 = vld [vmem:[%s12008_s10 + $0x7d0] sm:$0xff]  ;;  %v4756_v22 = vld [vmem:[%s12008_s10 + $0x778] sm:$0xff] }
 0x65d   :  { %5012 = vmatprep.subr.mxu1 %v4700_v16  ;;  %4991 = vmatprep.subr.mxu0 %v4600_v45  ;;  %v4763_v9 = vld [vmem:[%s12008_s10 + $0x7b0] sm:$0xff]  ;;  %v4760_v16 = vld [vmem:[%s12008_s10 + $0x798] sm:$0xff] }
 0x65e   :  { %5013 = vmatpush1.msra.mxu1 %v4699_v24  ;;  %4992 = vmatpush2.msra.mxu0 %v4599_v62  ;;  %v4759_v33 = vld [vmem:[%s12008_s10 + $0x790] sm:$0xff]  ;;  %v5083_v24 = vld [vmem:[%s12010_s12 + $0x18] sm:$0xff] }
 0x65f   :  { %5014 = vmatprep.subr.mxu1 %v4696_v53  ;;  %4993 = vmatprep.subr.mxu0 %v4596_v28  ;;  %v4755_v53 = vld [vmem:[%s12008_s10 + $0x770] sm:$0xff]  ;;  %v4748_v28 = vld [vmem:[%s12008_s10 + $0x738] sm:$0xff] }
 0x660   :  { %5015 = vmatpush1.msra.mxu1 %v4695_v55  ;;  %4994 = vmatpush2.msra.mxu0 %v4595_v26  ;;  %v5082_v45 = vld [vmem:[%s12010_s12 + $0x10] sm:$0xff]  ;;  %v4752_v55 = vld [vmem:[%s12008_s10 + $0x758] sm:$0xff]  ;;  %v5080_v26 = vld [vmem:[%s12010_s12] sm:$0xff] }
 0x661   :  { %5016 = vmatprep.subr.mxu1 %v4692_v59  ;;  %4995 = vmatprep.subr.mxu0 %v4592_v11  ;;  %v4751_v62 = vld [vmem:[%s12008_s10 + $0x750] sm:$0xff]  ;;  %v5081_v59 = vld [vmem:[%s12010_s12 + $0x8] sm:$0xff]  ;;  %v5079_v11 = vld [vmem:[%s12011_s1] sm:$0xff] }
 0x662   :  { %5017 = vmatpush1.msra.mxu1 %v4691_v4  ;;  %4996 = vmatpush2.msra.mxu0 %v4591_v54  ;;  %v4747_v4 = vld [vmem:[%s12008_s10 + $0x730] sm:$0xff]  ;;  %v4740_v54 = vld [vmem:[%s12008_s10 + $0x6f8] sm:$0xff] }
 0x663   :  { %5018 = vmatprep.subr.mxu1 %v4688_v32  ;;  %4997 = vmatprep.subr.mxu0 %v4588_v61  ;;  %v4744_v32 = vld [vmem:[%s12008_s10 + $0x718] sm:$0xff] }
 0x664   :  { %5019 = vmatpush1.msra.mxu1 %v4687_v56  ;;  %4998 = vmatpush2.msra.mxu0 %v4587_v27  ;;  %v4743_v56 = vld [vmem:[%s12008_s10 + $0x710] sm:$0xff]  ;;  %v4736_v61 = vld [vmem:[%s12008_s10 + $0x6d8] sm:$0xff] }
 0x665   :  { %5020 = vmatprep.subr.mxu1 %v4684_v10  ;;  %4999 = vmatprep.subr.mxu0 %v4584_v29  ;;  %v4739_v10 = vld [vmem:[%s12008_s10 + $0x6f0] sm:$0xff]  ;;  %v4732_v27 = vld [vmem:[%s12008_s10 + $0x6b8] sm:$0xff] }
 0x666   :  { %5021 = vmatpush1.msra.mxu1 %v4683_v25  ;;  %5000 = vmatpush2.msra.mxu0 %v4583_v5  ;;  %v4735_v25 = vld [vmem:[%s12008_s10 + $0x6d0] sm:$0xff]  ;;  %v4728_v29 = vld [vmem:[%s12008_s10 + $0x698] sm:$0xff] }
 0x667   :  { %5022 = vmatprep.subr.mxu1 %v4680_v35  ;;  %5002 = vmatmul.mubr.f32.vlgmr.msra.gmra.mxu0 %v11284_v19  ;;  %v5093_v19 = vld [vmem:[%s12010_s12 + $0x68] sm:$0xff]  ;;  %v4731_v35 = vld [vmem:[%s12008_s10 + $0x6b0] sm:$0xff]  ;;  %v4724_v5 = vld [vmem:[%s12008_s10 + $0x678] sm:$0xff] }
 0x668   :  { %5023 = vmatpush1.msra.mxu1 %v4679_v30  ;;  %5496 = vmatprep.subr.mxu0 %v5681_v51  ;;  %v4727_v30 = vld [vmem:[%s12008_s10 + $0x690] sm:$0xff] }
 0x669   :  { %5024 = vmatprep.subr.mxu1 %v4676_v18  ;;  %5497 = vmatpush3.msra.mxu0 %v5095_v49  ;;  %v4723_v18 = vld [vmem:[%s12008_s10 + $0x670] sm:$0xff]  ;;  %v4720_v49 = vld [vmem:[%s12008_s10 + $0x658] sm:$0xff] }
 0x66a   :  { %5025 = vmatpush1.msra.mxu1 %v4675_v44  ;;  %5498 = vmatprep.subr.mxu0 %v5681_v51  ;;  %v4719_v44 = vld [vmem:[%s12008_s10 + $0x650] sm:$0xff] }
 0x66b   :  { %5026 = vmatprep.subr.mxu1 %v4672_v41  ;;  %5499 = vmatpush3.msra.mxu0 %v5094_v39  ;;  %v4716_v41 = vld [vmem:[%s12008_s10 + $0x638] sm:$0xff]  ;;  %v4715_v39 = vld [vmem:[%s12008_s10 + $0x630] sm:$0xff] }
 0x66c   :  { %5027 = vmatpush1.msra.mxu1 %v4671_v42  ;;  %5500 = vmatprep.subr.mxu0 %v5681_v51  ;;  %v4712_v42 = vld [vmem:[%s12008_s10 + $0x618] sm:$0xff] }
 0x66d   :  { %5028 = vmatprep.subr.mxu1 %v4668_v31  ;;  %5501 = vmatpush3.msra.mxu0 %v5093_v19  ;;  %v4711_v31 = vld [vmem:[%s12008_s10 + $0x610] sm:$0xff]  ;;  %v5235_v19 = vld [vmem:[%s12012_s14 + $0x1e8] sm:$0xff] }
 0x66e   :  { %5029 = vmatpush1.msra.mxu1 %v4667_v43  ;;  %5502 = vmatprep.subr.mxu0 %v5681_v51  ;;  %v5237_v43 = vld [vmem:[%s12012_s14 + $0x1f8] sm:$0xff] }
 0x66f   :  { %5030 = vmatprep.subr.mxu1 %v4664_v17  ;;  %5503 = vmatpush3.msra.mxu0 %v5092_v8  ;;  %v5234_v17 = vld [vmem:[%s12012_s14 + $0x1e0] sm:$0xff]  ;;  %v5233_v8 = vld [vmem:[%s12012_s14 + $0x1d8] sm:$0xff] }
 0x670   :  { %5031 = vmatpush1.msra.mxu1 %v4663_v23  ;;  %5504 = vmatprep.subr.mxu0 %v5681_v51  ;;  %v5230_v23 = vld [vmem:[%s12012_s14 + $0x1c0] sm:$0xff] }
 0x671   :  { %5032 = vmatprep.subr.mxu1 %v4660_v63  ;;  %5505 = vmatpush3.msra.mxu0 %v5091_v58  ;;  %v5232_v63 = vld [vmem:[%s12012_s14 + $0x1d0] sm:$0xff]  ;;  %v5227_v58 = vld [vmem:[%s12012_s14 + $0x1a8] sm:$0xff] }
 0x672   :  { %5033 = vmatpush1.msra.mxu1 %v4659_v13  ;;  %5506 = vmatprep.subr.mxu0 %v5681_v51  ;;  %v5229_v13 = vld [vmem:[%s12012_s14 + $0x1b8] sm:$0xff] }
 0x673   :  { %5034 = vmatprep.subr.mxu1 %v4656_v1  ;;  %5507 = vmatpush3.msra.mxu0 %v5090_v48  ;;  %v5226_v1 = vld [vmem:[%s12012_s14 + $0x1a0] sm:$0xff]  ;;  %v5228_v48 = vld [vmem:[%s12012_s14 + $0x1b0] sm:$0xff] }
 0x674   :  { %5035 = vmatpush1.msra.mxu1 %v4655_v40  ;;  %5508 = vmatprep.subr.mxu0 %v5681_v51  ;;  %v5223_v40 = vld [vmem:[%s12012_s14 + $0x188] sm:$0xff] }
 0x675   :  { %5036 = vmatprep.subr.mxu1 %v4652_v20  ;;  %5509 = vmatpush3.msra.mxu0 %v5089_v46  ;;  %v5225_v20 = vld [vmem:[%s12012_s14 + $0x198] sm:$0xff]  ;;  %v5222_v46 = vld [vmem:[%s12012_s14 + $0x180] sm:$0xff] }
 0x676   :  { %5037 = vmatpush1.msra.mxu1 %v4651_v21  ;;  %5510 = vmatprep.subr.mxu0 %v5681_v51  ;;  %v5224_v21 = vld [vmem:[%s12012_s14 + $0x190] sm:$0xff] }
 0x677   :  { %5038 = vmatprep.subr.mxu1 %v4648_v0  ;;  %5511 = vmatpush3.msra.mxu0 %v5088_v60  ;;  %v5219_v0 = vld [vmem:[%s12012_s14 + $0x168] sm:$0xff]  ;;  %v5221_v60 = vld [vmem:[%s12012_s14 + $0x178] sm:$0xff] }
 0x678   :  { %5039 = vmatpush1.msra.mxu1 %v4647_v37  ;;  %5512 = vmatprep.subr.mxu0 %v5681_v51  ;;  %v5218_v37 = vld [vmem:[%s12012_s14 + $0x160] sm:$0xff] }
 0x679   :  { %5040 = vmatprep.subr.mxu1 %v4772_v3  ;;  %5513 = vmatpush3.msra.mxu0 %v5087_v38  ;;  %v5220_v3 = vld [vmem:[%s12012_s14 + $0x170] sm:$0xff]  ;;  %v5215_v38 = vld [vmem:[%s12012_s14 + $0x148] sm:$0xff] }
 0x67a   :  { %5528 = vmatprep.mubr.msk.f32.mxu0 %vm5682_vm0, %v5681_v51  ;;  %5514 = vmatprep.subr.mxu0 %v5681_v51 }
 0x67b   :  { %5041 = vmatpush2.msra.mxu1 %v4771_v12  ;;  %5515 = vmatpush3.msra.mxu0 %v5086_v52  ;;  %v5217_v12 = vld [vmem:[%s12012_s14 + $0x158] sm:$0xff]  ;;  %v5214_v52 = vld [vmem:[%s12012_s14 + $0x140] sm:$0xff] }
 0x67c   :  { %5042 = vmatprep.subr.mxu1 %v4768_v50  ;;  %5516 = vmatprep.subr.mxu0 %v5681_v51  ;;  %v5216_v50 = vld [vmem:[%s12012_s14 + $0x150] sm:$0xff] }
 0x67d   :  { %5043 = vmatpush2.msra.mxu1 %v4767_v7  ;;  %5517 = vmatpush3.msra.mxu0 %v5085_v14  ;;  %v5211_v7 = vld [vmem:[%s12012_s14 + $0x128] sm:$0xff]  ;;  %v5213_v14 = vld [vmem:[%s12012_s14 + $0x138] sm:$0xff] }
 0x67e   :  { %5044 = vmatprep.subr.mxu1 %v4764_v15  ;;  %5518 = vmatprep.subr.mxu0 %v5681_v51  ;;  %v5210_v15 = vld [vmem:[%s12012_s14 + $0x120] sm:$0xff] }
 0x67f   :  { %5045 = vmatpush2.msra.mxu1 %v4763_v9  ;;  %5519 = vmatpush3.msra.mxu0 %v5084_v34  ;;  %v5212_v9 = vld [vmem:[%s12012_s14 + $0x130] sm:$0xff]  ;;  %v5207_v34 = vld [vmem:[%s12012_s14 + $0x108] sm:$0xff] }
 0x680   :  { %5046 = vmatprep.subr.mxu1 %v4760_v16  ;;  %5520 = vmatprep.subr.mxu0 %v5681_v51  ;;  %v5209_v16 = vld [vmem:[%s12012_s14 + $0x118] sm:$0xff] }
 0x681   :  { %5047 = vmatpush2.msra.mxu1 %v4759_v33  ;;  %5521 = vmatpush3.msra.mxu0 %v5083_v24  ;;  %v5206_v33 = vld [vmem:[%s12012_s14 + $0x100] sm:$0xff]  ;;  %v5208_v24 = vld [vmem:[%s12012_s14 + $0x110] sm:$0xff] }
 0x682   :  { %5048 = vmatprep.subr.mxu1 %v4756_v22  ;;  %5522 = vmatprep.subr.mxu0 %v5681_v51  ;;  %v5203_v22 = vld [vmem:[%s12012_s14 + $0xe8] sm:$0xff] }
 0x683   :  { %5049 = vmatpush2.msra.mxu1 %v4755_v53  ;;  %5523 = vmatpush3.msra.mxu0 %v5082_v45  ;;  %v5205_v53 = vld [vmem:[%s12012_s14 + $0xf8] sm:$0xff]  ;;  %v5202_v45 = vld [vmem:[%s12012_s14 + $0xe0] sm:$0xff] }
 0x684   :  { %5050 = vmatprep.subr.mxu1 %v4752_v55  ;;  %5524 = vmatprep.subr.mxu0 %v5681_v51  ;;  %v5204_v55 = vld [vmem:[%s12012_s14 + $0xf0] sm:$0xff] }
 0x685   :  { %5051 = vmatpush2.msra.mxu1 %v4751_v62  ;;  %5525 = vmatpush3.msra.mxu0 %v5081_v59  ;;  %v5199_v62 = vld [vmem:[%s12012_s14 + $0xc8] sm:$0xff]  ;;  %v5201_v59 = vld [vmem:[%s12012_s14 + $0xd8] sm:$0xff] }
 0x686   :  { %5052 = vmatprep.subr.mxu1 %v4748_v28  ;;  %5526 = vmatprep.subr.mxu0 %v5681_v51  ;;  %v5198_v28 = vld [vmem:[%s12012_s14 + $0xc0] sm:$0xff] }
 0x687   :  { %5053 = vmatpush2.msra.mxu1 %v4747_v4  ;;  %5527 = vmatpush3.msra.mxu0 %v5080_v26  ;;  %v5200_v4 = vld [vmem:[%s12012_s14 + $0xd0] sm:$0xff]  ;;  %v5195_v26 = vld [vmem:[%s12012_s14 + $0xa8] sm:$0xff] }
 0x688   :  { %5054 = vmatprep.subr.mxu1 %v4744_v32  ;;  %5529 = vmatmul.mubr.f32.vlgmr.msra.gmra.mxu0 %v5079_v11  ;;  %v5197_v32 = vld [vmem:[%s12012_s14 + $0xb8] sm:$0xff]  ;;  %v5194_v11 = vld [vmem:[%s12012_s14 + $0xa0] sm:$0xff] }
 0x689   :  { %5055 = vmatpush2.msra.mxu1 %v4743_v56  ;;  %5395 = vmatprep.mubr.f32.mxu0 %v5681_v51  ;;  %v5196_v56 = vld [vmem:[%s12012_s14 + $0xb0] sm:$0xff] }
 0x68a   :  { %5056 = vmatprep.subr.mxu1 %v4740_v54  ;;  %5331 = vmatprep.subr.mxu0 %v5237_v43  ;;  %v5191_v54 = vld [vmem:[%s12012_s14 + $0x88] sm:$0xff]  ;;  %v5177_v43 = vld [vmem:[%s12012_s14 + $0x18] sm:$0xff] }
 0x68b   :  { %5057 = vmatpush2.msra.mxu1 %v4739_v10  ;;  %v5193_v10 = vld [vmem:[%s12012_s14 + $0x98] sm:$0xff] }
 0x68c   :  { %5058 = vmatprep.subr.mxu1 %v4736_v61  ;;  %v5190_v61 = vld [vmem:[%s12012_s14 + $0x80] sm:$0xff] }
 0x68d   :  { %5059 = vmatpush2.msra.mxu1 %v4735_v25  ;;  %v5192_v25 = vld [vmem:[%s12012_s14 + $0x90] sm:$0xff] }
 0x68e   :  { %5060 = vmatprep.subr.mxu1 %v4732_v27  ;;  %v5187_v27 = vld [vmem:[%s12012_s14 + $0x68] sm:$0xff] }
 0x68f   :  { %5061 = vmatpush2.msra.mxu1 %v4731_v35  ;;  %v5189_v35 = vld [vmem:[%s12012_s14 + $0x78] sm:$0xff] }
 0x690   :  { %5062 = vmatprep.subr.mxu1 %v4728_v29  ;;  %v5186_v29 = vld [vmem:[%s12012_s14 + $0x60] sm:$0xff] }
 0x691   :  { %5063 = vmatpush2.msra.mxu1 %v4727_v30  ;;  %v5188_v30 = vld [vmem:[%s12012_s14 + $0x70] sm:$0xff] }
 0x692   :  { %5064 = vmatprep.subr.mxu1 %v4724_v5  ;;  %v5183_v5 = vld [vmem:[%s12012_s14 + $0x48] sm:$0xff] }
 0x693   :  { %5065 = vmatpush2.msra.mxu1 %v4723_v18  ;;  %v5185_v18 = vld [vmem:[%s12012_s14 + $0x58] sm:$0xff] }
 0x694   :  { %5066 = vmatprep.subr.mxu1 %v4720_v49  ;;  %v5182_v49 = vld [vmem:[%s12012_s14 + $0x40] sm:$0xff] }
 0x695   :  { %5067 = vmatpush2.msra.mxu1 %v4719_v44  ;;  %v5184_v44 = vld [vmem:[%s12012_s14 + $0x50] sm:$0xff] }
 0x696   :  { %5068 = vmatprep.subr.mxu1 %v4716_v41  ;;  %v5179_v41 = vld [vmem:[%s12012_s14 + $0x28] sm:$0xff] }
 0x697   :  { %5069 = vmatpush2.msra.mxu1 %v4715_v39  ;;  %v5181_v39 = vld [vmem:[%s12012_s14 + $0x38] sm:$0xff] }
 0x698   :  { %5070 = vmatprep.subr.mxu1 %v4712_v42  ;;  %v5178_v42 = vld [vmem:[%s12012_s14 + $0x20] sm:$0xff] }
 0x699   :  { %5071 = vmatpush2.msra.mxu1 %v4711_v31  ;;  %v5180_v31 = vld [vmem:[%s12012_s14 + $0x30] sm:$0xff] }
 0x69a   :  { %5073 = vmatmul.mubr.f32.vlgmr.msra.gmra.mxu1 %v11473_v36  ;;  %5260 = vmatprep.subr.mxu1 %v5235_v19  ;;  %v5236_v36 = vld [vmem:[%s12012_s14 + $0x1f0] sm:$0xff]  ;;  %v5175_v19 = vld [vmem:[%s12012_s14 + $0x8] sm:$0xff] }
 0x69b   :  { %5324 = vmatprep.mubr.f32.mxu1 %v5681_v51  ;;  %v5231_v51 = vld [vmem:[%s12012_s14 + $0x1c8] sm:$0xff]  ;;  %5261 = vmatpush1.msra.mxu1 %v5234_v17  ;;  %v5174_v17 = vld [vmem:[%s12012_s14] sm:$0xff] }
 0x69c   :  { %5332 = vmatpush1.msra.mxu0 %v5236_v36  ;;  %5262 = vmatprep.subr.mxu1 %v5231_v51  ;;  %v5176_v36 = vld [vmem:[%s12012_s14 + $0x10] sm:$0xff] }
 0x69d   :  { %5333 = vmatprep.subr.mxu0 %v5233_v8  ;;  %5263 = vmatpush1.msra.mxu1 %v5230_v23 }
 0x69e   :  { %5334 = vmatpush1.msra.mxu0 %v5232_v63  ;;  %5264 = vmatprep.subr.mxu1 %v5227_v58  ;;  %v5478_v58 = vld [vmem:[%s12013_s13] ss:$0 sm:$0xff] }
 0x69f   :  { %5335 = vmatprep.subr.mxu0 %v5229_v13  ;;  %5265 = vmatpush1.msra.mxu1 %v5226_v1 }
 0x6a0   :  { %5336 = vmatpush1.msra.mxu0 %v5228_v48  ;;  %5266 = vmatprep.subr.mxu1 %v5223_v40 }
 0x6a1   :  { %5337 = vmatprep.subr.mxu0 %v5225_v20  ;;  %5267 = vmatpush1.msra.mxu1 %v5222_v46  ;;  %v4773_v46 = vld [vmem:[%s12014_s11] sm:$0xf] }
 0x6a2   :  { %5338 = vmatpush1.msra.mxu0 %v5224_v21  ;;  %5268 = vmatprep.subr.mxu1 %v5219_v0 }
 0x6a3   :  { %5339 = vmatprep.subr.mxu0 %v5221_v60  ;;  %5269 = vmatpush1.msra.mxu1 %v5218_v37  ;;  %v5238_v60 = vld [vmem:[%s12015_s15] sm:$0xf]  ;;  %v4778_v37 = vrot.slane %v4773_v46, %v7499_v2 }
 0x6a4   :  { %5340 = vmatpush1.msra.mxu0 %v5220_v3  ;;  %5270 = vmatprep.subr.mxu1 %v5215_v38  ;;  %v4786_v3 = vrot.slane %v4773_v46, %v7937_v57  ;;  %v4782_v38 = vrot.slane %v4773_v46, %v7513_v6 }
 0x6a5   :  { %5341 = vmatprep.subr.mxu0 %v5217_v12  ;;  %5271 = vmatpush1.msra.mxu1 %v5214_v52  ;;  %v4790_v12 = vrot.slane %v4773_v46, %v7946_v47  ;;  %v5243_v52 = vrot.slane %v5238_v60, %v7499_v2 }
 0x6a6   :  { %5342 = vmatpush1.msra.mxu0 %v5216_v50  ;;  %5272 = vmatprep.subr.mxu1 %v5211_v7  ;;  %v5251_v50 = vrot.slane %v5238_v60, %v7937_v57 }
 0x6a7   :  { %5343 = vmatprep.subr.mxu0 %v5213_v14  ;;  %5273 = vmatpush1.msra.mxu1 %v5210_v15 }
 0x6a8   :  { %5344 = vmatpush1.msra.mxu0 %v5212_v9  ;;  %5274 = vmatprep.subr.mxu1 %v5207_v34  ;;  %v5247_v9 = vrot.slane %v5238_v60, %v7513_v6  ;;  %v5255_v34 = vrot.slane %v5238_v60, %v7946_v47 }
 0x6a9   :  { %5345 = vmatprep.subr.mxu0 %v5209_v16  ;;  %5275 = vmatpush1.msra.mxu1 %v5206_v33 }
 0x6aa   :  { %5346 = vmatpush1.msra.mxu0 %v5208_v24  ;;  %5276 = vmatprep.subr.mxu1 %v5203_v22 }
 0x6ab   :  { %5347 = vmatprep.subr.mxu0 %v5205_v53  ;;  %5277 = vmatpush1.msra.mxu1 %v5202_v45 }
 0x6ac   :  { %5348 = vmatpush1.msra.mxu0 %v5204_v55  ;;  %5278 = vmatprep.subr.mxu1 %v5199_v62 }
 0x6ad   :  { %5349 = vmatprep.subr.mxu0 %v5201_v59  ;;  %5279 = vmatpush1.msra.mxu1 %v5198_v28 }
 0x6ae   :  { %5350 = vmatpush1.msra.mxu0 %v5200_v4  ;;  %5280 = vmatprep.subr.mxu1 %v5195_v26 }
 0x6af   :  { %5351 = vmatprep.subr.mxu0 %v5197_v32  ;;  %5281 = vmatpush1.msra.mxu1 %v5194_v11 }
 0x6b0   :  { %5352 = vmatpush1.msra.mxu0 %v5196_v56  ;;  %5282 = vmatprep.subr.mxu1 %v5191_v54 }
 0x6b1   :  { %5353 = vmatprep.subr.mxu0 %v5193_v10  ;;  %5283 = vmatpush1.msra.mxu1 %v5190_v61 }
 0x6b2   :  { %5354 = vmatpush1.msra.mxu0 %v5192_v25  ;;  %5284 = vmatprep.subr.mxu1 %v5187_v27 }
 0x6b3   :  { %5355 = vmatprep.subr.mxu0 %v5189_v35  ;;  %5285 = vmatpush1.msra.mxu1 %v5186_v29 }
 0x6b4   :  { %5356 = vmatpush1.msra.mxu0 %v5188_v30  ;;  %5286 = vmatprep.subr.mxu1 %v5183_v5 }
 0x6b5   :  { %5357 = vmatprep.subr.mxu0 %v5185_v18  ;;  %5287 = vmatpush1.msra.mxu1 %v5182_v49 }
 0x6b6   :  { %5358 = vmatpush1.msra.mxu0 %v5184_v44  ;;  %5288 = vmatprep.subr.mxu1 %v5179_v41 }
 0x6b7   :  { %5359 = vmatprep.subr.mxu0 %v5181_v39  ;;  %5289 = vmatpush1.msra.mxu1 %v5178_v42 }
 0x6b8   :  { %5360 = vmatpush1.msra.mxu0 %v5180_v31  ;;  %5290 = vmatprep.subr.mxu1 %v5175_v19 }
 0x6b9   :  { %5361 = vmatprep.subr.mxu0 %v5177_v43  ;;  %5291 = vmatpush1.msra.mxu1 %v5174_v17 }
 0x6ba   :  { %5362 = vmatpush1.msra.mxu0 %v5176_v36 }
 0x6e6   :  { %v4861_v51 = vpop.f32.mrf.mxu0 }
 0x6e7   :  { %v4862_v14 = vadd.f32 %v4861_v51, %v4778_v37 }
 0x6e8   :  { %v4863_v8 = vpop.f32.mrf.mxu0 }
 0x6e9   :  { %v4864_v16 = vadd.f32 %v4863_v8, %v4782_v38 }
 0x719   :  { %v4932_v20 = vpop.f32.mrf.mxu1 }
 0x71a   :  { %v4933_v53 = vadd.f32 %v4932_v20, %v4862_v14 }
 0x71b   :  { %v4934_v21 = vpop.f32.mrf.mxu1 }
 0x71c   :  { %v4935_v59 = vadd.f32 %v4934_v21, %v4864_v16 }
 0x727   :  { %v5003_v23 = vpop.f32.mrf.mxu0 }
 0x728   :  { %v5004_v15 = vadd.f32 %v5003_v23, %v4786_v3 }
 0x729   :  { %v5005_v63 = vpop.f32.mrf.mxu0 }
 0x72a   :  { %v5006_v33 = vadd.f32 %v5005_v63, %v4790_v12 }
 0x748   :  { %v5169_v13 = vpop.f32.mrf.mxu0 }
 0x749   :  { %v5170_v1 = vadd.f32 %v5478_v58, %v5169_v13 }
 0x74a   :  { %v5530_v48 = vpop.f32.mrf.mxu0 }
 0x74b   :  { %v5173_v40 = vmax.f32 %v5170_v1, 0.0 }
 0x74d   :  { %5325 = vmatmul.mubr.f32.vlgmr.msra.gmra.mxu1 %v5173_v40  ;;  %5396 = vmatmul.mubr.f32.vlgmr.msra.gmra.mxu0 %v5173_v40 }
 0x75a   :  { %v5074_v0 = vpop.f32.mrf.mxu1 }
 0x75b   :  { %v5075_v45 = vadd.f32 %v5074_v0, %v5004_v15 }
 0x75c   :  { %v5076_v7 = vpop.f32.mrf.mxu1 }
 0x75d   :  { %v5077_v28 = vadd.f32 %v5076_v7, %v5006_v33 }
 0x80d   :  { %v5326_v24 = vpop.f32.mrf.mxu1  ;;  %v5397_v22 = vpop.f32.mrf.mxu0 }
 0x80e   :  { %v5327_v55 = vadd.f32 %v5326_v24, %v5243_v52  ;;  %v5398_v62 = vadd.f32 %v5397_v22, %v5251_v50 }
 0x80f   :  { %v5328_v2 = vpop.f32.mrf.mxu1  ;;  %v5399_v4 = vpop.f32.mrf.mxu0 }
 0x810   :  { %v5402_v57 = vadd.f32 %v5327_v55, %v4933_v53  ;;  %v5404_v26 = vadd.f32 %v5398_v62, %v5075_v45  ;;  %v5329_v32 = vadd.f32 %v5328_v2, %v5247_v9  ;;  %v5400_v11 = vadd.f32 %v5399_v4, %v5255_v34 }
 0x812   :  { %5406 = vst [vmem:[%s12016_s16] sm:$0xff] %v5402_v57  ;;  %5408 = vst [vmem:[%s12016_s16 + $0x10] sm:$0xff] %v5404_v26  ;;  %v5403_v6 = vadd.f32 %v5329_v32, %v4935_v59  ;;  %v5405_v47 = vadd.f32 %v5400_v11, %v5077_v28 }
 0x814   :  { %5407 = vst [vmem:[%s12016_s16 + $0x8] sm:$0xff] %v5403_v6  ;;  %5409 = vst [vmem:[%s12016_s16 + $0x18] sm:$0xff] %v5405_v47 }

</bundles_post_ra>
